<compile_context>
chip_gen: v6e
topology: v6e:2x2x1
jax: 0.10.0
libtpu: 0.0.40
codegen_flags: <defaults>
</compile_context>

<pallas_src>
import jax
import jax.numpy as jnp
from jax.experimental import pallas as pl
from jax.experimental.pallas import tpu as pltpu


_FULL_UNROLL_MAX_T = 32      # fully unroll the time loop (static addresses) below this


def _round_up(x, m):
    return (x + m - 1) // m * m


def _proj_chunk_len(T, Bp):
    # Rows per input-projection matmul chunk: aim for ~512 MXU rows per call.
    return max(1, min(T, 512 // Bp))


def _bigru_kernel(x_ref, h0_ref, wih_ref, whh_ref, bih_ref, bhh_ref,
                  out_ref, hn_ref, gi_ref):
    """Merged bidirectional GRU: both directions in one serial loop.

    x_ref:   (T*Bp, Hp)     time-major embedded inputs (row = t*Bp + b)
    h0_ref:  (2, Bp, Hp)    initial hidden (f32), [0]=fwd, [1]=rev
    wih_ref: (Hp, 6Hp)      [W_ih_fwd^T | W_ih_rev^T], per-gate padded
    whh_ref: (2Hp, 6Hp)     block-diag [[W_hh_fwd^T, 0], [0, W_hh_rev^T]]
    bih_ref: (1, 6Hp)       input biases  (f32)
    bhh_ref: (1, 6Hp)       hidden biases (f32)
    out_ref: (T, Bp, 2Hp)   time-major output (f32); fwd lanes [0,Hp), rev [Hp,2Hp)
    hn_ref:  (2, Bp, Hp)    final hidden per direction (f32)
    gi_ref:  (T*Bp, 6Hp)    scratch: hoisted input projection (+ b_ih)
    """
    T, Bp, two_hp = out_ref.shape
    Hp = two_hp // 2
    G = 3 * Hp                       # per-direction gate width
    f32 = jnp.float32
    mm_dtype = wih_ref.dtype         # matmul operand dtype (f32 or bf16)

    # ---- 1) Input projection for BOTH directions, chunked over T ------------
    wih = wih_ref[...]
    bih = bih_ref[...].astype(f32)                      # (1, 6Hp)
    tc = _proj_chunk_len(T, Bp)

    def project(t0, n):                                 # static t0, n (Python ints)
        r0, nr = t0 * Bp, n * Bp
        xc = x_ref[r0:r0 + nr, :]
        gic = jnp.dot(xc, wih, preferred_element_type=f32) + bih
        gi_ref[r0:r0 + nr, :] = gic.astype(gi_ref.dtype)

    for c in range(T // tc):
        project(c * tc, tc)
    rem = T % tc
    if rem:
        project(T - rem, rem)

    # ---- 2) Serial recurrence, both directions interleaved ------------------
    whh = whh_ref[...]                                  # (2Hp, 6Hp) block-diag
    bhh = jnp.broadcast_to(bhh_ref[...].astype(f32), (Bp, 2 * G))   # hoisted

    def gru_cell(gi, gh, h_prev):                       # all f32, (Bp, 3Hp)/(Bp, Hp)
        r = jax.nn.sigmoid(gi[:, :Hp] + gh[:, :Hp])
        z = jax.nn.sigmoid(gi[:, Hp:2 * Hp] + gh[:, Hp:2 * Hp])
        n = jnp.tanh(gi[:, 2 * Hp:] + r * gh[:, 2 * Hp:])
        return (1.0 - z) * n + z * h_prev

    def load_gi(t, lo):
        start = t * Bp
        if not isinstance(t, int):                      # fori path: hint alignment
            start = pl.multiple_of(start, Bp)
        return gi_ref[pl.ds(start, Bp), lo:lo + G].astype(f32)

    def one_step(t_f, t_r, h_f, h_r):
        # Block-diagonal recurrent matmul: K = 2*Hp fills the 256-deep MXU, and
        # the two directions' gate math / EUP work overlap (independent chains).
        h_cat = jnp.concatenate([h_f, h_r], axis=-1)    # (Bp, 2Hp) f32
        gh = jnp.dot(h_cat.astype(mm_dtype), whh,
                     preferred_element_type=f32) + bhh  # (Bp, 6Hp) f32
        gi_f = load_gi(t_f, 0)
        gi_r = load_gi(t_r, G)
        h_f = gru_cell(gi_f, gh[:, :G], h_f)
        h_r = gru_cell(gi_r, gh[:, G:], h_r)
        # Time-major stores: each is a full (Bp, Hp) tile -> dense vst, no
        # 1-sublane masked scatters inside the latency-bound loop.
        out_ref[t_f, :, :Hp] = h_f.astype(out_ref.dtype)
        out_ref[t_r, :, Hp:] = h_r.astype(out_ref.dtype)
        return h_f, h_r

    h_f = h0_ref[0].astype(f32)
    h_r = h0_ref[1].astype(f32)

    if T <= _FULL_UNROLL_MAX_T:
        # Fully unrolled: every time index / address is a compile-time constant.
        for s in range(T):
            h_f, h_r = one_step(s, T - 1 - s, h_f, h_r)
    else:
        # Unroll factor tied to Hp so the unrolled live set stays in the vreg file.
        unroll = 8 if Hp <= 128 else (4 if Hp <= 256 else 2)

        def body(s, carry):
            return one_step(s, T - 1 - s, *carry)

        h_f, h_r = jax.lax.fori_loop(0, T, body, (h_f, h_r), unroll=unroll)

    hn_ref[0] = h_f.astype(hn_ref.dtype)
    hn_ref[1] = h_r.astype(hn_ref.dtype)


def encoder_rnn_forward(input_ids, hidden, params, *, matmul_dtype=jnp.float32):
    """Mirrors EncoderRNN.forward(input, hidden).

    input_ids: (B, T) int32 token ids
    hidden:    (2, B, H) float32 initial hidden state (num_directions=2)
    returns:   output (B, T, 2H), h_n (2, B, H)   -- same as nn.GRU(batch_first=True)

    matmul_dtype: jnp.float32 (matches PyTorch numerics) or jnp.bfloat16
                  (only matmul operands / gi storage are cast; the carried hidden
                  state and all gate math stay f32 -> recommended on v6e / v7x).
    """
    emb = params["embedding"]      # (V, H)
    wih = params["wih"]            # (2, 3H, H)   PyTorch weight_ih_l0 / _reverse
    whh = params["whh"]            # (2, 3H, H)
    bih = params["bih"]            # (2, 3H)
    bhh = params["bhh"]            # (2, 3H)

    B, T = input_ids.shape
    H = emb.shape[1]
    Hp = _round_up(H, 128)         # lane-dense hidden padding
    Bp = _round_up(B, 8)           # sublane batch padding
    G = 3 * Hp

    # ---- one-time parameter packing (in production, cache this) ------------
    def pack_ih(w):                # (2, 3H, H) -> (Hp, 6Hp): [W_fwd^T | W_rev^T]
        w = w.reshape(2, 3, H, H)                       # [dir, gate, out, in]
        w = jnp.transpose(w, (3, 0, 1, 2))              # [in, dir, gate, out]
        w = jnp.pad(w, ((0, Hp - H), (0, 0), (0, 0), (0, Hp - H)))
        return w.reshape(Hp, 2 * G).astype(matmul_dtype)

    def pack_hh(w):                # (2, 3H, H) -> (2Hp, 6Hp) block-diagonal
        w = w.reshape(2, 3, H, H)
        w = jnp.transpose(w, (0, 3, 1, 2))              # [dir, in, gate, out]
        w = jnp.pad(w, ((0, 0), (0, Hp - H), (0, 0), (0, Hp - H)))
        w = w.reshape(2, Hp, G).astype(jnp.float32)
        z = jnp.zeros((Hp, G), jnp.float32)
        top = jnp.concatenate([w[0], z], axis=1)
        bot = jnp.concatenate([z, w[1]], axis=1)
        return jnp.concatenate([top, bot], axis=0).astype(matmul_dtype)

    def pack_b(b):                 # (2, 3H) -> (1, 6Hp)
        b = b.reshape(2, 3, H)
        b = jnp.pad(b, ((0, 0), (0, 0), (0, Hp - H)))
        return b.reshape(1, 2 * G).astype(jnp.float32)

    wih_p, whh_p = pack_ih(wih), pack_hh(whh)
    bih_p, bhh_p = pack_b(bih), pack_b(bhh)

    # Embedding gather directly in time-major row order (only the int ids are
    # transposed / flattened, never the activations).
    emb_p = jnp.pad(emb.astype(matmul_dtype), ((0, 0), (0, Hp - H)))
    ids_p = jnp.pad(input_ids, ((0, Bp - B), (0, 0)))   # padded batch rows sliced off later
    x_2d = emb_p[ids_p.T.reshape(-1)]                   # (T*Bp, Hp), row = t*Bp + b

    h0_p = jnp.pad(hidden.astype(jnp.float32),
                   ((0, 0), (0, Bp - B), (0, Hp - H)))  # (2, Bp, Hp)

    # ---- footprint-derived VMEM limit (no hard-coded 32 MiB) ---------------
    mmb = jnp.dtype(matmul_dtype).itemsize
    tc = _proj_chunk_len(T, Bp)
    footprint = (T * Bp * Hp * mmb                # x
                 + T * Bp * 2 * G * mmb           # gi scratch
                 + T * Bp * 2 * Hp * 4            # out (time-major, f32)
                 + 3 * Hp * 2 * G * mmb           # W_ih + block-diag W_hh
                 + 4 * Bp * Hp * 4                # h0 + h_n
                 + 2 * tc * Bp * 2 * G * 4)       # projection temporaries (est.)
    # Cap at 64 MiB (v7x per-TC VMEM); bigger footprints need the streaming TODO.
    vmem_limit = int(min(max(32 << 20, 2 * footprint), 64 << 20))

    cost = pl.CostEstimate(
        flops=(2 * T * Bp * Hp * 2 * G            # input projection
               + 2 * T * Bp * 2 * Hp * 2 * G      # recurrent block-diag matmul
               + 30 * T * Bp * Hp),               # gate arithmetic (both dirs)
        transcendentals=6 * T * Bp * Hp,
        bytes_accessed=(T * Bp * Hp * mmb + 3 * Hp * 2 * G * mmb + 2 * 2 * G * 4
                        + 4 * Bp * Hp * 4 + T * Bp * 2 * Hp * 4))

    vmem_spec = lambda: pl.BlockSpec(memory_space=pltpu.MemorySpace.VMEM)

    out_tm, hn_p = pl.pallas_call(
        _bigru_kernel,
        out_shape=(
            jax.ShapeDtypeStruct((T, Bp, 2 * Hp), jnp.float32),   # time-major
            jax.ShapeDtypeStruct((2, Bp, Hp), jnp.float32),
        ),
        in_specs=[vmem_spec() for _ in range(6)],
        out_specs=(vmem_spec(), vmem_spec()),
        scratch_shapes=[pltpu.VMEM((T * Bp, 2 * G), matmul_dtype)],
        compiler_params=pltpu.CompilerParams(vmem_limit_bytes=vmem_limit),
        cost_estimate=cost,
    )(x_2d, h0_p, wih_p, whh_p, bih_p, bhh_p)

    # Single XLA pass over the output: batch_first relayout + strip padding
    # (outside the latency-bound serial loop).
    out_bt = jnp.transpose(out_tm, (1, 0, 2))[:B]       # (B, T, 2Hp)
    if Hp == H:
        output = out_bt
    else:
        output = jnp.concatenate([out_bt[:, :, :H], out_bt[:, :, Hp:Hp + H]],
                                 axis=-1)
    h_n = hn_p[:, :B, :H]
    return output, h_n


# --------------------------- pure-JAX reference ------------------------------

def _gru_dir_ref(x_tm, h0, w_ih, w_hh, b_ih, b_hh, reverse):
    """Single-direction GRU reference (PyTorch semantics)."""
    H = h0.shape[-1]

    def step(h, x_t):
        gi = x_t @ w_ih.T + b_ih
        gh = h @ w_hh.T + b_hh
        r = jax.nn.sigmoid(gi[:, :H] + gh[:, :H])
        z = jax.nn.sigmoid(gi[:, H:2 * H] + gh[:, H:2 * H])
        n = jnp.tanh(gi[:, 2 * H:] + r * gh[:, 2 * H:])
        h_new = (1.0 - z) * n + z * h
        return h_new, h_new

    xs = x_tm[::-1] if reverse else x_tm
    h_last, ys = jax.lax.scan(step, h0, xs)
    if reverse:
        ys = ys[::-1]
    return ys, h_last


def encoder_rnn_reference(input_ids, hidden, params):
    emb = params["embedding"][input_ids]                 # (B, T, H)
    x_tm = jnp.transpose(emb, (1, 0, 2))                 # (T, B, H)
    wih, whh, bih, bhh = params["wih"], params["whh"], params["bih"], params["bhh"]
    out_f, h_f = _gru_dir_ref(x_tm, hidden[0], wih[0], whh[0], bih[0], bhh[0], False)
    out_r, h_r = _gru_dir_ref(x_tm, hidden[1], wih[1], whh[1], bih[1], bhh[1], True)
    output = jnp.transpose(jnp.concatenate([out_f, out_r], axis=-1), (1, 0, 2))
    h_n = jnp.stack([h_f, h_r], axis=0)
    return output, h_n


def init_params(key, vocab_size, hidden_size):
    H = hidden_size
    k = 1.0 / jnp.sqrt(jnp.float32(H))
    ks = jax.random.split(key, 9)
    emb = jax.random.normal(ks[0], (vocab_size, H), jnp.float32)
    emb = emb.at[0].set(0.0)  # padding_idx=0 row is zero
    u = lambda kk, shape: jax.random.uniform(kk, shape, jnp.float32, -k, k)
    # PyTorch GRU param shapes: weight_ih/hh (3H, H), bias_ih/hh (3H,), x2 directions
    wih = jnp.stack([u(ks[1], (3 * H, H)), u(ks[2], (3 * H, H))])   # (2, 3H, H)
    whh = jnp.stack([u(ks[3], (3 * H, H)), u(ks[4], (3 * H, H))])   # (2, 3H, H)
    bih = jnp.stack([u(ks[5], (3 * H,)), u(ks[6], (3 * H,))])       # (2, 3H)
    bhh = jnp.stack([u(ks[7], (3 * H,)), u(ks[8], (3 * H,))])       # (2, 3H)
    return {"embedding": emb, "wih": wih, "whh": whh, "bih": bih, "bhh": bhh}


if __name__ == "__main__":
    VOCAB, H, B, T = 50, 32, 2, 8

    key = jax.random.PRNGKey(0)
    k_par, k_ids, k_h0 = jax.random.split(key, 3)

    params = init_params(k_par, VOCAB, H)
    input_ids = jax.random.randint(k_ids, (B, T), 0, VOCAB, dtype=jnp.int32)
    hidden = jax.random.normal(k_h0, (2, B, H), jnp.float32)

    ref_out, ref_hn = encoder_rnn_reference(input_ids, hidden, params)

    # f32 path (default): matches the PyTorch / f32 reference tightly.
    output, h_n = jax.block_until_ready(
        encoder_rnn_forward(input_ids, hidden, params))
    assert output.shape == (B, T, 2 * H)
    assert h_n.shape == (2, B, H)
    assert jnp.allclose(output, ref_out, atol=1e-3, rtol=1e-3)
    assert jnp.allclose(h_n, ref_hn, atol=1e-3, rtol=1e-3)

    # bf16 matmul-operand path (recommended on v6e/v7x): sanity-check vs f32 ref.
    out_bf, hn_bf = jax.block_until_ready(
        encoder_rnn_forward(input_ids, hidden, params,
                            matmul_dtype=jnp.bfloat16))
    rel_out = jnp.linalg.norm(out_bf - ref_out) / jnp.linalg.norm(ref_out)
    rel_hn = jnp.linalg.norm(hn_bf - ref_hn) / jnp.linalg.norm(ref_hn)
    assert out_bf.shape == (B, T, 2 * H) and hn_bf.shape == (2, B, H)
    assert float(rel_out) < 0.1 and float(rel_hn) < 0.1

    print("KERNEL_OK")
</pallas_src>

<mosaic_0001>
module attributes {stable_mosaic.version = 11 : i64} {
  func.func @_bigru_kernel(%arg0: memref<64x128xf32, #tpu.memory_space<vmem>>, %arg1: memref<2x8x128xf32, #tpu.memory_space<vmem>>, %arg2: memref<128x768xf32, #tpu.memory_space<vmem>>, %arg3: memref<256x768xf32, #tpu.memory_space<vmem>>, %arg4: memref<1x768xf32, #tpu.memory_space<vmem>>, %arg5: memref<1x768xf32, #tpu.memory_space<vmem>>, %arg6: memref<8x8x256xf32, #tpu.memory_space<vmem>>, %arg7: memref<2x8x128xf32, #tpu.memory_space<vmem>>, %arg8: memref<64x768xf32, #tpu.memory_space<vmem>>) attributes {dimension_semantics = [], scalar_prefetch = 0 : i64, scratch_operands = 1 : i64, tpu.core_type = #tpu.core_type<tc>} {
    %c0 = arith.constant 0 : index
    %c0_0 = arith.constant 0 : index
    %0 = vector.load %arg2[%c0, %c0_0] : memref<128x768xf32, #tpu.memory_space<vmem>>, vector<128x768xf32>
    %c0_1 = arith.constant 0 : index
    %c0_2 = arith.constant 0 : index
    %1 = vector.load %arg4[%c0_1, %c0_2] : memref<1x768xf32, #tpu.memory_space<vmem>>, vector<1x768xf32>
    %c0_3 = arith.constant 0 : index
    %c0_4 = arith.constant 0 : index
    %2 = vector.load %arg0[%c0_3, %c0_4] : memref<64x128xf32, #tpu.memory_space<vmem>>, vector<64x128xf32>
    %cst = arith.constant dense<0.000000e+00> : vector<64x768xf32>
    %3 = tpu.matmul %2, %0, %cst {dimension_numbers = #tpu.dot_dimension_numbers<[1], [0], [0], [1], [0, 0, 1, 1], [], []>} : vector<64x128xf32>, vector<128x768xf32>, vector<64x768xf32> -> vector<64x768xf32>
    %4 = vector.broadcast %1 : vector<1x768xf32> to vector<64x768xf32>
    %5 = arith.addf %3, %4 : vector<64x768xf32>
    %c0_5 = arith.constant 0 : index
    %c0_6 = arith.constant 0 : index
    %6 = vector.load %arg8[%c0_5, %c0_6] : memref<64x768xf32, #tpu.memory_space<vmem>>, vector<64x768xf32>
    tpu.vector_store %arg8[%c0_5, %c0_6], %5 {strides = array<i32>} : memref<64x768xf32, #tpu.memory_space<vmem>>, vector<64x768xf32>,
    %c0_7 = arith.constant 0 : index
    %c0_8 = arith.constant 0 : index
    %7 = vector.load %arg3[%c0_7, %c0_8] : memref<256x768xf32, #tpu.memory_space<vmem>>, vector<256x768xf32>
    %c0_9 = arith.constant 0 : index
    %c0_10 = arith.constant 0 : index
    %8 = vector.load %arg5[%c0_9, %c0_10] : memref<1x768xf32, #tpu.memory_space<vmem>>, vector<1x768xf32>
    %9 = vector.shape_cast %8 : vector<1x768xf32> to vector<1x768xf32>
    %10 = vector.broadcast %9 : vector<1x768xf32> to vector<8x768xf32>
    %c0_11 = arith.constant 0 : index
    %c0_12 = arith.constant 0 : index
    %c0_13 = arith.constant 0 : index
    %11 = vector.load %arg1[%c0_11, %c0_12, %c0_13] : memref<2x8x128xf32, #tpu.memory_space<vmem>>, vector<1x8x128xf32>
    %12 = vector.shape_cast %11 : vector<1x8x128xf32> to vector<8x128xf32>
    %c1 = arith.constant 1 : index
    %c0_14 = arith.constant 0 : index
    %c0_15 = arith.constant 0 : index
    %13 = vector.load %arg1[%c1, %c0_14, %c0_15] : memref<2x8x128xf32, #tpu.memory_space<vmem>>, vector<1x8x128xf32>
    %14 = vector.shape_cast %13 : vector<1x8x128xf32> to vector<8x128xf32>
    %15 = tpu.concatenate %12, %14 in 1 : vector<8x128xf32>, vector<8x128xf32> -> vector<8x256xf32>
    %cst_16 = arith.constant dense<0.000000e+00> : vector<8x768xf32>
    %16 = tpu.matmul %15, %7, %cst_16 {dimension_numbers = #tpu.dot_dimension_numbers<[1], [0], [0], [1], [0, 0, 1, 1], [], []>} : vector<8x256xf32>, vector<256x768xf32>, vector<8x768xf32> -> vector<8x768xf32>
    %17 = arith.addf %16, %10 : vector<8x768xf32>
    %c0_17 = arith.constant 0 : index
    %c0_18 = arith.constant 0 : index
    %18 = vector.load %arg8[%c0_17, %c0_18] : memref<64x768xf32, #tpu.memory_space<vmem>>, vector<8x384xf32>
    %c56 = arith.constant 56 : index
    %c384 = arith.constant 384 : index
    %19 = vector.load %arg8[%c56, %c384] : memref<64x768xf32, #tpu.memory_space<vmem>>, vector<8x384xf32>
    %20 = vector.extract_strided_slice %17 {offsets = [0, 0], sizes = [8, 384], strides = [1, 1]} : vector<8x768xf32> to vector<8x384xf32>
    %21 = vector.extract_strided_slice %18 {offsets = [0, 0], sizes = [8, 128], strides = [1, 1]} : vector<8x384xf32> to vector<8x128xf32>
    %22 = vector.extract_strided_slice %20 {offsets = [0, 0], sizes = [8, 128], strides = [1, 1]} : vector<8x384xf32> to vector<8x128xf32>
    %23 = arith.addf %21, %22 : vector<8x128xf32>
    %24 = arith.negf %23 : vector<8x128xf32>
    %25 = math.exp %24 : vector<8x128xf32>
    %cst_19 = arith.constant 1.000000e+00 : f32
    %26 = vector.broadcast %cst_19 : f32 to vector<8x128xf32>
    %27 = arith.addf %26, %25 : vector<8x128xf32>
    %28 = arith.divf %26, %27 : vector<8x128xf32>
    %29 = vector.extract_strided_slice %18 {offsets = [0, 128], sizes = [8, 128], strides = [1, 1]} : vector<8x384xf32> to vector<8x128xf32>
    %30 = vector.extract_strided_slice %20 {offsets = [0, 128], sizes = [8, 128], strides = [1, 1]} : vector<8x384xf32> to vector<8x128xf32>
    %31 = arith.addf %29, %30 : vector<8x128xf32>
    %32 = arith.negf %31 : vector<8x128xf32>
    %33 = math.exp %32 : vector<8x128xf32>
    %cst_20 = arith.constant 1.000000e+00 : f32
    %34 = vector.broadcast %cst_20 : f32 to vector<8x128xf32>
    %35 = arith.addf %34, %33 : vector<8x128xf32>
    %36 = arith.divf %34, %35 : vector<8x128xf32>
    %37 = vector.extract_strided_slice %18 {offsets = [0, 256], sizes = [8, 128], strides = [1, 1]} : vector<8x384xf32> to vector<8x128xf32>
    %38 = vector.extract_strided_slice %20 {offsets = [0, 256], sizes = [8, 128], strides = [1, 1]} : vector<8x384xf32> to vector<8x128xf32>
    %39 = arith.mulf %28, %38 : vector<8x128xf32>
    %40 = arith.addf %37, %39 : vector<8x128xf32>
    %41 = math.tanh %40 : vector<8x128xf32>
    %cst_21 = arith.constant 1.000000e+00 : f32
    %42 = vector.broadcast %cst_21 : f32 to vector<8x128xf32>
    %43 = arith.subf %42, %36 : vector<8x128xf32>
    %44 = arith.mulf %43, %41 : vector<8x128xf32>
    %45 = arith.mulf %36, %12 : vector<8x128xf32>
    %46 = arith.addf %44, %45 : vector<8x128xf32>
    %47 = vector.extract_strided_slice %17 {offsets = [0, 384], sizes = [8, 384], strides = [1, 1]} : vector<8x768xf32> to vector<8x384xf32>
    %48 = vector.extract_strided_slice %19 {offsets = [0, 0], sizes = [8, 128], strides = [1, 1]} : vector<8x384xf32> to vector<8x128xf32>
    %49 = vector.extract_strided_slice %47 {offsets = [0, 0], sizes = [8, 128], strides = [1, 1]} : vector<8x384xf32> to vector<8x128xf32>
    %50 = arith.addf %48, %49 : vector<8x128xf32>
    %51 = arith.negf %50 : vector<8x128xf32>
    %52 = math.exp %51 : vector<8x128xf32>
    %cst_22 = arith.constant 1.000000e+00 : f32
    %53 = vector.broadcast %cst_22 : f32 to vector<8x128xf32>
    %54 = arith.addf %53, %52 : vector<8x128xf32>
    %55 = arith.divf %53, %54 : vector<8x128xf32>
    %56 = vector.extract_strided_slice %19 {offsets = [0, 128], sizes = [8, 128], strides = [1, 1]} : vector<8x384xf32> to vector<8x128xf32>
    %57 = vector.extract_strided_slice %47 {offsets = [0, 128], sizes = [8, 128], strides = [1, 1]} : vector<8x384xf32> to vector<8x128xf32>
    %58 = arith.addf %56, %57 : vector<8x128xf32>
    %59 = arith.negf %58 : vector<8x128xf32>
    %60 = math.exp %59 : vector<8x128xf32>
    %cst_23 = arith.constant 1.000000e+00 : f32
    %61 = vector.broadcast %cst_23 : f32 to vector<8x128xf32>
    %62 = arith.addf %61, %60 : vector<8x128xf32>
    %63 = arith.divf %61, %62 : vector<8x128xf32>
    %64 = vector.extract_strided_slice %19 {offsets = [0, 256], sizes = [8, 128], strides = [1, 1]} : vector<8x384xf32> to vector<8x128xf32>
    %65 = vector.extract_strided_slice %47 {offsets = [0, 256], sizes = [8, 128], strides = [1, 1]} : vector<8x384xf32> to vector<8x128xf32>
    %66 = arith.mulf %55, %65 : vector<8x128xf32>
    %67 = arith.addf %64, %66 : vector<8x128xf32>
    %68 = math.tanh %67 : vector<8x128xf32>
    %cst_24 = arith.constant 1.000000e+00 : f32
    %69 = vector.broadcast %cst_24 : f32 to vector<8x128xf32>
    %70 = arith.subf %69, %63 : vector<8x128xf32>
    %71 = arith.mulf %70, %68 : vector<8x128xf32>
    %72 = arith.mulf %63, %14 : vector<8x128xf32>
    %73 = arith.addf %71, %72 : vector<8x128xf32>
    %c0_25 = arith.constant 0 : index
    %c0_26 = arith.constant 0 : index
    %c0_27 = arith.constant 0 : index
    %74 = vector.load %arg6[%c0_25, %c0_26, %c0_27] : memref<8x8x256xf32, #tpu.memory_space<vmem>>, vector<1x8x128xf32>
    %75 = vector.shape_cast %74 : vector<1x8x128xf32> to vector<8x128xf32>
    %76 = vector.shape_cast %46 : vector<8x128xf32> to vector<1x8x128xf32>
    tpu.vector_store %arg6[%c0_25, %c0_26, %c0_27], %76 {strides = array<i32>} : memref<8x8x256xf32, #tpu.memory_space<vmem>>, vector<1x8x128xf32>,
    %c7 = arith.constant 7 : index
    %c0_28 = arith.constant 0 : index
    %c128 = arith.constant 128 : index
    %77 = vector.load %arg6[%c7, %c0_28, %c128] : memref<8x8x256xf32, #tpu.memory_space<vmem>>, vector<1x8x128xf32>
    %78 = vector.shape_cast %77 : vector<1x8x128xf32> to vector<8x128xf32>
    %79 = vector.shape_cast %73 : vector<8x128xf32> to vector<1x8x128xf32>
    tpu.vector_store %arg6[%c7, %c0_28, %c128], %79 {strides = array<i32>} : memref<8x8x256xf32, #tpu.memory_space<vmem>>, vector<1x8x128xf32>,
    %80 = tpu.concatenate %46, %73 in 1 : vector<8x128xf32>, vector<8x128xf32> -> vector<8x256xf32>
    %cst_29 = arith.constant dense<0.000000e+00> : vector<8x768xf32>
    %81 = tpu.matmul %80, %7, %cst_29 {dimension_numbers = #tpu.dot_dimension_numbers<[1], [0], [0], [1], [0, 0, 1, 1], [], []>} : vector<8x256xf32>, vector<256x768xf32>, vector<8x768xf32> -> vector<8x768xf32>
    %82 = arith.addf %81, %10 : vector<8x768xf32>
    %c8 = arith.constant 8 : index
    %c0_30 = arith.constant 0 : index
    %83 = vector.load %arg8[%c8, %c0_30] : memref<64x768xf32, #tpu.memory_space<vmem>>, vector<8x384xf32>
    %c48 = arith.constant 48 : index
    %c384_31 = arith.constant 384 : index
    %84 = vector.load %arg8[%c48, %c384_31] : memref<64x768xf32, #tpu.memory_space<vmem>>, vector<8x384xf32>
    %85 = vector.extract_strided_slice %82 {offsets = [0, 0], sizes = [8, 384], strides = [1, 1]} : vector<8x768xf32> to vector<8x384xf32>
    %86 = vector.extract_strided_slice %83 {offsets = [0, 0], sizes = [8, 128], strides = [1, 1]} : vector<8x384xf32> to vector<8x128xf32>
    %87 = vector.extract_strided_slice %85 {offsets = [0, 0], sizes = [8, 128], strides = [1, 1]} : vector<8x384xf32> to vector<8x128xf32>
    %88 = arith.addf %86, %87 : vector<8x128xf32>
    %89 = arith.negf %88 : vector<8x128xf32>
    %90 = math.exp %89 : vector<8x128xf32>
    %cst_32 = arith.constant 1.000000e+00 : f32
    %91 = vector.broadcast %cst_32 : f32 to vector<8x128xf32>
    %92 = arith.addf %91, %90 : vector<8x128xf32>
    %93 = arith.divf %91, %92 : vector<8x128xf32>
    %94 = vector.extract_strided_slice %83 {offsets = [0, 128], sizes = [8, 128], strides = [1, 1]} : vector<8x384xf32> to vector<8x128xf32>
    %95 = vector.extract_strided_slice %85 {offsets = [0, 128], sizes = [8, 128], strides = [1, 1]} : vector<8x384xf32> to vector<8x128xf32>
    %96 = arith.addf %94, %95 : vector<8x128xf32>
    %97 = arith.negf %96 : vector<8x128xf32>
    %98 = math.exp %97 : vector<8x128xf32>
    %cst_33 = arith.constant 1.000000e+00 : f32
    %99 = vector.broadcast %cst_33 : f32 to vector<8x128xf32>
    %100 = arith.addf %99, %98 : vector<8x128xf32>
    %101 = arith.divf %99, %100 : vector<8x128xf32>
    %102 = vector.extract_strided_slice %83 {offsets = [0, 256], sizes = [8, 128], strides = [1, 1]} : vector<8x384xf32> to vector<8x128xf32>
    %103 = vector.extract_strided_slice %85 {offsets = [0, 256], sizes = [8, 128], strides = [1, 1]} : vector<8x384xf32> to vector<8x128xf32>
    %104 = arith.mulf %93, %103 : vector<8x128xf32>
    %105 = arith.addf %102, %104 : vector<8x128xf32>
    %106 = math.tanh %105 : vector<8x128xf32>
    %cst_34 = arith.constant 1.000000e+00 : f32
    %107 = vector.broadcast %cst_34 : f32 to vector<8x128xf32>
    %108 = arith.subf %107, %101 : vector<8x128xf32>
    %109 = arith.mulf %108, %106 : vector<8x128xf32>
    %110 = arith.mulf %101, %46 : vector<8x128xf32>
    %111 = arith.addf %109, %110 : vector<8x128xf32>
    %112 = vector.extract_strided_slice %82 {offsets = [0, 384], sizes = [8, 384], strides = [1, 1]} : vector<8x768xf32> to vector<8x384xf32>
    %113 = vector.extract_strided_slice %84 {offsets = [0, 0], sizes = [8, 128], strides = [1, 1]} : vector<8x384xf32> to vector<8x128xf32>
    %114 = vector.extract_strided_slice %112 {offsets = [0, 0], sizes = [8, 128], strides = [1, 1]} : vector<8x384xf32> to vector<8x128xf32>
    %115 = arith.addf %113, %114 : vector<8x128xf32>
    %116 = arith.negf %115 : vector<8x128xf32>
    %117 = math.exp %116 : vector<8x128xf32>
    %cst_35 = arith.constant 1.000000e+00 : f32
    %118 = vector.broadcast %cst_35 : f32 to vector<8x128xf32>
    %119 = arith.addf %118, %117 : vector<8x128xf32>
    %120 = arith.divf %118, %119 : vector<8x128xf32>
    %121 = vector.extract_strided_slice %84 {offsets = [0, 128], sizes = [8, 128], strides = [1, 1]} : vector<8x384xf32> to vector<8x128xf32>
    %122 = vector.extract_strided_slice %112 {offsets = [0, 128], sizes = [8, 128], strides = [1, 1]} : vector<8x384xf32> to vector<8x128xf32>
    %123 = arith.addf %121, %122 : vector<8x128xf32>
    %124 = arith.negf %123 : vector<8x128xf32>
    %125 = math.exp %124 : vector<8x128xf32>
    %cst_36 = arith.constant 1.000000e+00 : f32
    %126 = vector.broadcast %cst_36 : f32 to vector<8x128xf32>
    %127 = arith.addf %126, %125 : vector<8x128xf32>
    %128 = arith.divf %126, %127 : vector<8x128xf32>
    %129 = vector.extract_strided_slice %84 {offsets = [0, 256], sizes = [8, 128], strides = [1, 1]} : vector<8x384xf32> to vector<8x128xf32>
    %130 = vector.extract_strided_slice %112 {offsets = [0, 256], sizes = [8, 128], strides = [1, 1]} : vector<8x384xf32> to vector<8x128xf32>
    %131 = arith.mulf %120, %130 : vector<8x128xf32>
    %132 = arith.addf %129, %131 : vector<8x128xf32>
    %133 = math.tanh %132 : vector<8x128xf32>
    %cst_37 = arith.constant 1.000000e+00 : f32
    %134 = vector.broadcast %cst_37 : f32 to vector<8x128xf32>
    %135 = arith.subf %134, %128 : vector<8x128xf32>
    %136 = arith.mulf %135, %133 : vector<8x128xf32>
    %137 = arith.mulf %128, %73 : vector<8x128xf32>
    %138 = arith.addf %136, %137 : vector<8x128xf32>
    %c1_38 = arith.constant 1 : index
    %c0_39 = arith.constant 0 : index
    %c0_40 = arith.constant 0 : index
    %139 = vector.load %arg6[%c1_38, %c0_39, %c0_40] : memref<8x8x256xf32, #tpu.memory_space<vmem>>, vector<1x8x128xf32>
    %140 = vector.shape_cast %139 : vector<1x8x128xf32> to vector<8x128xf32>
    %141 = vector.shape_cast %111 : vector<8x128xf32> to vector<1x8x128xf32>
    tpu.vector_store %arg6[%c1_38, %c0_39, %c0_40], %141 {strides = array<i32>} : memref<8x8x256xf32, #tpu.memory_space<vmem>>, vector<1x8x128xf32>,
    %c6 = arith.constant 6 : index
    %c0_41 = arith.constant 0 : index
    %c128_42 = arith.constant 128 : index
    %142 = vector.load %arg6[%c6, %c0_41, %c128_42] : memref<8x8x256xf32, #tpu.memory_space<vmem>>, vector<1x8x128xf32>
    %143 = vector.shape_cast %142 : vector<1x8x128xf32> to vector<8x128xf32>
    %144 = vector.shape_cast %138 : vector<8x128xf32> to vector<1x8x128xf32>
    tpu.vector_store %arg6[%c6, %c0_41, %c128_42], %144 {strides = array<i32>} : memref<8x8x256xf32, #tpu.memory_space<vmem>>, vector<1x8x128xf32>,
    %145 = tpu.concatenate %111, %138 in 1 : vector<8x128xf32>, vector<8x128xf32> -> vector<8x256xf32>
    %cst_43 = arith.constant dense<0.000000e+00> : vector<8x768xf32>
    %146 = tpu.matmul %145, %7, %cst_43 {dimension_numbers = #tpu.dot_dimension_numbers<[1], [0], [0], [1], [0, 0, 1, 1], [], []>} : vector<8x256xf32>, vector<256x768xf32>, vector<8x768xf32> -> vector<8x768xf32>
    %147 = arith.addf %146, %10 : vector<8x768xf32>
    %c16 = arith.constant 16 : index
    %c0_44 = arith.constant 0 : index
    %148 = vector.load %arg8[%c16, %c0_44] : memref<64x768xf32, #tpu.memory_space<vmem>>, vector<8x384xf32>
    %c40 = arith.constant 40 : index
    %c384_45 = arith.constant 384 : index
    %149 = vector.load %arg8[%c40, %c384_45] : memref<64x768xf32, #tpu.memory_space<vmem>>, vector<8x384xf32>
    %150 = vector.extract_strided_slice %147 {offsets = [0, 0], sizes = [8, 384], strides = [1, 1]} : vector<8x768xf32> to vector<8x384xf32>
    %151 = vector.extract_strided_slice %148 {offsets = [0, 0], sizes = [8, 128], strides = [1, 1]} : vector<8x384xf32> to vector<8x128xf32>
    %152 = vector.extract_strided_slice %150 {offsets = [0, 0], sizes = [8, 128], strides = [1, 1]} : vector<8x384xf32> to vector<8x128xf32>
    %153 = arith.addf %151, %152 : vector<8x128xf32>
    %154 = arith.negf %153 : vector<8x128xf32>
    %155 = math.exp %154 : vector<8x128xf32>
    %cst_46 = arith.constant 1.000000e+00 : f32
    %156 = vector.broadcast %cst_46 : f32 to vector<8x128xf32>
    %157 = arith.addf %156, %155 : vector<8x128xf32>
    %158 = arith.divf %156, %157 : vector<8x128xf32>
    %159 = vector.extract_strided_slice %148 {offsets = [0, 128], sizes = [8, 128], strides = [1, 1]} : vector<8x384xf32> to vector<8x128xf32>
    %160 = vector.extract_strided_slice %150 {offsets = [0, 128], sizes = [8, 128], strides = [1, 1]} : vector<8x384xf32> to vector<8x128xf32>
    %161 = arith.addf %159, %160 : vector<8x128xf32>
    %162 = arith.negf %161 : vector<8x128xf32>
    %163 = math.exp %162 : vector<8x128xf32>
    %cst_47 = arith.constant 1.000000e+00 : f32
    %164 = vector.broadcast %cst_47 : f32 to vector<8x128xf32>
    %165 = arith.addf %164, %163 : vector<8x128xf32>
    %166 = arith.divf %164, %165 : vector<8x128xf32>
    %167 = vector.extract_strided_slice %148 {offsets = [0, 256], sizes = [8, 128], strides = [1, 1]} : vector<8x384xf32> to vector<8x128xf32>
    %168 = vector.extract_strided_slice %150 {offsets = [0, 256], sizes = [8, 128], strides = [1, 1]} : vector<8x384xf32> to vector<8x128xf32>
    %169 = arith.mulf %158, %168 : vector<8x128xf32>
    %170 = arith.addf %167, %169 : vector<8x128xf32>
    %171 = math.tanh %170 : vector<8x128xf32>
    %cst_48 = arith.constant 1.000000e+00 : f32
    %172 = vector.broadcast %cst_48 : f32 to vector<8x128xf32>
    %173 = arith.subf %172, %166 : vector<8x128xf32>
    %174 = arith.mulf %173, %171 : vector<8x128xf32>
    %175 = arith.mulf %166, %111 : vector<8x128xf32>
    %176 = arith.addf %174, %175 : vector<8x128xf32>
    %177 = vector.extract_strided_slice %147 {offsets = [0, 384], sizes = [8, 384], strides = [1, 1]} : vector<8x768xf32> to vector<8x384xf32>
    %178 = vector.extract_strided_slice %149 {offsets = [0, 0], sizes = [8, 128], strides = [1, 1]} : vector<8x384xf32> to vector<8x128xf32>
    %179 = vector.extract_strided_slice %177 {offsets = [0, 0], sizes = [8, 128], strides = [1, 1]} : vector<8x384xf32> to vector<8x128xf32>
    %180 = arith.addf %178, %179 : vector<8x128xf32>
    %181 = arith.negf %180 : vector<8x128xf32>
    %182 = math.exp %181 : vector<8x128xf32>
    %cst_49 = arith.constant 1.000000e+00 : f32
    %183 = vector.broadcast %cst_49 : f32 to vector<8x128xf32>
    %184 = arith.addf %183, %182 : vector<8x128xf32>
    %185 = arith.divf %183, %184 : vector<8x128xf32>
    %186 = vector.extract_strided_slice %149 {offsets = [0, 128], sizes = [8, 128], strides = [1, 1]} : vector<8x384xf32> to vector<8x128xf32>
    %187 = vector.extract_strided_slice %177 {offsets = [0, 128], sizes = [8, 128], strides = [1, 1]} : vector<8x384xf32> to vector<8x128xf32>
    %188 = arith.addf %186, %187 : vector<8x128xf32>
    %189 = arith.negf %188 : vector<8x128xf32>
    %190 = math.exp %189 : vector<8x128xf32>
    %cst_50 = arith.constant 1.000000e+00 : f32
    %191 = vector.broadcast %cst_50 : f32 to vector<8x128xf32>
    %192 = arith.addf %191, %190 : vector<8x128xf32>
    %193 = arith.divf %191, %192 : vector<8x128xf32>
    %194 = vector.extract_strided_slice %149 {offsets = [0, 256], sizes = [8, 128], strides = [1, 1]} : vector<8x384xf32> to vector<8x128xf32>
    %195 = vector.extract_strided_slice %177 {offsets = [0, 256], sizes = [8, 128], strides = [1, 1]} : vector<8x384xf32> to vector<8x128xf32>
    %196 = arith.mulf %185, %195 : vector<8x128xf32>
    %197 = arith.addf %194, %196 : vector<8x128xf32>
    %198 = math.tanh %197 : vector<8x128xf32>
    %cst_51 = arith.constant 1.000000e+00 : f32
    %199 = vector.broadcast %cst_51 : f32 to vector<8x128xf32>
    %200 = arith.subf %199, %193 : vector<8x128xf32>
    %201 = arith.mulf %200, %198 : vector<8x128xf32>
    %202 = arith.mulf %193, %138 : vector<8x128xf32>
    %203 = arith.addf %201, %202 : vector<8x128xf32>
    %c2 = arith.constant 2 : index
    %c0_52 = arith.constant 0 : index
    %c0_53 = arith.constant 0 : index
    %204 = vector.load %arg6[%c2, %c0_52, %c0_53] : memref<8x8x256xf32, #tpu.memory_space<vmem>>, vector<1x8x128xf32>
    %205 = vector.shape_cast %204 : vector<1x8x128xf32> to vector<8x128xf32>
    %206 = vector.shape_cast %176 : vector<8x128xf32> to vector<1x8x128xf32>
    tpu.vector_store %arg6[%c2, %c0_52, %c0_53], %206 {strides = array<i32>} : memref<8x8x256xf32, #tpu.memory_space<vmem>>, vector<1x8x128xf32>,
    %c5 = arith.constant 5 : index
    %c0_54 = arith.constant 0 : index
    %c128_55 = arith.constant 128 : index
    %207 = vector.load %arg6[%c5, %c0_54, %c128_55] : memref<8x8x256xf32, #tpu.memory_space<vmem>>, vector<1x8x128xf32>
    %208 = vector.shape_cast %207 : vector<1x8x128xf32> to vector<8x128xf32>
    %209 = vector.shape_cast %203 : vector<8x128xf32> to vector<1x8x128xf32>
    tpu.vector_store %arg6[%c5, %c0_54, %c128_55], %209 {strides = array<i32>} : memref<8x8x256xf32, #tpu.memory_space<vmem>>, vector<1x8x128xf32>,
    %210 = tpu.concatenate %176, %203 in 1 : vector<8x128xf32>, vector<8x128xf32> -> vector<8x256xf32>
    %cst_56 = arith.constant dense<0.000000e+00> : vector<8x768xf32>
    %211 = tpu.matmul %210, %7, %cst_56 {dimension_numbers = #tpu.dot_dimension_numbers<[1], [0], [0], [1], [0, 0, 1, 1], [], []>} : vector<8x256xf32>, vector<256x768xf32>, vector<8x768xf32> -> vector<8x768xf32>
    %212 = arith.addf %211, %10 : vector<8x768xf32>
    %c24 = arith.constant 24 : index
    %c0_57 = arith.constant 0 : index
    %213 = vector.load %arg8[%c24, %c0_57] : memref<64x768xf32, #tpu.memory_space<vmem>>, vector<8x384xf32>
    %c32 = arith.constant 32 : index
    %c384_58 = arith.constant 384 : index
    %214 = vector.load %arg8[%c32, %c384_58] : memref<64x768xf32, #tpu.memory_space<vmem>>, vector<8x384xf32>
    %215 = vector.extract_strided_slice %212 {offsets = [0, 0], sizes = [8, 384], strides = [1, 1]} : vector<8x768xf32> to vector<8x384xf32>
    %216 = vector.extract_strided_slice %213 {offsets = [0, 0], sizes = [8, 128], strides = [1, 1]} : vector<8x384xf32> to vector<8x128xf32>
    %217 = vector.extract_strided_slice %215 {offsets = [0, 0], sizes = [8, 128], strides = [1, 1]} : vector<8x384xf32> to vector<8x128xf32>
    %218 = arith.addf %216, %217 : vector<8x128xf32>
    %219 = arith.negf %218 : vector<8x128xf32>
    %220 = math.exp %219 : vector<8x128xf32>
    %cst_59 = arith.constant 1.000000e+00 : f32
    %221 = vector.broadcast %cst_59 : f32 to vector<8x128xf32>
    %222 = arith.addf %221, %220 : vector<8x128xf32>
    %223 = arith.divf %221, %222 : vector<8x128xf32>
    %224 = vector.extract_strided_slice %213 {offsets = [0, 128], sizes = [8, 128], strides = [1, 1]} : vector<8x384xf32> to vector<8x128xf32>
    %225 = vector.extract_strided_slice %215 {offsets = [0, 128], sizes = [8, 128], strides = [1, 1]} : vector<8x384xf32> to vector<8x128xf32>
    %226 = arith.addf %224, %225 : vector<8x128xf32>
    %227 = arith.negf %226 : vector<8x128xf32>
    %228 = math.exp %227 : vector<8x128xf32>
    %cst_60 = arith.constant 1.000000e+00 : f32
    %229 = vector.broadcast %cst_60 : f32 to vector<8x128xf32>
    %230 = arith.addf %229, %228 : vector<8x128xf32>
    %231 = arith.divf %229, %230 : vector<8x128xf32>
    %232 = vector.extract_strided_slice %213 {offsets = [0, 256], sizes = [8, 128], strides = [1, 1]} : vector<8x384xf32> to vector<8x128xf32>
    %233 = vector.extract_strided_slice %215 {offsets = [0, 256], sizes = [8, 128], strides = [1, 1]} : vector<8x384xf32> to vector<8x128xf32>
    %234 = arith.mulf %223, %233 : vector<8x128xf32>
    %235 = arith.addf %232, %234 : vector<8x128xf32>
    %236 = math.tanh %235 : vector<8x128xf32>
    %cst_61 = arith.constant 1.000000e+00 : f32
    %237 = vector.broadcast %cst_61 : f32 to vector<8x128xf32>
    %238 = arith.subf %237, %231 : vector<8x128xf32>
    %239 = arith.mulf %238, %236 : vector<8x128xf32>
    %240 = arith.mulf %231, %176 : vector<8x128xf32>
    %241 = arith.addf %239, %240 : vector<8x128xf32>
    %242 = vector.extract_strided_slice %212 {offsets = [0, 384], sizes = [8, 384], strides = [1, 1]} : vector<8x768xf32> to vector<8x384xf32>
    %243 = vector.extract_strided_slice %214 {offsets = [0, 0], sizes = [8, 128], strides = [1, 1]} : vector<8x384xf32> to vector<8x128xf32>
    %244 = vector.extract_strided_slice %242 {offsets = [0, 0], sizes = [8, 128], strides = [1, 1]} : vector<8x384xf32> to vector<8x128xf32>
    %245 = arith.addf %243, %244 : vector<8x128xf32>
    %246 = arith.negf %245 : vector<8x128xf32>
    %247 = math.exp %246 : vector<8x128xf32>
    %cst_62 = arith.constant 1.000000e+00 : f32
    %248 = vector.broadcast %cst_62 : f32 to vector<8x128xf32>
    %249 = arith.addf %248, %247 : vector<8x128xf32>
    %250 = arith.divf %248, %249 : vector<8x128xf32>
    %251 = vector.extract_strided_slice %214 {offsets = [0, 128], sizes = [8, 128], strides = [1, 1]} : vector<8x384xf32> to vector<8x128xf32>
    %252 = vector.extract_strided_slice %242 {offsets = [0, 128], sizes = [8, 128], strides = [1, 1]} : vector<8x384xf32> to vector<8x128xf32>
    %253 = arith.addf %251, %252 : vector<8x128xf32>
    %254 = arith.negf %253 : vector<8x128xf32>
    %255 = math.exp %254 : vector<8x128xf32>
    %cst_63 = arith.constant 1.000000e+00 : f32
    %256 = vector.broadcast %cst_63 : f32 to vector<8x128xf32>
    %257 = arith.addf %256, %255 : vector<8x128xf32>
    %258 = arith.divf %256, %257 : vector<8x128xf32>
    %259 = vector.extract_strided_slice %214 {offsets = [0, 256], sizes = [8, 128], strides = [1, 1]} : vector<8x384xf32> to vector<8x128xf32>
    %260 = vector.extract_strided_slice %242 {offsets = [0, 256], sizes = [8, 128], strides = [1, 1]} : vector<8x384xf32> to vector<8x128xf32>
    %261 = arith.mulf %250, %260 : vector<8x128xf32>
    %262 = arith.addf %259, %261 : vector<8x128xf32>
    %263 = math.tanh %262 : vector<8x128xf32>
    %cst_64 = arith.constant 1.000000e+00 : f32
    %264 = vector.broadcast %cst_64 : f32 to vector<8x128xf32>
    %265 = arith.subf %264, %258 : vector<8x128xf32>
    %266 = arith.mulf %265, %263 : vector<8x128xf32>
    %267 = arith.mulf %258, %203 : vector<8x128xf32>
    %268 = arith.addf %266, %267 : vector<8x128xf32>
    %c3 = arith.constant 3 : index
    %c0_65 = arith.constant 0 : index
    %c0_66 = arith.constant 0 : index
    %269 = vector.load %arg6[%c3, %c0_65, %c0_66] : memref<8x8x256xf32, #tpu.memory_space<vmem>>, vector<1x8x128xf32>
    %270 = vector.shape_cast %269 : vector<1x8x128xf32> to vector<8x128xf32>
    %271 = vector.shape_cast %241 : vector<8x128xf32> to vector<1x8x128xf32>
    tpu.vector_store %arg6[%c3, %c0_65, %c0_66], %271 {strides = array<i32>} : memref<8x8x256xf32, #tpu.memory_space<vmem>>, vector<1x8x128xf32>,
    %c4 = arith.constant 4 : index
    %c0_67 = arith.constant 0 : index
    %c128_68 = arith.constant 128 : index
    %272 = vector.load %arg6[%c4, %c0_67, %c128_68] : memref<8x8x256xf32, #tpu.memory_space<vmem>>, vector<1x8x128xf32>
    %273 = vector.shape_cast %272 : vector<1x8x128xf32> to vector<8x128xf32>
    %274 = vector.shape_cast %268 : vector<8x128xf32> to vector<1x8x128xf32>
    tpu.vector_store %arg6[%c4, %c0_67, %c128_68], %274 {strides = array<i32>} : memref<8x8x256xf32, #tpu.memory_space<vmem>>, vector<1x8x128xf32>,
    %275 = tpu.concatenate %241, %268 in 1 : vector<8x128xf32>, vector<8x128xf32> -> vector<8x256xf32>
    %cst_69 = arith.constant dense<0.000000e+00> : vector<8x768xf32>
    %276 = tpu.matmul %275, %7, %cst_69 {dimension_numbers = #tpu.dot_dimension_numbers<[1], [0], [0], [1], [0, 0, 1, 1], [], []>} : vector<8x256xf32>, vector<256x768xf32>, vector<8x768xf32> -> vector<8x768xf32>
    %277 = arith.addf %276, %10 : vector<8x768xf32>
    %c32_70 = arith.constant 32 : index
    %c0_71 = arith.constant 0 : index
    %278 = vector.load %arg8[%c32_70, %c0_71] : memref<64x768xf32, #tpu.memory_space<vmem>>, vector<8x384xf32>
    %c24_72 = arith.constant 24 : index
    %c384_73 = arith.constant 384 : index
    %279 = vector.load %arg8[%c24_72, %c384_73] : memref<64x768xf32, #tpu.memory_space<vmem>>, vector<8x384xf32>
    %280 = vector.extract_strided_slice %277 {offsets = [0, 0], sizes = [8, 384], strides = [1, 1]} : vector<8x768xf32> to vector<8x384xf32>
    %281 = vector.extract_strided_slice %278 {offsets = [0, 0], sizes = [8, 128], strides = [1, 1]} : vector<8x384xf32> to vector<8x128xf32>
    %282 = vector.extract_strided_slice %280 {offsets = [0, 0], sizes = [8, 128], strides = [1, 1]} : vector<8x384xf32> to vector<8x128xf32>
    %283 = arith.addf %281, %282 : vector<8x128xf32>
    %284 = arith.negf %283 : vector<8x128xf32>
    %285 = math.exp %284 : vector<8x128xf32>
    %cst_74 = arith.constant 1.000000e+00 : f32
    %286 = vector.broadcast %cst_74 : f32 to vector<8x128xf32>
    %287 = arith.addf %286, %285 : vector<8x128xf32>
    %288 = arith.divf %286, %287 : vector<8x128xf32>
    %289 = vector.extract_strided_slice %278 {offsets = [0, 128], sizes = [8, 128], strides = [1, 1]} : vector<8x384xf32> to vector<8x128xf32>
    %290 = vector.extract_strided_slice %280 {offsets = [0, 128], sizes = [8, 128], strides = [1, 1]} : vector<8x384xf32> to vector<8x128xf32>
    %291 = arith.addf %289, %290 : vector<8x128xf32>
    %292 = arith.negf %291 : vector<8x128xf32>
    %293 = math.exp %292 : vector<8x128xf32>
    %cst_75 = arith.constant 1.000000e+00 : f32
    %294 = vector.broadcast %cst_75 : f32 to vector<8x128xf32>
    %295 = arith.addf %294, %293 : vector<8x128xf32>
    %296 = arith.divf %294, %295 : vector<8x128xf32>
    %297 = vector.extract_strided_slice %278 {offsets = [0, 256], sizes = [8, 128], strides = [1, 1]} : vector<8x384xf32> to vector<8x128xf32>
    %298 = vector.extract_strided_slice %280 {offsets = [0, 256], sizes = [8, 128], strides = [1, 1]} : vector<8x384xf32> to vector<8x128xf32>
    %299 = arith.mulf %288, %298 : vector<8x128xf32>
    %300 = arith.addf %297, %299 : vector<8x128xf32>
    %301 = math.tanh %300 : vector<8x128xf32>
    %cst_76 = arith.constant 1.000000e+00 : f32
    %302 = vector.broadcast %cst_76 : f32 to vector<8x128xf32>
    %303 = arith.subf %302, %296 : vector<8x128xf32>
    %304 = arith.mulf %303, %301 : vector<8x128xf32>
    %305 = arith.mulf %296, %241 : vector<8x128xf32>
    %306 = arith.addf %304, %305 : vector<8x128xf32>
    %307 = vector.extract_strided_slice %277 {offsets = [0, 384], sizes = [8, 384], strides = [1, 1]} : vector<8x768xf32> to vector<8x384xf32>
    %308 = vector.extract_strided_slice %279 {offsets = [0, 0], sizes = [8, 128], strides = [1, 1]} : vector<8x384xf32> to vector<8x128xf32>
    %309 = vector.extract_strided_slice %307 {offsets = [0, 0], sizes = [8, 128], strides = [1, 1]} : vector<8x384xf32> to vector<8x128xf32>
    %310 = arith.addf %308, %309 : vector<8x128xf32>
    %311 = arith.negf %310 : vector<8x128xf32>
    %312 = math.exp %311 : vector<8x128xf32>
    %cst_77 = arith.constant 1.000000e+00 : f32
    %313 = vector.broadcast %cst_77 : f32 to vector<8x128xf32>
    %314 = arith.addf %313, %312 : vector<8x128xf32>
    %315 = arith.divf %313, %314 : vector<8x128xf32>
    %316 = vector.extract_strided_slice %279 {offsets = [0, 128], sizes = [8, 128], strides = [1, 1]} : vector<8x384xf32> to vector<8x128xf32>
    %317 = vector.extract_strided_slice %307 {offsets = [0, 128], sizes = [8, 128], strides = [1, 1]} : vector<8x384xf32> to vector<8x128xf32>
    %318 = arith.addf %316, %317 : vector<8x128xf32>
    %319 = arith.negf %318 : vector<8x128xf32>
    %320 = math.exp %319 : vector<8x128xf32>
    %cst_78 = arith.constant 1.000000e+00 : f32
    %321 = vector.broadcast %cst_78 : f32 to vector<8x128xf32>
    %322 = arith.addf %321, %320 : vector<8x128xf32>
    %323 = arith.divf %321, %322 : vector<8x128xf32>
    %324 = vector.extract_strided_slice %279 {offsets = [0, 256], sizes = [8, 128], strides = [1, 1]} : vector<8x384xf32> to vector<8x128xf32>
    %325 = vector.extract_strided_slice %307 {offsets = [0, 256], sizes = [8, 128], strides = [1, 1]} : vector<8x384xf32> to vector<8x128xf32>
    %326 = arith.mulf %315, %325 : vector<8x128xf32>
    %327 = arith.addf %324, %326 : vector<8x128xf32>
    %328 = math.tanh %327 : vector<8x128xf32>
    %cst_79 = arith.constant 1.000000e+00 : f32
    %329 = vector.broadcast %cst_79 : f32 to vector<8x128xf32>
    %330 = arith.subf %329, %323 : vector<8x128xf32>
    %331 = arith.mulf %330, %328 : vector<8x128xf32>
    %332 = arith.mulf %323, %268 : vector<8x128xf32>
    %333 = arith.addf %331, %332 : vector<8x128xf32>
    %c4_80 = arith.constant 4 : index
    %c0_81 = arith.constant 0 : index
    %c0_82 = arith.constant 0 : index
    %334 = vector.load %arg6[%c4_80, %c0_81, %c0_82] : memref<8x8x256xf32, #tpu.memory_space<vmem>>, vector<1x8x128xf32>
    %335 = vector.shape_cast %334 : vector<1x8x128xf32> to vector<8x128xf32>
    %336 = vector.shape_cast %306 : vector<8x128xf32> to vector<1x8x128xf32>
    tpu.vector_store %arg6[%c4_80, %c0_81, %c0_82], %336 {strides = array<i32>} : memref<8x8x256xf32, #tpu.memory_space<vmem>>, vector<1x8x128xf32>,
    %c3_83 = arith.constant 3 : index
    %c0_84 = arith.constant 0 : index
    %c128_85 = arith.constant 128 : index
    %337 = vector.load %arg6[%c3_83, %c0_84, %c128_85] : memref<8x8x256xf32, #tpu.memory_space<vmem>>, vector<1x8x128xf32>
    %338 = vector.shape_cast %337 : vector<1x8x128xf32> to vector<8x128xf32>
    %339 = vector.shape_cast %333 : vector<8x128xf32> to vector<1x8x128xf32>
    tpu.vector_store %arg6[%c3_83, %c0_84, %c128_85], %339 {strides = array<i32>} : memref<8x8x256xf32, #tpu.memory_space<vmem>>, vector<1x8x128xf32>,
    %340 = tpu.concatenate %306, %333 in 1 : vector<8x128xf32>, vector<8x128xf32> -> vector<8x256xf32>
    %cst_86 = arith.constant dense<0.000000e+00> : vector<8x768xf32>
    %341 = tpu.matmul %340, %7, %cst_86 {dimension_numbers = #tpu.dot_dimension_numbers<[1], [0], [0], [1], [0, 0, 1, 1], [], []>} : vector<8x256xf32>, vector<256x768xf32>, vector<8x768xf32> -> vector<8x768xf32>
    %342 = arith.addf %341, %10 : vector<8x768xf32>
    %c40_87 = arith.constant 40 : index
    %c0_88 = arith.constant 0 : index
    %343 = vector.load %arg8[%c40_87, %c0_88] : memref<64x768xf32, #tpu.memory_space<vmem>>, vector<8x384xf32>
    %c16_89 = arith.constant 16 : index
    %c384_90 = arith.constant 384 : index
    %344 = vector.load %arg8[%c16_89, %c384_90] : memref<64x768xf32, #tpu.memory_space<vmem>>, vector<8x384xf32>
    %345 = vector.extract_strided_slice %342 {offsets = [0, 0], sizes = [8, 384], strides = [1, 1]} : vector<8x768xf32> to vector<8x384xf32>
    %346 = vector.extract_strided_slice %343 {offsets = [0, 0], sizes = [8, 128], strides = [1, 1]} : vector<8x384xf32> to vector<8x128xf32>
    %347 = vector.extract_strided_slice %345 {offsets = [0, 0], sizes = [8, 128], strides = [1, 1]} : vector<8x384xf32> to vector<8x128xf32>
    %348 = arith.addf %346, %347 : vector<8x128xf32>
    %349 = arith.negf %348 : vector<8x128xf32>
    %350 = math.exp %349 : vector<8x128xf32>
    %cst_91 = arith.constant 1.000000e+00 : f32
    %351 = vector.broadcast %cst_91 : f32 to vector<8x128xf32>
    %352 = arith.addf %351, %350 : vector<8x128xf32>
    %353 = arith.divf %351, %352 : vector<8x128xf32>
    %354 = vector.extract_strided_slice %343 {offsets = [0, 128], sizes = [8, 128], strides = [1, 1]} : vector<8x384xf32> to vector<8x128xf32>
    %355 = vector.extract_strided_slice %345 {offsets = [0, 128], sizes = [8, 128], strides = [1, 1]} : vector<8x384xf32> to vector<8x128xf32>
    %356 = arith.addf %354, %355 : vector<8x128xf32>
    %357 = arith.negf %356 : vector<8x128xf32>
    %358 = math.exp %357 : vector<8x128xf32>
    %cst_92 = arith.constant 1.000000e+00 : f32
    %359 = vector.broadcast %cst_92 : f32 to vector<8x128xf32>
    %360 = arith.addf %359, %358 : vector<8x128xf32>
    %361 = arith.divf %359, %360 : vector<8x128xf32>
    %362 = vector.extract_strided_slice %343 {offsets = [0, 256], sizes = [8, 128], strides = [1, 1]} : vector<8x384xf32> to vector<8x128xf32>
    %363 = vector.extract_strided_slice %345 {offsets = [0, 256], sizes = [8, 128], strides = [1, 1]} : vector<8x384xf32> to vector<8x128xf32>
    %364 = arith.mulf %353, %363 : vector<8x128xf32>
    %365 = arith.addf %362, %364 : vector<8x128xf32>
    %366 = math.tanh %365 : vector<8x128xf32>
    %cst_93 = arith.constant 1.000000e+00 : f32
    %367 = vector.broadcast %cst_93 : f32 to vector<8x128xf32>
    %368 = arith.subf %367, %361 : vector<8x128xf32>
    %369 = arith.mulf %368, %366 : vector<8x128xf32>
    %370 = arith.mulf %361, %306 : vector<8x128xf32>
    %371 = arith.addf %369, %370 : vector<8x128xf32>
    %372 = vector.extract_strided_slice %342 {offsets = [0, 384], sizes = [8, 384], strides = [1, 1]} : vector<8x768xf32> to vector<8x384xf32>
    %373 = vector.extract_strided_slice %344 {offsets = [0, 0], sizes = [8, 128], strides = [1, 1]} : vector<8x384xf32> to vector<8x128xf32>
    %374 = vector.extract_strided_slice %372 {offsets = [0, 0], sizes = [8, 128], strides = [1, 1]} : vector<8x384xf32> to vector<8x128xf32>
    %375 = arith.addf %373, %374 : vector<8x128xf32>
    %376 = arith.negf %375 : vector<8x128xf32>
    %377 = math.exp %376 : vector<8x128xf32>
    %cst_94 = arith.constant 1.000000e+00 : f32
    %378 = vector.broadcast %cst_94 : f32 to vector<8x128xf32>
    %379 = arith.addf %378, %377 : vector<8x128xf32>
    %380 = arith.divf %378, %379 : vector<8x128xf32>
    %381 = vector.extract_strided_slice %344 {offsets = [0, 128], sizes = [8, 128], strides = [1, 1]} : vector<8x384xf32> to vector<8x128xf32>
    %382 = vector.extract_strided_slice %372 {offsets = [0, 128], sizes = [8, 128], strides = [1, 1]} : vector<8x384xf32> to vector<8x128xf32>
    %383 = arith.addf %381, %382 : vector<8x128xf32>
    %384 = arith.negf %383 : vector<8x128xf32>
    %385 = math.exp %384 : vector<8x128xf32>
    %cst_95 = arith.constant 1.000000e+00 : f32
    %386 = vector.broadcast %cst_95 : f32 to vector<8x128xf32>
    %387 = arith.addf %386, %385 : vector<8x128xf32>
    %388 = arith.divf %386, %387 : vector<8x128xf32>
    %389 = vector.extract_strided_slice %344 {offsets = [0, 256], sizes = [8, 128], strides = [1, 1]} : vector<8x384xf32> to vector<8x128xf32>
    %390 = vector.extract_strided_slice %372 {offsets = [0, 256], sizes = [8, 128], strides = [1, 1]} : vector<8x384xf32> to vector<8x128xf32>
    %391 = arith.mulf %380, %390 : vector<8x128xf32>
    %392 = arith.addf %389, %391 : vector<8x128xf32>
    %393 = math.tanh %392 : vector<8x128xf32>
    %cst_96 = arith.constant 1.000000e+00 : f32
    %394 = vector.broadcast %cst_96 : f32 to vector<8x128xf32>
    %395 = arith.subf %394, %388 : vector<8x128xf32>
    %396 = arith.mulf %395, %393 : vector<8x128xf32>
    %397 = arith.mulf %388, %333 : vector<8x128xf32>
    %398 = arith.addf %396, %397 : vector<8x128xf32>
    %c5_97 = arith.constant 5 : index
    %c0_98 = arith.constant 0 : index
    %c0_99 = arith.constant 0 : index
    %399 = vector.load %arg6[%c5_97, %c0_98, %c0_99] : memref<8x8x256xf32, #tpu.memory_space<vmem>>, vector<1x8x128xf32>
    %400 = vector.shape_cast %399 : vector<1x8x128xf32> to vector<8x128xf32>
    %401 = vector.shape_cast %371 : vector<8x128xf32> to vector<1x8x128xf32>
    tpu.vector_store %arg6[%c5_97, %c0_98, %c0_99], %401 {strides = array<i32>} : memref<8x8x256xf32, #tpu.memory_space<vmem>>, vector<1x8x128xf32>,
    %c2_100 = arith.constant 2 : index
    %c0_101 = arith.constant 0 : index
    %c128_102 = arith.constant 128 : index
    %402 = vector.load %arg6[%c2_100, %c0_101, %c128_102] : memref<8x8x256xf32, #tpu.memory_space<vmem>>, vector<1x8x128xf32>
    %403 = vector.shape_cast %402 : vector<1x8x128xf32> to vector<8x128xf32>
    %404 = vector.shape_cast %398 : vector<8x128xf32> to vector<1x8x128xf32>
    tpu.vector_store %arg6[%c2_100, %c0_101, %c128_102], %404 {strides = array<i32>} : memref<8x8x256xf32, #tpu.memory_space<vmem>>, vector<1x8x128xf32>,
    %405 = tpu.concatenate %371, %398 in 1 : vector<8x128xf32>, vector<8x128xf32> -> vector<8x256xf32>
    %cst_103 = arith.constant dense<0.000000e+00> : vector<8x768xf32>
    %406 = tpu.matmul %405, %7, %cst_103 {dimension_numbers = #tpu.dot_dimension_numbers<[1], [0], [0], [1], [0, 0, 1, 1], [], []>} : vector<8x256xf32>, vector<256x768xf32>, vector<8x768xf32> -> vector<8x768xf32>
    %407 = arith.addf %406, %10 : vector<8x768xf32>
    %c48_104 = arith.constant 48 : index
    %c0_105 = arith.constant 0 : index
    %408 = vector.load %arg8[%c48_104, %c0_105] : memref<64x768xf32, #tpu.memory_space<vmem>>, vector<8x384xf32>
    %c8_106 = arith.constant 8 : index
    %c384_107 = arith.constant 384 : index
    %409 = vector.load %arg8[%c8_106, %c384_107] : memref<64x768xf32, #tpu.memory_space<vmem>>, vector<8x384xf32>
    %410 = vector.extract_strided_slice %407 {offsets = [0, 0], sizes = [8, 384], strides = [1, 1]} : vector<8x768xf32> to vector<8x384xf32>
    %411 = vector.extract_strided_slice %408 {offsets = [0, 0], sizes = [8, 128], strides = [1, 1]} : vector<8x384xf32> to vector<8x128xf32>
    %412 = vector.extract_strided_slice %410 {offsets = [0, 0], sizes = [8, 128], strides = [1, 1]} : vector<8x384xf32> to vector<8x128xf32>
    %413 = arith.addf %411, %412 : vector<8x128xf32>
    %414 = arith.negf %413 : vector<8x128xf32>
    %415 = math.exp %414 : vector<8x128xf32>
    %cst_108 = arith.constant 1.000000e+00 : f32
    %416 = vector.broadcast %cst_108 : f32 to vector<8x128xf32>
    %417 = arith.addf %416, %415 : vector<8x128xf32>
    %418 = arith.divf %416, %417 : vector<8x128xf32>
    %419 = vector.extract_strided_slice %408 {offsets = [0, 128], sizes = [8, 128], strides = [1, 1]} : vector<8x384xf32> to vector<8x128xf32>
    %420 = vector.extract_strided_slice %410 {offsets = [0, 128], sizes = [8, 128], strides = [1, 1]} : vector<8x384xf32> to vector<8x128xf32>
    %421 = arith.addf %419, %420 : vector<8x128xf32>
    %422 = arith.negf %421 : vector<8x128xf32>
    %423 = math.exp %422 : vector<8x128xf32>
    %cst_109 = arith.constant 1.000000e+00 : f32
    %424 = vector.broadcast %cst_109 : f32 to vector<8x128xf32>
    %425 = arith.addf %424, %423 : vector<8x128xf32>
    %426 = arith.divf %424, %425 : vector<8x128xf32>
    %427 = vector.extract_strided_slice %408 {offsets = [0, 256], sizes = [8, 128], strides = [1, 1]} : vector<8x384xf32> to vector<8x128xf32>
    %428 = vector.extract_strided_slice %410 {offsets = [0, 256], sizes = [8, 128], strides = [1, 1]} : vector<8x384xf32> to vector<8x128xf32>
    %429 = arith.mulf %418, %428 : vector<8x128xf32>
    %430 = arith.addf %427, %429 : vector<8x128xf32>
    %431 = math.tanh %430 : vector<8x128xf32>
    %cst_110 = arith.constant 1.000000e+00 : f32
    %432 = vector.broadcast %cst_110 : f32 to vector<8x128xf32>
    %433 = arith.subf %432, %426 : vector<8x128xf32>
    %434 = arith.mulf %433, %431 : vector<8x128xf32>
    %435 = arith.mulf %426, %371 : vector<8x128xf32>
    %436 = arith.addf %434, %435 : vector<8x128xf32>
    %437 = vector.extract_strided_slice %407 {offsets = [0, 384], sizes = [8, 384], strides = [1, 1]} : vector<8x768xf32> to vector<8x384xf32>
    %438 = vector.extract_strided_slice %409 {offsets = [0, 0], sizes = [8, 128], strides = [1, 1]} : vector<8x384xf32> to vector<8x128xf32>
    %439 = vector.extract_strided_slice %437 {offsets = [0, 0], sizes = [8, 128], strides = [1, 1]} : vector<8x384xf32> to vector<8x128xf32>
    %440 = arith.addf %438, %439 : vector<8x128xf32>
    %441 = arith.negf %440 : vector<8x128xf32>
    %442 = math.exp %441 : vector<8x128xf32>
    %cst_111 = arith.constant 1.000000e+00 : f32
    %443 = vector.broadcast %cst_111 : f32 to vector<8x128xf32>
    %444 = arith.addf %443, %442 : vector<8x128xf32>
    %445 = arith.divf %443, %444 : vector<8x128xf32>
    %446 = vector.extract_strided_slice %409 {offsets = [0, 128], sizes = [8, 128], strides = [1, 1]} : vector<8x384xf32> to vector<8x128xf32>
    %447 = vector.extract_strided_slice %437 {offsets = [0, 128], sizes = [8, 128], strides = [1, 1]} : vector<8x384xf32> to vector<8x128xf32>
    %448 = arith.addf %446, %447 : vector<8x128xf32>
    %449 = arith.negf %448 : vector<8x128xf32>
    %450 = math.exp %449 : vector<8x128xf32>
    %cst_112 = arith.constant 1.000000e+00 : f32
    %451 = vector.broadcast %cst_112 : f32 to vector<8x128xf32>
    %452 = arith.addf %451, %450 : vector<8x128xf32>
    %453 = arith.divf %451, %452 : vector<8x128xf32>
    %454 = vector.extract_strided_slice %409 {offsets = [0, 256], sizes = [8, 128], strides = [1, 1]} : vector<8x384xf32> to vector<8x128xf32>
    %455 = vector.extract_strided_slice %437 {offsets = [0, 256], sizes = [8, 128], strides = [1, 1]} : vector<8x384xf32> to vector<8x128xf32>
    %456 = arith.mulf %445, %455 : vector<8x128xf32>
    %457 = arith.addf %454, %456 : vector<8x128xf32>
    %458 = math.tanh %457 : vector<8x128xf32>
    %cst_113 = arith.constant 1.000000e+00 : f32
    %459 = vector.broadcast %cst_113 : f32 to vector<8x128xf32>
    %460 = arith.subf %459, %453 : vector<8x128xf32>
    %461 = arith.mulf %460, %458 : vector<8x128xf32>
    %462 = arith.mulf %453, %398 : vector<8x128xf32>
    %463 = arith.addf %461, %462 : vector<8x128xf32>
    %c6_114 = arith.constant 6 : index
    %c0_115 = arith.constant 0 : index
    %c0_116 = arith.constant 0 : index
    %464 = vector.load %arg6[%c6_114, %c0_115, %c0_116] : memref<8x8x256xf32, #tpu.memory_space<vmem>>, vector<1x8x128xf32>
    %465 = vector.shape_cast %464 : vector<1x8x128xf32> to vector<8x128xf32>
    %466 = vector.shape_cast %436 : vector<8x128xf32> to vector<1x8x128xf32>
    tpu.vector_store %arg6[%c6_114, %c0_115, %c0_116], %466 {strides = array<i32>} : memref<8x8x256xf32, #tpu.memory_space<vmem>>, vector<1x8x128xf32>,
    %c1_117 = arith.constant 1 : index
    %c0_118 = arith.constant 0 : index
    %c128_119 = arith.constant 128 : index
    %467 = vector.load %arg6[%c1_117, %c0_118, %c128_119] : memref<8x8x256xf32, #tpu.memory_space<vmem>>, vector<1x8x128xf32>
    %468 = vector.shape_cast %467 : vector<1x8x128xf32> to vector<8x128xf32>
    %469 = vector.shape_cast %463 : vector<8x128xf32> to vector<1x8x128xf32>
    tpu.vector_store %arg6[%c1_117, %c0_118, %c128_119], %469 {strides = array<i32>} : memref<8x8x256xf32, #tpu.memory_space<vmem>>, vector<1x8x128xf32>,
    %470 = tpu.concatenate %436, %463 in 1 : vector<8x128xf32>, vector<8x128xf32> -> vector<8x256xf32>
    %cst_120 = arith.constant dense<0.000000e+00> : vector<8x768xf32>
    %471 = tpu.matmul %470, %7, %cst_120 {dimension_numbers = #tpu.dot_dimension_numbers<[1], [0], [0], [1], [0, 0, 1, 1], [], []>} : vector<8x256xf32>, vector<256x768xf32>, vector<8x768xf32> -> vector<8x768xf32>
    %472 = arith.addf %471, %10 : vector<8x768xf32>
    %c56_121 = arith.constant 56 : index
    %c0_122 = arith.constant 0 : index
    %473 = vector.load %arg8[%c56_121, %c0_122] : memref<64x768xf32, #tpu.memory_space<vmem>>, vector<8x384xf32>
    %c0_123 = arith.constant 0 : index
    %c384_124 = arith.constant 384 : index
    %474 = vector.load %arg8[%c0_123, %c384_124] : memref<64x768xf32, #tpu.memory_space<vmem>>, vector<8x384xf32>
    %475 = vector.extract_strided_slice %472 {offsets = [0, 0], sizes = [8, 384], strides = [1, 1]} : vector<8x768xf32> to vector<8x384xf32>
    %476 = vector.extract_strided_slice %473 {offsets = [0, 0], sizes = [8, 128], strides = [1, 1]} : vector<8x384xf32> to vector<8x128xf32>
    %477 = vector.extract_strided_slice %475 {offsets = [0, 0], sizes = [8, 128], strides = [1, 1]} : vector<8x384xf32> to vector<8x128xf32>
    %478 = arith.addf %476, %477 : vector<8x128xf32>
    %479 = arith.negf %478 : vector<8x128xf32>
    %480 = math.exp %479 : vector<8x128xf32>
    %cst_125 = arith.constant 1.000000e+00 : f32
    %481 = vector.broadcast %cst_125 : f32 to vector<8x128xf32>
    %482 = arith.addf %481, %480 : vector<8x128xf32>
    %483 = arith.divf %481, %482 : vector<8x128xf32>
    %484 = vector.extract_strided_slice %473 {offsets = [0, 128], sizes = [8, 128], strides = [1, 1]} : vector<8x384xf32> to vector<8x128xf32>
    %485 = vector.extract_strided_slice %475 {offsets = [0, 128], sizes = [8, 128], strides = [1, 1]} : vector<8x384xf32> to vector<8x128xf32>
    %486 = arith.addf %484, %485 : vector<8x128xf32>
    %487 = arith.negf %486 : vector<8x128xf32>
    %488 = math.exp %487 : vector<8x128xf32>
    %cst_126 = arith.constant 1.000000e+00 : f32
    %489 = vector.broadcast %cst_126 : f32 to vector<8x128xf32>
    %490 = arith.addf %489, %488 : vector<8x128xf32>
    %491 = arith.divf %489, %490 : vector<8x128xf32>
    %492 = vector.extract_strided_slice %473 {offsets = [0, 256], sizes = [8, 128], strides = [1, 1]} : vector<8x384xf32> to vector<8x128xf32>
    %493 = vector.extract_strided_slice %475 {offsets = [0, 256], sizes = [8, 128], strides = [1, 1]} : vector<8x384xf32> to vector<8x128xf32>
    %494 = arith.mulf %483, %493 : vector<8x128xf32>
    %495 = arith.addf %492, %494 : vector<8x128xf32>
    %496 = math.tanh %495 : vector<8x128xf32>
    %cst_127 = arith.constant 1.000000e+00 : f32
    %497 = vector.broadcast %cst_127 : f32 to vector<8x128xf32>
    %498 = arith.subf %497, %491 : vector<8x128xf32>
    %499 = arith.mulf %498, %496 : vector<8x128xf32>
    %500 = arith.mulf %491, %436 : vector<8x128xf32>
    %501 = arith.addf %499, %500 : vector<8x128xf32>
    %502 = vector.extract_strided_slice %472 {offsets = [0, 384], sizes = [8, 384], strides = [1, 1]} : vector<8x768xf32> to vector<8x384xf32>
    %503 = vector.extract_strided_slice %474 {offsets = [0, 0], sizes = [8, 128], strides = [1, 1]} : vector<8x384xf32> to vector<8x128xf32>
    %504 = vector.extract_strided_slice %502 {offsets = [0, 0], sizes = [8, 128], strides = [1, 1]} : vector<8x384xf32> to vector<8x128xf32>
    %505 = arith.addf %503, %504 : vector<8x128xf32>
    %506 = arith.negf %505 : vector<8x128xf32>
    %507 = math.exp %506 : vector<8x128xf32>
    %cst_128 = arith.constant 1.000000e+00 : f32
    %508 = vector.broadcast %cst_128 : f32 to vector<8x128xf32>
    %509 = arith.addf %508, %507 : vector<8x128xf32>
    %510 = arith.divf %508, %509 : vector<8x128xf32>
    %511 = vector.extract_strided_slice %474 {offsets = [0, 128], sizes = [8, 128], strides = [1, 1]} : vector<8x384xf32> to vector<8x128xf32>
    %512 = vector.extract_strided_slice %502 {offsets = [0, 128], sizes = [8, 128], strides = [1, 1]} : vector<8x384xf32> to vector<8x128xf32>
    %513 = arith.addf %511, %512 : vector<8x128xf32>
    %514 = arith.negf %513 : vector<8x128xf32>
    %515 = math.exp %514 : vector<8x128xf32>
    %cst_129 = arith.constant 1.000000e+00 : f32
    %516 = vector.broadcast %cst_129 : f32 to vector<8x128xf32>
    %517 = arith.addf %516, %515 : vector<8x128xf32>
    %518 = arith.divf %516, %517 : vector<8x128xf32>
    %519 = vector.extract_strided_slice %474 {offsets = [0, 256], sizes = [8, 128], strides = [1, 1]} : vector<8x384xf32> to vector<8x128xf32>
    %520 = vector.extract_strided_slice %502 {offsets = [0, 256], sizes = [8, 128], strides = [1, 1]} : vector<8x384xf32> to vector<8x128xf32>
    %521 = arith.mulf %510, %520 : vector<8x128xf32>
    %522 = arith.addf %519, %521 : vector<8x128xf32>
    %523 = math.tanh %522 : vector<8x128xf32>
    %cst_130 = arith.constant 1.000000e+00 : f32
    %524 = vector.broadcast %cst_130 : f32 to vector<8x128xf32>
    %525 = arith.subf %524, %518 : vector<8x128xf32>
    %526 = arith.mulf %525, %523 : vector<8x128xf32>
    %527 = arith.mulf %518, %463 : vector<8x128xf32>
    %528 = arith.addf %526, %527 : vector<8x128xf32>
    %c7_131 = arith.constant 7 : index
    %c0_132 = arith.constant 0 : index
    %c0_133 = arith.constant 0 : index
    %529 = vector.load %arg6[%c7_131, %c0_132, %c0_133] : memref<8x8x256xf32, #tpu.memory_space<vmem>>, vector<1x8x128xf32>
    %530 = vector.shape_cast %529 : vector<1x8x128xf32> to vector<8x128xf32>
    %531 = vector.shape_cast %501 : vector<8x128xf32> to vector<1x8x128xf32>
    tpu.vector_store %arg6[%c7_131, %c0_132, %c0_133], %531 {strides = array<i32>} : memref<8x8x256xf32, #tpu.memory_space<vmem>>, vector<1x8x128xf32>,
    %c0_134 = arith.constant 0 : index
    %c0_135 = arith.constant 0 : index
    %c128_136 = arith.constant 128 : index
    %532 = vector.load %arg6[%c0_134, %c0_135, %c128_136] : memref<8x8x256xf32, #tpu.memory_space<vmem>>, vector<1x8x128xf32>
    %533 = vector.shape_cast %532 : vector<1x8x128xf32> to vector<8x128xf32>
    %534 = vector.shape_cast %528 : vector<8x128xf32> to vector<1x8x128xf32>
    tpu.vector_store %arg6[%c0_134, %c0_135, %c128_136], %534 {strides = array<i32>} : memref<8x8x256xf32, #tpu.memory_space<vmem>>, vector<1x8x128xf32>,
    %c0_137 = arith.constant 0 : index
    %c0_138 = arith.constant 0 : index
    %c0_139 = arith.constant 0 : index
    %535 = vector.load %arg7[%c0_137, %c0_138, %c0_139] : memref<2x8x128xf32, #tpu.memory_space<vmem>>, vector<1x8x128xf32>
    %536 = vector.shape_cast %535 : vector<1x8x128xf32> to vector<8x128xf32>
    %537 = vector.shape_cast %501 : vector<8x128xf32> to vector<1x8x128xf32>
    tpu.vector_store %arg7[%c0_137, %c0_138, %c0_139], %537 {strides = array<i32>} : memref<2x8x128xf32, #tpu.memory_space<vmem>>, vector<1x8x128xf32>,
    %c1_140 = arith.constant 1 : index
    %c0_141 = arith.constant 0 : index
    %c0_142 = arith.constant 0 : index
    %538 = vector.load %arg7[%c1_140, %c0_141, %c0_142] : memref<2x8x128xf32, #tpu.memory_space<vmem>>, vector<1x8x128xf32>
    %539 = vector.shape_cast %538 : vector<1x8x128xf32> to vector<8x128xf32>
    %540 = vector.shape_cast %528 : vector<8x128xf32> to vector<1x8x128xf32>
    tpu.vector_store %arg7[%c1_140, %c0_141, %c0_142], %540 {strides = array<i32>} : memref<2x8x128xf32, #tpu.memory_space<vmem>>, vector<1x8x128xf32>,
    return
  }
}

</mosaic_0001>

<bundles_post_ra>
// kernel: tpu_custom_call.1
= control target key start
LH: loop header
LB: loop body
LE: loop exit
PB: predicated region body
PF: predicated region fallthrough
CT: control target
= control target key end

     0   :  { %13 = vsyncpa [#allocation4], 0  ;;  %s7544_s0 = inlined_call_operand.hbm [shape: f32[64,128], index: 0, kind: input, shape index: {}]   ;;  %s7545_s1 = inlined_call_operand.hbm [shape: f32[2,8,128], index: 1, kind: input, shape index: {}]   ;;  %s7546_s2 = inlined_call_operand.hbm [shape: f32[128,768], index: 2, kind: input, shape index: {}]   ;;  %s7547_s3 = inlined_call_operand.hbm [shape: f32[256,768], index: 3, kind: input, shape index: {}]   ;;  %s7548_s4 = inlined_call_operand.vmem [shape: f32[1,768], index: 4, kind: input, shape index: {}]   ;;  %s7549_s5 = inlined_call_operand.hbm [shape: f32[1,768], index: 5, kind: input, shape index: {}]   ;;  %s7550_s6 = inlined_call_operand.hbm [shape: f32[8,8,256], index: 6, kind: output, shape index: {0}]   ;;  %s7551_s7 = inlined_call_operand.hbm [shape: f32[2,8,128], index: 7, kind: output, shape index: {1}]  }
   0x1   :  { %14 = vsyncpa [#allocation7], 0 }
   0x2   :  { %15 = vsyncpa [#allocation10], 0 }
   0x3   :  { %16 = vsyncpa [#allocation5], 0 }
   0x4   :  { %17 = vsyncpa [#allocation14], 0  ;;  %s3924_s24 = smov [#allocation6]  }
   0x5   :  { %s35_s25 = sshll.u32 %s3924_s24, 4  ;;  %s36_s25 = int_to_ptr.vmem [resolvable:$true] %s35_s25 }
   0x6   :  { %s3782_s26 = scalar_lea.vmem %s36_s25, 256  ;;  %p3787_p1 = scmp.lt.s32.totalorder %s36_s25, %s36_s25 }
   0x7   :  { %p3783_p0 = scmp.ne.s32.totalorder %s36_s25, %s3782_s26  ;;  %p3788_p2 = scmp.lt.s32.totalorder %s3782_s26, %s3782_s26 }
   0x9   :  { %p3789_p3 = por %p3788_p2, %p3787_p1 }
   0xb   :  { %p3790_p4 = pnand %p3789_p3, %p3783_p0 }
   0xd   :  { %3793 = shalt.err (!%p3790_p4)
}
   0xe   :  { %s3925_s27 = smov 128   ;;  %s3926_s28 = smov 8  }
   0xf   :  { %41 = dma.hbm_to_vmem [thread:$0]  %s7545_s1, 256, %s36_s25, [#allocation7], %s3925_s27, %s3925_s27, %s3926_s28  }
  0x10   :  { %s3927_s8 = smov [#allocation9]   ;;  %s3928_s10 = smov [#allocation3]  }
  0x11   :  { %s59_s9 = sshll.u32 %s3927_s8, 4  ;;  %s23_s11 = sshll.u32 %s3928_s10, 4  ;;  %s60_s9 = int_to_ptr.vmem [resolvable:$true] %s59_s9  ;;  %s24_s11 = int_to_ptr.vmem [resolvable:$true] %s23_s11 }
  0x12   :  { %s3802_s12 = scalar_lea.vmem %s60_s9, 24576  ;;  %p3807_p6 = scmp.lt.s32.totalorder %s60_s9, %s60_s9 }
  0x13   :  { %p3803_p5 = scmp.ne.s32.totalorder %s60_s9, %s3802_s12  ;;  %p3808_p7 = scmp.lt.s32.totalorder %s3802_s12, %s3802_s12 }
  0x15   :  { %p3809_p8 = por %p3808_p7, %p3807_p6 }
  0x17   :  { %p3810_p9 = pnand %p3809_p8, %p3803_p5 }
  0x19   :  { %3813 = shalt.err (!%p3810_p9)
}
  0x1a   :  { %s3929_s13 = smov 768   ;;  %s3930_s14 = smov 48  }
  0x1b   :  { %65 = dma.hbm_to_vmem [thread:$0]  %s7547_s3, 24576, %s60_s9, [#allocation10], %s3929_s13, %s3929_s13, %s3930_s14  }
  0x1c   :  { %s3822_s1 = scalar_lea.vmem %s24_s11, 1024  ;;  %p3827_p11 = scmp.lt.s32.totalorder %s24_s11, %s24_s11 }
  0x1d   :  { %p3823_p10 = scmp.ne.s32.totalorder %s24_s11, %s3822_s1  ;;  %p3828_p12 = scmp.lt.s32.totalorder %s3822_s1, %s3822_s1 }
  0x1f   :  { %p3829_p13 = por %p3828_p12, %p3827_p11 }
  0x21   :  { %p3830_p0 = pnand %p3829_p13, %p3823_p10 }
  0x23   :  { %3833 = shalt.err (!%p3830_p0)
}
  0x24   :  { %29 = dma.hbm_to_vmem [thread:$0]  %s7544_s0, 1024, %s24_s11, [#allocation4], %s3925_s27, %s3925_s27, %s3926_s28  }
  0x25   :  { %s3931_s19 = smov [#allocation8]   ;;  %s3932_s21 = smov [#allocation11]  }
  0x26   :  { %s47_s20 = sshll.u32 %s3931_s19, 4  ;;  %s74_s3 = sshll.u32 %s3932_s21, 4  ;;  %s48_s20 = int_to_ptr.vmem [resolvable:$true] %s47_s20  ;;  %s75_s3 = int_to_ptr.vmem [resolvable:$true] %s74_s3 }
  0x27   :  { %s3842_s22 = scalar_lea.vmem %s48_s20, 12288  ;;  %p3847_p2 = scmp.lt.s32.totalorder %s48_s20, %s48_s20 }
  0x28   :  { %p3843_p1 = scmp.ne.s32.totalorder %s48_s20, %s3842_s22  ;;  %p3848_p3 = scmp.lt.s32.totalorder %s3842_s22, %s3842_s22 }
  0x2a   :  { %p3849_p4 = por %p3848_p3, %p3847_p2 }
  0x2c   :  { %p3850_p5 = pnand %p3849_p4, %p3843_p1 }
  0x2e   :  { %3853 = shalt.err (!%p3850_p5)
}
  0x2f   :  { %53 = dma.hbm_to_vmem [thread:$0]  %s7546_s2, 12288, %s48_s20, [#allocation7], %s3929_s13, %s3929_s13, %s3930_s14  }
  0x30   :  { %s3862_s25 = scalar_lea.vmem %s75_s3, 96  ;;  %p3867_p7 = scmp.lt.s32.totalorder %s75_s3, %s75_s3 }
  0x31   :  { %p3863_p6 = scmp.ne.s32.totalorder %s75_s3, %s3862_s25  ;;  %p3868_p8 = scmp.lt.s32.totalorder %s3862_s25, %s3862_s25 }
  0x33   :  { %p3869_p9 = por %p3868_p8, %p3867_p7 }
  0x35   :  { %p3870_p10 = pnand %p3869_p9, %p3863_p6 }
  0x37   :  { %3873 = shalt.err (!%p3870_p10)
}
  0x38   :  { %77 = dma.hbm_to_vmem [thread:$0]  %s7549_s5, 96, %s75_s3, [#allocation10]  }
  0x39   :  { %3914 = dma.done.wait [#allocation4], 1024  }
  0x3a   :  { %3915 = vsyncadd [#allocation4], 4294966272 }
  0x3b   :  { %3916 = dma.done.wait [#allocation7], 12544  }
  0x3c   :  { %3917 = vsyncadd [#allocation7], 4294954752 }
  0x3d   :  { %3918 = dma.done.wait [#allocation10], 24672  }
  0x3e   :  { %3919 = vsyncadd [#allocation10], 4294942624  ;;  %v7557_v0 = vmov 0.0   ;;  %v184_v1 = vld [vmem:[#allocation8 + $0x2d8] sm:$0xff]  ;;  %v186_v2 = vld [vmem:[#allocation8 + $0x2e8] sm:$0xff]  ;;  %s3935_s30 = smov [#allocation13]  }
  0x3f   :  { %406 = vmatprep.mubr.f32.mxu1 %v7557_v0  ;;  %293 = vmatprep.mubr.f32.mxu0 %v7557_v0  ;;  %v183_v3 = vld [vmem:[#allocation8 + $0x2d0] sm:$0xff]  ;;  %v185_v4 = vld [vmem:[#allocation8 + $0x2e0] sm:$0xff]  ;;  %v178_v5 = vld [vmem:[#allocation8 + $0x2a8] sm:$0xff]  ;;  %s2974_s8 = sshll.u32 %s3935_s30, 4  ;;  %s2975_s8 = int_to_ptr.vmem [resolvable:$true] %s2974_s8 }
  0x40   :  { %229 = vmatprep.subr.mxu0 %v184_v1  ;;  %342 = vmatprep.subr.mxu1 %v186_v2  ;;  %v180_v6 = vld [vmem:[#allocation8 + $0x2b8] sm:$0xff]  ;;  %v177_v7 = vld [vmem:[#allocation8 + $0x2a0] sm:$0xff]  ;;  %v179_v8 = vld [vmem:[#allocation8 + $0x2b0] sm:$0xff] }
  0x41   :  { %230 = vmatpush1.msra.mxu0 %v183_v3  ;;  %343 = vmatpush1.msra.mxu1 %v185_v4  ;;  %v172_v9 = vld [vmem:[#allocation8 + $0x278] sm:$0xff]  ;;  %v174_v10 = vld [vmem:[#allocation8 + $0x288] sm:$0xff]  ;;  %v171_v11 = vld [vmem:[#allocation8 + $0x270] sm:$0xff] }
  0x42   :  { %231 = vmatprep.subr.mxu0 %v178_v5  ;;  %344 = vmatprep.subr.mxu1 %v180_v6  ;;  %v173_v12 = vld [vmem:[#allocation8 + $0x280] sm:$0xff]  ;;  %v166_v13 = vld [vmem:[#allocation8 + $0x248] sm:$0xff]  ;;  %v168_v14 = vld [vmem:[#allocation8 + $0x258] sm:$0xff] }
  0x43   :  { %232 = vmatpush1.msra.mxu0 %v177_v7  ;;  %345 = vmatpush1.msra.mxu1 %v179_v8  ;;  %v165_v15 = vld [vmem:[#allocation8 + $0x240] sm:$0xff]  ;;  %v167_v16 = vld [vmem:[#allocation8 + $0x250] sm:$0xff]  ;;  %v160_v17 = vld [vmem:[#allocation8 + $0x218] sm:$0xff] }
  0x44   :  { %233 = vmatprep.subr.mxu0 %v172_v9  ;;  %346 = vmatprep.subr.mxu1 %v174_v10  ;;  %v162_v18 = vld [vmem:[#allocation8 + $0x228] sm:$0xff]  ;;  %v159_v19 = vld [vmem:[#allocation8 + $0x210] sm:$0xff]  ;;  %v161_v20 = vld [vmem:[#allocation8 + $0x220] sm:$0xff] }
  0x45   :  { %234 = vmatpush1.msra.mxu0 %v171_v11  ;;  %347 = vmatpush1.msra.mxu1 %v173_v12  ;;  %v154_v21 = vld [vmem:[#allocation8 + $0x1e8] sm:$0xff]  ;;  %v156_v22 = vld [vmem:[#allocation8 + $0x1f8] sm:$0xff]  ;;  %v153_v23 = vld [vmem:[#allocation8 + $0x1e0] sm:$0xff] }
  0x46   :  { %235 = vmatprep.subr.mxu0 %v166_v13  ;;  %348 = vmatprep.subr.mxu1 %v168_v14  ;;  %v155_v24 = vld [vmem:[#allocation8 + $0x1f0] sm:$0xff]  ;;  %v148_v25 = vld [vmem:[#allocation8 + $0x1b8] sm:$0xff]  ;;  %v150_v26 = vld [vmem:[#allocation8 + $0x1c8] sm:$0xff] }
  0x47   :  { %236 = vmatpush1.msra.mxu0 %v165_v15  ;;  %349 = vmatpush1.msra.mxu1 %v167_v16  ;;  %v147_v27 = vld [vmem:[#allocation8 + $0x1b0] sm:$0xff]  ;;  %v149_v28 = vld [vmem:[#allocation8 + $0x1c0] sm:$0xff]  ;;  %v142_v29 = vld [vmem:[#allocation8 + $0x188] sm:$0xff] }
  0x48   :  { %237 = vmatprep.subr.mxu0 %v160_v17  ;;  %350 = vmatprep.subr.mxu1 %v162_v18  ;;  %v144_v30 = vld [vmem:[#allocation8 + $0x198] sm:$0xff]  ;;  %v141_v31 = vld [vmem:[#allocation8 + $0x180] sm:$0xff]  ;;  %v143_v32 = vld [vmem:[#allocation8 + $0x190] sm:$0xff] }
  0x49   :  { %238 = vmatpush1.msra.mxu0 %v159_v19  ;;  %351 = vmatpush1.msra.mxu1 %v161_v20  ;;  %v136_v33 = vld [vmem:[#allocation8 + $0x158] sm:$0xff]  ;;  %v138_v34 = vld [vmem:[#allocation8 + $0x168] sm:$0xff]  ;;  %v135_v35 = vld [vmem:[#allocation8 + $0x150] sm:$0xff] }
  0x4a   :  { %239 = vmatprep.subr.mxu0 %v154_v21  ;;  %352 = vmatprep.subr.mxu1 %v156_v22  ;;  %v137_v36 = vld [vmem:[#allocation8 + $0x160] sm:$0xff]  ;;  %v130_v37 = vld [vmem:[#allocation8 + $0x128] sm:$0xff]  ;;  %v132_v38 = vld [vmem:[#allocation8 + $0x138] sm:$0xff] }
  0x4b   :  { %240 = vmatpush1.msra.mxu0 %v153_v23  ;;  %353 = vmatpush1.msra.mxu1 %v155_v24  ;;  %v129_v39 = vld [vmem:[#allocation8 + $0x120] sm:$0xff]  ;;  %v131_v40 = vld [vmem:[#allocation8 + $0x130] sm:$0xff]  ;;  %v124_v41 = vld [vmem:[#allocation8 + $0xf8] sm:$0xff] }
  0x4c   :  { %241 = vmatprep.subr.mxu0 %v148_v25  ;;  %354 = vmatprep.subr.mxu1 %v150_v26  ;;  %v126_v42 = vld [vmem:[#allocation8 + $0x108] sm:$0xff]  ;;  %v123_v43 = vld [vmem:[#allocation8 + $0xf0] sm:$0xff]  ;;  %v125_v44 = vld [vmem:[#allocation8 + $0x100] sm:$0xff] }
  0x4d   :  { %242 = vmatpush1.msra.mxu0 %v147_v27  ;;  %355 = vmatpush1.msra.mxu1 %v149_v28  ;;  %v118_v45 = vld [vmem:[#allocation8 + $0xc8] sm:$0xff]  ;;  %v120_v46 = vld [vmem:[#allocation8 + $0xd8] sm:$0xff]  ;;  %v117_v47 = vld [vmem:[#allocation8 + $0xc0] sm:$0xff] }
  0x4e   :  { %243 = vmatprep.subr.mxu0 %v142_v29  ;;  %356 = vmatprep.subr.mxu1 %v144_v30  ;;  %v119_v48 = vld [vmem:[#allocation8 + $0xd0] sm:$0xff]  ;;  %v112_v49 = vld [vmem:[#allocation8 + $0x98] sm:$0xff]  ;;  %v114_v50 = vld [vmem:[#allocation8 + $0xa8] sm:$0xff] }
  0x4f   :  { %244 = vmatpush1.msra.mxu0 %v141_v31  ;;  %357 = vmatpush1.msra.mxu1 %v143_v32  ;;  %v111_v51 = vld [vmem:[#allocation8 + $0x90] sm:$0xff]  ;;  %v113_v52 = vld [vmem:[#allocation8 + $0xa0] sm:$0xff]  ;;  %v106_v53 = vld [vmem:[#allocation8 + $0x68] sm:$0xff] }
  0x50   :  { %245 = vmatprep.subr.mxu0 %v136_v33  ;;  %358 = vmatprep.subr.mxu1 %v138_v34  ;;  %v108_v54 = vld [vmem:[#allocation8 + $0x78] sm:$0xff]  ;;  %v105_v55 = vld [vmem:[#allocation8 + $0x60] sm:$0xff]  ;;  %v107_v56 = vld [vmem:[#allocation8 + $0x70] sm:$0xff] }
  0x51   :  { %246 = vmatpush1.msra.mxu0 %v135_v35  ;;  %359 = vmatpush1.msra.mxu1 %v137_v36  ;;  %v100_v57 = vld [vmem:[#allocation8 + $0x38] sm:$0xff]  ;;  %v102_v58 = vld [vmem:[#allocation8 + $0x48] sm:$0xff]  ;;  %v99_v59 = vld [vmem:[#allocation8 + $0x30] sm:$0xff] }
  0x52   :  { %247 = vmatprep.subr.mxu0 %v130_v37  ;;  %360 = vmatprep.subr.mxu1 %v132_v38  ;;  %v101_v60 = vld [vmem:[#allocation8 + $0x40] sm:$0xff]  ;;  %v94_v61 = vld [vmem:[#allocation8 + $0x8] sm:$0xff]  ;;  %v96_v62 = vld [vmem:[#allocation8 + $0x18] sm:$0xff] }
  0x53   :  { %248 = vmatpush1.msra.mxu0 %v129_v39  ;;  %361 = vmatpush1.msra.mxu1 %v131_v40  ;;  %v93_v63 = vld [vmem:[#allocation8] sm:$0xff]  ;;  %v95_v1 = vld [vmem:[#allocation8 + $0x10] sm:$0xff]  ;;  %v188_v3 = vld [vmem:[#allocation8 + $0x2f8] sm:$0xff] }
  0x54   :  { %249 = vmatprep.subr.mxu0 %v124_v41  ;;  %362 = vmatprep.subr.mxu1 %v126_v42  ;;  %v4001_v2 = vld [vmem:[#allocation3] sm:$0xff]  ;;  %v4003_v4 = vld [vmem:[#allocation9 + $0x2d8] sm:$0xff]  ;;  %v182_v7 = vld [vmem:[#allocation8 + $0x2c8] sm:$0xff] }
  0x55   :  { %250 = vmatpush1.msra.mxu0 %v123_v43  ;;  %363 = vmatpush1.msra.mxu1 %v125_v44  ;;  %v187_v5 = vld [vmem:[#allocation8 + $0x2f0] sm:$0xff]  ;;  %v4008_v8 = vld [vmem:[#allocation9 + $0x2a8] sm:$0xff]  ;;  %v181_v9 = vld [vmem:[#allocation8 + $0x2c0] sm:$0xff] }
  0x56   :  { %251 = vmatprep.subr.mxu0 %v118_v45  ;;  %364 = vmatprep.subr.mxu1 %v120_v46  ;;  %v4005_v6 = vld [vmem:[#allocation9 + $0x2d0] sm:$0xff]  ;;  %v4012_v10 = vld [vmem:[#allocation9 + $0x2a0] sm:$0xff]  ;;  %v176_v11 = vld [vmem:[#allocation8 + $0x298] sm:$0xff] }
  0x57   :  { %252 = vmatpush1.msra.mxu0 %v117_v47  ;;  %365 = vmatpush1.msra.mxu1 %v119_v48  ;;  %v4016_v12 = vld [vmem:[#allocation9 + $0x278] sm:$0xff]  ;;  %v175_v14 = vld [vmem:[#allocation8 + $0x290] sm:$0xff]  ;;  %v170_v16 = vld [vmem:[#allocation8 + $0x268] sm:$0xff] }
  0x58   :  { %253 = vmatprep.subr.mxu0 %v112_v49  ;;  %366 = vmatprep.subr.mxu1 %v114_v50  ;;  %v4018_v13 = vld [vmem:[#allocation3 + $0x8] sm:$0xff]  ;;  %v4021_v15 = vld [vmem:[#allocation9 + $0x270] sm:$0xff]  ;;  %v4024_v17 = vld [vmem:[#allocation9 + $0x248] sm:$0xff] }
  0x59   :  { %254 = vmatpush1.msra.mxu0 %v111_v51  ;;  %367 = vmatpush1.msra.mxu1 %v113_v52  ;;  %v169_v18 = vld [vmem:[#allocation8 + $0x260] sm:$0xff]  ;;  %v164_v20 = vld [vmem:[#allocation8 + $0x238] sm:$0xff]  ;;  %v163_v23 = vld [vmem:[#allocation8 + $0x230] sm:$0xff] }
  0x5a   :  { %255 = vmatprep.subr.mxu0 %v106_v53  ;;  %368 = vmatprep.subr.mxu1 %v108_v54  ;;  %v4028_v19 = vld [vmem:[#allocation9 + $0x240] sm:$0xff]  ;;  %v4032_v21 = vld [vmem:[#allocation9 + $0x218] sm:$0xff]  ;;  %v4037_v24 = vld [vmem:[#allocation9 + $0x210] sm:$0xff] }
  0x5b   :  { %256 = vmatpush1.msra.mxu0 %v105_v55  ;;  %369 = vmatpush1.msra.mxu1 %v107_v56  ;;  %v4034_v22 = vld [vmem:[#allocation3 + $0x10] sm:$0xff]  ;;  %v158_v25 = vld [vmem:[#allocation8 + $0x208] sm:$0xff]  ;;  %v152_v29 = vld [vmem:[#allocation8 + $0x1d8] sm:$0xff] }
  0x5c   :  { %257 = vmatprep.subr.mxu0 %v100_v57  ;;  %370 = vmatprep.subr.mxu1 %v102_v58  ;;  %v4040_v26 = vld [vmem:[#allocation9 + $0x1e8] sm:$0xff]  ;;  %v157_v27 = vld [vmem:[#allocation8 + $0x200] sm:$0xff]  ;;  %v4048_v30 = vld [vmem:[#allocation9 + $0x1b8] sm:$0xff] }
  0x5d   :  { %258 = vmatpush1.msra.mxu0 %v99_v59  ;;  %371 = vmatpush1.msra.mxu1 %v101_v60  ;;  %v4044_v28 = vld [vmem:[#allocation9 + $0x1e0] sm:$0xff]  ;;  %v4050_v31 = vld [vmem:[#allocation3 + $0x18] sm:$0xff]  ;;  %v151_v32 = vld [vmem:[#allocation8 + $0x1d0] sm:$0xff] }
  0x5e   :  { %259 = vmatprep.subr.mxu0 %v94_v61  ;;  %372 = vmatprep.subr.mxu1 %v96_v62  ;;  %v4053_v33 = vld [vmem:[#allocation9 + $0x1b0] sm:$0xff]  ;;  %v146_v34 = vld [vmem:[#allocation8 + $0x1a8] sm:$0xff]  ;;  %v145_v36 = vld [vmem:[#allocation8 + $0x1a0] sm:$0xff] }
  0x5f   :  { %260 = vmatpush1.msra.mxu0 %v93_v63  ;;  %373 = vmatpush1.msra.mxu1 %v95_v1  ;;  %v4056_v35 = vld [vmem:[#allocation9 + $0x188] sm:$0xff]  ;;  %v4060_v37 = vld [vmem:[#allocation9 + $0x180] sm:$0xff]  ;;  %v140_v38 = vld [vmem:[#allocation8 + $0x178] sm:$0xff] }
  0x60   :  { %407 = vmatmul.mubr.f32.vlgmr.msra.gmra.mxu1 %v4001_v2  ;;  %455 = vmatprep.subr.mxu0 %v188_v3  ;;  %v4064_v39 = vld [vmem:[#allocation9 + $0x158] sm:$0xff]  ;;  %v4066_v40 = vld [vmem:[#allocation3 + $0x20] sm:$0xff]  ;;  %v134_v43 = vld [vmem:[#allocation8 + $0x148] sm:$0xff] }
  0x61   :  { %843 = vmatprep.subr.mxu1 %v4003_v4  ;;  %294 = vmatmul.mubr.f32.vlgmr.msra.gmra.mxu0 %v4001_v2  ;;  %v139_v41 = vld [vmem:[#allocation8 + $0x170] sm:$0xff]  ;;  %v4072_v44 = vld [vmem:[#allocation9 + $0x128] sm:$0xff]  ;;  %v133_v45 = vld [vmem:[#allocation8 + $0x140] sm:$0xff] }
  0x62   :  { %456 = vmatpush1.msra.mxu0 %v187_v5  ;;  %844 = vmatpush1.msra.mxu1 %v4005_v6  ;;  %v4069_v42 = vld [vmem:[#allocation9 + $0x150] sm:$0xff]  ;;  %v4076_v46 = vld [vmem:[#allocation9 + $0x120] sm:$0xff]  ;;  %v128_v47 = vld [vmem:[#allocation8 + $0x118] sm:$0xff] }
  0x63   :  { %457 = vmatprep.subr.mxu0 %v182_v7  ;;  %845 = vmatprep.subr.mxu1 %v4008_v8  ;;  %v4080_v48 = vld [vmem:[#allocation9 + $0xf8] sm:$0xff]  ;;  %v127_v50 = vld [vmem:[#allocation8 + $0x110] sm:$0xff]  ;;  %v122_v52 = vld [vmem:[#allocation8 + $0xe8] sm:$0xff] }
  0x64   :  { %458 = vmatpush1.msra.mxu0 %v181_v9  ;;  %846 = vmatpush1.msra.mxu1 %v4012_v10  ;;  %v4082_v49 = vld [vmem:[#allocation3 + $0x28] sm:$0xff]  ;;  %v4085_v51 = vld [vmem:[#allocation9 + $0xf0] sm:$0xff]  ;;  %v4088_v53 = vld [vmem:[#allocation9 + $0xc8] sm:$0xff] }
  0x65   :  { %299 = vmatprep.mubr.f32.mxu0 %v7557_v0  ;;  %459 = vmatprep.subr.mxu0 %v176_v11  ;;  %v121_v54 = vld [vmem:[#allocation8 + $0xe0] sm:$0xff]  ;;  %v116_v56 = vld [vmem:[#allocation8 + $0xb8] sm:$0xff]  ;;  %v115_v59 = vld [vmem:[#allocation8 + $0xb0] sm:$0xff] }
  0x66   :  { %847 = vmatprep.subr.mxu1 %v4016_v12  ;;  %300 = vmatmul.mubr.f32.gmra.mxu0 %v4018_v13  ;;  %v4092_v55 = vld [vmem:[#allocation9 + $0xc0] sm:$0xff]  ;;  %v4096_v57 = vld [vmem:[#allocation9 + $0x98] sm:$0xff]  ;;  %v4101_v60 = vld [vmem:[#allocation9 + $0x90] sm:$0xff] }
  0x67   :  { %460 = vmatpush1.msra.mxu0 %v175_v14  ;;  %848 = vmatpush1.msra.mxu1 %v4021_v15  ;;  %v4098_v58 = vld [vmem:[#allocation3 + $0x30] sm:$0xff]  ;;  %v110_v61 = vld [vmem:[#allocation8 + $0x88] sm:$0xff]  ;;  %v104_v3 = vld [vmem:[#allocation8 + $0x58] sm:$0xff] }
  0x68   :  { %461 = vmatprep.subr.mxu0 %v170_v16  ;;  %849 = vmatprep.subr.mxu1 %v4024_v17  ;;  %v4104_v62 = vld [vmem:[#allocation9 + $0x68] sm:$0xff]  ;;  %v109_v63 = vld [vmem:[#allocation8 + $0x80] sm:$0xff]  ;;  %v4112_v5 = vld [vmem:[#allocation9 + $0x38] sm:$0xff] }
  0x69   :  { %462 = vmatpush1.msra.mxu0 %v169_v18  ;;  %850 = vmatpush1.msra.mxu1 %v4028_v19  ;;  %v4108_v1 = vld [vmem:[#allocation9 + $0x60] sm:$0xff]  ;;  %v4114_v7 = vld [vmem:[#allocation3 + $0x38] sm:$0xff]  ;;  %v103_v9 = vld [vmem:[#allocation8 + $0x50] sm:$0xff] }
  0x6a   :  { %305 = vmatprep.mubr.f32.mxu0 %v7557_v0  ;;  %463 = vmatprep.subr.mxu0 %v164_v20  ;;  %v4117_v11 = vld [vmem:[#allocation9 + $0x30] sm:$0xff]  ;;  %v98_v14 = vld [vmem:[#allocation8 + $0x28] sm:$0xff]  ;;  %v97_v18 = vld [vmem:[#allocation8 + $0x20] sm:$0xff] }
  0x6b   :  { %851 = vmatprep.subr.mxu1 %v4032_v21  ;;  %306 = vmatmul.mubr.f32.gmra.mxu0 %v4034_v22  ;;  %v4120_v16 = vld [vmem:[#allocation9 + $0x8] sm:$0xff]  ;;  %v4124_v20 = vld [vmem:[#allocation9] sm:$0xff] }
  0x6c   :  { %464 = vmatpush1.msra.mxu0 %v163_v23  ;;  %852 = vmatpush1.msra.mxu1 %v4037_v24  ;;  %v4127_v23 = vld [vmem:[#allocation9 + $0x5d8] sm:$0xff] }
  0x6d   :  { %465 = vmatprep.subr.mxu0 %v158_v25  ;;  %853 = vmatprep.subr.mxu1 %v4040_v26  ;;  %v4130_v25 = vld [vmem:[#allocation9 + $0x2e8] sm:$0xff] }
  0x6e   :  { %466 = vmatpush1.msra.mxu0 %v157_v27  ;;  %854 = vmatpush1.msra.mxu1 %v4044_v28  ;;  %v4133_v27 = vld [vmem:[#allocation9 + $0x5d0] sm:$0xff] }
  0x6f   :  { %311 = vmatprep.mubr.f32.mxu0 %v7557_v0  ;;  %467 = vmatprep.subr.mxu0 %v152_v29  ;;  %v4135_v29 = vld [vmem:[#allocation9 + $0x2e0] sm:$0xff] }
  0x70   :  { %855 = vmatprep.subr.mxu1 %v4048_v30  ;;  %312 = vmatmul.mubr.f32.gmra.mxu0 %v4050_v31 }
  0x71   :  { %468 = vmatpush1.msra.mxu0 %v151_v32  ;;  %856 = vmatpush1.msra.mxu1 %v4053_v33  ;;  %v4139_v32 = vld [vmem:[#allocation9 + $0x5a8] sm:$0xff] }
  0x72   :  { %469 = vmatprep.subr.mxu0 %v146_v34  ;;  %857 = vmatprep.subr.mxu1 %v4056_v35  ;;  %v4143_v34 = vld [vmem:[#allocation9 + $0x2b8] sm:$0xff] }
  0x73   :  { %470 = vmatpush1.msra.mxu0 %v145_v36  ;;  %858 = vmatpush1.msra.mxu1 %v4060_v37  ;;  %v4147_v36 = vld [vmem:[#allocation9 + $0x5a0] sm:$0xff] }
  0x74   :  { %317 = vmatprep.mubr.f32.mxu0 %v7557_v0  ;;  %471 = vmatprep.subr.mxu0 %v140_v38  ;;  %v4149_v38 = vld [vmem:[#allocation9 + $0x2b0] sm:$0xff] }
  0x75   :  { %859 = vmatprep.subr.mxu1 %v4064_v39  ;;  %318 = vmatmul.mubr.f32.gmra.mxu0 %v4066_v40 }
  0x76   :  { %472 = vmatpush1.msra.mxu0 %v139_v41  ;;  %860 = vmatpush1.msra.mxu1 %v4069_v42  ;;  %v4153_v41 = vld [vmem:[#allocation9 + $0x578] sm:$0xff] }
  0x77   :  { %473 = vmatprep.subr.mxu0 %v134_v43  ;;  %861 = vmatprep.subr.mxu1 %v4072_v44  ;;  %v4155_v43 = vld [vmem:[#allocation9 + $0x288] sm:$0xff] }
  0x78   :  { %474 = vmatpush1.msra.mxu0 %v133_v45  ;;  %862 = vmatpush1.msra.mxu1 %v4076_v46  ;;  %v4161_v45 = vld [vmem:[#allocation9 + $0x280] sm:$0xff] }
  0x79   :  { %323 = vmatprep.mubr.f32.mxu0 %v7557_v0  ;;  %475 = vmatprep.subr.mxu0 %v128_v47  ;;  %v4165_v47 = vld [vmem:[#allocation9 + $0x548] sm:$0xff] }
  0x7a   :  { %863 = vmatprep.subr.mxu1 %v4080_v48  ;;  %324 = vmatmul.mubr.f32.gmra.mxu0 %v4082_v49  ;;  %8029 = vst [vmem:[#allocation21_spill] sm:$0xff] %v4165_v47 }
  0x7b   :  { %476 = vmatpush1.msra.mxu0 %v127_v50  ;;  %864 = vmatpush1.msra.mxu1 %v4085_v51  ;;  %v4169_v50 = vld [vmem:[#allocation9 + $0x258] sm:$0xff] }
  0x7c   :  { %477 = vmatprep.subr.mxu0 %v122_v52  ;;  %865 = vmatprep.subr.mxu1 %v4088_v53  ;;  %v4173_v52 = vld [vmem:[#allocation9 + $0x540] sm:$0xff] }
  0x7d   :  { %478 = vmatpush1.msra.mxu0 %v121_v54  ;;  %866 = vmatpush1.msra.mxu1 %v4092_v55  ;;  %8030 = vst [vmem:[#allocation22_spill] sm:$0xff] %v4173_v52  ;;  %v4175_v54 = vld [vmem:[#allocation9 + $0x250] sm:$0xff] }
  0x7e   :  { %329 = vmatprep.mubr.f32.mxu0 %v7557_v0  ;;  %479 = vmatprep.subr.mxu0 %v116_v56  ;;  %8031 = vst [vmem:[#allocation23_spill] sm:$0xff] %v4175_v54  ;;  %v4179_v56 = vld [vmem:[#allocation9 + $0x518] sm:$0xff] }
  0x7f   :  { %867 = vmatprep.subr.mxu1 %v4096_v57  ;;  %330 = vmatmul.mubr.f32.gmra.mxu0 %v4098_v58  ;;  %8032 = vst [vmem:[#allocation24_spill] sm:$0xff] %v4179_v56 }
  0x80   :  { %480 = vmatpush1.msra.mxu0 %v115_v59  ;;  %868 = vmatpush1.msra.mxu1 %v4101_v60  ;;  %v4181_v59 = vld [vmem:[#allocation9 + $0x228] sm:$0xff] }
  0x81   :  { %481 = vmatprep.subr.mxu0 %v110_v61  ;;  %869 = vmatprep.subr.mxu1 %v4104_v62  ;;  %8033 = vst [vmem:[#allocation25_spill] sm:$0xff] %v4181_v59  ;;  %v4185_v61 = vld [vmem:[#allocation9 + $0x510] sm:$0xff] }
  0x82   :  { %482 = vmatpush1.msra.mxu0 %v109_v63  ;;  %870 = vmatpush1.msra.mxu1 %v4108_v1  ;;  %8034 = vst [vmem:[#allocation26_spill] sm:$0xff] %v4185_v61  ;;  %v4187_v63 = vld [vmem:[#allocation9 + $0x220] sm:$0xff] }
  0x83   :  { %335 = vmatprep.mubr.f32.mxu0 %v7557_v0  ;;  %483 = vmatprep.subr.mxu0 %v104_v3  ;;  %8035 = vst [vmem:[#allocation27_spill] sm:$0xff] %v4187_v63  ;;  %v4191_v3 = vld [vmem:[#allocation9 + $0x4e8] sm:$0xff] }
  0x84   :  { %871 = vmatprep.subr.mxu1 %v4112_v5  ;;  %336 = vmatmul.mubr.f32.gmra.mxu0 %v4114_v7  ;;  %8036 = vst [vmem:[#allocation28_spill] sm:$0xff] %v4191_v3 }
  0x85   :  { %484 = vmatpush1.msra.mxu0 %v103_v9  ;;  %872 = vmatpush1.msra.mxu1 %v4117_v11  ;;  %v4195_v9 = vld [vmem:[#allocation9 + $0x1f8] sm:$0xff] }
  0x86   :  { %485 = vmatprep.subr.mxu0 %v98_v14  ;;  %873 = vmatprep.subr.mxu1 %v4120_v16  ;;  %8037 = vst [vmem:[#allocation29_spill] sm:$0xff] %v4195_v9  ;;  %v4199_v14 = vld [vmem:[#allocation9 + $0x4e0] sm:$0xff] }
  0x87   :  { %486 = vmatpush1.msra.mxu0 %v97_v18  ;;  %874 = vmatpush1.msra.mxu1 %v4124_v20  ;;  %8038 = vst [vmem:[#allocation30_spill] sm:$0xff] %v4199_v14  ;;  %v4201_v18 = vld [vmem:[#allocation9 + $0x1f0] sm:$0xff] }
  0x88   :  { %519 = vmatprep.mubr.f32.mxu0 %v7557_v0  ;;  %875 = vmatprep.subr.mxu1 %v4127_v23  ;;  %8039 = vst [vmem:[#allocation31_spill] sm:$0xff] %v4201_v18 }
  0x89   :  { %914 = vmatprep.subr.mxu0 %v4130_v25  ;;  %520 = vmatmul.mubr.f32.vlgmr.msra.gmra.mxu0 %v4001_v2  ;;  %v4159_v2 = vld [vmem:[#allocation9 + $0x570] sm:$0xff] }
  0x8a   :  { %876 = vmatpush2.msra.mxu1 %v4133_v27  ;;  %915 = vmatpush1.msra.mxu0 %v4135_v29  ;;  %8028 = vst [vmem:[#allocation20_spill] sm:$0xff] %v4159_v2 }
  0x8b   :  { %412 = vmatprep.mubr.f32.mxu1 %v7557_v0  ;;  %877 = vmatprep.subr.mxu1 %v4139_v32 }
  0x8c   :  { %916 = vmatprep.subr.mxu0 %v4143_v34  ;;  %413 = vmatmul.mubr.f32.gmra.mxu1 %v4018_v13 }
  0x8d   :  { %878 = vmatpush2.msra.mxu1 %v4147_v36  ;;  %917 = vmatpush1.msra.mxu0 %v4149_v38 }
  0x8e   :  { %879 = vmatprep.subr.mxu1 %v4153_v41  ;;  %918 = vmatprep.subr.mxu0 %v4155_v43 }
  0x8f   :  { %880 = vmatpush2.msra.mxu1 %v4159_v2  ;;  %919 = vmatpush1.msra.mxu0 %v4161_v45  ;;  %v4333_v2 = vld [vmem:[#allocation9 + $0x10] sm:$0xff] }
  0x90   :  { %418 = vmatprep.mubr.f32.mxu1 %v7557_v0  ;;  %881 = vmatprep.subr.mxu1 %v4165_v47  ;;  %v4207_v47 = vld [vmem:[#allocation9 + $0x1c8] sm:$0xff]  ;;  %8080 = vst [vmem:[#allocation71_spill] sm:$0xff] %v4333_v2 }
  0x91   :  { %920 = vmatprep.subr.mxu0 %v4169_v50  ;;  %419 = vmatmul.mubr.f32.gmra.mxu1 %v4034_v22  ;;  %8041 = vst [vmem:[#allocation33_spill] sm:$0xff] %v4207_v47 }
  0x92   :  { %882 = vmatpush2.msra.mxu1 %v4173_v52  ;;  %921 = vmatpush1.msra.mxu0 %v4175_v54  ;;  %v4205_v52 = vld [vmem:[#allocation9 + $0x4b8] sm:$0xff] }
  0x93   :  { %883 = vmatprep.subr.mxu1 %v4179_v56  ;;  %922 = vmatprep.subr.mxu0 %v4181_v59  ;;  %8040 = vst [vmem:[#allocation32_spill] sm:$0xff] %v4205_v52  ;;  %v4211_v56 = vld [vmem:[#allocation9 + $0x4b0] sm:$0xff]  ;;  %v8048_v59 = vmov 0.0   ;;  %v4367_v54 = vld [vmem:[#allocation9 + $0x298] sm:$0xff] }
  0x94   :  { %884 = vmatpush2.msra.mxu1 %v4185_v61  ;;  %923 = vmatpush1.msra.mxu0 %v4187_v63  ;;  %8042 = vst [vmem:[#allocation34_spill] sm:$0xff] %v4211_v56  ;;  %v4213_v61 = vld [vmem:[#allocation9 + $0x1c0] sm:$0xff]  ;;  %v4217_v63 = vld [vmem:[#allocation9 + $0x488] sm:$0xff]  ;;  %8089 = vst [vmem:[#allocation80_spill] sm:$0xff] %v4367_v54 }
  0x95   :  { %424 = vmatprep.mubr.f32.mxu1 %v7557_v0  ;;  %885 = vmatprep.subr.mxu1 %v4191_v3  ;;  %8043 = vst [vmem:[#allocation35_spill] sm:$0xff] %v4213_v61  ;;  %8044 = vst [vmem:[#allocation36_spill] sm:$0xff] %v4217_v63  ;;  %v4221_v0 = vld [vmem:[#allocation9 + $0x198] sm:$0xff]  ;;  %v4225_v3 = vld [vmem:[#allocation9 + $0x480] sm:$0xff] }
  0x96   :  { %924 = vmatprep.subr.mxu0 %v4195_v9  ;;  %425 = vmatmul.mubr.f32.gmra.mxu1 %v4050_v31  ;;  %8045 = vst [vmem:[#allocation37_spill] sm:$0xff] %v4221_v0  ;;  %8046 = vst [vmem:[#allocation38_spill] sm:$0xff] %v4225_v3  ;;  %v4227_v9 = vld [vmem:[#allocation9 + $0x190] sm:$0xff] }
  0x97   :  { %886 = vmatpush2.msra.mxu1 %v4199_v14  ;;  %925 = vmatpush1.msra.mxu0 %v4201_v18  ;;  %8047 = vst [vmem:[#allocation39_spill] sm:$0xff] %v4227_v9  ;;  %v4231_v14 = vld [vmem:[#allocation9 + $0x458] sm:$0xff]  ;;  %v4233_v18 = vld [vmem:[#allocation9 + $0x168] sm:$0xff] }
  0x98   :  { %887 = vmatprep.subr.mxu1 %v4205_v52  ;;  %926 = vmatprep.subr.mxu0 %v4207_v47  ;;  %8049 = vst [vmem:[#allocation40_spill] sm:$0xff] %v4231_v14  ;;  %8050 = vst [vmem:[#allocation41_spill] sm:$0xff] %v4233_v18  ;;  %v4237_v52 = vld [vmem:[#allocation9 + $0x450] sm:$0xff] }
  0x99   :  { %888 = vmatpush2.msra.mxu1 %v4211_v56  ;;  %927 = vmatpush1.msra.mxu0 %v4213_v61  ;;  %8051 = vst [vmem:[#allocation42_spill] sm:$0xff] %v4237_v52  ;;  %v4239_v56 = vld [vmem:[#allocation9 + $0x160] sm:$0xff]  ;;  %v4243_v61 = vld [vmem:[#allocation9 + $0x428] sm:$0xff]  ;;  %v4253_v47 = vld [vmem:[#allocation9 + $0x130] sm:$0xff] }
  0x9a   :  { %430 = vmatprep.mubr.f32.mxu1 %v8048_v59  ;;  %889 = vmatprep.subr.mxu1 %v4217_v63  ;;  %8052 = vst [vmem:[#allocation43_spill] sm:$0xff] %v4239_v56  ;;  %8053 = vst [vmem:[#allocation44_spill] sm:$0xff] %v4243_v61  ;;  %v4247_v63 = vld [vmem:[#allocation9 + $0x138] sm:$0xff] }
  0x9b   :  { %928 = vmatprep.subr.mxu0 %v4221_v0  ;;  %431 = vmatmul.mubr.f32.gmra.mxu1 %v4066_v40  ;;  %8054 = vst [vmem:[#allocation45_spill] sm:$0xff] %v4247_v63  ;;  %v4251_v0 = vld [vmem:[#allocation9 + $0x420] sm:$0xff]  ;;  %8056 = vst [vmem:[#allocation47_spill] sm:$0xff] %v4253_v47 }
  0x9c   :  { %890 = vmatpush2.msra.mxu1 %v4225_v3  ;;  %929 = vmatpush1.msra.mxu0 %v4227_v9  ;;  %8055 = vst [vmem:[#allocation46_spill] sm:$0xff] %v4251_v0  ;;  %v4257_v3 = vld [vmem:[#allocation9 + $0x3f8] sm:$0xff]  ;;  %v4259_v9 = vld [vmem:[#allocation9 + $0x108] sm:$0xff] }
  0x9d   :  { %891 = vmatprep.subr.mxu1 %v4231_v14  ;;  %930 = vmatprep.subr.mxu0 %v4233_v18  ;;  %8057 = vst [vmem:[#allocation48_spill] sm:$0xff] %v4257_v3  ;;  %8058 = vst [vmem:[#allocation49_spill] sm:$0xff] %v4259_v9  ;;  %v4263_v14 = vld [vmem:[#allocation9 + $0x3f0] sm:$0xff] }
  0x9e   :  { %892 = vmatpush2.msra.mxu1 %v4237_v52  ;;  %931 = vmatpush1.msra.mxu0 %v4239_v56  ;;  %8059 = vst [vmem:[#allocation50_spill] sm:$0xff] %v4263_v14  ;;  %v4265_v52 = vld [vmem:[#allocation9 + $0x100] sm:$0xff]  ;;  %v4269_v56 = vld [vmem:[#allocation9 + $0x3c8] sm:$0xff]  ;;  %v4279_v18 = vld [vmem:[#allocation9 + $0xd0] sm:$0xff] }
  0x9f   :  { %436 = vmatprep.mubr.f32.mxu1 %v8048_v59  ;;  %893 = vmatprep.subr.mxu1 %v4243_v61  ;;  %8060 = vst [vmem:[#allocation51_spill] sm:$0xff] %v4265_v52  ;;  %8061 = vst [vmem:[#allocation52_spill] sm:$0xff] %v4269_v56  ;;  %v4273_v61 = vld [vmem:[#allocation9 + $0xd8] sm:$0xff] }
  0xa0   :  { %932 = vmatprep.subr.mxu0 %v4247_v63  ;;  %437 = vmatmul.mubr.f32.gmra.mxu1 %v4082_v49  ;;  %8062 = vst [vmem:[#allocation53_spill] sm:$0xff] %v4273_v61  ;;  %v4277_v63 = vld [vmem:[#allocation9 + $0x3c0] sm:$0xff]  ;;  %8064 = vst [vmem:[#allocation55_spill] sm:$0xff] %v4279_v18 }
  0xa1   :  { %894 = vmatpush2.msra.mxu1 %v4251_v0  ;;  %933 = vmatpush1.msra.mxu0 %v4253_v47  ;;  %8063 = vst [vmem:[#allocation54_spill] sm:$0xff] %v4277_v63  ;;  %v4283_v0 = vld [vmem:[#allocation9 + $0x398] sm:$0xff]  ;;  %v4285_v47 = vld [vmem:[#allocation9 + $0xa8] sm:$0xff] }
  0xa2   :  { %895 = vmatprep.subr.mxu1 %v4257_v3  ;;  %934 = vmatprep.subr.mxu0 %v4259_v9  ;;  %8065 = vst [vmem:[#allocation56_spill] sm:$0xff] %v4283_v0  ;;  %8066 = vst [vmem:[#allocation57_spill] sm:$0xff] %v4285_v47  ;;  %v4289_v3 = vld [vmem:[#allocation9 + $0x390] sm:$0xff] }
  0xa3   :  { %896 = vmatpush2.msra.mxu1 %v4263_v14  ;;  %935 = vmatpush1.msra.mxu0 %v4265_v52  ;;  %8067 = vst [vmem:[#allocation58_spill] sm:$0xff] %v4289_v3  ;;  %v4291_v14 = vld [vmem:[#allocation9 + $0xa0] sm:$0xff]  ;;  %v4295_v52 = vld [vmem:[#allocation9 + $0x368] sm:$0xff]  ;;  %v4305_v9 = vld [vmem:[#allocation9 + $0x70] sm:$0xff] }
  0xa4   :  { %442 = vmatprep.mubr.f32.mxu1 %v8048_v59  ;;  %897 = vmatprep.subr.mxu1 %v4269_v56  ;;  %8068 = vst [vmem:[#allocation59_spill] sm:$0xff] %v4291_v14  ;;  %8069 = vst [vmem:[#allocation60_spill] sm:$0xff] %v4295_v52  ;;  %v4299_v56 = vld [vmem:[#allocation9 + $0x78] sm:$0xff] }
  0xa5   :  { %936 = vmatprep.subr.mxu0 %v4273_v61  ;;  %443 = vmatmul.mubr.f32.gmra.mxu1 %v4098_v58  ;;  %8070 = vst [vmem:[#allocation61_spill] sm:$0xff] %v4299_v56  ;;  %v4303_v61 = vld [vmem:[#allocation9 + $0x360] sm:$0xff]  ;;  %8072 = vst [vmem:[#allocation63_spill] sm:$0xff] %v4305_v9 }
  0xa6   :  { %898 = vmatpush2.msra.mxu1 %v4277_v63  ;;  %937 = vmatpush1.msra.mxu0 %v4279_v18  ;;  %8071 = vst [vmem:[#allocation62_spill] sm:$0xff] %v4303_v61  ;;  %v4309_v63 = vld [vmem:[#allocation9 + $0x338] sm:$0xff]  ;;  %v4311_v18 = vld [vmem:[#allocation9 + $0x48] sm:$0xff] }
  0xa7   :  { %899 = vmatprep.subr.mxu1 %v4283_v0  ;;  %938 = vmatprep.subr.mxu0 %v4285_v47  ;;  %8073 = vst [vmem:[#allocation64_spill] sm:$0xff] %v4309_v63  ;;  %8074 = vst [vmem:[#allocation65_spill] sm:$0xff] %v4311_v18  ;;  %v4315_v0 = vld [vmem:[#allocation9 + $0x330] sm:$0xff]  ;;  %v4323_v47 = vld [vmem:[#allocation9 + $0x18] sm:$0xff] }
  0xa8   :  { %900 = vmatpush2.msra.mxu1 %v4289_v3  ;;  %939 = vmatpush1.msra.mxu0 %v4291_v14  ;;  %8075 = vst [vmem:[#allocation66_spill] sm:$0xff] %v4315_v0  ;;  %v4317_v3 = vld [vmem:[#allocation9 + $0x40] sm:$0xff]  ;;  %v4321_v14 = vld [vmem:[#allocation9 + $0x308] sm:$0xff]  ;;  %8078 = vst [vmem:[#allocation69_spill] sm:$0xff] %v4323_v47 }
  0xa9   :  { %448 = vmatprep.mubr.f32.mxu1 %v8048_v59  ;;  %901 = vmatprep.subr.mxu1 %v4295_v52  ;;  %8076 = vst [vmem:[#allocation67_spill] sm:$0xff] %v4317_v3  ;;  %8077 = vst [vmem:[#allocation68_spill] sm:$0xff] %v4321_v14  ;;  %v4327_v52 = vld [vmem:[#allocation9 + $0x300] sm:$0xff] }
  0xaa   :  { %940 = vmatprep.subr.mxu0 %v4299_v56  ;;  %449 = vmatmul.mubr.f32.gmra.mxu1 %v4114_v7  ;;  %8079 = vst [vmem:[#allocation70_spill] sm:$0xff] %v4327_v52  ;;  %v4329_v56 = vld [vmem:[#allocation6 + $0x8] sm:$0xff] }
  0xab   :  { %902 = vmatpush2.msra.mxu1 %v4303_v61  ;;  %941 = vmatpush1.msra.mxu0 %v4305_v9  ;;  %v4335_v61 = vld [vmem:[#allocation6] sm:$0xff]  ;;  %v4339_v9 = vld [vmem:[#allocation9 + $0x5e8] sm:$0xff] }
  0xac   :  { %903 = vmatprep.subr.mxu1 %v4309_v63  ;;  %942 = vmatprep.subr.mxu0 %v4311_v18  ;;  %8081 = vst [vmem:[#allocation72_spill] sm:$0xff] %v4339_v9  ;;  %v4341_v63 = vld [vmem:[#allocation9 + $0x2f8] sm:$0xff]  ;;  %v4345_v18 = vld [vmem:[#allocation9 + $0x5e0] sm:$0xff] }
  0xad   :  { %904 = vmatpush2.msra.mxu1 %v4315_v0  ;;  %943 = vmatpush1.msra.mxu0 %v4317_v3  ;;  %8082 = vst [vmem:[#allocation73_spill] sm:$0xff] %v4341_v63  ;;  %v4347_v0 = vld [vmem:[#allocation9 + $0x2f0] sm:$0xff]  ;;  %v4351_v3 = vld [vmem:[#allocation9 + $0x5b8] sm:$0xff] }
  0xae   :  { %905 = vmatprep.subr.mxu1 %v4321_v14  ;;  %944 = vmatprep.subr.mxu0 %v4323_v47  ;;  %8083 = vst [vmem:[#allocation74_spill] sm:$0xff] %v4347_v0  ;;  %8084 = vst [vmem:[#allocation75_spill] sm:$0xff] %v4351_v3  ;;  %v4353_v14 = vld [vmem:[#allocation9 + $0x2c8] sm:$0xff]  ;;  %v4357_v47 = vld [vmem:[#allocation9 + $0x5b0] sm:$0xff] }
  0xaf   :  { %906 = vmatpush2.msra.mxu1 %v4327_v52  ;;  %907 = vmatprep.mubr.f32.mxu1 %v4329_v56  ;;  %8085 = vst [vmem:[#allocation76_spill] sm:$0xff] %v4353_v14  ;;  %8086 = vst [vmem:[#allocation77_spill] sm:$0xff] %v4357_v47  ;;  %v4361_v52 = vld [vmem:[#allocation9 + $0x2c0] sm:$0xff] }
  0xb0   :  { %945 = vmatpush1.msra.mxu0 %v4333_v2  ;;  %908 = vmatmul.mubr.f32.vlgmr.msra.gmra.mxu1 %v4335_v61  ;;  %8087 = vst [vmem:[#allocation78_spill] sm:$0xff] %v4361_v52  ;;  %v4365_v2 = vld [vmem:[#allocation9 + $0x588] sm:$0xff] }
  0xb1   :  { %946 = vmatprep.subr.mxu0 %v4339_v9  ;;  %985 = vmatprep.subr.mxu1 %v4341_v63  ;;  %8088 = vst [vmem:[#allocation79_spill] sm:$0xff] %v4365_v2  ;;  %v4371_v63 = vld [vmem:[#allocation9 + $0x580] sm:$0xff]  ;;  %v4373_v9 = vld [vmem:[#allocation9 + $0x290] sm:$0xff] }
  0xb2   :  { %947 = vmatpush2.msra.mxu0 %v4345_v18  ;;  %986 = vmatpush1.msra.mxu1 %v4347_v0  ;;  %8090 = vst [vmem:[#allocation81_spill] sm:$0xff] %v4373_v9  ;;  %v4377_v0 = vld [vmem:[#allocation9 + $0x558] sm:$0xff] }
  0xb3   :  { %948 = vmatprep.subr.mxu0 %v4351_v3  ;;  %987 = vmatprep.subr.mxu1 %v4353_v14  ;;  %8091 = vst [vmem:[#allocation82_spill] sm:$0xff] %v4377_v0  ;;  %v4379_v3 = vld [vmem:[#allocation9 + $0x268] sm:$0xff]  ;;  %v4383_v14 = vld [vmem:[#allocation9 + $0x550] sm:$0xff] }
  0xb4   :  { %525 = vmatprep.mubr.f32.mxu0 %v8048_v59  ;;  %949 = vmatpush2.msra.mxu0 %v4357_v47  ;;  %8092 = vst [vmem:[#allocation83_spill] sm:$0xff] %v4379_v3  ;;  %8093 = vst [vmem:[#allocation84_spill] sm:$0xff] %v4383_v14  ;;  %v4387_v47 = vld [vmem:[#allocation9 + $0x260] sm:$0xff] }
  0xb5   :  { %988 = vmatpush1.msra.mxu1 %v4361_v52  ;;  %526 = vmatmul.mubr.f32.gmra.mxu0 %v4018_v13  ;;  %8094 = vst [vmem:[#allocation85_spill] sm:$0xff] %v4387_v47  ;;  %v4391_v13 = vld [vmem:[#allocation9 + $0x528] sm:$0xff]  ;;  %v4393_v52 = vld [vmem:[#allocation9 + $0x238] sm:$0xff] }
  0xb6   :  { %950 = vmatprep.subr.mxu0 %v4365_v2  ;;  %989 = vmatprep.subr.mxu1 %v4367_v54  ;;  %8095 = vst [vmem:[#allocation86_spill] sm:$0xff] %v4391_v13  ;;  %8096 = vst [vmem:[#allocation87_spill] sm:$0xff] %v4393_v52  ;;  %v4397_v54 = vld [vmem:[#allocation9 + $0x520] sm:$0xff]  ;;  %v4399_v2 = vld [vmem:[#allocation9 + $0x230] sm:$0xff] }
  0xb7   :  { %951 = vmatpush2.msra.mxu0 %v4371_v63  ;;  %990 = vmatpush1.msra.mxu1 %v4373_v9  ;;  %8097 = vst [vmem:[#allocation88_spill] sm:$0xff] %v4399_v2  ;;  %v4403_v9 = vld [vmem:[#allocation9 + $0x4f8] sm:$0xff] }
  0xb8   :  { %952 = vmatprep.subr.mxu0 %v4377_v0  ;;  %991 = vmatprep.subr.mxu1 %v4379_v3  ;;  %8098 = vst [vmem:[#allocation89_spill] sm:$0xff] %v4403_v9  ;;  %v4405_v0 = vld [vmem:[#allocation9 + $0x208] sm:$0xff]  ;;  %v4409_v3 = vld [vmem:[#allocation9 + $0x4f0] sm:$0xff] }
  0xb9   :  { %531 = vmatprep.mubr.f32.mxu0 %v8048_v59  ;;  %953 = vmatpush2.msra.mxu0 %v4383_v14  ;;  %8099 = vst [vmem:[#allocation90_spill] sm:$0xff] %v4405_v0  ;;  %8100 = vst [vmem:[#allocation91_spill] sm:$0xff] %v4409_v3  ;;  %v4413_v14 = vld [vmem:[#allocation9 + $0x200] sm:$0xff] }
  0xba   :  { %992 = vmatpush1.msra.mxu1 %v4387_v47  ;;  %532 = vmatmul.mubr.f32.gmra.mxu0 %v4034_v22  ;;  %8101 = vst [vmem:[#allocation92_spill] sm:$0xff] %v4413_v14  ;;  %v4417_v22 = vld [vmem:[#allocation9 + $0x4c8] sm:$0xff]  ;;  %v4419_v47 = vld [vmem:[#allocation9 + $0x1d8] sm:$0xff] }
  0xbb   :  { %954 = vmatprep.subr.mxu0 %v4391_v13  ;;  %993 = vmatprep.subr.mxu1 %v4393_v52  ;;  %8102 = vst [vmem:[#allocation93_spill] sm:$0xff] %v4417_v22  ;;  %8103 = vst [vmem:[#allocation94_spill] sm:$0xff] %v4419_v47  ;;  %v4423_v52 = vld [vmem:[#allocation9 + $0x4c0] sm:$0xff]  ;;  %v4425_v13 = vld [vmem:[#allocation9 + $0x1d0] sm:$0xff] }
  0xbc   :  { %955 = vmatpush2.msra.mxu0 %v4397_v54  ;;  %994 = vmatpush1.msra.mxu1 %v4399_v2  ;;  %8104 = vst [vmem:[#allocation95_spill] sm:$0xff] %v4425_v13  ;;  %v4429_v2 = vld [vmem:[#allocation9 + $0x498] sm:$0xff] }
  0xbd   :  { %956 = vmatprep.subr.mxu0 %v4403_v9  ;;  %995 = vmatprep.subr.mxu1 %v4405_v0  ;;  %8105 = vst [vmem:[#allocation96_spill] sm:$0xff] %v4429_v2  ;;  %v4431_v9 = vld [vmem:[#allocation9 + $0x1a8] sm:$0xff]  ;;  %v4435_v0 = vld [vmem:[#allocation9 + $0x490] sm:$0xff] }
  0xbe   :  { %537 = vmatprep.mubr.f32.mxu0 %v8048_v59  ;;  %957 = vmatpush2.msra.mxu0 %v4409_v3  ;;  %8106 = vst [vmem:[#allocation97_spill] sm:$0xff] %v4431_v9  ;;  %8107 = vst [vmem:[#allocation98_spill] sm:$0xff] %v4435_v0  ;;  %v4439_v3 = vld [vmem:[#allocation9 + $0x1a0] sm:$0xff] }
  0xbf   :  { %996 = vmatpush1.msra.mxu1 %v4413_v14  ;;  %538 = vmatmul.mubr.f32.gmra.mxu0 %v4050_v31  ;;  %8108 = vst [vmem:[#allocation99_spill] sm:$0xff] %v4439_v3  ;;  %v4443_v31 = vld [vmem:[#allocation9 + $0x468] sm:$0xff]  ;;  %v4445_v14 = vld [vmem:[#allocation9 + $0x178] sm:$0xff] }
  0xc0   :  { %958 = vmatprep.subr.mxu0 %v4417_v22  ;;  %997 = vmatprep.subr.mxu1 %v4419_v47  ;;  %8109 = vst [vmem:[#allocation100_spill] sm:$0xff] %v4443_v31  ;;  %8110 = vst [vmem:[#allocation101_spill] sm:$0xff] %v4445_v14  ;;  %v4449_v47 = vld [vmem:[#allocation9 + $0x460] sm:$0xff]  ;;  %v4451_v22 = vld [vmem:[#allocation9 + $0x170] sm:$0xff] }
  0xc1   :  { %959 = vmatpush2.msra.mxu0 %v4423_v52  ;;  %998 = vmatpush1.msra.mxu1 %v4425_v13  ;;  %8111 = vst [vmem:[#allocation102_spill] sm:$0xff] %v4451_v22  ;;  %v4455_v13 = vld [vmem:[#allocation9 + $0x438] sm:$0xff] }
  0xc2   :  { %960 = vmatprep.subr.mxu0 %v4429_v2  ;;  %999 = vmatprep.subr.mxu1 %v4431_v9  ;;  %8112 = vst [vmem:[#allocation103_spill] sm:$0xff] %v4455_v13  ;;  %v4457_v2 = vld [vmem:[#allocation9 + $0x148] sm:$0xff]  ;;  %v4461_v9 = vld [vmem:[#allocation9 + $0x430] sm:$0xff] }
  0xc3   :  { %543 = vmatprep.mubr.f32.mxu0 %v8048_v59  ;;  %961 = vmatpush2.msra.mxu0 %v4435_v0  ;;  %8113 = vst [vmem:[#allocation104_spill] sm:$0xff] %v4457_v2  ;;  %8114 = vst [vmem:[#allocation105_spill] sm:$0xff] %v4461_v9  ;;  %v4465_v0 = vld [vmem:[#allocation9 + $0x140] sm:$0xff] }
  0xc4   :  { %1000 = vmatpush1.msra.mxu1 %v4439_v3  ;;  %544 = vmatmul.mubr.f32.gmra.mxu0 %v4066_v40  ;;  %8115 = vst [vmem:[#allocation106_spill] sm:$0xff] %v4465_v0  ;;  %v4469_v40 = vld [vmem:[#allocation9 + $0x408] sm:$0xff]  ;;  %v4471_v3 = vld [vmem:[#allocation9 + $0x118] sm:$0xff] }
  0xc5   :  { %962 = vmatprep.subr.mxu0 %v4443_v31  ;;  %1001 = vmatprep.subr.mxu1 %v4445_v14  ;;  %8116 = vst [vmem:[#allocation107_spill] sm:$0xff] %v4469_v40  ;;  %8117 = vst [vmem:[#allocation108_spill] sm:$0xff] %v4471_v3  ;;  %v4475_v14 = vld [vmem:[#allocation9 + $0x400] sm:$0xff]  ;;  %v4477_v31 = vld [vmem:[#allocation9 + $0x110] sm:$0xff] }
  0xc6   :  { %963 = vmatpush2.msra.mxu0 %v4449_v47  ;;  %1002 = vmatpush1.msra.mxu1 %v4451_v22  ;;  %8118 = vst [vmem:[#allocation109_spill] sm:$0xff] %v4477_v31  ;;  %v4481_v22 = vld [vmem:[#allocation9 + $0x3d8] sm:$0xff] }
  0xc7   :  { %964 = vmatprep.subr.mxu0 %v4455_v13  ;;  %1003 = vmatprep.subr.mxu1 %v4457_v2  ;;  %8119 = vst [vmem:[#allocation110_spill] sm:$0xff] %v4481_v22  ;;  %v4483_v13 = vld [vmem:[#allocation9 + $0xe8] sm:$0xff]  ;;  %v4487_v2 = vld [vmem:[#allocation9 + $0x3d0] sm:$0xff] }
  0xc8   :  { %549 = vmatprep.mubr.f32.mxu0 %v8048_v59  ;;  %965 = vmatpush2.msra.mxu0 %v4461_v9  ;;  %8120 = vst [vmem:[#allocation111_spill] sm:$0xff] %v4483_v13  ;;  %8121 = vst [vmem:[#allocation112_spill] sm:$0xff] %v4487_v2  ;;  %v4491_v9 = vld [vmem:[#allocation9 + $0xe0] sm:$0xff] }
  0xc9   :  { %1004 = vmatpush1.msra.mxu1 %v4465_v0  ;;  %550 = vmatmul.mubr.f32.gmra.mxu0 %v4082_v49  ;;  %8122 = vst [vmem:[#allocation113_spill] sm:$0xff] %v4491_v9  ;;  %v4495_v49 = vld [vmem:[#allocation9 + $0x3a8] sm:$0xff]  ;;  %v4497_v0 = vld [vmem:[#allocation9 + $0xb8] sm:$0xff] }
  0xca   :  { %966 = vmatprep.subr.mxu0 %v4469_v40  ;;  %1005 = vmatprep.subr.mxu1 %v4471_v3  ;;  %8123 = vst [vmem:[#allocation114_spill] sm:$0xff] %v4495_v49  ;;  %8124 = vst [vmem:[#allocation115_spill] sm:$0xff] %v4497_v0  ;;  %v4501_v3 = vld [vmem:[#allocation9 + $0x3a0] sm:$0xff]  ;;  %v4503_v40 = vld [vmem:[#allocation9 + $0xb0] sm:$0xff] }
  0xcb   :  { %967 = vmatpush2.msra.mxu0 %v4475_v14  ;;  %1006 = vmatpush1.msra.mxu1 %v4477_v31  ;;  %8125 = vst [vmem:[#allocation116_spill] sm:$0xff] %v4503_v40  ;;  %v4507_v31 = vld [vmem:[#allocation9 + $0x378] sm:$0xff] }
  0xcc   :  { %968 = vmatprep.subr.mxu0 %v4481_v22  ;;  %1007 = vmatprep.subr.mxu1 %v4483_v13  ;;  %8126 = vst [vmem:[#allocation117_spill] sm:$0xff] %v4507_v31  ;;  %v4509_v22 = vld [vmem:[#allocation9 + $0x88] sm:$0xff]  ;;  %v4513_v13 = vld [vmem:[#allocation9 + $0x370] sm:$0xff] }
  0xcd   :  { %555 = vmatprep.mubr.f32.mxu0 %v8048_v59  ;;  %969 = vmatpush2.msra.mxu0 %v4487_v2  ;;  %8127 = vst [vmem:[#allocation118_spill] sm:$0xff] %v4509_v22  ;;  %v4517_v2 = vld [vmem:[#allocation9 + $0x80] sm:$0xff] }
  0xce   :  { %1008 = vmatpush1.msra.mxu1 %v4491_v9  ;;  %556 = vmatmul.mubr.f32.gmra.mxu0 %v4098_v58  ;;  %8128 = vst [vmem:[#allocation119_spill] sm:$0xff] %v4517_v2  ;;  %v4521_v58 = vld [vmem:[#allocation9 + $0x348] sm:$0xff]  ;;  %v4523_v9 = vld [vmem:[#allocation9 + $0x58] sm:$0xff] }
  0xcf   :  { %970 = vmatprep.subr.mxu0 %v4495_v49  ;;  %1009 = vmatprep.subr.mxu1 %v4497_v0  ;;  %8129 = vst [vmem:[#allocation120_spill] sm:$0xff] %v4523_v9  ;;  %v4527_v0 = vld [vmem:[#allocation9 + $0x340] sm:$0xff]  ;;  %v4529_v49 = vld [vmem:[#allocation9 + $0x50] sm:$0xff] }
  0xd0   :  { %971 = vmatpush2.msra.mxu0 %v4501_v3  ;;  %1010 = vmatpush1.msra.mxu1 %v4503_v40  ;;  %8130 = vst [vmem:[#allocation121_spill] sm:$0xff] %v4529_v49  ;;  %v4533_v40 = vld [vmem:[#allocation9 + $0x318] sm:$0xff] }
  0xd1   :  { %972 = vmatprep.subr.mxu0 %v4507_v31  ;;  %1011 = vmatprep.subr.mxu1 %v4509_v22  ;;  %v4535_v31 = vld [vmem:[#allocation9 + $0x28] sm:$0xff]  ;;  %v4539_v22 = vld [vmem:[#allocation9 + $0x310] sm:$0xff] }
  0xd2   :  { %561 = vmatprep.mubr.f32.mxu0 %v8048_v59  ;;  %973 = vmatpush2.msra.mxu0 %v4513_v13  ;;  %8131 = vst [vmem:[#allocation122_spill] sm:$0xff] %v4535_v31  ;;  %8132 = vst [vmem:[#allocation123_spill] sm:$0xff] %v4539_v22  ;;  %v4543_v59 = vld [vmem:[#allocation9 + $0x20] sm:$0xff] }
  0xd3   :  { %1012 = vmatpush1.msra.mxu1 %v4517_v2  ;;  %562 = vmatmul.mubr.f32.gmra.mxu0 %v4114_v7  ;;  %8133 = vst [vmem:[#allocation124_spill] sm:$0xff] %v4543_v59  ;;  %v4547_v7 = vld [vmem:[#allocation9 + $0x5f8] sm:$0xff]  ;;  %v4551_v2 = vld [vmem:[#allocation9 + $0x5f0] sm:$0xff] }
  0xd4   :  { %974 = vmatprep.subr.mxu0 %v4521_v58  ;;  %1013 = vmatprep.subr.mxu1 %v4523_v9  ;;  %8134 = vst [vmem:[#allocation125_spill] sm:$0xff] %v4547_v7  ;;  %v4555_v9 = vld [vmem:[#allocation9 + $0x5c8] sm:$0xff] }
  0xd5   :  { %975 = vmatpush2.msra.mxu0 %v4527_v0  ;;  %1014 = vmatpush1.msra.mxu1 %v4529_v49  ;;  %v4558_v49 = vld [vmem:[#allocation9 + $0x5c0] sm:$0xff] }
  0xd6   :  { %976 = vmatprep.subr.mxu0 %v4533_v40  ;;  %1015 = vmatprep.subr.mxu1 %v4535_v31  ;;  %v4562_v31 = vld [vmem:[#allocation9 + $0x598] sm:$0xff] }
  0xd7   :  { %977 = vmatpush2.msra.mxu0 %v4539_v22  ;;  %978 = vmatprep.mubr.f32.mxu0 %v4329_v56  ;;  %v4566_v22 = vld [vmem:[#allocation9 + $0x590] sm:$0xff] }
  0xd8   :  { %1016 = vmatpush1.msra.mxu1 %v4543_v59  ;;  %979 = vmatmul.mubr.f32.vlgmr.msra.gmra.mxu0 %v4335_v61  ;;  %v4570_v59 = vld [vmem:[#allocation9 + $0x568] sm:$0xff] }
  0xd9   :  { %1017 = vmatprep.subr.mxu1 %v4547_v7  ;;  %1049 = vmatprep.mubr.f32.mxu1 %v4329_v56  ;;  %v4574_v7 = vld [vmem:[#allocation9 + $0x560] sm:$0xff] }
  0xda   :  { %1018 = vmatpush2.msra.mxu1 %v4551_v2  ;;  %1107 = vmatprep.subr.mxu0 %v4003_v4  ;;  %v4578_v4 = vld [vmem:[#allocation9 + $0x538] sm:$0xff] }
  0xdb   :  { %1019 = vmatprep.subr.mxu1 %v4555_v9  ;;  %1108 = vmatpush1.msra.mxu0 %v4005_v6  ;;  %v4582_v6 = vld [vmem:[#allocation9 + $0x530] sm:$0xff] }
  0xdc   :  { %1020 = vmatpush2.msra.mxu1 %v4558_v49  ;;  %1109 = vmatprep.subr.mxu0 %v4008_v8  ;;  %v4586_v8 = vld [vmem:[#allocation9 + $0x508] sm:$0xff] }
  0xdd   :  { %1021 = vmatprep.subr.mxu1 %v4562_v31  ;;  %1110 = vmatpush1.msra.mxu0 %v4012_v10  ;;  %v4590_v10 = vld [vmem:[#allocation9 + $0x500] sm:$0xff] }
  0xde   :  { %1022 = vmatpush2.msra.mxu1 %v4566_v22  ;;  %1111 = vmatprep.subr.mxu0 %v4016_v12  ;;  %v4594_v12 = vld [vmem:[#allocation9 + $0x4d8] sm:$0xff] }
  0xdf   :  { %1023 = vmatprep.subr.mxu1 %v4570_v59  ;;  %1112 = vmatpush1.msra.mxu0 %v4021_v15  ;;  %v4598_v15 = vld [vmem:[#allocation9 + $0x4d0] sm:$0xff] }
  0xe0   :  { %1024 = vmatpush2.msra.mxu1 %v4574_v7  ;;  %1113 = vmatprep.subr.mxu0 %v4024_v17  ;;  %v4602_v17 = vld [vmem:[#allocation9 + $0x4a8] sm:$0xff] }
  0xe1   :  { %1025 = vmatprep.subr.mxu1 %v4578_v4  ;;  %1114 = vmatpush1.msra.mxu0 %v4028_v19  ;;  %v4606_v19 = vld [vmem:[#allocation9 + $0x4a0] sm:$0xff] }
  0xe2   :  { %1026 = vmatpush2.msra.mxu1 %v4582_v6  ;;  %1115 = vmatprep.subr.mxu0 %v4032_v21  ;;  %v4610_v21 = vld [vmem:[#allocation9 + $0x478] sm:$0xff] }
  0xe3   :  { %1027 = vmatprep.subr.mxu1 %v4586_v8  ;;  %1116 = vmatpush1.msra.mxu0 %v4037_v24  ;;  %v4614_v24 = vld [vmem:[#allocation9 + $0x470] sm:$0xff] }
  0xe4   :  { %1028 = vmatpush2.msra.mxu1 %v4590_v10  ;;  %1117 = vmatprep.subr.mxu0 %v4040_v26  ;;  %v4618_v26 = vld [vmem:[#allocation9 + $0x448] sm:$0xff] }
  0xe5   :  { %1029 = vmatprep.subr.mxu1 %v4594_v12  ;;  %1118 = vmatpush1.msra.mxu0 %v4044_v28  ;;  %v4622_v28 = vld [vmem:[#allocation9 + $0x440] sm:$0xff] }
  0xe6   :  { %1030 = vmatpush2.msra.mxu1 %v4598_v15  ;;  %1119 = vmatprep.subr.mxu0 %v4048_v30  ;;  %v4626_v30 = vld [vmem:[#allocation9 + $0x418] sm:$0xff] }
  0xe7   :  { %1031 = vmatprep.subr.mxu1 %v4602_v17  ;;  %1120 = vmatpush1.msra.mxu0 %v4053_v33  ;;  %v4630_v33 = vld [vmem:[#allocation9 + $0x410] sm:$0xff] }
  0xe8   :  { %1032 = vmatpush2.msra.mxu1 %v4606_v19  ;;  %1121 = vmatprep.subr.mxu0 %v4056_v35  ;;  %v4634_v35 = vld [vmem:[#allocation9 + $0x3e8] sm:$0xff] }
  0xe9   :  { %1033 = vmatprep.subr.mxu1 %v4610_v21  ;;  %1122 = vmatpush1.msra.mxu0 %v4060_v37  ;;  %v4638_v37 = vld [vmem:[#allocation9 + $0x3e0] sm:$0xff] }
  0xea   :  { %1034 = vmatpush2.msra.mxu1 %v4614_v24  ;;  %1123 = vmatprep.subr.mxu0 %v4064_v39  ;;  %v4642_v39 = vld [vmem:[#allocation9 + $0x3b8] sm:$0xff] }
  0xeb   :  { %1035 = vmatprep.subr.mxu1 %v4618_v26  ;;  %1124 = vmatpush1.msra.mxu0 %v4069_v42  ;;  %v4646_v42 = vld [vmem:[#allocation9 + $0x3b0] sm:$0xff] }
  0xec   :  { %1036 = vmatpush2.msra.mxu1 %v4622_v28  ;;  %1125 = vmatprep.subr.mxu0 %v4072_v44  ;;  %v4650_v44 = vld [vmem:[#allocation9 + $0x388] sm:$0xff] }
  0xed   :  { %1037 = vmatprep.subr.mxu1 %v4626_v30  ;;  %1126 = vmatpush1.msra.mxu0 %v4076_v46  ;;  %v4654_v46 = vld [vmem:[#allocation9 + $0x380] sm:$0xff] }
  0xee   :  { %1038 = vmatpush2.msra.mxu1 %v4630_v33  ;;  %1127 = vmatprep.subr.mxu0 %v4080_v48  ;;  %v4658_v48 = vld [vmem:[#allocation9 + $0x358] sm:$0xff] }
  0xef   :  { %1039 = vmatprep.subr.mxu1 %v4634_v35  ;;  %1128 = vmatpush1.msra.mxu0 %v4085_v51  ;;  %v4662_v51 = vld [vmem:[#allocation9 + $0x350] sm:$0xff] }
  0xf0   :  { %1040 = vmatpush2.msra.mxu1 %v4638_v37  ;;  %1129 = vmatprep.subr.mxu0 %v4088_v53  ;;  %v4666_v53 = vld [vmem:[#allocation9 + $0x328] sm:$0xff] }
  0xf1   :  { %1041 = vmatprep.subr.mxu1 %v4642_v39  ;;  %1130 = vmatpush1.msra.mxu0 %v4092_v55  ;;  %v4670_v55 = vld [vmem:[#allocation9 + $0x320] sm:$0xff] }
  0xf2   :  { %1042 = vmatpush2.msra.mxu1 %v4646_v42  ;;  %1131 = vmatprep.subr.mxu0 %v4096_v57  ;;  %v8135_v57 = vld [vmem:[#allocation23_spill] sm:$0xff] }
  0xf3   :  { %1043 = vmatprep.subr.mxu1 %v4650_v44  ;;  %1132 = vmatpush1.msra.mxu0 %v4101_v60  ;;  %v8136_v60 = vld [vmem:[#allocation20_spill] sm:$0xff] }
  0xf4   :  { %1044 = vmatpush2.msra.mxu1 %v4654_v46  ;;  %1133 = vmatprep.subr.mxu0 %v4104_v62  ;;  %v8137_v62 = vld [vmem:[#allocation25_spill] sm:$0xff] }
  0xf5   :  { %1045 = vmatprep.subr.mxu1 %v4658_v48  ;;  %1134 = vmatpush1.msra.mxu0 %v4108_v1  ;;  %v8138_v1 = vld [vmem:[#allocation21_spill] sm:$0xff] }
  0xf6   :  { %1046 = vmatpush2.msra.mxu1 %v4662_v51  ;;  %1135 = vmatprep.subr.mxu0 %v4112_v5  ;;  %v8139_v5 = vld [vmem:[#allocation27_spill] sm:$0xff] }
  0xf7   :  { %1047 = vmatprep.subr.mxu1 %v4666_v53  ;;  %1136 = vmatpush1.msra.mxu0 %v4117_v11  ;;  %v8140_v11 = vld [vmem:[#allocation22_spill] sm:$0xff] }
  0xf8   :  { %1048 = vmatpush2.msra.mxu1 %v4670_v55  ;;  %1137 = vmatprep.subr.mxu0 %v4120_v16  ;;  %v8141_v16 = vld [vmem:[#allocation29_spill] sm:$0xff] }
  0xf9   :  { %1050 = vmatmul.mubr.f32.vlgmr.msra.gmra.mxu1 %v4335_v61  ;;  %1178 = vmatprep.subr.mxu1 %v4130_v25  ;;  %v8144_v25 = vld [vmem:[#allocation26_spill] sm:$0xff] }
  0xfa   :  { %1179 = vmatpush1.msra.mxu1 %v4135_v29  ;;  %1138 = vmatpush1.msra.mxu0 %v4124_v20  ;;  %v8142_v20 = vld [vmem:[#allocation24_spill] sm:$0xff] }
  0xfb   :  { %1180 = vmatprep.subr.mxu1 %v4143_v34  ;;  %1139 = vmatprep.subr.mxu0 %v4127_v23  ;;  %v8143_v23 = vld [vmem:[#allocation31_spill] sm:$0xff]  ;;  %v8146_v29 = vld [vmem:[#allocation28_spill] sm:$0xff]  ;;  %v8148_v34 = vld [vmem:[#allocation30_spill] sm:$0xff] }
  0xfc   :  { %1181 = vmatpush1.msra.mxu1 %v4149_v38  ;;  %1140 = vmatpush2.msra.mxu0 %v4133_v27  ;;  %v8145_v27 = vld [vmem:[#allocation33_spill] sm:$0xff]  ;;  %v8150_v38 = vld [vmem:[#allocation32_spill] sm:$0xff] }
  0xfd   :  { %1182 = vmatprep.subr.mxu1 %v4155_v43  ;;  %1141 = vmatprep.subr.mxu0 %v4139_v32  ;;  %v8147_v32 = vld [vmem:[#allocation35_spill] sm:$0xff]  ;;  %v8152_v43 = vld [vmem:[#allocation34_spill] sm:$0xff] }
  0xfe   :  { %1183 = vmatpush1.msra.mxu1 %v4161_v45  ;;  %1142 = vmatpush2.msra.mxu0 %v4147_v36  ;;  %v8149_v36 = vld [vmem:[#allocation37_spill] sm:$0xff] }
  0xff   :  { %1184 = vmatprep.subr.mxu1 %v4169_v50  ;;  %1143 = vmatprep.subr.mxu0 %v4153_v41  ;;  %v8151_v41 = vld [vmem:[#allocation39_spill] sm:$0xff]  ;;  %v8153_v45 = vld [vmem:[#allocation41_spill] sm:$0xff]  ;;  %v8154_v50 = vld [vmem:[#allocation36_spill] sm:$0xff] }
 0x100   :  { %1185 = vmatpush1.msra.mxu1 %v8135_v57  ;;  %1144 = vmatpush2.msra.mxu0 %v8136_v60  ;;  %v8155_v57 = vld [vmem:[#allocation43_spill] sm:$0xff]  ;;  %v8156_v60 = vld [vmem:[#allocation38_spill] sm:$0xff] }
 0x101   :  { %1186 = vmatprep.subr.mxu1 %v8137_v62  ;;  %1145 = vmatprep.subr.mxu0 %v8138_v1  ;;  %v8157_v62 = vld [vmem:[#allocation45_spill] sm:$0xff]  ;;  %v8158_v1 = vld [vmem:[#allocation40_spill] sm:$0xff] }
 0x102   :  { %1187 = vmatpush1.msra.mxu1 %v8139_v5  ;;  %1146 = vmatpush2.msra.mxu0 %v8140_v11  ;;  %v8159_v5 = vld [vmem:[#allocation47_spill] sm:$0xff]  ;;  %v8160_v11 = vld [vmem:[#allocation42_spill] sm:$0xff] }
 0x103   :  { %1188 = vmatprep.subr.mxu1 %v8141_v16  ;;  %1147 = vmatprep.subr.mxu0 %v8142_v20  ;;  %v8161_v16 = vld [vmem:[#allocation49_spill] sm:$0xff]  ;;  %v8162_v20 = vld [vmem:[#allocation44_spill] sm:$0xff] }
 0x104   :  { %1189 = vmatpush1.msra.mxu1 %v8143_v23  ;;  %1148 = vmatpush2.msra.mxu0 %v8144_v25  ;;  %v8163_v23 = vld [vmem:[#allocation51_spill] sm:$0xff]  ;;  %v8164_v25 = vld [vmem:[#allocation46_spill] sm:$0xff] }
 0x105   :  { %1190 = vmatprep.subr.mxu1 %v8145_v27  ;;  %1149 = vmatprep.subr.mxu0 %v8146_v29  ;;  %v8165_v27 = vld [vmem:[#allocation53_spill] sm:$0xff]  ;;  %v8166_v29 = vld [vmem:[#allocation48_spill] sm:$0xff] }
 0x106   :  { %1191 = vmatpush1.msra.mxu1 %v8147_v32  ;;  %1150 = vmatpush2.msra.mxu0 %v8148_v34  ;;  %v8167_v32 = vld [vmem:[#allocation55_spill] sm:$0xff]  ;;  %v8168_v34 = vld [vmem:[#allocation50_spill] sm:$0xff] }
 0x107   :  { %1192 = vmatprep.subr.mxu1 %v8149_v36  ;;  %1151 = vmatprep.subr.mxu0 %v8150_v38  ;;  %v8169_v36 = vld [vmem:[#allocation57_spill] sm:$0xff]  ;;  %v8170_v38 = vld [vmem:[#allocation52_spill] sm:$0xff] }
 0x108   :  { %1193 = vmatpush1.msra.mxu1 %v8151_v41  ;;  %1152 = vmatpush2.msra.mxu0 %v8152_v43  ;;  %v8171_v41 = vld [vmem:[#allocation59_spill] sm:$0xff]  ;;  %v8172_v43 = vld [vmem:[#allocation54_spill] sm:$0xff] }
 0x109   :  { %1194 = vmatprep.subr.mxu1 %v8153_v45  ;;  %1153 = vmatprep.subr.mxu0 %v8154_v50  ;;  %v8173_v45 = vld [vmem:[#allocation61_spill] sm:$0xff]  ;;  %v8174_v50 = vld [vmem:[#allocation56_spill] sm:$0xff] }
 0x10a   :  { %1195 = vmatpush1.msra.mxu1 %v8155_v57  ;;  %1154 = vmatpush2.msra.mxu0 %v8156_v60  ;;  %v8175_v57 = vld [vmem:[#allocation63_spill] sm:$0xff]  ;;  %v8176_v60 = vld [vmem:[#allocation58_spill] sm:$0xff] }
 0x10b   :  { %1196 = vmatprep.subr.mxu1 %v8157_v62  ;;  %1155 = vmatprep.subr.mxu0 %v8158_v1  ;;  %v8177_v62 = vld [vmem:[#allocation65_spill] sm:$0xff]  ;;  %v8178_v1 = vld [vmem:[#allocation60_spill] sm:$0xff] }
 0x10c   :  { %1197 = vmatpush1.msra.mxu1 %v8159_v5  ;;  %1156 = vmatpush2.msra.mxu0 %v8160_v11  ;;  %v8179_v5 = vld [vmem:[#allocation67_spill] sm:$0xff]  ;;  %v8180_v11 = vld [vmem:[#allocation62_spill] sm:$0xff] }
 0x10d   :  { %1198 = vmatprep.subr.mxu1 %v8161_v16  ;;  %1157 = vmatprep.subr.mxu0 %v8162_v20  ;;  %v8181_v16 = vld [vmem:[#allocation69_spill] sm:$0xff]  ;;  %v8182_v20 = vld [vmem:[#allocation64_spill] sm:$0xff] }
 0x10e   :  { %1199 = vmatpush1.msra.mxu1 %v8163_v23  ;;  %1158 = vmatpush2.msra.mxu0 %v8164_v25  ;;  %v8183_v23 = vld [vmem:[#allocation71_spill] sm:$0xff]  ;;  %v8184_v25 = vld [vmem:[#allocation66_spill] sm:$0xff] }
 0x10f   :  { %1200 = vmatprep.subr.mxu1 %v8165_v27  ;;  %1159 = vmatprep.subr.mxu0 %v8166_v29  ;;  %v8185_v27 = vld [vmem:[#allocation72_spill] sm:$0xff] }
 0x110   :  { %1201 = vmatpush1.msra.mxu1 %v8167_v32  ;;  %1160 = vmatpush2.msra.mxu0 %v8168_v34  ;;  %v8186_v29 = vld [vmem:[#allocation68_spill] sm:$0xff]  ;;  %v8187_v32 = vld [vmem:[#allocation70_spill] sm:$0xff]  ;;  %v199_v34 = vlaneseq }
 0x111   :  { %1202 = vmatprep.subr.mxu1 %v8169_v36  ;;  %1161 = vmatprep.subr.mxu0 %v8170_v38  ;;  %v8188_v36 = vld [vmem:[#allocation75_spill] sm:$0xff]  ;;  %v8189_v38 = vld [vmem:[#allocation73_spill] sm:$0xff] }
 0x112   :  { %1203 = vmatpush1.msra.mxu1 %v8171_v41  ;;  %1162 = vmatpush2.msra.mxu0 %v8172_v43  ;;  %v8190_v41 = vld [vmem:[#allocation77_spill] sm:$0xff]  ;;  %v8191_v43 = vld [vmem:[#allocation79_spill] sm:$0xff] }
 0x113   :  { %1204 = vmatprep.subr.mxu1 %v8173_v45  ;;  %1163 = vmatprep.subr.mxu0 %v8174_v50  ;;  %v4752_v45 = vshrl.u32 %v199_v34, 7  ;;  %v8192_v50 = vld [vmem:[#allocation82_spill] sm:$0xff] }
 0x114   :  { %1205 = vmatpush1.msra.mxu1 %v8175_v57  ;;  %1164 = vmatpush2.msra.mxu0 %v8176_v60  ;;  %v8193_v57 = vld [vmem:[#allocation84_spill] sm:$0xff]  ;;  %v8199_v34 = vld [vmem:[#allocation98_spill] sm:$0xff] }
 0x115   :  { %1206 = vmatprep.subr.mxu1 %v8177_v62  ;;  %1165 = vmatprep.subr.mxu0 %v8178_v1  ;;  %v8194_v62 = vld [vmem:[#allocation86_spill] sm:$0xff]  ;;  %v7660_v1 = vsub.s32 1, %v4752_v45 }
 0x116   :  { %1207 = vmatpush1.msra.mxu1 %v8179_v5  ;;  %1166 = vmatpush2.msra.mxu0 %v8180_v11  ;;  %v8195_v11 = vld [vmem:[#allocation89_spill] sm:$0xff] }
 0x117   :  { %1208 = vmatprep.subr.mxu1 %v8181_v16  ;;  %1167 = vmatprep.subr.mxu0 %v8182_v20  ;;  %v8196_v16 = vld [vmem:[#allocation91_spill] sm:$0xff] }
 0x118   :  { %1209 = vmatpush1.msra.mxu1 %v8183_v23  ;;  %1168 = vmatpush2.msra.mxu0 %v8184_v25  ;;  %v8197_v23 = vld [vmem:[#allocation93_spill] sm:$0xff] }
 0x119   :  { %1210 = vmatprep.subr.mxu1 %v8185_v27  ;;  %1169 = vmatprep.subr.mxu0 %v8186_v29  ;;  %v8198_v29 = vld [vmem:[#allocation96_spill] sm:$0xff] }
 0x11a   :  { %1211 = vmatpush2.msra.mxu1 %v4345_v18  ;;  %1170 = vmatpush2.msra.mxu0 %v8187_v32  ;;  %v7661_v18 = vsub.s32 0, %v4752_v45 }
 0x11b   :  { %1212 = vmatprep.subr.mxu1 %v8188_v36  ;;  %1249 = vmatprep.subr.mxu0 %v8189_v38  ;;  %v8201_v38 = vld [vmem:[#allocation100_spill] sm:$0xff] }
 0x11c   :  { %1213 = vmatpush2.msra.mxu1 %v8190_v41  ;;  %v8202_v41 = vld [vmem:[#allocation103_spill] sm:$0xff] }
 0x11d   :  { %1214 = vmatprep.subr.mxu1 %v8191_v43 }
 0x11e   :  { %1215 = vmatpush2.msra.mxu1 %v4371_v63  ;;  %v4768_v63 = vld [vmem:[%s7548_s4] sm:$0x3f]  ;;  %s3934_s4 = smov [#allocation12]  }
 0x11f   :  { %1216 = vmatprep.subr.mxu1 %v8192_v50  ;;  %v4774_v20 = vrot.slane %v4768_v63, %v7661_v18  ;;  %v4781_v25 = vrot.slane %v4768_v63, %v7660_v1  ;;  %v8204_v50 = vld [vmem:[#allocation105_spill] sm:$0xff]  ;;  %s2962_s29 = sshll.u32 %s3934_s4, 4  ;;  %s2963_s29 = int_to_ptr.vmem [resolvable:$true] %s2962_s29 }
 0x120   :  { %1217 = vmatpush2.msra.mxu1 %v8193_v57  ;;  %s3874_s9 = scalar_lea.vmem %s2963_s29, 2048  ;;  %p3879_p12 = scmp.lt.s32.totalorder %s2963_s29, %s2963_s29 }
 0x121   :  { %v4757_v60 = vpop.f32.mrf.mxu0  ;;  %1218 = vmatprep.subr.mxu1 %v8194_v62  ;;  %v8205_v62 = vld [vmem:[#allocation107_spill] sm:$0xff]  ;;  %p3875_p11 = scmp.ne.s32.totalorder %s2963_s29, %s3874_s9  ;;  %p3880_p13 = scmp.lt.s32.totalorder %s3874_s9, %s3874_s9 }
 0x122   :  { %1219 = vmatpush2.msra.mxu1 %v4397_v54 }
 0x123   :  { %v4762_v5 = vpop.f32.mrf.mxu0  ;;  %1220 = vmatprep.subr.mxu1 %v8195_v11  ;;  %p3881_p0 = por %p3880_p13, %p3879_p12 }
 0x124   :  { %1221 = vmatpush2.msra.mxu1 %v8196_v16  ;;  %v8207_v16 = vld [vmem:[#allocation110_spill] sm:$0xff] }
 0x125   :  { %1222 = vmatprep.subr.mxu1 %v8197_v23  ;;  %p3882_p1 = pnand %p3881_p0, %p3875_p11 }
 0x126   :  { %v301_v54 = vpop.f32.mrf.mxu0  ;;  %1223 = vmatpush2.msra.mxu1 %v4423_v52 }
 0x127   :  { %v4784_v27 = vadd.f32 %v301_v54, %v4774_v20  ;;  %1224 = vmatprep.subr.mxu1 %v8198_v29  ;;  %v8210_v29 = vld [vmem:[#allocation114_spill] sm:$0xff] }
 0x128   :  { %v303_v32 = vpop.f32.mrf.mxu0  ;;  %1225 = vmatpush2.msra.mxu1 %v8199_v34 }
 0x129   :  { %v4789_v36 = vadd.f32 %v303_v32, %v4781_v25  ;;  %1226 = vmatprep.subr.mxu1 %v8201_v38  ;;  %v8212_v38 = vld [vmem:[#allocation117_spill] sm:$0xff] }
 0x12a   :  { %1227 = vmatpush2.msra.mxu1 %v4449_v47  ;;  %v8208_v47 = vld [vmem:[#allocation112_spill] sm:$0xff] }
 0x12b   :  { %8200 = vst [vmem:[#allocation23_spill] sm:$0xff] %v4789_v36  ;;  %v307_v52 = vpop.f32.mrf.mxu0  ;;  %1228 = vmatprep.subr.mxu1 %v8202_v41 }
 0x12c   :  { %v4795_v43 = vadd.f32 %v307_v52, %v4774_v20  ;;  %1229 = vmatpush2.msra.mxu1 %v8204_v50  ;;  %v8215_v50 = vld [vmem:[#allocation123_spill] sm:$0xff] }
 0x12d   :  { %v309_v57 = vpop.f32.mrf.mxu0  ;;  %1230 = vmatprep.subr.mxu1 %v8205_v62 }
 0x12e   :  { %8203 = vst [vmem:[#allocation20_spill] sm:$0xff] %v4795_v43  ;;  %v4800_v11 = vadd.f32 %v309_v57, %v4781_v25  ;;  %1231 = vmatpush2.msra.mxu1 %v4475_v14  ;;  %v4825_v57 = vld [vmem:[#allocation9 + $0x2d8] sm:$0xff] }
 0x12f   :  { %1232 = vmatprep.subr.mxu1 %v8207_v16 }
 0x130   :  { %8206 = vst [vmem:[#allocation25_spill] sm:$0xff] %v4800_v11  ;;  %v313_v23 = vpop.f32.mrf.mxu0  ;;  %1233 = vmatpush2.msra.mxu1 %v8208_v47 }
 0x131   :  { %v4806_v54 = vadd.f32 %v313_v23, %v4774_v20  ;;  %1234 = vmatprep.subr.mxu1 %v8210_v29 }
 0x132   :  { %v315_v32 = vpop.f32.mrf.mxu0  ;;  %1235 = vmatpush2.msra.mxu1 %v4501_v3 }
 0x133   :  { %8209 = vst [vmem:[#allocation21_spill] sm:$0xff] %v4806_v54  ;;  %v4811_v34 = vadd.f32 %v315_v32, %v4781_v25  ;;  %1236 = vmatprep.subr.mxu1 %v8212_v38  ;;  %v4843_v38 = vpop.f32.mrf.mxu1 }
 0x134   :  { %1237 = vmatpush2.msra.mxu1 %v4513_v13 }
 0x135   :  { %8211 = vst [vmem:[#allocation27_spill] sm:$0xff] %v4811_v34  ;;  %v319_v14 = vpop.f32.mrf.mxu0  ;;  %1238 = vmatprep.subr.mxu1 %v4521_v58 }
 0x136   :  { %v4817_v52 = vadd.f32 %v319_v14, %v4774_v20  ;;  %1239 = vmatpush2.msra.mxu1 %v4527_v0 }
 0x137   :  { %v321_v41 = vpop.f32.mrf.mxu0  ;;  %1240 = vmatprep.subr.mxu1 %v4533_v40 }
 0x138   :  { %8213 = vst [vmem:[#allocation22_spill] sm:$0xff] %v4817_v52  ;;  %v4822_v3 = vadd.f32 %v321_v41, %v4781_v25  ;;  %1241 = vmatpush2.msra.mxu1 %v8215_v50  ;;  %v4848_v50 = vpop.f32.mrf.mxu1 }
 0x139   :  { %1372 = vmatprep.subr.mxu1 %v4825_v57  ;;  %8222 = vst [vmem:[#allocation30_spill] sm:$0xff] %v4848_v50 }
 0x13a   :  { %8214 = vst [vmem:[#allocation29_spill] sm:$0xff] %v4822_v3  ;;  %v325_v13 = vpop.f32.mrf.mxu0 }
 0x13b   :  { %v4829_v58 = vadd.f32 %v325_v13, %v4774_v20 }
 0x13c   :  { %v327_v62 = vpop.f32.mrf.mxu0 }
 0x13d   :  { %8216 = vst [vmem:[#allocation24_spill] sm:$0xff] %v4829_v58  ;;  %v4832_v16 = vadd.f32 %v327_v62, %v4781_v25 }
 0x13f   :  { %8217 = vst [vmem:[#allocation31_spill] sm:$0xff] %v4832_v16  ;;  %v331_v0 = vpop.f32.mrf.mxu0  ;;  %v8236_v16 = vsub.s32 0, %v4752_v45 }
 0x140   :  { %v4835_v40 = vadd.f32 %v331_v0, %v4774_v20 }
 0x141   :  { %v333_v23 = vpop.f32.mrf.mxu0 }
 0x142   :  { %8218 = vst [vmem:[#allocation26_spill] sm:$0xff] %v4835_v40  ;;  %v4838_v47 = vadd.f32 %v333_v23, %v4781_v25  ;;  %v4876_v40 = vld [vmem:[#allocation11] sm:$0x3f] }
 0x143   :  { %v4881_v58 = vrot.slane %v4876_v40, %v8236_v16 }
 0x144   :  { %8219 = vst [vmem:[#allocation33_spill] sm:$0xff] %v4838_v47  ;;  %v337_v29 = vpop.f32.mrf.mxu0 }
 0x145   :  { %v4841_v32 = vadd.f32 %v337_v29, %v4774_v20  ;;  %8237 = vst [vmem:[#allocation44_spill] sm:$0xff] %v4881_v58 }
 0x146   :  { %v339_v14 = vpop.f32.mrf.mxu0 }
 0x147   :  { %8220 = vst [vmem:[#allocation28_spill] sm:$0xff] %v4841_v32  ;;  %v4846_v41 = vadd.f32 %v339_v14, %v4781_v25 }
 0x149   :  { %8221 = vst [vmem:[#allocation35_spill] sm:$0xff] %v4846_v41 }
 0x14c   :  { %v4850_v13 = vpop.f32.mrf.mxu1 }
 0x14d   :  { %8223 = vst [vmem:[#allocation37_spill] sm:$0xff] %v4850_v13 }
 0x14e   :  { %v4852_v62 = vpop.f32.mrf.mxu1 }
 0x14f   :  { %8224 = vst [vmem:[#allocation32_spill] sm:$0xff] %v4852_v62 }
 0x151   :  { %v4854_v0 = vpop.f32.mrf.mxu1 }
 0x152   :  { %8225 = vst [vmem:[#allocation39_spill] sm:$0xff] %v4854_v0 }
 0x153   :  { %v4856_v23 = vpop.f32.mrf.mxu1 }
 0x154   :  { %8226 = vst [vmem:[#allocation34_spill] sm:$0xff] %v4856_v23 }
 0x156   :  { %v4858_v1 = vpop.f32.mrf.mxu1 }
 0x157   :  { %8227 = vst [vmem:[#allocation41_spill] sm:$0xff] %v4858_v1 }
 0x158   :  { %v4860_v29 = vpop.f32.mrf.mxu1 }
 0x159   :  { %8228 = vst [vmem:[#allocation36_spill] sm:$0xff] %v4860_v29 }
 0x15b   :  { %v4862_v18 = vpop.f32.mrf.mxu1 }
 0x15c   :  { %8229 = vst [vmem:[#allocation43_spill] sm:$0xff] %v4862_v18  ;;  %v4883_v18 = vpop.f32.mrf.mxu0 }
 0x15d   :  { %v4864_v32 = vpop.f32.mrf.mxu1  ;;  %8238 = vst [vmem:[#allocation51_spill] sm:$0xff] %v4883_v18 }
 0x15e   :  { %8230 = vst [vmem:[#allocation38_spill] sm:$0xff] %v4864_v32  ;;  %v4888_v3 = vpop.f32.mrf.mxu0  ;;  %v8241_v32 = vsub.s32 1, %v4752_v45 }
 0x15f   :  { %8239 = vst [vmem:[#allocation46_spill] sm:$0xff] %v4888_v3 }
 0x160   :  { %v4866_v14 = vpop.f32.mrf.mxu1  ;;  %v4895_v16 = vrot.slane %v4876_v40, %v8241_v32 }
 0x161   :  { %8231 = vst [vmem:[#allocation45_spill] sm:$0xff] %v4866_v14  ;;  %v296_v14 = vadd.f32 %v4757_v60, %v4774_v20 }
 0x162   :  { %v4868_v41 = vpop.f32.mrf.mxu1  ;;  %8242 = vst [vmem:[#allocation48_spill] sm:$0xff] %v4895_v16 }
 0x163   :  { %8232 = vst [vmem:[#allocation40_spill] sm:$0xff] %v4868_v41 }
 0x165   :  { %v4870_v50 = vpop.f32.mrf.mxu1 }
 0x166   :  { %8233 = vst [vmem:[#allocation47_spill] sm:$0xff] %v4870_v50 }
 0x167   :  { %v4872_v47 = vpop.f32.mrf.mxu1 }
 0x168   :  { %8234 = vst [vmem:[#allocation42_spill] sm:$0xff] %v4872_v47 }
 0x16a   :  { %v4874_v62 = vpop.f32.mrf.mxu1 }
 0x16b   :  { %8235 = vst [vmem:[#allocation49_spill] sm:$0xff] %v4874_v62 }
 0x16c   :  { %v452_v23 = vpop.f32.mrf.mxu1 }
 0x170   :  { %v909_v29 = vpop.f32.mrf.mxu1 }
 0x171   :  { %v910_v50 = vadd.f32 %v909_v29, %v4881_v58 }
 0x172   :  { %v911_v18 = vpop.f32.mrf.mxu1 }
 0x173   :  { %v1062_v52 = vadd.f32 %v910_v50, %v296_v14  ;;  %v912_v60 = vadd.f32 %v911_v18, %v4895_v16 }
 0x175   :  { %v2992_v62 = vmul.f32 -1.442695, %v1062_v52  ;;  %v4890_v1 = vpop.f32.mrf.mxu0  ;;  %v298_v52 = vadd.f32 %v4762_v5, %v4781_v25  ;;  %v209_v25 = vsub.s32 2, %v4752_v45 }
 0x176   :  { %8240 = vst [vmem:[#allocation53_spill] sm:$0xff] %v4890_v1 }
 0x177   :  { %3038 = vpow2.f32 %v2992_v62  ;;  %v4897_v34 = vpop.f32.mrf.mxu0  ;;  %v1069_v50 = vadd.f32 %v912_v60, %v298_v52 }
 0x178   :  { %8243 = vst [vmem:[#allocation55_spill] sm:$0xff] %v4897_v34 }
 0x179   :  { %v2993_v14 = vmul.f32 -1.442695, %v1069_v50  ;;  %v213_v50 = vsub.s32 3, %v4752_v45 }
 0x17a   :  { %v4899_v54 = vpop.f32.mrf.mxu0 }
 0x17b   :  { %8244 = vst [vmem:[#allocation50_spill] sm:$0xff] %v4899_v54  ;;  %3040 = vpow2.f32 %v2993_v14  ;;  %v4928_v14 = vrot.slane %v4768_v63, %v209_v25 }
 0x17c   :  { %v4902_v20 = vpop.f32.mrf.mxu0 }
 0x17d   :  { %8245 = vst [vmem:[#allocation57_spill] sm:$0xff] %v4902_v20  ;;  %v409_v41 = vadd.f32 %v4843_v38, %v4928_v14  ;;  %v217_v38 = vsub.s32 4, %v4752_v45 }
 0x17f   :  { %v4906_v29 = vpop.f32.mrf.mxu0 }
 0x180   :  { %8246 = vst [vmem:[#allocation52_spill] sm:$0xff] %v4906_v29  ;;  %v4925_v29 = vrot.slane %v4876_v40, %v209_v25 }
 0x181   :  { %v4908_v62 = vpop.f32.mrf.mxu0 }
 0x182   :  { %8247 = vst [vmem:[#allocation59_spill] sm:$0xff] %v4908_v62  ;;  %8254 = vst [vmem:[#allocation60_spill] sm:$0xff] %v4925_v29 }
 0x184   :  { %v3039_v32 = vpop.eup %3038  ;;  %v4910_v3 = vpop.f32.mrf.mxu0 }
 0x185   :  { %8248 = vst [vmem:[#allocation54_spill] sm:$0xff] %v4910_v3  ;;  %v1066_v1 = vadd.f32 1.0, %v3039_v32  ;;  %v4931_v32 = vrot.slane %v4876_v40, %v213_v50 }
 0x186   :  { %v4912_v34 = vpop.f32.mrf.mxu0 }
 0x187   :  { %8249 = vst [vmem:[#allocation61_spill] sm:$0xff] %v4912_v34  ;;  %3042 = vrcp.f32 %v1066_v1  ;;  %8255 = vst [vmem:[#allocation67_spill] sm:$0xff] %v4931_v32 }
 0x188   :  { %v3041_v52 = vpop.eup %3040 }
 0x189   :  { %v4914_v54 = vpop.f32.mrf.mxu0  ;;  %v1073_v1 = vadd.f32 1.0, %v3041_v52 }
 0x18a   :  { %8250 = vst [vmem:[#allocation56_spill] sm:$0xff] %v4914_v54  ;;  %v4935_v54 = vrot.slane %v4768_v63, %v213_v50 }
 0x18b   :  { %v4916_v18 = vpop.f32.mrf.mxu0  ;;  %3044 = vrcp.f32 %v1073_v1 }
 0x18c   :  { %8251 = vst [vmem:[#allocation63_spill] sm:$0xff] %v4916_v18  ;;  %v453_v52 = vadd.f32 %v452_v23, %v4935_v54 }
 0x18e   :  { %v4918_v20 = vpop.f32.mrf.mxu0 }
 0x18f   :  { %8252 = vst [vmem:[#allocation58_spill] sm:$0xff] %v4918_v20 }
 0x190   :  { %v4920_v5 = vpop.f32.mrf.mxu0 }
 0x191   :  { %8253 = vst [vmem:[#allocation65_spill] sm:$0xff] %v4920_v5 }
 0x193   :  { %v563_v60 = vpop.f32.mrf.mxu0 }
 0x194   :  { %v3043_v34 = vpop.eup %3042 }
 0x195   :  { %v565_v62 = vpop.f32.mrf.mxu0 }
 0x198   :  { %v980_v3 = vpop.f32.mrf.mxu0  ;;  %v3045_v13 = vpop.eup %3044 }
 0x199   :  { %v981_v18 = vadd.f32 %v980_v3, %v4925_v29  ;;  %v1079_v3 = vsub.f32 1.0, %v3045_v13  ;;  %v1081_v47 = vmul.f32 %v3045_v13, %v4335_v61 }
 0x19a   :  { %v982_v0 = vpop.f32.mrf.mxu0 }
 0x19b   :  { %v1076_v11 = vmul.f32 %v3043_v34, %v981_v18  ;;  %v983_v25 = vadd.f32 %v982_v0, %v4931_v32 }
 0x19d   :  { %v1077_v43 = vadd.f32 %v1076_v11, %v409_v41  ;;  %v1083_v5 = vadd.f32 %v983_v25, %v453_v52  ;;  %v4947_v11 = vrot.slane %v4876_v40, %v217_v38 }
 0x19f   :  { %3046 = vtanh.f32 %v1077_v43  ;;  %v2994_v20 = vmul.f32 -1.442695, %v1083_v5  ;;  %v4950_v43 = vrot.slane %v4768_v63, %v217_v38 }
 0x1a1   :  { %3048 = vpow2.f32 %v2994_v20  ;;  %v564_v23 = vadd.f32 %v563_v60, %v4950_v43  ;;  %v221_v20 = vsub.s32 5, %v4752_v45 }
 0x1a3   :  { %v4960_v25 = vrot.slane %v4768_v63, %v221_v20  ;;  %v8256_v63 = vld [vmem:[#allocation74_spill] sm:$0xff] }
 0x1a5   :  { %v566_v60 = vadd.f32 %v565_v62, %v4960_v25  ;;  %v8257_v62 = vld [vmem:[#allocation76_spill] sm:$0xff] }
 0x1ac   :  { %v3047_v29 = vpop.eup %3046 }
 0x1ad   :  { %v1080_v50 = vmul.f32 %v3047_v29, %v1079_v3  ;;  %v4956_v29 = vrot.slane %v4876_v40, %v221_v20  ;;  %v4982_v20 = vld [vmem:[#allocation9 + $0x2a0] sm:$0xff] }
 0x1ae   :  { %v3049_v34 = vpop.eup %3048 }
 0x1af   :  { %v4942_v36 = vadd.f32 %v1081_v47, %v1080_v50  ;;  %v1087_v0 = vadd.f32 1.0, %v3049_v34 }
 0x1b1   :  { %1104 = vst [vmem:[#allocation12] sm:$0xff] %v4942_v36  ;;  %3050 = vrcp.f32 %v1087_v0 }
 0x1b9   :  { %v1051_v41 = vpop.f32.mrf.mxu1 }
 0x1ba   :  { %v1052_v61 = vadd.f32 %v1051_v41, %v4947_v11 }
 0x1bb   :  { %v1053_v18 = vpop.f32.mrf.mxu1 }
 0x1bc   :  { %v1090_v47 = vadd.f32 %v1052_v61, %v564_v23  ;;  %v1054_v1 = vadd.f32 %v1053_v18, %v4956_v29  ;;  %v4974_v61 = vld [vmem:[#allocation9 + $0x2d0] sm:$0xff]  ;;  %v8260_v18 = vld [vmem:[#allocation81_spill] sm:$0xff] }
 0x1be   :  { %v2995_v13 = vmul.f32 -1.442695, %v1090_v47  ;;  %v3051_v5 = vpop.eup %3050  ;;  %v4978_v47 = vld [vmem:[#allocation9 + $0x2a8] sm:$0xff] }
 0x1bf   :  { %v1097_v52 = vmul.f32 %v3051_v5, %v1054_v1  ;;  %v4986_v5 = vld [vmem:[#allocation9 + $0x278] sm:$0xff]  ;;  %v8261_v1 = vld [vmem:[#allocation83_spill] sm:$0xff] }
 0x1c0   :  { %3052 = vpow2.f32 %v2995_v13  ;;  %v8259_v13 = vld [vmem:[#allocation80_spill] sm:$0xff] }
 0x1c1   :  { %v1098_v34 = vadd.f32 %v1097_v52, %v566_v60  ;;  %v4990_v52 = vld [vmem:[#allocation9 + $0x270] sm:$0xff]  ;;  %v8262_v60 = vld [vmem:[#allocation85_spill] sm:$0xff] }
 0x1cd   :  { %v3053_v3 = vpop.eup %3052 }
 0x1ce   :  { %v1094_v50 = vadd.f32 1.0, %v3053_v3  ;;  %v4994_v3 = vld [vmem:[#allocation9 + $0x248] sm:$0xff] }
 0x1d0   :  { %3054 = vrcp.f32 %v1094_v50  ;;  %v8263_v50 = vld [vmem:[#allocation87_spill] sm:$0xff] }
 0x1d1   :  { %3056 = vtanh.f32 %v1098_v34  ;;  %v4998_v34 = vld [vmem:[#allocation9 + $0x240] sm:$0xff] }
 0x1dd   :  { %v3055_v38 = vpop.eup %3054 }
 0x1de   :  { %v1100_v45 = vsub.f32 1.0, %v3055_v38  ;;  %v3057_v0 = vpop.eup %3056  ;;  %v1102_v41 = vmul.f32 %v3055_v38, %v4329_v56  ;;  %v8258_v56 = vld [vmem:[#allocation78_spill] sm:$0xff]  ;;  %v8264_v38 = vld [vmem:[#allocation88_spill] sm:$0xff] }
 0x1e0   :  { %v1101_v40 = vmul.f32 %v3057_v0, %v1100_v45  ;;  %v5002_v45 = vld [vmem:[#allocation9 + $0x218] sm:$0xff]  ;;  %v8265_v0 = vld [vmem:[#allocation90_spill] sm:$0xff] }
 0x1e2   :  { %v4964_v23 = vadd.f32 %v1102_v41, %v1101_v40  ;;  %v5006_v40 = vld [vmem:[#allocation9 + $0x210] sm:$0xff] }
 0x1e3   :  { %v8266_v41 = vld [vmem:[#allocation92_spill] sm:$0xff] }
 0x1e4   :  { %1106 = vst [vmem:[#allocation12 + $0x78] sm:$0xff] %v4964_v23  ;;  %1171 = vmatprep.mubr.f32.mxu0 %v4964_v23  ;;  %1242 = vmatprep.mubr.f32.mxu1 %v4964_v23 }
 0x1e5   :  { %1172 = vmatmul.mubr.f32.vlgmr.msra.gmra.mxu0 %v4942_v36  ;;  %1243 = vmatmul.mubr.f32.vlgmr.msra.gmra.mxu1 %v4942_v36 }
 0x1e6   :  { %1250 = vmatpush1.msra.mxu0 %v8256_v63  ;;  %1313 = vmatprep.mubr.f32.mxu0 %v4964_v23  ;;  %v5010_v63 = vld [vmem:[#allocation9 + $0x1e8] sm:$0xff] }
 0x1e7   :  { %1251 = vmatprep.subr.mxu0 %v8257_v62  ;;  %1373 = vmatpush1.msra.mxu1 %v4974_v61  ;;  %v8267_v62 = vld [vmem:[#allocation94_spill] sm:$0xff] }
 0x1e8   :  { %1252 = vmatpush1.msra.mxu0 %v8258_v56  ;;  %1374 = vmatprep.subr.mxu1 %v4978_v47  ;;  %v5014_v56 = vld [vmem:[#allocation9 + $0x1e0] sm:$0xff] }
 0x1e9   :  { %1253 = vmatprep.subr.mxu0 %v8259_v13  ;;  %1375 = vmatpush1.msra.mxu1 %v4982_v20  ;;  %v8268_v13 = vld [vmem:[#allocation95_spill] sm:$0xff] }
 0x1ea   :  { %1254 = vmatpush1.msra.mxu0 %v8260_v18  ;;  %1376 = vmatprep.subr.mxu1 %v4986_v5  ;;  %v5018_v18 = vld [vmem:[#allocation9 + $0x1b8] sm:$0xff] }
 0x1eb   :  { %1255 = vmatprep.subr.mxu0 %v8261_v1  ;;  %1377 = vmatpush1.msra.mxu1 %v4990_v52  ;;  %v8269_v1 = vld [vmem:[#allocation97_spill] sm:$0xff] }
 0x1ec   :  { %1256 = vmatpush1.msra.mxu0 %v8262_v60  ;;  %1378 = vmatprep.subr.mxu1 %v4994_v3  ;;  %v5022_v60 = vld [vmem:[#allocation9 + $0x1b0] sm:$0xff] }
 0x1ed   :  { %1257 = vmatprep.subr.mxu0 %v8263_v50  ;;  %1379 = vmatpush1.msra.mxu1 %v4998_v34  ;;  %8270 = vst [vmem:[#allocation62_spill] sm:$0xff] %v5022_v60  ;;  %v8271_v50 = vld [vmem:[#allocation99_spill] sm:$0xff] }
 0x1ee   :  { %1258 = vmatpush1.msra.mxu0 %v8264_v38  ;;  %1380 = vmatprep.subr.mxu1 %v5002_v45  ;;  %v5026_v38 = vld [vmem:[#allocation9 + $0x188] sm:$0xff] }
 0x1ef   :  { %1259 = vmatprep.subr.mxu0 %v8265_v0  ;;  %1381 = vmatpush1.msra.mxu1 %v5006_v40  ;;  %8272 = vst [vmem:[#allocation69_spill] sm:$0xff] %v5026_v38  ;;  %v8273_v0 = vld [vmem:[#allocation101_spill] sm:$0xff] }
 0x1f0   :  { %1260 = vmatpush1.msra.mxu0 %v8266_v41  ;;  %1382 = vmatprep.subr.mxu1 %v5010_v63  ;;  %v5030_v41 = vld [vmem:[#allocation9 + $0x180] sm:$0xff] }
 0x1f1   :  { %1261 = vmatprep.subr.mxu0 %v8267_v62  ;;  %1383 = vmatpush1.msra.mxu1 %v5014_v56  ;;  %8274 = vst [vmem:[#allocation64_spill] sm:$0xff] %v5030_v41  ;;  %v8275_v62 = vld [vmem:[#allocation102_spill] sm:$0xff] }
 0x1f2   :  { %1262 = vmatpush1.msra.mxu0 %v8268_v13  ;;  %1384 = vmatprep.subr.mxu1 %v5018_v18  ;;  %v5034_v13 = vld [vmem:[#allocation9 + $0x158] sm:$0xff] }
 0x1f3   :  { %1263 = vmatprep.subr.mxu0 %v8269_v1  ;;  %1385 = vmatpush1.msra.mxu1 %v5022_v60  ;;  %8276 = vst [vmem:[#allocation71_spill] sm:$0xff] %v5034_v13  ;;  %v8277_v1 = vld [vmem:[#allocation104_spill] sm:$0xff] }
 0x1f4   :  { %1264 = vmatpush1.msra.mxu0 %v8271_v50  ;;  %1386 = vmatprep.subr.mxu1 %v5026_v38  ;;  %v5038_v60 = vld [vmem:[#allocation9 + $0x150] sm:$0xff]  ;;  %v8279_v50 = vld [vmem:[#allocation106_spill] sm:$0xff] }
 0x1f5   :  { %1265 = vmatprep.subr.mxu0 %v8273_v0  ;;  %1387 = vmatpush1.msra.mxu1 %v5030_v41  ;;  %8278 = vst [vmem:[#allocation66_spill] sm:$0xff] %v5038_v60  ;;  %v5042_v38 = vld [vmem:[#allocation9 + $0x128] sm:$0xff]  ;;  %v8281_v0 = vld [vmem:[#allocation108_spill] sm:$0xff]  ;;  %v5046_v41 = vld [vmem:[#allocation9 + $0x120] sm:$0xff] }
 0x1f6   :  { %1266 = vmatpush1.msra.mxu0 %v8275_v62  ;;  %1388 = vmatprep.subr.mxu1 %v5034_v13  ;;  %8280 = vst [vmem:[#allocation72_spill] sm:$0xff] %v5042_v38  ;;  %8282 = vst [vmem:[#allocation68_spill] sm:$0xff] %v5046_v41  ;;  %v8283_v62 = vld [vmem:[#allocation109_spill] sm:$0xff] }
 0x1f7   :  { %1267 = vmatprep.subr.mxu0 %v8277_v1  ;;  %1389 = vmatpush1.msra.mxu1 %v5038_v60  ;;  %v5050_v13 = vld [vmem:[#allocation9 + $0xf8] sm:$0xff]  ;;  %v8285_v1 = vld [vmem:[#allocation111_spill] sm:$0xff] }
 0x1f8   :  { %1268 = vmatpush1.msra.mxu0 %v8279_v50  ;;  %1390 = vmatprep.subr.mxu1 %v5042_v38  ;;  %8284 = vst [vmem:[#allocation70_spill] sm:$0xff] %v5050_v13  ;;  %v5054_v60 = vld [vmem:[#allocation9 + $0xf0] sm:$0xff]  ;;  %v8287_v50 = vld [vmem:[#allocation113_spill] sm:$0xff]  ;;  %v5058_v38 = vld [vmem:[#allocation9 + $0xc8] sm:$0xff] }
 0x1f9   :  { %1269 = vmatprep.subr.mxu0 %v8281_v0  ;;  %1391 = vmatpush1.msra.mxu1 %v5046_v41  ;;  %8286 = vst [vmem:[#allocation75_spill] sm:$0xff] %v5054_v60  ;;  %8288 = vst [vmem:[#allocation73_spill] sm:$0xff] %v5058_v38  ;;  %v8289_v0 = vld [vmem:[#allocation115_spill] sm:$0xff]  ;;  %v5062_v41 = vld [vmem:[#allocation9 + $0xc0] sm:$0xff] }
 0x1fa   :  { %1270 = vmatpush1.msra.mxu0 %v8283_v62  ;;  %1392 = vmatprep.subr.mxu1 %v5050_v13  ;;  %8290 = vst [vmem:[#allocation77_spill] sm:$0xff] %v5062_v41  ;;  %v8291_v62 = vld [vmem:[#allocation116_spill] sm:$0xff] }
 0x1fb   :  { %1271 = vmatprep.subr.mxu0 %v8285_v1  ;;  %1393 = vmatpush1.msra.mxu1 %v5054_v60  ;;  %v5066_v13 = vld [vmem:[#allocation9 + $0x98] sm:$0xff]  ;;  %v8293_v1 = vld [vmem:[#allocation118_spill] sm:$0xff]  ;;  %v5070_v60 = vld [vmem:[#allocation9 + $0x90] sm:$0xff] }
 0x1fc   :  { %1272 = vmatpush1.msra.mxu0 %v8287_v50  ;;  %1394 = vmatprep.subr.mxu1 %v5058_v38  ;;  %8292 = vst [vmem:[#allocation79_spill] sm:$0xff] %v5066_v13  ;;  %8294 = vst [vmem:[#allocation82_spill] sm:$0xff] %v5070_v60  ;;  %v8295_v50 = vld [vmem:[#allocation119_spill] sm:$0xff] }
 0x1fd   :  { %1273 = vmatprep.subr.mxu0 %v8289_v0  ;;  %1395 = vmatpush1.msra.mxu1 %v5062_v41  ;;  %v5074_v38 = vld [vmem:[#allocation9 + $0x68] sm:$0xff]  ;;  %v8297_v0 = vld [vmem:[#allocation120_spill] sm:$0xff]  ;;  %v5078_v41 = vld [vmem:[#allocation9 + $0x60] sm:$0xff] }
 0x1fe   :  { %1274 = vmatpush1.msra.mxu0 %v8291_v62  ;;  %1396 = vmatprep.subr.mxu1 %v5066_v13  ;;  %8296 = vst [vmem:[#allocation84_spill] sm:$0xff] %v5074_v38  ;;  %8298 = vst [vmem:[#allocation86_spill] sm:$0xff] %v5078_v41  ;;  %v8299_v62 = vld [vmem:[#allocation121_spill] sm:$0xff] }
 0x1ff   :  { %1275 = vmatprep.subr.mxu0 %v8293_v1  ;;  %1397 = vmatpush1.msra.mxu1 %v5070_v60  ;;  %v5082_v13 = vld [vmem:[#allocation9 + $0x38] sm:$0xff]  ;;  %v8300_v1 = vld [vmem:[#allocation122_spill] sm:$0xff]  ;;  %v5086_v60 = vld [vmem:[#allocation9 + $0x30] sm:$0xff] }
 0x200   :  { %1276 = vmatpush1.msra.mxu0 %v8295_v50  ;;  %1398 = vmatprep.subr.mxu1 %v5074_v38  ;;  %v8301_v50 = vld [vmem:[#allocation124_spill] sm:$0xff]  ;;  %v5090_v38 = vld [vmem:[#allocation9 + $0x8] sm:$0xff] }
 0x201   :  { %1277 = vmatprep.subr.mxu0 %v8297_v0  ;;  %1399 = vmatpush1.msra.mxu1 %v5078_v41  ;;  %v8302_v0 = vld [vmem:[#allocation125_spill] sm:$0xff] }
 0x202   :  { %1278 = vmatpush1.msra.mxu0 %v8299_v62  ;;  %1400 = vmatprep.subr.mxu1 %v5082_v13  ;;  %v5094_v41 = vld [vmem:[#allocation9] sm:$0xff]  ;;  %v5098_v62 = vld [vmem:[#allocation9 + $0x5d8] sm:$0xff] }
 0x203   :  { %1279 = vmatprep.subr.mxu0 %v8300_v1  ;;  %1401 = vmatpush1.msra.mxu1 %v5086_v60  ;;  %v5102_v1 = vld [vmem:[#allocation9 + $0x5d0] sm:$0xff] }
 0x204   :  { %1280 = vmatpush1.msra.mxu0 %v8301_v50  ;;  %1402 = vmatprep.subr.mxu1 %v5090_v38  ;;  %v5106_v50 = vld [vmem:[#allocation9 + $0x5a8] sm:$0xff] }
 0x205   :  { %1281 = vmatprep.subr.mxu0 %v8302_v0  ;;  %1403 = vmatpush1.msra.mxu1 %v5094_v41  ;;  %v5110_v0 = vld [vmem:[#allocation9 + $0x5a0] sm:$0xff] }
 0x206   :  { %1282 = vmatpush2.msra.mxu0 %v4551_v2  ;;  %1404 = vmatprep.subr.mxu1 %v5098_v62  ;;  %v5114_v2 = vld [vmem:[#allocation9 + $0x578] sm:$0xff] }
 0x207   :  { %1283 = vmatprep.subr.mxu0 %v4555_v9  ;;  %1405 = vmatpush2.msra.mxu1 %v5102_v1  ;;  %v5118_v9 = vld [vmem:[#allocation9 + $0x570] sm:$0xff] }
 0x208   :  { %1284 = vmatpush2.msra.mxu0 %v4558_v49  ;;  %1406 = vmatprep.subr.mxu1 %v5106_v50  ;;  %v5122_v49 = vld [vmem:[#allocation9 + $0x548] sm:$0xff] }
 0x209   :  { %1285 = vmatprep.subr.mxu0 %v4562_v31  ;;  %1407 = vmatpush2.msra.mxu1 %v5110_v0  ;;  %v5126_v31 = vld [vmem:[#allocation9 + $0x540] sm:$0xff] }
 0x20a   :  { %1286 = vmatpush2.msra.mxu0 %v4566_v22  ;;  %1408 = vmatprep.subr.mxu1 %v5114_v2  ;;  %v5130_v22 = vld [vmem:[#allocation9 + $0x518] sm:$0xff] }
 0x20b   :  { %1287 = vmatprep.subr.mxu0 %v4570_v59  ;;  %1409 = vmatpush2.msra.mxu1 %v5118_v9  ;;  %v5134_v59 = vld [vmem:[#allocation9 + $0x510] sm:$0xff] }
 0x20c   :  { %1288 = vmatpush2.msra.mxu0 %v4574_v7  ;;  %1410 = vmatprep.subr.mxu1 %v5122_v49  ;;  %v5138_v7 = vld [vmem:[#allocation9 + $0x4e8] sm:$0xff] }
 0x20d   :  { %1289 = vmatprep.subr.mxu0 %v4578_v4  ;;  %1411 = vmatpush2.msra.mxu1 %v5126_v31  ;;  %v5142_v4 = vld [vmem:[#allocation9 + $0x4e0] sm:$0xff] }
 0x20e   :  { %1290 = vmatpush2.msra.mxu0 %v4582_v6  ;;  %1412 = vmatprep.subr.mxu1 %v5130_v22  ;;  %v5146_v6 = vld [vmem:[#allocation9 + $0x4b8] sm:$0xff] }
 0x20f   :  { %1291 = vmatprep.subr.mxu0 %v4586_v8  ;;  %1413 = vmatpush2.msra.mxu1 %v5134_v59  ;;  %v5150_v8 = vld [vmem:[#allocation9 + $0x4b0] sm:$0xff] }
 0x210   :  { %1292 = vmatpush2.msra.mxu0 %v4590_v10  ;;  %1414 = vmatprep.subr.mxu1 %v5138_v7  ;;  %v5154_v10 = vld [vmem:[#allocation9 + $0x488] sm:$0xff] }
 0x211   :  { %1293 = vmatprep.subr.mxu0 %v4594_v12  ;;  %1415 = vmatpush2.msra.mxu1 %v5142_v4  ;;  %v5158_v12 = vld [vmem:[#allocation9 + $0x480] sm:$0xff] }
 0x212   :  { %1294 = vmatpush2.msra.mxu0 %v4598_v15  ;;  %1416 = vmatprep.subr.mxu1 %v5146_v6  ;;  %v5162_v15 = vld [vmem:[#allocation9 + $0x458] sm:$0xff] }
 0x213   :  { %1295 = vmatprep.subr.mxu0 %v4602_v17  ;;  %1417 = vmatpush2.msra.mxu1 %v5150_v8  ;;  %v5166_v17 = vld [vmem:[#allocation9 + $0x450] sm:$0xff] }
 0x214   :  { %1296 = vmatpush2.msra.mxu0 %v4606_v19  ;;  %1418 = vmatprep.subr.mxu1 %v5154_v10  ;;  %v5170_v19 = vld [vmem:[#allocation9 + $0x428] sm:$0xff] }
 0x215   :  { %1297 = vmatprep.subr.mxu0 %v4610_v21  ;;  %1419 = vmatpush2.msra.mxu1 %v5158_v12  ;;  %v5174_v21 = vld [vmem:[#allocation9 + $0x420] sm:$0xff] }
 0x216   :  { %1298 = vmatpush2.msra.mxu0 %v4614_v24  ;;  %1420 = vmatprep.subr.mxu1 %v5162_v15  ;;  %v5178_v24 = vld [vmem:[#allocation9 + $0x3f8] sm:$0xff] }
 0x217   :  { %1299 = vmatprep.subr.mxu0 %v4618_v26  ;;  %1421 = vmatpush2.msra.mxu1 %v5166_v17  ;;  %v5182_v26 = vld [vmem:[#allocation9 + $0x3f0] sm:$0xff] }
 0x218   :  { %1300 = vmatpush2.msra.mxu0 %v4622_v28  ;;  %1422 = vmatprep.subr.mxu1 %v5170_v19  ;;  %8303 = vst [vmem:[#allocation89_spill] sm:$0xff] %v5182_v26  ;;  %v5186_v28 = vld [vmem:[#allocation9 + $0x3c8] sm:$0xff] }
 0x219   :  { %1301 = vmatprep.subr.mxu0 %v4626_v30  ;;  %1423 = vmatpush2.msra.mxu1 %v5174_v21  ;;  %8304 = vst [vmem:[#allocation91_spill] sm:$0xff] %v5186_v28  ;;  %v5190_v30 = vld [vmem:[#allocation9 + $0x3c0] sm:$0xff] }
 0x21a   :  { %1302 = vmatpush2.msra.mxu0 %v4630_v33  ;;  %1424 = vmatprep.subr.mxu1 %v5178_v24  ;;  %8305 = vst [vmem:[#allocation93_spill] sm:$0xff] %v5190_v30  ;;  %v5194_v33 = vld [vmem:[#allocation9 + $0x398] sm:$0xff] }
 0x21b   :  { %1303 = vmatprep.subr.mxu0 %v4634_v35  ;;  %1425 = vmatpush2.msra.mxu1 %v5182_v26  ;;  %8306 = vst [vmem:[#allocation96_spill] sm:$0xff] %v5194_v33  ;;  %v5198_v35 = vld [vmem:[#allocation9 + $0x390] sm:$0xff] }
 0x21c   :  { %1304 = vmatpush2.msra.mxu0 %v4638_v37  ;;  %1426 = vmatprep.subr.mxu1 %v5186_v28  ;;  %8307 = vst [vmem:[#allocation98_spill] sm:$0xff] %v5198_v35  ;;  %v5202_v37 = vld [vmem:[#allocation9 + $0x368] sm:$0xff] }
 0x21d   :  { %1305 = vmatprep.subr.mxu0 %v4642_v39  ;;  %1427 = vmatpush2.msra.mxu1 %v5190_v30  ;;  %8308 = vst [vmem:[#allocation100_spill] sm:$0xff] %v5202_v37  ;;  %v5206_v39 = vld [vmem:[#allocation9 + $0x360] sm:$0xff] }
 0x21e   :  { %1306 = vmatpush2.msra.mxu0 %v4646_v42  ;;  %1428 = vmatprep.subr.mxu1 %v5194_v33  ;;  %8309 = vst [vmem:[#allocation103_spill] sm:$0xff] %v5206_v39  ;;  %v5210_v42 = vld [vmem:[#allocation9 + $0x338] sm:$0xff] }
 0x21f   :  { %1307 = vmatprep.subr.mxu0 %v4650_v44  ;;  %1429 = vmatpush2.msra.mxu1 %v5198_v35  ;;  %8310 = vst [vmem:[#allocation105_spill] sm:$0xff] %v5210_v42  ;;  %v5214_v44 = vld [vmem:[#allocation9 + $0x330] sm:$0xff] }
 0x220   :  { %1308 = vmatpush2.msra.mxu0 %v4654_v46  ;;  %1430 = vmatprep.subr.mxu1 %v5202_v37  ;;  %8311 = vst [vmem:[#allocation107_spill] sm:$0xff] %v5214_v44  ;;  %v5218_v46 = vld [vmem:[#allocation9 + $0x308] sm:$0xff] }
 0x221   :  { %1309 = vmatprep.subr.mxu0 %v4658_v48  ;;  %1431 = vmatpush2.msra.mxu1 %v5206_v39  ;;  %8312 = vst [vmem:[#allocation110_spill] sm:$0xff] %v5218_v46  ;;  %v5222_v48 = vld [vmem:[#allocation9 + $0x2e8] sm:$0xff] }
 0x222   :  { %1310 = vmatpush2.msra.mxu0 %v4662_v51  ;;  %1432 = vmatprep.subr.mxu1 %v5210_v42  ;;  %8313 = vst [vmem:[#allocation112_spill] sm:$0xff] %v5222_v48  ;;  %v5225_v51 = vld [vmem:[#allocation9 + $0x2e0] sm:$0xff] }
 0x223   :  { %1311 = vmatprep.subr.mxu0 %v4666_v53  ;;  %1433 = vmatpush2.msra.mxu1 %v5214_v44  ;;  %8314 = vst [vmem:[#allocation114_spill] sm:$0xff] %v5225_v51  ;;  %v5228_v53 = vld [vmem:[#allocation9 + $0x300] sm:$0xff]  ;;  %v5231_v44 = vld [vmem:[#allocation9 + $0x2b8] sm:$0xff] }
 0x224   :  { %1312 = vmatpush2.msra.mxu0 %v4670_v55  ;;  %1434 = vmatprep.subr.mxu1 %v5218_v46  ;;  %8315 = vst [vmem:[#allocation117_spill] sm:$0xff] %v5228_v53  ;;  %8316 = vst [vmem:[#allocation123_spill] sm:$0xff] %v5231_v44  ;;  %v5234_v55 = vld [vmem:[#allocation9 + $0x2f8] sm:$0xff]  ;;  %v5237_v46 = vld [vmem:[#allocation9 + $0x2b0] sm:$0xff] }
 0x225   :  { %1314 = vmatmul.mubr.f32.vlgmr.msra.gmra.mxu0 %v4942_v36  ;;  %1443 = vmatprep.subr.mxu0 %v5222_v48  ;;  %8317 = vst [vmem:[#allocation74_spill] sm:$0xff] %v5234_v55  ;;  %8318 = vst [vmem:[#allocation76_spill] sm:$0xff] %v5237_v46  ;;  %v5240_v48 = vld [vmem:[#allocation9 + $0x288] sm:$0xff] }
 0x226   :  { %1444 = vmatpush1.msra.mxu0 %v5225_v51  ;;  %1435 = vmatpush2.msra.mxu1 %v5228_v53  ;;  %8319 = vst [vmem:[#allocation78_spill] sm:$0xff] %v5240_v48  ;;  %v5243_v51 = vld [vmem:[#allocation9 + $0x280] sm:$0xff]  ;;  %v5246_v53 = vld [vmem:[#allocation9 + $0x258] sm:$0xff] }
 0x227   :  { %1445 = vmatprep.subr.mxu0 %v5231_v44  ;;  %1514 = vmatprep.subr.mxu1 %v5234_v55  ;;  %8320 = vst [vmem:[#allocation80_spill] sm:$0xff] %v5243_v51  ;;  %8321 = vst [vmem:[#allocation81_spill] sm:$0xff] %v5246_v53  ;;  %v5249_v44 = vld [vmem:[#allocation9 + $0x250] sm:$0xff]  ;;  %v5252_v55 = vld [vmem:[#allocation9 + $0x228] sm:$0xff] }
 0x228   :  { %1446 = vmatpush1.msra.mxu0 %v5237_v46  ;;  %8322 = vst [vmem:[#allocation83_spill] sm:$0xff] %v5249_v44  ;;  %8323 = vst [vmem:[#allocation85_spill] sm:$0xff] %v5252_v55  ;;  %v5255_v46 = vld [vmem:[#allocation9 + $0x220] sm:$0xff] }
 0x229   :  { %1447 = vmatprep.subr.mxu0 %v5240_v48  ;;  %8324 = vst [vmem:[#allocation87_spill] sm:$0xff] %v5255_v46  ;;  %v5258_v48 = vld [vmem:[#allocation9 + $0x1f8] sm:$0xff] }
 0x22a   :  { %1448 = vmatpush1.msra.mxu0 %v5243_v51  ;;  %8325 = vst [vmem:[#allocation88_spill] sm:$0xff] %v5258_v48  ;;  %v5261_v51 = vld [vmem:[#allocation9 + $0x1f0] sm:$0xff] }
 0x22b   :  { %1449 = vmatprep.subr.mxu0 %v5246_v53  ;;  %8326 = vst [vmem:[#allocation90_spill] sm:$0xff] %v5261_v51  ;;  %v5264_v53 = vld [vmem:[#allocation9 + $0x1c8] sm:$0xff] }
 0x22c   :  { %1450 = vmatpush1.msra.mxu0 %v5249_v44  ;;  %8327 = vst [vmem:[#allocation92_spill] sm:$0xff] %v5264_v53  ;;  %v5267_v44 = vld [vmem:[#allocation9 + $0x1c0] sm:$0xff] }
 0x22d   :  { %1451 = vmatprep.subr.mxu0 %v5252_v55  ;;  %8328 = vst [vmem:[#allocation94_spill] sm:$0xff] %v5267_v44  ;;  %v5270_v55 = vld [vmem:[#allocation9 + $0x198] sm:$0xff] }
 0x22e   :  { %1452 = vmatpush1.msra.mxu0 %v5255_v46  ;;  %8329 = vst [vmem:[#allocation95_spill] sm:$0xff] %v5270_v55  ;;  %v5273_v46 = vld [vmem:[#allocation9 + $0x190] sm:$0xff] }
 0x22f   :  { %1453 = vmatprep.subr.mxu0 %v5258_v48  ;;  %8330 = vst [vmem:[#allocation97_spill] sm:$0xff] %v5273_v46  ;;  %v5276_v48 = vld [vmem:[#allocation9 + $0x168] sm:$0xff] }
 0x230   :  { %1454 = vmatpush1.msra.mxu0 %v5261_v51  ;;  %8331 = vst [vmem:[#allocation99_spill] sm:$0xff] %v5276_v48  ;;  %v5279_v51 = vld [vmem:[#allocation9 + $0x160] sm:$0xff] }
 0x231   :  { %1455 = vmatprep.subr.mxu0 %v5264_v53  ;;  %8332 = vst [vmem:[#allocation101_spill] sm:$0xff] %v5279_v51  ;;  %v5282_v53 = vld [vmem:[#allocation9 + $0x138] sm:$0xff] }
 0x232   :  { %1456 = vmatpush1.msra.mxu0 %v5267_v44  ;;  %8333 = vst [vmem:[#allocation102_spill] sm:$0xff] %v5282_v53  ;;  %v5285_v44 = vld [vmem:[#allocation9 + $0x130] sm:$0xff] }
 0x233   :  { %1457 = vmatprep.subr.mxu0 %v5270_v55  ;;  %8334 = vst [vmem:[#allocation104_spill] sm:$0xff] %v5285_v44  ;;  %v5288_v55 = vld [vmem:[#allocation9 + $0x108] sm:$0xff] }
 0x234   :  { %1458 = vmatpush1.msra.mxu0 %v5273_v46  ;;  %8335 = vst [vmem:[#allocation106_spill] sm:$0xff] %v5288_v55  ;;  %v5291_v46 = vld [vmem:[#allocation9 + $0x100] sm:$0xff] }
 0x235   :  { %1459 = vmatprep.subr.mxu0 %v5276_v48  ;;  %8336 = vst [vmem:[#allocation108_spill] sm:$0xff] %v5291_v46  ;;  %v5294_v48 = vld [vmem:[#allocation9 + $0xd8] sm:$0xff] }
 0x236   :  { %1460 = vmatpush1.msra.mxu0 %v5279_v51  ;;  %8337 = vst [vmem:[#allocation109_spill] sm:$0xff] %v5294_v48  ;;  %v5297_v51 = vld [vmem:[#allocation9 + $0xd0] sm:$0xff] }
 0x237   :  { %1461 = vmatprep.subr.mxu0 %v5282_v53  ;;  %8338 = vst [vmem:[#allocation111_spill] sm:$0xff] %v5297_v51  ;;  %v5300_v53 = vld [vmem:[#allocation9 + $0xa8] sm:$0xff] }
 0x238   :  { %1462 = vmatpush1.msra.mxu0 %v5285_v44  ;;  %8339 = vst [vmem:[#allocation113_spill] sm:$0xff] %v5300_v53  ;;  %v5303_v44 = vld [vmem:[#allocation9 + $0xa0] sm:$0xff] }
 0x239   :  { %1463 = vmatprep.subr.mxu0 %v5288_v55  ;;  %8340 = vst [vmem:[#allocation115_spill] sm:$0xff] %v5303_v44  ;;  %v5306_v55 = vld [vmem:[#allocation9 + $0x78] sm:$0xff] }
 0x23a   :  { %1464 = vmatpush1.msra.mxu0 %v5291_v46  ;;  %8341 = vst [vmem:[#allocation116_spill] sm:$0xff] %v5306_v55  ;;  %v5309_v46 = vld [vmem:[#allocation9 + $0x70] sm:$0xff] }
 0x23b   :  { %1465 = vmatprep.subr.mxu0 %v5294_v48  ;;  %8342 = vst [vmem:[#allocation118_spill] sm:$0xff] %v5309_v46  ;;  %v5312_v48 = vld [vmem:[#allocation9 + $0x48] sm:$0xff] }
 0x23c   :  { %1466 = vmatpush1.msra.mxu0 %v5297_v51  ;;  %8343 = vst [vmem:[#allocation119_spill] sm:$0xff] %v5312_v48  ;;  %v5315_v51 = vld [vmem:[#allocation9 + $0x40] sm:$0xff] }
 0x23d   :  { %1467 = vmatprep.subr.mxu0 %v5300_v53  ;;  %8344 = vst [vmem:[#allocation120_spill] sm:$0xff] %v5315_v51  ;;  %v5318_v53 = vld [vmem:[#allocation9 + $0x18] sm:$0xff] }
 0x23e   :  { %1468 = vmatpush1.msra.mxu0 %v5303_v44  ;;  %8345 = vst [vmem:[#allocation121_spill] sm:$0xff] %v5318_v53  ;;  %v5321_v44 = vld [vmem:[#allocation9 + $0x10] sm:$0xff] }
 0x23f   :  { %1469 = vmatprep.subr.mxu0 %v5306_v55  ;;  %8346 = vst [vmem:[#allocation122_spill] sm:$0xff] %v5321_v44  ;;  %v5324_v55 = vld [vmem:[#allocation9 + $0x5e8] sm:$0xff] }
 0x240   :  { %1470 = vmatpush1.msra.mxu0 %v5309_v46  ;;  %8347 = vst [vmem:[#allocation124_spill] sm:$0xff] %v5324_v55  ;;  %v5327_v46 = vld [vmem:[#allocation9 + $0x5e0] sm:$0xff] }
 0x241   :  { %1471 = vmatprep.subr.mxu0 %v5312_v48  ;;  %8348 = vst [vmem:[#allocation125_spill] sm:$0xff] %v5327_v46  ;;  %v5330_v48 = vld [vmem:[#allocation9 + $0x5b8] sm:$0xff] }
 0x242   :  { %1472 = vmatpush1.msra.mxu0 %v5315_v51  ;;  %8349 = vst [vmem:[#allocation126_spill] sm:$0xff] %v5330_v48  ;;  %v5333_v51 = vld [vmem:[#allocation9 + $0x5b0] sm:$0xff] }
 0x243   :  { %1473 = vmatprep.subr.mxu0 %v5318_v53  ;;  %8350 = vst [vmem:[#allocation127_spill] sm:$0xff] %v5333_v51  ;;  %v5336_v53 = vld [vmem:[#allocation9 + $0x588] sm:$0xff] }
 0x244   :  { %1474 = vmatpush1.msra.mxu0 %v5321_v44  ;;  %8351 = vst [vmem:[#allocation128_spill] sm:$0xff] %v5336_v53  ;;  %v5339_v44 = vld [vmem:[#allocation9 + $0x580] sm:$0xff] }
 0x245   :  { %1475 = vmatprep.subr.mxu0 %v5324_v55  ;;  %8352 = vst [vmem:[#allocation129_spill] sm:$0xff] %v5339_v44  ;;  %v5342_v55 = vld [vmem:[#allocation9 + $0x558] sm:$0xff] }
 0x246   :  { %1476 = vmatpush2.msra.mxu0 %v5327_v46  ;;  %8353 = vst [vmem:[#allocation130_spill] sm:$0xff] %v5342_v55  ;;  %v5345_v46 = vld [vmem:[#allocation9 + $0x550] sm:$0xff] }
 0x247   :  { %1477 = vmatprep.subr.mxu0 %v5330_v48  ;;  %8354 = vst [vmem:[#allocation131_spill] sm:$0xff] %v5345_v46  ;;  %v5348_v48 = vld [vmem:[#allocation9 + $0x528] sm:$0xff] }
 0x248   :  { %1478 = vmatpush2.msra.mxu0 %v5333_v51  ;;  %8355 = vst [vmem:[#allocation132_spill] sm:$0xff] %v5348_v48  ;;  %v5351_v51 = vld [vmem:[#allocation9 + $0x520] sm:$0xff] }
 0x249   :  { %1479 = vmatprep.subr.mxu0 %v5336_v53  ;;  %8356 = vst [vmem:[#allocation133_spill] sm:$0xff] %v5351_v51  ;;  %v5354_v53 = vld [vmem:[#allocation9 + $0x4f8] sm:$0xff] }
 0x24a   :  { %1480 = vmatpush2.msra.mxu0 %v5339_v44  ;;  %8357 = vst [vmem:[#allocation134_spill] sm:$0xff] %v5354_v53  ;;  %v5357_v44 = vld [vmem:[#allocation9 + $0x4f0] sm:$0xff] }
 0x24b   :  { %1481 = vmatprep.subr.mxu0 %v5342_v55  ;;  %8358 = vst [vmem:[#allocation135_spill] sm:$0xff] %v5357_v44  ;;  %v5360_v55 = vld [vmem:[#allocation9 + $0x4c8] sm:$0xff] }
 0x24c   :  { %1482 = vmatpush2.msra.mxu0 %v5345_v46  ;;  %8359 = vst [vmem:[#allocation136_spill] sm:$0xff] %v5360_v55  ;;  %v5363_v46 = vld [vmem:[#allocation9 + $0x4c0] sm:$0xff] }
 0x24d   :  { %1483 = vmatprep.subr.mxu0 %v5348_v48  ;;  %8360 = vst [vmem:[#allocation137_spill] sm:$0xff] %v5363_v46  ;;  %v5366_v48 = vld [vmem:[#allocation9 + $0x498] sm:$0xff] }
 0x24e   :  { %1484 = vmatpush2.msra.mxu0 %v5351_v51  ;;  %8361 = vst [vmem:[#allocation138_spill] sm:$0xff] %v5366_v48  ;;  %v5369_v51 = vld [vmem:[#allocation9 + $0x490] sm:$0xff] }
 0x24f   :  { %1485 = vmatprep.subr.mxu0 %v5354_v53  ;;  %8362 = vst [vmem:[#allocation139_spill] sm:$0xff] %v5369_v51  ;;  %v5372_v53 = vld [vmem:[#allocation9 + $0x468] sm:$0xff] }
 0x250   :  { %1486 = vmatpush2.msra.mxu0 %v5357_v44  ;;  %8363 = vst [vmem:[#allocation140_spill] sm:$0xff] %v5372_v53  ;;  %v5375_v44 = vld [vmem:[#allocation9 + $0x460] sm:$0xff] }
 0x251   :  { %1487 = vmatprep.subr.mxu0 %v5360_v55  ;;  %8364 = vst [vmem:[#allocation141_spill] sm:$0xff] %v5375_v44  ;;  %v5378_v55 = vld [vmem:[#allocation9 + $0x438] sm:$0xff] }
 0x252   :  { %1488 = vmatpush2.msra.mxu0 %v5363_v46  ;;  %8365 = vst [vmem:[#allocation142_spill] sm:$0xff] %v5378_v55  ;;  %v5381_v46 = vld [vmem:[#allocation9 + $0x430] sm:$0xff] }
 0x253   :  { %1489 = vmatprep.subr.mxu0 %v5366_v48  ;;  %8366 = vst [vmem:[#allocation143_spill] sm:$0xff] %v5381_v46  ;;  %v5384_v48 = vld [vmem:[#allocation9 + $0x408] sm:$0xff] }
 0x254   :  { %1490 = vmatpush2.msra.mxu0 %v5369_v51  ;;  %8367 = vst [vmem:[#allocation144_spill] sm:$0xff] %v5384_v48  ;;  %v5387_v51 = vld [vmem:[#allocation9 + $0x400] sm:$0xff] }
 0x255   :  { %1491 = vmatprep.subr.mxu0 %v5372_v53  ;;  %8368 = vst [vmem:[#allocation145_spill] sm:$0xff] %v5387_v51  ;;  %v5390_v53 = vld [vmem:[#allocation9 + $0x3d8] sm:$0xff] }
 0x256   :  { %1492 = vmatpush2.msra.mxu0 %v5375_v44  ;;  %8369 = vst [vmem:[#allocation146_spill] sm:$0xff] %v5390_v53  ;;  %v5393_v44 = vld [vmem:[#allocation9 + $0x3d0] sm:$0xff] }
 0x257   :  { %1493 = vmatprep.subr.mxu0 %v5378_v55  ;;  %8370 = vst [vmem:[#allocation147_spill] sm:$0xff] %v5393_v44  ;;  %v5396_v55 = vld [vmem:[#allocation9 + $0x3a8] sm:$0xff] }
 0x258   :  { %1494 = vmatpush2.msra.mxu0 %v5381_v46  ;;  %8371 = vst [vmem:[#allocation148_spill] sm:$0xff] %v5396_v55  ;;  %v5399_v46 = vld [vmem:[#allocation9 + $0x3a0] sm:$0xff] }
 0x259   :  { %1495 = vmatprep.subr.mxu0 %v5384_v48  ;;  %8372 = vst [vmem:[#allocation149_spill] sm:$0xff] %v5399_v46  ;;  %v5402_v48 = vld [vmem:[#allocation9 + $0x378] sm:$0xff] }
 0x25a   :  { %1496 = vmatpush2.msra.mxu0 %v5387_v51  ;;  %8373 = vst [vmem:[#allocation150_spill] sm:$0xff] %v5402_v48  ;;  %v5405_v51 = vld [vmem:[#allocation9 + $0x370] sm:$0xff] }
 0x25b   :  { %1497 = vmatprep.subr.mxu0 %v5390_v53  ;;  %8374 = vst [vmem:[#allocation151_spill] sm:$0xff] %v5405_v51  ;;  %v5408_v53 = vld [vmem:[#allocation9 + $0x348] sm:$0xff] }
 0x25c   :  { %1498 = vmatpush2.msra.mxu0 %v5393_v44  ;;  %8375 = vst [vmem:[#allocation152_spill] sm:$0xff] %v5408_v53  ;;  %v5411_v44 = vld [vmem:[#allocation9 + $0x340] sm:$0xff] }
 0x25d   :  { %1499 = vmatprep.subr.mxu0 %v5396_v55  ;;  %8376 = vst [vmem:[#allocation153_spill] sm:$0xff] %v5411_v44  ;;  %v5414_v55 = vld [vmem:[#allocation9 + $0x318] sm:$0xff] }
 0x25e   :  { %1500 = vmatpush2.msra.mxu0 %v5399_v46  ;;  %8377 = vst [vmem:[#allocation154_spill] sm:$0xff] %v5414_v55  ;;  %v5417_v46 = vld [vmem:[#allocation9 + $0x310] sm:$0xff] }
 0x25f   :  { %1501 = vmatprep.subr.mxu0 %v5402_v48  ;;  %8378 = vst [vmem:[#allocation155_spill] sm:$0xff] %v5417_v46 }
 0x260   :  { %1502 = vmatpush2.msra.mxu0 %v5405_v51 }
 0x261   :  { %1503 = vmatprep.subr.mxu0 %v5408_v53 }
 0x262   :  { %1504 = vmatpush2.msra.mxu0 %v5411_v44  ;;  %v8379_v44 = vld [vmem:[#allocation23_spill] sm:$0xff] }
 0x263   :  { %1505 = vmatprep.subr.mxu0 %v5414_v55 }
 0x264   :  { %1506 = vmatpush2.msra.mxu0 %v5417_v46 }
 0x265   :  { %1637 = vmatprep.subr.mxu0 %v4825_v57 }
 0x2a5   :  { %v1173_v48 = vpop.f32.mrf.mxu0  ;;  %v1244_v55 = vpop.f32.mrf.mxu1 }
 0x2a6   :  { %v1174_v51 = vadd.f32 %v1173_v48, %v4881_v58  ;;  %v8380_v48 = vld [vmem:[#allocation42_spill] sm:$0xff] }
 0x2a7   :  { %v1175_v42 = vpop.f32.mrf.mxu0  ;;  %v1246_v28 = vpop.f32.mrf.mxu1  ;;  %v447_v58 = vadd.f32 %v8380_v48, %v4935_v54 }
 0x2a8   :  { %v1326_v53 = vadd.f32 %v1174_v51, %v4784_v27  ;;  %v1176_v37 = vadd.f32 %v1175_v42, %v4895_v16  ;;  %v1247_v57 = vadd.f32 %v1246_v28, %v4931_v32  ;;  %v8381_v42 = vld [vmem:[#allocation60_spill] sm:$0xff] }
 0x2aa   :  { %v2996_v39 = vmul.f32 -1.442695, %v1326_v53  ;;  %v1333_v35 = vadd.f32 %v1176_v37, %v8379_v44  ;;  %v1347_v26 = vadd.f32 %v1247_v57, %v447_v58 }
 0x2ac   :  { %3058 = vpow2.f32 %v2996_v39  ;;  %v2997_v33 = vmul.f32 -1.442695, %v1333_v35  ;;  %v2998_v51 = vmul.f32 -1.442695, %v1347_v26  ;;  %v1245_v39 = vadd.f32 %v1244_v55, %v8381_v42  ;;  %v8382_v35 = vld [vmem:[#allocation37_spill] sm:$0xff] }
 0x2ae   :  { %3060 = vpow2.f32 %v2997_v33  ;;  %v415_v33 = vadd.f32 %v8382_v35, %v4928_v14 }
 0x2b9   :  { %v3059_v30 = vpop.eup %3058 }
 0x2ba   :  { %v1330_v46 = vadd.f32 1.0, %v3059_v30 }
 0x2bb   :  { %v3061_v27 = vpop.eup %3060 }
 0x2bc   :  { %3062 = vrcp.f32 %v1330_v46  ;;  %v1337_v53 = vadd.f32 1.0, %v3061_v27  ;;  %v8383_v27 = vld [vmem:[#allocation58_spill] sm:$0xff] }
 0x2bd   :  { %3064 = vpow2.f32 %v2998_v51  ;;  %v558_v51 = vadd.f32 %v8383_v27, %v4950_v43 }
 0x2be   :  { %3066 = vrcp.f32 %v1337_v53 }
 0x2c9   :  { %v3063_v37 = vpop.eup %3062 }
 0x2ca   :  { %v1340_v44 = vmul.f32 %v3063_v37, %v1245_v39  ;;  %v3065_v46 = vpop.eup %3064 }
 0x2cb   :  { %v3067_v28 = vpop.eup %3066  ;;  %v1351_v32 = vadd.f32 1.0, %v3065_v46 }
 0x2cc   :  { %v1341_v30 = vadd.f32 %v1340_v44, %v415_v33  ;;  %v1343_v16 = vsub.f32 1.0, %v3067_v28  ;;  %v1345_v26 = vmul.f32 %v3067_v28, %v4942_v36 }
 0x2ce   :  { %3068 = vtanh.f32 %v1341_v30 }
 0x2cf   :  { %3070 = vrcp.f32 %v1351_v32  ;;  %v8384_v32 = vld [vmem:[#allocation65_spill] sm:$0xff] }
 0x2db   :  { %v3069_v48 = vpop.eup %3068 }
 0x2dc   :  { %v1344_v58 = vmul.f32 %v3069_v48, %v1343_v16  ;;  %v3071_v33 = vpop.eup %3070  ;;  %v560_v16 = vadd.f32 %v8384_v32, %v4960_v25  ;;  %v5505_v32 = vld [vmem:[#allocation9 + $0x1a0] sm:$0xff] }
 0x2de   :  { %v5432_v57 = vadd.f32 %v1345_v26, %v1344_v58 }
 0x2e0   :  { %1369 = vst [vmem:[#allocation12 + $0x10] sm:$0xff] %v5432_v57 }
 0x2e5   :  { %v1315_v55 = vpop.f32.mrf.mxu0 }
 0x2e6   :  { %v1316_v53 = vadd.f32 %v1315_v55, %v4947_v11 }
 0x2e7   :  { %v1317_v39 = vpop.f32.mrf.mxu0 }
 0x2e8   :  { %v1354_v37 = vadd.f32 %v1316_v53, %v558_v51  ;;  %v1318_v35 = vadd.f32 %v1317_v39, %v4956_v29  ;;  %v5449_v53 = vld [vmem:[#allocation9 + $0x2f0] sm:$0xff]  ;;  %v5453_v39 = vld [vmem:[#allocation9 + $0x2c8] sm:$0xff] }
 0x2ea   :  { %v2999_v44 = vmul.f32 -1.442695, %v1354_v37  ;;  %v1361_v36 = vmul.f32 %v3071_v33, %v1318_v35  ;;  %v5461_v37 = vld [vmem:[#allocation9 + $0x298] sm:$0xff]  ;;  %v5465_v35 = vld [vmem:[#allocation9 + $0x290] sm:$0xff]  ;;  %v5469_v33 = vld [vmem:[#allocation9 + $0x268] sm:$0xff] }
 0x2ec   :  { %3072 = vpow2.f32 %v2999_v44  ;;  %v1362_v30 = vadd.f32 %v1361_v36, %v560_v16  ;;  %v5509_v16 = vld [vmem:[#allocation9 + $0x178] sm:$0xff]  ;;  %v5513_v44 = vld [vmem:[#allocation9 + $0x170] sm:$0xff]  ;;  %v5517_v36 = vld [vmem:[#allocation9 + $0x148] sm:$0xff] }
 0x2f9   :  { %v3073_v46 = vpop.eup %3072 }
 0x2fa   :  { %v1358_v28 = vadd.f32 1.0, %v3073_v46  ;;  %v5521_v46 = vld [vmem:[#allocation9 + $0x140] sm:$0xff] }
 0x2fc   :  { %3074 = vrcp.f32 %v1358_v28  ;;  %v8390_v28 = vld [vmem:[#allocation72_spill] sm:$0xff] }
 0x2fd   :  { %3076 = vtanh.f32 %v1362_v30  ;;  %v8389_v30 = vld [vmem:[#allocation66_spill] sm:$0xff] }
 0x309   :  { %v3075_v48 = vpop.eup %3074 }
 0x30a   :  { %v1364_v58 = vsub.f32 1.0, %v3075_v48  ;;  %v3077_v26 = vpop.eup %3076  ;;  %v1366_v27 = vmul.f32 %v3075_v48, %v4964_v23  ;;  %v5457_v23 = vld [vmem:[#allocation9 + $0x2c0] sm:$0xff]  ;;  %v5525_v48 = vld [vmem:[#allocation9 + $0x118] sm:$0xff] }
 0x30c   :  { %v1365_v55 = vmul.f32 %v3077_v26, %v1364_v58  ;;  %v8391_v58 = vld [vmem:[#allocation68_spill] sm:$0xff] }
 0x30d   :  { %v5529_v26 = vld [vmem:[#allocation9 + $0x110] sm:$0xff] }
 0x30e   :  { %v5442_v51 = vadd.f32 %v1366_v27, %v1365_v55  ;;  %v8392_v55 = vld [vmem:[#allocation70_spill] sm:$0xff] }
 0x30f   :  { %v5533_v27 = vld [vmem:[#allocation9 + $0xe8] sm:$0xff] }
 0x310   :  { %1371 = vst [vmem:[#allocation12 + $0x68] sm:$0xff] %v5442_v51  ;;  %1436 = vmatprep.mubr.f32.mxu1 %v5442_v51  ;;  %1507 = vmatprep.mubr.f32.mxu0 %v5442_v51 }
 0x311   :  { %1437 = vmatmul.mubr.f32.vlgmr.msra.gmra.mxu1 %v5432_v57  ;;  %1508 = vmatmul.mubr.f32.vlgmr.msra.gmra.mxu0 %v5432_v57 }
 0x312   :  { %1515 = vmatpush1.msra.mxu1 %v5449_v53  ;;  %1578 = vmatprep.mubr.f32.mxu1 %v5442_v51 }
 0x313   :  { %1516 = vmatprep.subr.mxu1 %v5453_v39  ;;  %1638 = vmatpush1.msra.mxu0 %v4974_v61  ;;  %v5473_v61 = vld [vmem:[#allocation9 + $0x260] sm:$0xff] }
 0x314   :  { %1517 = vmatpush1.msra.mxu1 %v5457_v23  ;;  %1639 = vmatprep.subr.mxu0 %v4978_v47  ;;  %v5477_v47 = vld [vmem:[#allocation9 + $0x238] sm:$0xff] }
 0x315   :  { %1518 = vmatprep.subr.mxu1 %v5461_v37  ;;  %1640 = vmatpush1.msra.mxu0 %v4982_v20  ;;  %v5481_v20 = vld [vmem:[#allocation9 + $0x230] sm:$0xff] }
 0x316   :  { %1519 = vmatpush1.msra.mxu1 %v5465_v35  ;;  %1641 = vmatprep.subr.mxu0 %v4986_v5  ;;  %v5485_v5 = vld [vmem:[#allocation9 + $0x208] sm:$0xff] }
 0x317   :  { %1520 = vmatprep.subr.mxu1 %v5469_v33  ;;  %1642 = vmatpush1.msra.mxu0 %v4990_v52  ;;  %v5489_v52 = vld [vmem:[#allocation9 + $0x200] sm:$0xff] }
 0x318   :  { %1521 = vmatpush1.msra.mxu1 %v5473_v61  ;;  %1643 = vmatprep.subr.mxu0 %v4994_v3  ;;  %v5493_v3 = vld [vmem:[#allocation9 + $0x1d8] sm:$0xff] }
 0x319   :  { %1522 = vmatprep.subr.mxu1 %v5477_v47  ;;  %1644 = vmatpush1.msra.mxu0 %v4998_v34  ;;  %v5497_v34 = vld [vmem:[#allocation9 + $0x1d0] sm:$0xff] }
 0x31a   :  { %1523 = vmatpush1.msra.mxu1 %v5481_v20  ;;  %1645 = vmatprep.subr.mxu0 %v5002_v45  ;;  %v5501_v45 = vld [vmem:[#allocation9 + $0x1a8] sm:$0xff] }
 0x31b   :  { %1524 = vmatprep.subr.mxu1 %v5485_v5  ;;  %1646 = vmatpush1.msra.mxu0 %v5006_v40  ;;  %v8385_v40 = vld [vmem:[#allocation62_spill] sm:$0xff] }
 0x31c   :  { %1525 = vmatpush1.msra.mxu1 %v5489_v52  ;;  %1647 = vmatprep.subr.mxu0 %v5010_v63  ;;  %v8386_v63 = vld [vmem:[#allocation69_spill] sm:$0xff] }
 0x31d   :  { %1526 = vmatprep.subr.mxu1 %v5493_v3  ;;  %1648 = vmatpush1.msra.mxu0 %v5014_v56  ;;  %v8387_v56 = vld [vmem:[#allocation64_spill] sm:$0xff] }
 0x31e   :  { %1527 = vmatpush1.msra.mxu1 %v5497_v34  ;;  %1649 = vmatprep.subr.mxu0 %v5018_v18  ;;  %v8388_v18 = vld [vmem:[#allocation71_spill] sm:$0xff] }
 0x31f   :  { %1528 = vmatprep.subr.mxu1 %v5501_v45  ;;  %1650 = vmatpush1.msra.mxu0 %v8385_v40  ;;  %v8393_v40 = vld [vmem:[#allocation75_spill] sm:$0xff] }
 0x320   :  { %1529 = vmatpush1.msra.mxu1 %v5505_v32  ;;  %1651 = vmatprep.subr.mxu0 %v8386_v63  ;;  %v5537_v63 = vld [vmem:[#allocation9 + $0xe0] sm:$0xff] }
 0x321   :  { %1530 = vmatprep.subr.mxu1 %v5509_v16  ;;  %1652 = vmatpush1.msra.mxu0 %v8387_v56  ;;  %8394 = vst [vmem:[#allocation23_spill] sm:$0xff] %v5537_v63  ;;  %v8395_v56 = vld [vmem:[#allocation73_spill] sm:$0xff] }
 0x322   :  { %1531 = vmatpush1.msra.mxu1 %v5513_v44  ;;  %1653 = vmatprep.subr.mxu0 %v8388_v18  ;;  %v5541_v18 = vld [vmem:[#allocation9 + $0xb8] sm:$0xff] }
 0x323   :  { %1532 = vmatprep.subr.mxu1 %v5517_v36  ;;  %1654 = vmatpush1.msra.mxu0 %v8389_v30  ;;  %8396 = vst [vmem:[#allocation42_spill] sm:$0xff] %v5541_v18  ;;  %v8397_v30 = vld [vmem:[#allocation77_spill] sm:$0xff] }
 0x324   :  { %1533 = vmatpush1.msra.mxu1 %v5521_v46  ;;  %1655 = vmatprep.subr.mxu0 %v8390_v28  ;;  %v5545_v28 = vld [vmem:[#allocation9 + $0xb0] sm:$0xff] }
 0x325   :  { %1534 = vmatprep.subr.mxu1 %v5525_v48  ;;  %1656 = vmatpush1.msra.mxu0 %v8391_v58  ;;  %8398 = vst [vmem:[#allocation60_spill] sm:$0xff] %v5545_v28  ;;  %v8399_v58 = vld [vmem:[#allocation79_spill] sm:$0xff] }
 0x326   :  { %1535 = vmatpush1.msra.mxu1 %v5529_v26  ;;  %1657 = vmatprep.subr.mxu0 %v8392_v55  ;;  %v5549_v55 = vld [vmem:[#allocation9 + $0x88] sm:$0xff] }
 0x327   :  { %1536 = vmatprep.subr.mxu1 %v5533_v27  ;;  %1658 = vmatpush1.msra.mxu0 %v8393_v40  ;;  %v8400_v40 = vld [vmem:[#allocation82_spill] sm:$0xff] }
 0x328   :  { %1537 = vmatpush1.msra.mxu1 %v5537_v63  ;;  %1659 = vmatprep.subr.mxu0 %v8395_v56  ;;  %v5553_v63 = vld [vmem:[#allocation9 + $0x80] sm:$0xff]  ;;  %v8401_v56 = vld [vmem:[#allocation84_spill] sm:$0xff] }
 0x329   :  { %1538 = vmatprep.subr.mxu1 %v5541_v18  ;;  %1660 = vmatpush1.msra.mxu0 %v8397_v30  ;;  %v5557_v18 = vld [vmem:[#allocation9 + $0x58] sm:$0xff]  ;;  %v8402_v30 = vld [vmem:[#allocation86_spill] sm:$0xff] }
 0x32a   :  { %1539 = vmatpush1.msra.mxu1 %v5545_v28  ;;  %1661 = vmatprep.subr.mxu0 %v8399_v58  ;;  %v5561_v28 = vld [vmem:[#allocation9 + $0x50] sm:$0xff]  ;;  %v5565_v58 = vld [vmem:[#allocation9 + $0x28] sm:$0xff] }
 0x32b   :  { %1540 = vmatprep.subr.mxu1 %v5549_v55  ;;  %1662 = vmatpush1.msra.mxu0 %v8400_v40  ;;  %v5569_v40 = vld [vmem:[#allocation9 + $0x20] sm:$0xff] }
 0x32c   :  { %1541 = vmatpush1.msra.mxu1 %v5553_v63  ;;  %1663 = vmatprep.subr.mxu0 %v8401_v56  ;;  %v5573_v56 = vld [vmem:[#allocation9 + $0x5f8] sm:$0xff] }
 0x32d   :  { %1542 = vmatprep.subr.mxu1 %v5557_v18  ;;  %1664 = vmatpush1.msra.mxu0 %v8402_v30  ;;  %v5577_v30 = vld [vmem:[#allocation9 + $0x5f0] sm:$0xff] }
 0x32e   :  { %1543 = vmatpush1.msra.mxu1 %v5561_v28  ;;  %1665 = vmatprep.subr.mxu0 %v5082_v13  ;;  %v5581_v13 = vld [vmem:[#allocation9 + $0x5c8] sm:$0xff] }
 0x32f   :  { %1544 = vmatprep.subr.mxu1 %v5565_v58  ;;  %1666 = vmatpush1.msra.mxu0 %v5086_v60  ;;  %v5585_v60 = vld [vmem:[#allocation9 + $0x5c0] sm:$0xff] }
 0x330   :  { %1545 = vmatpush1.msra.mxu1 %v5569_v40  ;;  %1667 = vmatprep.subr.mxu0 %v5090_v38  ;;  %v5589_v38 = vld [vmem:[#allocation9 + $0x598] sm:$0xff] }
 0x331   :  { %1546 = vmatprep.subr.mxu1 %v5573_v56  ;;  %1668 = vmatpush1.msra.mxu0 %v5094_v41  ;;  %v5593_v41 = vld [vmem:[#allocation9 + $0x590] sm:$0xff] }
 0x332   :  { %1547 = vmatpush2.msra.mxu1 %v5577_v30  ;;  %1669 = vmatprep.subr.mxu0 %v5098_v62  ;;  %v5597_v62 = vld [vmem:[#allocation9 + $0x568] sm:$0xff] }
 0x333   :  { %1548 = vmatprep.subr.mxu1 %v5581_v13  ;;  %1670 = vmatpush2.msra.mxu0 %v5102_v1  ;;  %v5601_v1 = vld [vmem:[#allocation9 + $0x560] sm:$0xff] }
 0x334   :  { %1549 = vmatpush2.msra.mxu1 %v5585_v60  ;;  %1671 = vmatprep.subr.mxu0 %v5106_v50  ;;  %v5605_v50 = vld [vmem:[#allocation9 + $0x538] sm:$0xff] }
 0x335   :  { %1550 = vmatprep.subr.mxu1 %v5589_v38  ;;  %1672 = vmatpush2.msra.mxu0 %v5110_v0  ;;  %8403 = vst [vmem:[#allocation37_spill] sm:$0xff] %v5605_v50  ;;  %v5609_v0 = vld [vmem:[#allocation9 + $0x530] sm:$0xff] }
 0x336   :  { %1551 = vmatpush2.msra.mxu1 %v5593_v41  ;;  %1673 = vmatprep.subr.mxu0 %v5114_v2  ;;  %8404 = vst [vmem:[#allocation58_spill] sm:$0xff] %v5609_v0  ;;  %v5613_v2 = vld [vmem:[#allocation9 + $0x508] sm:$0xff] }
 0x337   :  { %1552 = vmatprep.subr.mxu1 %v5597_v62  ;;  %1674 = vmatpush2.msra.mxu0 %v5118_v9  ;;  %8405 = vst [vmem:[#allocation65_spill] sm:$0xff] %v5613_v2  ;;  %v5617_v9 = vld [vmem:[#allocation9 + $0x500] sm:$0xff] }
 0x338   :  { %1553 = vmatpush2.msra.mxu1 %v5601_v1  ;;  %1675 = vmatprep.subr.mxu0 %v5122_v49  ;;  %8406 = vst [vmem:[#allocation62_spill] sm:$0xff] %v5617_v9  ;;  %v5621_v49 = vld [vmem:[#allocation9 + $0x4d8] sm:$0xff] }
 0x339   :  { %1554 = vmatprep.subr.mxu1 %v5605_v50  ;;  %1676 = vmatpush2.msra.mxu0 %v5126_v31  ;;  %8407 = vst [vmem:[#allocation69_spill] sm:$0xff] %v5621_v49  ;;  %v5625_v31 = vld [vmem:[#allocation9 + $0x4d0] sm:$0xff] }
 0x33a   :  { %1555 = vmatpush2.msra.mxu1 %v5609_v0  ;;  %1677 = vmatprep.subr.mxu0 %v5130_v22  ;;  %8408 = vst [vmem:[#allocation64_spill] sm:$0xff] %v5625_v31  ;;  %v5629_v22 = vld [vmem:[#allocation9 + $0x4a8] sm:$0xff] }
 0x33b   :  { %1556 = vmatprep.subr.mxu1 %v5613_v2  ;;  %1678 = vmatpush2.msra.mxu0 %v5134_v59  ;;  %8409 = vst [vmem:[#allocation71_spill] sm:$0xff] %v5629_v22  ;;  %v5633_v59 = vld [vmem:[#allocation9 + $0x4a0] sm:$0xff] }
 0x33c   :  { %1557 = vmatpush2.msra.mxu1 %v5617_v9  ;;  %1679 = vmatprep.subr.mxu0 %v5138_v7  ;;  %8410 = vst [vmem:[#allocation66_spill] sm:$0xff] %v5633_v59  ;;  %v5637_v7 = vld [vmem:[#allocation9 + $0x478] sm:$0xff] }
 0x33d   :  { %1558 = vmatprep.subr.mxu1 %v5621_v49  ;;  %1680 = vmatpush2.msra.mxu0 %v5142_v4  ;;  %8411 = vst [vmem:[#allocation72_spill] sm:$0xff] %v5637_v7  ;;  %v5641_v4 = vld [vmem:[#allocation9 + $0x470] sm:$0xff] }
 0x33e   :  { %1559 = vmatpush2.msra.mxu1 %v5625_v31  ;;  %1681 = vmatprep.subr.mxu0 %v5146_v6  ;;  %8412 = vst [vmem:[#allocation68_spill] sm:$0xff] %v5641_v4  ;;  %v5645_v6 = vld [vmem:[#allocation9 + $0x448] sm:$0xff] }
 0x33f   :  { %1560 = vmatprep.subr.mxu1 %v5629_v22  ;;  %1682 = vmatpush2.msra.mxu0 %v5150_v8  ;;  %8413 = vst [vmem:[#allocation70_spill] sm:$0xff] %v5645_v6  ;;  %v5649_v8 = vld [vmem:[#allocation9 + $0x440] sm:$0xff] }
 0x340   :  { %1561 = vmatpush2.msra.mxu1 %v5633_v59  ;;  %1683 = vmatprep.subr.mxu0 %v5154_v10  ;;  %8414 = vst [vmem:[#allocation75_spill] sm:$0xff] %v5649_v8  ;;  %v5653_v10 = vld [vmem:[#allocation9 + $0x418] sm:$0xff] }
 0x341   :  { %1562 = vmatprep.subr.mxu1 %v5637_v7  ;;  %1684 = vmatpush2.msra.mxu0 %v5158_v12  ;;  %8415 = vst [vmem:[#allocation73_spill] sm:$0xff] %v5653_v10  ;;  %v5657_v12 = vld [vmem:[#allocation9 + $0x410] sm:$0xff]  ;;  %v8447_v7 = vld [vmem:[#allocation85_spill] sm:$0xff] }
 0x342   :  { %1563 = vmatpush2.msra.mxu1 %v5641_v4  ;;  %1685 = vmatprep.subr.mxu0 %v5162_v15  ;;  %8416 = vst [vmem:[#allocation77_spill] sm:$0xff] %v5657_v12  ;;  %v5661_v15 = vld [vmem:[#allocation9 + $0x3e8] sm:$0xff]  ;;  %v8444_v4 = vld [vmem:[#allocation80_spill] sm:$0xff] }
 0x343   :  { %1564 = vmatprep.subr.mxu1 %v5645_v6  ;;  %1686 = vmatpush2.msra.mxu0 %v5166_v17  ;;  %8417 = vst [vmem:[#allocation79_spill] sm:$0xff] %v5661_v15  ;;  %v8418_v17 = vld [vmem:[#allocation89_spill] sm:$0xff]  ;;  %v8441_v6 = vld [vmem:[#allocation74_spill] sm:$0xff]  ;;  %v8505_v59 = vld [vmem:[#allocation20_spill] sm:$0xff] }
 0x344   :  { %1565 = vmatpush2.msra.mxu1 %v5649_v8  ;;  %1687 = vmatprep.subr.mxu0 %v5170_v19  ;;  %v5665_v8 = vld [vmem:[#allocation9 + $0x3e0] sm:$0xff]  ;;  %v8420_v19 = vld [vmem:[#allocation91_spill] sm:$0xff] }
 0x345   :  { %1566 = vmatprep.subr.mxu1 %v5653_v10  ;;  %1688 = vmatpush2.msra.mxu0 %v5174_v21  ;;  %8419 = vst [vmem:[#allocation82_spill] sm:$0xff] %v5665_v8  ;;  %v5669_v10 = vld [vmem:[#allocation9 + $0x3b8] sm:$0xff] }
 0x346   :  { %1567 = vmatpush2.msra.mxu1 %v5657_v12  ;;  %1689 = vmatprep.subr.mxu0 %v5178_v24  ;;  %8421 = vst [vmem:[#allocation84_spill] sm:$0xff] %v5669_v10  ;;  %v8422_v21 = vld [vmem:[#allocation93_spill] sm:$0xff]  ;;  %v5673_v12 = vld [vmem:[#allocation9 + $0x3b0] sm:$0xff] }
 0x347   :  { %1568 = vmatprep.subr.mxu1 %v5661_v15  ;;  %1690 = vmatpush2.msra.mxu0 %v8418_v17  ;;  %8423 = vst [vmem:[#allocation86_spill] sm:$0xff] %v5673_v12  ;;  %v8424_v24 = vld [vmem:[#allocation96_spill] sm:$0xff]  ;;  %v5677_v15 = vld [vmem:[#allocation9 + $0x388] sm:$0xff] }
 0x348   :  { %1569 = vmatpush2.msra.mxu1 %v5665_v8  ;;  %1691 = vmatprep.subr.mxu0 %v8420_v19  ;;  %8425 = vst [vmem:[#allocation89_spill] sm:$0xff] %v5677_v15  ;;  %v8426_v17 = vld [vmem:[#allocation98_spill] sm:$0xff]  ;;  %v8428_v19 = vld [vmem:[#allocation100_spill] sm:$0xff] }
 0x349   :  { %1570 = vmatprep.subr.mxu1 %v5669_v10  ;;  %1692 = vmatpush2.msra.mxu0 %v8422_v21  ;;  %v5681_v8 = vld [vmem:[#allocation9 + $0x380] sm:$0xff]  ;;  %v5685_v10 = vld [vmem:[#allocation9 + $0x358] sm:$0xff]  ;;  %v8430_v21 = vld [vmem:[#allocation103_spill] sm:$0xff] }
 0x34a   :  { %1571 = vmatpush2.msra.mxu1 %v5673_v12  ;;  %1693 = vmatprep.subr.mxu0 %v8424_v24  ;;  %8427 = vst [vmem:[#allocation91_spill] sm:$0xff] %v5681_v8  ;;  %8429 = vst [vmem:[#allocation93_spill] sm:$0xff] %v5685_v10  ;;  %v5689_v12 = vld [vmem:[#allocation9 + $0x350] sm:$0xff]  ;;  %v8432_v24 = vld [vmem:[#allocation105_spill] sm:$0xff] }
 0x34b   :  { %1572 = vmatprep.subr.mxu1 %v5677_v15  ;;  %1694 = vmatpush2.msra.mxu0 %v8426_v17  ;;  %8431 = vst [vmem:[#allocation96_spill] sm:$0xff] %v5689_v12  ;;  %v5693_v15 = vld [vmem:[#allocation9 + $0x328] sm:$0xff] }
 0x34c   :  { %1573 = vmatpush2.msra.mxu1 %v5681_v8  ;;  %1695 = vmatprep.subr.mxu0 %v8428_v19  ;;  %8433 = vst [vmem:[#allocation98_spill] sm:$0xff] %v5693_v15  ;;  %v8434_v17 = vld [vmem:[#allocation107_spill] sm:$0xff]  ;;  %v5697_v8 = vld [vmem:[#allocation9 + $0x320] sm:$0xff] }
 0x34d   :  { %1574 = vmatprep.subr.mxu1 %v5685_v10  ;;  %1696 = vmatpush2.msra.mxu0 %v8430_v21  ;;  %8435 = vst [vmem:[#allocation100_spill] sm:$0xff] %v5697_v8  ;;  %v8436_v19 = vld [vmem:[#allocation110_spill] sm:$0xff]  ;;  %v8437_v21 = vld [vmem:[#allocation112_spill] sm:$0xff] }
 0x34e   :  { %1575 = vmatpush2.msra.mxu1 %v5689_v12  ;;  %1697 = vmatprep.subr.mxu0 %v8432_v24  ;;  %v8438_v10 = vld [vmem:[#allocation114_spill] sm:$0xff]  ;;  %v8439_v12 = vld [vmem:[#allocation117_spill] sm:$0xff]  ;;  %v8440_v24 = vld [vmem:[#allocation123_spill] sm:$0xff] }
 0x34f   :  { %1576 = vmatprep.subr.mxu1 %v5693_v15  ;;  %1698 = vmatpush2.msra.mxu0 %v8434_v17  ;;  %v8442_v15 = vld [vmem:[#allocation76_spill] sm:$0xff]  ;;  %v8443_v17 = vld [vmem:[#allocation78_spill] sm:$0xff] }
 0x350   :  { %1577 = vmatpush2.msra.mxu1 %v5697_v8  ;;  %1699 = vmatprep.subr.mxu0 %v8436_v19  ;;  %v8445_v8 = vld [vmem:[#allocation81_spill] sm:$0xff]  ;;  %v8446_v19 = vld [vmem:[#allocation83_spill] sm:$0xff] }
 0x351   :  { %1579 = vmatmul.mubr.f32.vlgmr.msra.gmra.mxu1 %v5432_v57  ;;  %1708 = vmatprep.subr.mxu1 %v8437_v21  ;;  %v8448_v21 = vld [vmem:[#allocation87_spill] sm:$0xff] }
 0x352   :  { %1709 = vmatpush1.msra.mxu1 %v8438_v10  ;;  %1700 = vmatpush2.msra.mxu0 %v8439_v12  ;;  %v8449_v10 = vld [vmem:[#allocation88_spill] sm:$0xff]  ;;  %v8450_v12 = vld [vmem:[#allocation90_spill] sm:$0xff] }
 0x353   :  { %1710 = vmatprep.subr.mxu1 %v8440_v24  ;;  %1779 = vmatprep.subr.mxu0 %v8441_v6  ;;  %v8451_v24 = vld [vmem:[#allocation92_spill] sm:$0xff]  ;;  %v8452_v6 = vld [vmem:[#allocation94_spill] sm:$0xff] }
 0x354   :  { %1711 = vmatpush1.msra.mxu1 %v8442_v15  ;;  %v8453_v15 = vld [vmem:[#allocation95_spill] sm:$0xff] }
 0x355   :  { %1712 = vmatprep.subr.mxu1 %v8443_v17  ;;  %v8454_v17 = vld [vmem:[#allocation97_spill] sm:$0xff] }
 0x356   :  { %1713 = vmatpush1.msra.mxu1 %v8444_v4  ;;  %v8455_v4 = vld [vmem:[#allocation99_spill] sm:$0xff] }
 0x357   :  { %1714 = vmatprep.subr.mxu1 %v8445_v8  ;;  %v8456_v8 = vld [vmem:[#allocation101_spill] sm:$0xff] }
 0x358   :  { %1715 = vmatpush1.msra.mxu1 %v8446_v19  ;;  %v8457_v19 = vld [vmem:[#allocation102_spill] sm:$0xff] }
 0x359   :  { %1716 = vmatprep.subr.mxu1 %v8447_v7  ;;  %v8458_v7 = vld [vmem:[#allocation104_spill] sm:$0xff] }
 0x35a   :  { %1717 = vmatpush1.msra.mxu1 %v8448_v21  ;;  %v8459_v21 = vld [vmem:[#allocation106_spill] sm:$0xff] }
 0x35b   :  { %1718 = vmatprep.subr.mxu1 %v8449_v10  ;;  %v8460_v10 = vld [vmem:[#allocation108_spill] sm:$0xff] }
 0x35c   :  { %1719 = vmatpush1.msra.mxu1 %v8450_v12  ;;  %v8461_v12 = vld [vmem:[#allocation109_spill] sm:$0xff] }
 0x35d   :  { %1720 = vmatprep.subr.mxu1 %v8451_v24  ;;  %v8462_v24 = vld [vmem:[#allocation111_spill] sm:$0xff] }
 0x35e   :  { %1721 = vmatpush1.msra.mxu1 %v8452_v6  ;;  %v8463_v6 = vld [vmem:[#allocation113_spill] sm:$0xff] }
 0x35f   :  { %1722 = vmatprep.subr.mxu1 %v8453_v15  ;;  %v8464_v15 = vld [vmem:[#allocation115_spill] sm:$0xff] }
 0x360   :  { %1723 = vmatpush1.msra.mxu1 %v8454_v17  ;;  %v8465_v17 = vld [vmem:[#allocation116_spill] sm:$0xff] }
 0x361   :  { %1724 = vmatprep.subr.mxu1 %v8455_v4  ;;  %v8466_v4 = vld [vmem:[#allocation118_spill] sm:$0xff] }
 0x362   :  { %1725 = vmatpush1.msra.mxu1 %v8456_v8  ;;  %v8467_v8 = vld [vmem:[#allocation119_spill] sm:$0xff] }
 0x363   :  { %1726 = vmatprep.subr.mxu1 %v8457_v19  ;;  %v8468_v19 = vld [vmem:[#allocation120_spill] sm:$0xff] }
 0x364   :  { %1727 = vmatpush1.msra.mxu1 %v8458_v7  ;;  %v8469_v7 = vld [vmem:[#allocation121_spill] sm:$0xff] }
 0x365   :  { %1728 = vmatprep.subr.mxu1 %v8459_v21  ;;  %v8470_v21 = vld [vmem:[#allocation122_spill] sm:$0xff] }
 0x366   :  { %1729 = vmatpush1.msra.mxu1 %v8460_v10  ;;  %v8471_v10 = vld [vmem:[#allocation124_spill] sm:$0xff] }
 0x367   :  { %1730 = vmatprep.subr.mxu1 %v8461_v12  ;;  %v8472_v12 = vld [vmem:[#allocation125_spill] sm:$0xff] }
 0x368   :  { %1731 = vmatpush1.msra.mxu1 %v8462_v24  ;;  %v8473_v24 = vld [vmem:[#allocation126_spill] sm:$0xff] }
 0x369   :  { %1732 = vmatprep.subr.mxu1 %v8463_v6  ;;  %v8474_v6 = vld [vmem:[#allocation127_spill] sm:$0xff] }
 0x36a   :  { %1733 = vmatpush1.msra.mxu1 %v8464_v15  ;;  %v8475_v15 = vld [vmem:[#allocation128_spill] sm:$0xff] }
 0x36b   :  { %1734 = vmatprep.subr.mxu1 %v8465_v17  ;;  %v8476_v17 = vld [vmem:[#allocation129_spill] sm:$0xff] }
 0x36c   :  { %1735 = vmatpush1.msra.mxu1 %v8466_v4  ;;  %v8477_v4 = vld [vmem:[#allocation130_spill] sm:$0xff] }
 0x36d   :  { %1736 = vmatprep.subr.mxu1 %v8467_v8  ;;  %v8478_v8 = vld [vmem:[#allocation131_spill] sm:$0xff] }
 0x36e   :  { %1737 = vmatpush1.msra.mxu1 %v8468_v19  ;;  %v8479_v19 = vld [vmem:[#allocation132_spill] sm:$0xff] }
 0x36f   :  { %1738 = vmatprep.subr.mxu1 %v8469_v7  ;;  %v8480_v7 = vld [vmem:[#allocation133_spill] sm:$0xff] }
 0x370   :  { %1739 = vmatpush1.msra.mxu1 %v8470_v21  ;;  %v8481_v21 = vld [vmem:[#allocation134_spill] sm:$0xff] }
 0x371   :  { %1740 = vmatprep.subr.mxu1 %v8471_v10  ;;  %v8482_v10 = vld [vmem:[#allocation135_spill] sm:$0xff] }
 0x372   :  { %1741 = vmatpush2.msra.mxu1 %v8472_v12  ;;  %v8483_v12 = vld [vmem:[#allocation136_spill] sm:$0xff] }
 0x373   :  { %1742 = vmatprep.subr.mxu1 %v8473_v24  ;;  %v8484_v24 = vld [vmem:[#allocation137_spill] sm:$0xff] }
 0x374   :  { %1743 = vmatpush2.msra.mxu1 %v8474_v6  ;;  %v8485_v6 = vld [vmem:[#allocation138_spill] sm:$0xff] }
 0x375   :  { %1744 = vmatprep.subr.mxu1 %v8475_v15  ;;  %v8486_v15 = vld [vmem:[#allocation139_spill] sm:$0xff] }
 0x376   :  { %1745 = vmatpush2.msra.mxu1 %v8476_v17  ;;  %v8487_v17 = vld [vmem:[#allocation140_spill] sm:$0xff] }
 0x377   :  { %1746 = vmatprep.subr.mxu1 %v8477_v4  ;;  %v8488_v4 = vld [vmem:[#allocation141_spill] sm:$0xff] }
 0x378   :  { %1747 = vmatpush2.msra.mxu1 %v8478_v8  ;;  %v8489_v8 = vld [vmem:[#allocation142_spill] sm:$0xff] }
 0x379   :  { %1748 = vmatprep.subr.mxu1 %v8479_v19  ;;  %v8490_v19 = vld [vmem:[#allocation143_spill] sm:$0xff] }
 0x37a   :  { %1749 = vmatpush2.msra.mxu1 %v8480_v7  ;;  %v8491_v7 = vld [vmem:[#allocation144_spill] sm:$0xff] }
 0x37b   :  { %1750 = vmatprep.subr.mxu1 %v8481_v21  ;;  %v8492_v21 = vld [vmem:[#allocation145_spill] sm:$0xff] }
 0x37c   :  { %1751 = vmatpush2.msra.mxu1 %v8482_v10  ;;  %v8493_v10 = vld [vmem:[#allocation146_spill] sm:$0xff] }
 0x37d   :  { %1752 = vmatprep.subr.mxu1 %v8483_v12  ;;  %v8494_v12 = vld [vmem:[#allocation147_spill] sm:$0xff] }
 0x37e   :  { %1753 = vmatpush2.msra.mxu1 %v8484_v24  ;;  %v8495_v24 = vld [vmem:[#allocation148_spill] sm:$0xff] }
 0x37f   :  { %1754 = vmatprep.subr.mxu1 %v8485_v6  ;;  %v8496_v6 = vld [vmem:[#allocation149_spill] sm:$0xff] }
 0x380   :  { %1755 = vmatpush2.msra.mxu1 %v8486_v15  ;;  %v8497_v15 = vld [vmem:[#allocation150_spill] sm:$0xff] }
 0x381   :  { %1756 = vmatprep.subr.mxu1 %v8487_v17  ;;  %v8498_v17 = vld [vmem:[#allocation151_spill] sm:$0xff] }
 0x382   :  { %1757 = vmatpush2.msra.mxu1 %v8488_v4  ;;  %v8499_v4 = vld [vmem:[#allocation152_spill] sm:$0xff] }
 0x383   :  { %1758 = vmatprep.subr.mxu1 %v8489_v8  ;;  %v8500_v8 = vld [vmem:[#allocation153_spill] sm:$0xff] }
 0x384   :  { %1759 = vmatpush2.msra.mxu1 %v8490_v19  ;;  %v8501_v19 = vld [vmem:[#allocation154_spill] sm:$0xff] }
 0x385   :  { %1760 = vmatprep.subr.mxu1 %v8491_v7  ;;  %v8502_v7 = vld [vmem:[#allocation155_spill] sm:$0xff] }
 0x386   :  { %1761 = vmatpush2.msra.mxu1 %v8492_v21  ;;  %v5768_v21 = vld [vmem:[#allocation9 + $0x2d8] sm:$0xff] }
 0x387   :  { %1762 = vmatprep.subr.mxu1 %v8493_v10  ;;  %8503 = vst [vmem:[#allocation103_spill] sm:$0xff] %v5768_v21 }
 0x388   :  { %1763 = vmatpush2.msra.mxu1 %v8494_v12  ;;  %v8504_v12 = vld [vmem:[#allocation44_spill] sm:$0xff] }
 0x389   :  { %1764 = vmatprep.subr.mxu1 %v8495_v24 }
 0x38a   :  { %1765 = vmatpush2.msra.mxu1 %v8496_v6 }
 0x38b   :  { %1766 = vmatprep.subr.mxu1 %v8497_v15 }
 0x38c   :  { %1767 = vmatpush2.msra.mxu1 %v8498_v17  ;;  %v8506_v17 = vld [vmem:[#allocation48_spill] sm:$0xff] }
 0x38d   :  { %1768 = vmatprep.subr.mxu1 %v8499_v4  ;;  %v8507_v4 = vld [vmem:[#allocation25_spill] sm:$0xff] }
 0x38e   :  { %1769 = vmatpush2.msra.mxu1 %v8500_v8 }
 0x38f   :  { %1770 = vmatprep.subr.mxu1 %v8501_v19 }
 0x390   :  { %1771 = vmatpush2.msra.mxu1 %v8502_v7 }
 0x391   :  { %1902 = vmatprep.subr.mxu1 %v5768_v21  ;;  %v8508_v21 = vld [vmem:[#allocation67_spill] sm:$0xff] }
 0x3d1   :  { %v1438_v10 = vpop.f32.mrf.mxu1  ;;  %v1509_v19 = vpop.f32.mrf.mxu0 }
 0x3d2   :  { %v1439_v24 = vadd.f32 %v1438_v10, %v8504_v12  ;;  %v8509_v10 = vld [vmem:[#allocation40_spill] sm:$0xff] }
 0x3d3   :  { %v1440_v6 = vpop.f32.mrf.mxu1  ;;  %v1511_v9 = vpop.f32.mrf.mxu0  ;;  %v441_v12 = vadd.f32 %v8509_v10, %v4935_v54 }
 0x3d4   :  { %v1591_v15 = vadd.f32 %v1439_v24, %v8505_v59  ;;  %v1441_v31 = vadd.f32 %v1440_v6, %v8506_v17  ;;  %v1512_v0 = vadd.f32 %v1511_v9, %v8508_v21  ;;  %v8510_v6 = vld [vmem:[#allocation39_spill] sm:$0xff] }
 0x3d6   :  { %v3000_v22 = vmul.f32 -1.442695, %v1591_v15  ;;  %v1598_v8 = vadd.f32 %v1441_v31, %v8507_v4  ;;  %v1612_v50 = vadd.f32 %v1512_v0, %v441_v12 }
 0x3d8   :  { %3078 = vpow2.f32 %v3000_v22  ;;  %v3001_v49 = vmul.f32 -1.442695, %v1598_v8  ;;  %v3002_v24 = vmul.f32 -1.442695, %v1612_v50  ;;  %v1510_v22 = vadd.f32 %v1509_v19, %v8381_v42 }
 0x3da   :  { %3080 = vpow2.f32 %v3001_v49  ;;  %v421_v49 = vadd.f32 %v8510_v6, %v4928_v14 }
 0x3e5   :  { %v3079_v7 = vpop.eup %3078 }
 0x3e6   :  { %v1595_v2 = vadd.f32 1.0, %v3079_v7 }
 0x3e7   :  { %v3081_v59 = vpop.eup %3080 }
 0x3e8   :  { %3082 = vrcp.f32 %v1595_v2  ;;  %v1602_v15 = vadd.f32 1.0, %v3081_v59  ;;  %v8511_v59 = vld [vmem:[#allocation56_spill] sm:$0xff] }
 0x3e9   :  { %3084 = vpow2.f32 %v3002_v24  ;;  %v552_v24 = vadd.f32 %v8511_v59, %v4950_v43 }
 0x3ea   :  { %3086 = vrcp.f32 %v1602_v15 }
 0x3f5   :  { %v3083_v31 = vpop.eup %3082 }
 0x3f6   :  { %v1605_v4 = vmul.f32 %v3083_v31, %v1510_v22  ;;  %v3085_v2 = vpop.eup %3084 }
 0x3f7   :  { %v3087_v9 = vpop.eup %3086  ;;  %v1616_v7 = vadd.f32 1.0, %v3085_v2 }
 0x3f8   :  { %v1606_v8 = vadd.f32 %v1605_v4, %v421_v49  ;;  %v1608_v21 = vsub.f32 1.0, %v3087_v9  ;;  %v1610_v50 = vmul.f32 %v3087_v9, %v5432_v57  ;;  %v8512_v4 = vld [vmem:[#allocation63_spill] sm:$0xff] }
 0x3fa   :  { %3088 = vtanh.f32 %v1606_v8 }
 0x3fb   :  { %3090 = vrcp.f32 %v1616_v7 }
 0x407   :  { %v3089_v10 = vpop.eup %3088 }
 0x408   :  { %v1609_v0 = vmul.f32 %v3089_v10, %v1608_v21  ;;  %v3091_v49 = vpop.eup %3090  ;;  %v554_v21 = vadd.f32 %v8512_v4, %v4960_v25  ;;  %v5902_v4 = vld [vmem:[#allocation9 + $0x68] sm:$0xff] }
 0x40a   :  { %v5782_v12 = vadd.f32 %v1610_v50, %v1609_v0 }
 0x40c   :  { %1634 = vst [vmem:[#allocation12 + $0x20] sm:$0xff] %v5782_v12 }
 0x411   :  { %v1580_v19 = vpop.f32.mrf.mxu1 }
 0x412   :  { %v1581_v15 = vadd.f32 %v1580_v19, %v4947_v11 }
 0x413   :  { %v1582_v22 = vpop.f32.mrf.mxu1 }
 0x414   :  { %v1619_v31 = vadd.f32 %v1581_v15, %v552_v24  ;;  %v1583_v6 = vadd.f32 %v1582_v22, %v4956_v29  ;;  %v5802_v15 = vld [vmem:[#allocation9 + $0x2d0] sm:$0xff]  ;;  %v5810_v22 = vld [vmem:[#allocation9 + $0x2a0] sm:$0xff] }
 0x416   :  { %v3003_v8 = vmul.f32 -1.442695, %v1619_v31  ;;  %v1626_v57 = vmul.f32 %v3091_v49, %v1583_v6  ;;  %v5886_v31 = vld [vmem:[#allocation9 + $0xc8] sm:$0xff]  ;;  %v5890_v6 = vld [vmem:[#allocation9 + $0xc0] sm:$0xff]  ;;  %v5894_v49 = vld [vmem:[#allocation9 + $0x98] sm:$0xff] }
 0x418   :  { %3092 = vpow2.f32 %v3003_v8  ;;  %v1627_v2 = vadd.f32 %v1626_v57, %v554_v21  ;;  %v5906_v21 = vld [vmem:[#allocation9 + $0x60] sm:$0xff]  ;;  %v5910_v8 = vld [vmem:[#allocation9 + $0x38] sm:$0xff] }
 0x419   :  { %v5954_v57 = vld [vmem:[#allocation9 + $0x540] sm:$0xff] }
 0x41a   :  { %8519 = vst [vmem:[#allocation110_spill] sm:$0xff] %v5954_v57 }
 0x425   :  { %v3093_v9 = vpop.eup %3092 }
 0x426   :  { %v1623_v7 = vadd.f32 1.0, %v3093_v9  ;;  %v5962_v9 = vld [vmem:[#allocation9 + $0x510] sm:$0xff] }
 0x427   :  { %8523 = vst [vmem:[#allocation114_spill] sm:$0xff] %v5962_v9 }
 0x428   :  { %3094 = vrcp.f32 %v1623_v7  ;;  %v5966_v7 = vld [vmem:[#allocation9 + $0x4e8] sm:$0xff] }
 0x429   :  { %3096 = vtanh.f32 %v1627_v2  ;;  %v5958_v2 = vld [vmem:[#allocation9 + $0x518] sm:$0xff]  ;;  %8525 = vst [vmem:[#allocation117_spill] sm:$0xff] %v5966_v7 }
 0x42a   :  { %8521 = vst [vmem:[#allocation112_spill] sm:$0xff] %v5958_v2 }
 0x435   :  { %v3095_v10 = vpop.eup %3094 }
 0x436   :  { %v1629_v0 = vsub.f32 1.0, %v3095_v10  ;;  %v3097_v50 = vpop.eup %3096  ;;  %v1631_v59 = vmul.f32 %v3095_v10, %v5442_v51  ;;  %v5806_v51 = vld [vmem:[#allocation9 + $0x2a8] sm:$0xff]  ;;  %v8526_v10 = vld [vmem:[#allocation69_spill] sm:$0xff] }
 0x438   :  { %v1630_v19 = vmul.f32 %v3097_v50, %v1629_v0  ;;  %v5970_v0 = vld [vmem:[#allocation9 + $0x4e0] sm:$0xff]  ;;  %v8528_v50 = vld [vmem:[#allocation64_spill] sm:$0xff] }
 0x439   :  { %8527 = vst [vmem:[#allocation123_spill] sm:$0xff] %v5970_v0 }
 0x43a   :  { %v5792_v24 = vadd.f32 %v1631_v59, %v1630_v19  ;;  %v5974_v19 = vld [vmem:[#allocation9 + $0x4b8] sm:$0xff]  ;;  %v8530_v59 = vld [vmem:[#allocation71_spill] sm:$0xff] }
 0x43b   :  { %8529 = vst [vmem:[#allocation74_spill] sm:$0xff] %v5974_v19 }
 0x43c   :  { %1636 = vst [vmem:[#allocation12 + $0x58] sm:$0xff] %v5792_v24  ;;  %1701 = vmatprep.mubr.f32.mxu0 %v5792_v24  ;;  %1772 = vmatprep.mubr.f32.mxu1 %v5792_v24 }
 0x43d   :  { %1702 = vmatmul.mubr.f32.vlgmr.msra.gmra.mxu0 %v5782_v12  ;;  %1773 = vmatmul.mubr.f32.vlgmr.msra.gmra.mxu1 %v5782_v12 }
 0x43e   :  { %1780 = vmatpush1.msra.mxu0 %v5449_v53  ;;  %1843 = vmatprep.mubr.f32.mxu0 %v5792_v24  ;;  %v5814_v53 = vld [vmem:[#allocation9 + $0x278] sm:$0xff] }
 0x43f   :  { %1781 = vmatprep.subr.mxu0 %v5453_v39  ;;  %1903 = vmatpush1.msra.mxu1 %v5802_v15  ;;  %v5818_v39 = vld [vmem:[#allocation9 + $0x270] sm:$0xff] }
 0x440   :  { %1782 = vmatpush1.msra.mxu0 %v5457_v23  ;;  %1904 = vmatprep.subr.mxu1 %v5806_v51  ;;  %v5822_v23 = vld [vmem:[#allocation9 + $0x248] sm:$0xff] }
 0x441   :  { %1783 = vmatprep.subr.mxu0 %v5461_v37  ;;  %1905 = vmatpush1.msra.mxu1 %v5810_v22  ;;  %v5826_v37 = vld [vmem:[#allocation9 + $0x240] sm:$0xff] }
 0x442   :  { %1784 = vmatpush1.msra.mxu0 %v5465_v35  ;;  %1906 = vmatprep.subr.mxu1 %v5814_v53  ;;  %v5830_v35 = vld [vmem:[#allocation9 + $0x218] sm:$0xff] }
 0x443   :  { %1785 = vmatprep.subr.mxu0 %v5469_v33  ;;  %1907 = vmatpush1.msra.mxu1 %v5818_v39  ;;  %v5834_v33 = vld [vmem:[#allocation9 + $0x210] sm:$0xff] }
 0x444   :  { %1786 = vmatpush1.msra.mxu0 %v5473_v61  ;;  %1908 = vmatprep.subr.mxu1 %v5822_v23  ;;  %v5838_v61 = vld [vmem:[#allocation9 + $0x1e8] sm:$0xff] }
 0x445   :  { %1787 = vmatprep.subr.mxu0 %v5477_v47  ;;  %1909 = vmatpush1.msra.mxu1 %v5826_v37  ;;  %v5842_v47 = vld [vmem:[#allocation9 + $0x1e0] sm:$0xff] }
 0x446   :  { %1788 = vmatpush1.msra.mxu0 %v5481_v20  ;;  %1910 = vmatprep.subr.mxu1 %v5830_v35  ;;  %v5846_v20 = vld [vmem:[#allocation9 + $0x1b8] sm:$0xff] }
 0x447   :  { %1789 = vmatprep.subr.mxu0 %v5485_v5  ;;  %1911 = vmatpush1.msra.mxu1 %v5834_v33  ;;  %v5850_v5 = vld [vmem:[#allocation9 + $0x1b0] sm:$0xff] }
 0x448   :  { %1790 = vmatpush1.msra.mxu0 %v5489_v52  ;;  %1912 = vmatprep.subr.mxu1 %v5838_v61  ;;  %v5854_v52 = vld [vmem:[#allocation9 + $0x188] sm:$0xff] }
 0x449   :  { %1791 = vmatprep.subr.mxu0 %v5493_v3  ;;  %1913 = vmatpush1.msra.mxu1 %v5842_v47  ;;  %v5858_v3 = vld [vmem:[#allocation9 + $0x180] sm:$0xff] }
 0x44a   :  { %1792 = vmatpush1.msra.mxu0 %v5497_v34  ;;  %1914 = vmatprep.subr.mxu1 %v5846_v20  ;;  %v5862_v34 = vld [vmem:[#allocation9 + $0x158] sm:$0xff] }
 0x44b   :  { %1793 = vmatprep.subr.mxu0 %v5501_v45  ;;  %1915 = vmatpush1.msra.mxu1 %v5850_v5  ;;  %v5866_v45 = vld [vmem:[#allocation9 + $0x150] sm:$0xff] }
 0x44c   :  { %1794 = vmatpush1.msra.mxu0 %v5505_v32  ;;  %1916 = vmatprep.subr.mxu1 %v5854_v52  ;;  %v5870_v32 = vld [vmem:[#allocation9 + $0x128] sm:$0xff] }
 0x44d   :  { %1795 = vmatprep.subr.mxu0 %v5509_v16  ;;  %1917 = vmatpush1.msra.mxu1 %v5858_v3  ;;  %v5874_v16 = vld [vmem:[#allocation9 + $0x120] sm:$0xff] }
 0x44e   :  { %1796 = vmatpush1.msra.mxu0 %v5513_v44  ;;  %1918 = vmatprep.subr.mxu1 %v5862_v34  ;;  %v5878_v44 = vld [vmem:[#allocation9 + $0xf8] sm:$0xff] }
 0x44f   :  { %1797 = vmatprep.subr.mxu0 %v5517_v36  ;;  %1919 = vmatpush1.msra.mxu1 %v5866_v45  ;;  %v5882_v36 = vld [vmem:[#allocation9 + $0xf0] sm:$0xff] }
 0x450   :  { %1798 = vmatpush1.msra.mxu0 %v5521_v46  ;;  %1920 = vmatprep.subr.mxu1 %v5870_v32  ;;  %v8513_v46 = vld [vmem:[#allocation23_spill] sm:$0xff] }
 0x451   :  { %1799 = vmatprep.subr.mxu0 %v5525_v48  ;;  %1921 = vmatpush1.msra.mxu1 %v5874_v16  ;;  %v8514_v48 = vld [vmem:[#allocation42_spill] sm:$0xff] }
 0x452   :  { %1800 = vmatpush1.msra.mxu0 %v5529_v26  ;;  %1922 = vmatprep.subr.mxu1 %v5878_v44  ;;  %v8515_v26 = vld [vmem:[#allocation60_spill] sm:$0xff] }
 0x453   :  { %1801 = vmatprep.subr.mxu0 %v5533_v27  ;;  %1923 = vmatpush1.msra.mxu1 %v5882_v36  ;;  %v5898_v27 = vld [vmem:[#allocation9 + $0x90] sm:$0xff] }
 0x454   :  { %1802 = vmatpush1.msra.mxu0 %v8513_v46  ;;  %1924 = vmatprep.subr.mxu1 %v5886_v31  ;;  %v5978_v46 = vld [vmem:[#allocation9 + $0x4b0] sm:$0xff] }
 0x455   :  { %1803 = vmatprep.subr.mxu0 %v8514_v48  ;;  %1925 = vmatpush1.msra.mxu1 %v5890_v6  ;;  %8531 = vst [vmem:[#allocation76_spill] sm:$0xff] %v5978_v46  ;;  %v8532_v48 = vld [vmem:[#allocation66_spill] sm:$0xff] }
 0x456   :  { %1804 = vmatpush1.msra.mxu0 %v8515_v26  ;;  %1926 = vmatprep.subr.mxu1 %v5894_v49  ;;  %v5982_v26 = vld [vmem:[#allocation9 + $0x488] sm:$0xff] }
 0x457   :  { %1805 = vmatprep.subr.mxu0 %v5549_v55  ;;  %1927 = vmatpush1.msra.mxu1 %v5898_v27  ;;  %v5914_v55 = vld [vmem:[#allocation9 + $0x30] sm:$0xff]  ;;  %8533 = vst [vmem:[#allocation78_spill] sm:$0xff] %v5982_v26 }
 0x458   :  { %1806 = vmatpush1.msra.mxu0 %v5553_v63  ;;  %1928 = vmatprep.subr.mxu1 %v5902_v4  ;;  %v5918_v63 = vld [vmem:[#allocation9 + $0x8] sm:$0xff] }
 0x459   :  { %1807 = vmatprep.subr.mxu0 %v5557_v18  ;;  %1929 = vmatpush1.msra.mxu1 %v5906_v21  ;;  %v5922_v18 = vld [vmem:[#allocation9] sm:$0xff] }
 0x45a   :  { %1808 = vmatpush1.msra.mxu0 %v5561_v28  ;;  %1930 = vmatprep.subr.mxu1 %v5910_v8  ;;  %v5926_v28 = vld [vmem:[#allocation9 + $0x5d8] sm:$0xff] }
 0x45b   :  { %1809 = vmatprep.subr.mxu0 %v5565_v58  ;;  %1931 = vmatpush1.msra.mxu1 %v5914_v55  ;;  %v5930_v58 = vld [vmem:[#allocation9 + $0x5d0] sm:$0xff] }
 0x45c   :  { %1810 = vmatpush1.msra.mxu0 %v5569_v40  ;;  %1932 = vmatprep.subr.mxu1 %v5918_v63  ;;  %v5934_v40 = vld [vmem:[#allocation9 + $0x5a8] sm:$0xff] }
 0x45d   :  { %1811 = vmatprep.subr.mxu0 %v5573_v56  ;;  %1933 = vmatpush1.msra.mxu1 %v5922_v18  ;;  %v5938_v56 = vld [vmem:[#allocation9 + $0x5a0] sm:$0xff] }
 0x45e   :  { %1812 = vmatpush2.msra.mxu0 %v5577_v30  ;;  %1934 = vmatprep.subr.mxu1 %v5926_v28  ;;  %v5942_v30 = vld [vmem:[#allocation9 + $0x578] sm:$0xff] }
 0x45f   :  { %1813 = vmatprep.subr.mxu0 %v5581_v13  ;;  %1935 = vmatpush2.msra.mxu1 %v5930_v58  ;;  %v5946_v13 = vld [vmem:[#allocation9 + $0x570] sm:$0xff] }
 0x460   :  { %1814 = vmatpush2.msra.mxu0 %v5585_v60  ;;  %1936 = vmatprep.subr.mxu1 %v5934_v40  ;;  %8516 = vst [vmem:[#allocation105_spill] sm:$0xff] %v5946_v13  ;;  %v5950_v60 = vld [vmem:[#allocation9 + $0x548] sm:$0xff] }
 0x461   :  { %1815 = vmatprep.subr.mxu0 %v5589_v38  ;;  %1937 = vmatpush2.msra.mxu1 %v5938_v56  ;;  %8517 = vst [vmem:[#allocation107_spill] sm:$0xff] %v5950_v60  ;;  %v8518_v38 = vld [vmem:[#allocation37_spill] sm:$0xff] }
 0x462   :  { %1816 = vmatpush2.msra.mxu0 %v5593_v41  ;;  %1938 = vmatprep.subr.mxu1 %v5942_v30  ;;  %v8520_v41 = vld [vmem:[#allocation58_spill] sm:$0xff] }
 0x463   :  { %1817 = vmatprep.subr.mxu0 %v5597_v62  ;;  %1939 = vmatpush2.msra.mxu1 %v5946_v13  ;;  %v8522_v62 = vld [vmem:[#allocation65_spill] sm:$0xff] }
 0x464   :  { %1818 = vmatpush2.msra.mxu0 %v5601_v1  ;;  %1940 = vmatprep.subr.mxu1 %v5950_v60  ;;  %v8524_v1 = vld [vmem:[#allocation62_spill] sm:$0xff] }
 0x465   :  { %1819 = vmatprep.subr.mxu0 %v8518_v38  ;;  %1941 = vmatpush2.msra.mxu1 %v5954_v57  ;;  %v8534_v38 = vld [vmem:[#allocation72_spill] sm:$0xff] }
 0x466   :  { %1820 = vmatpush2.msra.mxu0 %v8520_v41  ;;  %1942 = vmatprep.subr.mxu1 %v5958_v2  ;;  %v5986_v41 = vld [vmem:[#allocation9 + $0x480] sm:$0xff] }
 0x467   :  { %1821 = vmatprep.subr.mxu0 %v8522_v62  ;;  %1943 = vmatpush2.msra.mxu1 %v5962_v9  ;;  %8535 = vst [vmem:[#allocation80_spill] sm:$0xff] %v5986_v41  ;;  %v8536_v62 = vld [vmem:[#allocation68_spill] sm:$0xff] }
 0x468   :  { %1822 = vmatpush2.msra.mxu0 %v8524_v1  ;;  %1944 = vmatprep.subr.mxu1 %v5966_v7  ;;  %v5990_v1 = vld [vmem:[#allocation9 + $0x458] sm:$0xff] }
 0x469   :  { %1823 = vmatprep.subr.mxu0 %v8526_v10  ;;  %1945 = vmatpush2.msra.mxu1 %v5970_v0  ;;  %8537 = vst [vmem:[#allocation81_spill] sm:$0xff] %v5990_v1  ;;  %v8538_v10 = vld [vmem:[#allocation70_spill] sm:$0xff] }
 0x46a   :  { %1824 = vmatpush2.msra.mxu0 %v8528_v50  ;;  %1946 = vmatprep.subr.mxu1 %v5974_v19  ;;  %v5994_v50 = vld [vmem:[#allocation9 + $0x450] sm:$0xff] }
 0x46b   :  { %1825 = vmatprep.subr.mxu0 %v8530_v59  ;;  %1947 = vmatpush2.msra.mxu1 %v5978_v46  ;;  %8539 = vst [vmem:[#allocation83_spill] sm:$0xff] %v5994_v50  ;;  %v8540_v59 = vld [vmem:[#allocation75_spill] sm:$0xff]  ;;  %v8634_v46 = vld [vmem:[#allocation21_spill] sm:$0xff] }
 0x46c   :  { %1826 = vmatpush2.msra.mxu0 %v8532_v48  ;;  %1948 = vmatprep.subr.mxu1 %v5982_v26  ;;  %v5998_v48 = vld [vmem:[#allocation9 + $0x428] sm:$0xff] }
 0x46d   :  { %1827 = vmatprep.subr.mxu0 %v8534_v38  ;;  %1949 = vmatpush2.msra.mxu1 %v5986_v41  ;;  %8541 = vst [vmem:[#allocation85_spill] sm:$0xff] %v5998_v48  ;;  %v8542_v38 = vld [vmem:[#allocation73_spill] sm:$0xff] }
 0x46e   :  { %1828 = vmatpush2.msra.mxu0 %v8536_v62  ;;  %1950 = vmatprep.subr.mxu1 %v5990_v1  ;;  %v6002_v41 = vld [vmem:[#allocation9 + $0x420] sm:$0xff]  ;;  %v6006_v1 = vld [vmem:[#allocation9 + $0x3f8] sm:$0xff] }
 0x46f   :  { %1829 = vmatprep.subr.mxu0 %v8538_v10  ;;  %1951 = vmatpush2.msra.mxu1 %v5994_v50  ;;  %8543 = vst [vmem:[#allocation87_spill] sm:$0xff] %v6002_v41  ;;  %v8544_v62 = vld [vmem:[#allocation77_spill] sm:$0xff]  ;;  %8545 = vst [vmem:[#allocation88_spill] sm:$0xff] %v6006_v1  ;;  %v8546_v10 = vld [vmem:[#allocation79_spill] sm:$0xff] }
 0x470   :  { %1830 = vmatpush2.msra.mxu0 %v8540_v59  ;;  %1952 = vmatprep.subr.mxu1 %v5998_v48  ;;  %v6010_v50 = vld [vmem:[#allocation9 + $0x3f0] sm:$0xff]  ;;  %v8548_v59 = vld [vmem:[#allocation82_spill] sm:$0xff] }
 0x471   :  { %1831 = vmatprep.subr.mxu0 %v8542_v38  ;;  %1953 = vmatpush2.msra.mxu1 %v6002_v41  ;;  %8547 = vst [vmem:[#allocation90_spill] sm:$0xff] %v6010_v50  ;;  %v6014_v48 = vld [vmem:[#allocation9 + $0x3c8] sm:$0xff]  ;;  %v8550_v38 = vld [vmem:[#allocation84_spill] sm:$0xff]  ;;  %v6018_v41 = vld [vmem:[#allocation9 + $0x3c0] sm:$0xff] }
 0x472   :  { %1832 = vmatpush2.msra.mxu0 %v8544_v62  ;;  %1954 = vmatprep.subr.mxu1 %v6006_v1  ;;  %8549 = vst [vmem:[#allocation92_spill] sm:$0xff] %v6014_v48  ;;  %8551 = vst [vmem:[#allocation94_spill] sm:$0xff] %v6018_v41  ;;  %v8552_v62 = vld [vmem:[#allocation86_spill] sm:$0xff]  ;;  %v6022_v1 = vld [vmem:[#allocation9 + $0x398] sm:$0xff] }
 0x473   :  { %1833 = vmatprep.subr.mxu0 %v8546_v10  ;;  %1955 = vmatpush2.msra.mxu1 %v6010_v50  ;;  %8553 = vst [vmem:[#allocation95_spill] sm:$0xff] %v6022_v1  ;;  %v8554_v10 = vld [vmem:[#allocation89_spill] sm:$0xff]  ;;  %v6026_v50 = vld [vmem:[#allocation9 + $0x390] sm:$0xff] }
 0x474   :  { %1834 = vmatpush2.msra.mxu0 %v8548_v59  ;;  %1956 = vmatprep.subr.mxu1 %v6014_v48  ;;  %8555 = vst [vmem:[#allocation97_spill] sm:$0xff] %v6026_v50  ;;  %v8556_v59 = vld [vmem:[#allocation91_spill] sm:$0xff] }
 0x475   :  { %1835 = vmatprep.subr.mxu0 %v8550_v38  ;;  %1957 = vmatpush2.msra.mxu1 %v6018_v41  ;;  %v6030_v48 = vld [vmem:[#allocation9 + $0x368] sm:$0xff]  ;;  %v8558_v38 = vld [vmem:[#allocation93_spill] sm:$0xff] }
 0x476   :  { %1836 = vmatpush2.msra.mxu0 %v8552_v62  ;;  %1958 = vmatprep.subr.mxu1 %v6022_v1  ;;  %8557 = vst [vmem:[#allocation99_spill] sm:$0xff] %v6030_v48  ;;  %v6034_v41 = vld [vmem:[#allocation9 + $0x360] sm:$0xff]  ;;  %v8560_v62 = vld [vmem:[#allocation96_spill] sm:$0xff] }
 0x477   :  { %1837 = vmatprep.subr.mxu0 %v8554_v10  ;;  %1959 = vmatpush2.msra.mxu1 %v6026_v50  ;;  %8559 = vst [vmem:[#allocation101_spill] sm:$0xff] %v6034_v41  ;;  %v6038_v1 = vld [vmem:[#allocation9 + $0x338] sm:$0xff]  ;;  %v8562_v10 = vld [vmem:[#allocation98_spill] sm:$0xff]  ;;  %v6042_v50 = vld [vmem:[#allocation9 + $0x330] sm:$0xff] }
 0x478   :  { %1838 = vmatpush2.msra.mxu0 %v8556_v59  ;;  %1960 = vmatprep.subr.mxu1 %v6030_v48  ;;  %8561 = vst [vmem:[#allocation102_spill] sm:$0xff] %v6038_v1  ;;  %8563 = vst [vmem:[#allocation104_spill] sm:$0xff] %v6042_v50  ;;  %v8564_v59 = vld [vmem:[#allocation100_spill] sm:$0xff]  ;;  %v6046_v48 = vld [vmem:[#allocation9 + $0x308] sm:$0xff] }
 0x479   :  { %1839 = vmatprep.subr.mxu0 %v8558_v38  ;;  %1961 = vmatpush2.msra.mxu1 %v6034_v41  ;;  %8565 = vst [vmem:[#allocation106_spill] sm:$0xff] %v6046_v48  ;;  %v6050_v38 = vld [vmem:[#allocation9 + $0x2e8] sm:$0xff] }
 0x47a   :  { %1840 = vmatpush2.msra.mxu0 %v8560_v62  ;;  %1962 = vmatprep.subr.mxu1 %v6038_v1  ;;  %8566 = vst [vmem:[#allocation108_spill] sm:$0xff] %v6050_v38  ;;  %v6053_v62 = vld [vmem:[#allocation9 + $0x2e0] sm:$0xff] }
 0x47b   :  { %1841 = vmatprep.subr.mxu0 %v8562_v10  ;;  %1963 = vmatpush2.msra.mxu1 %v6042_v50  ;;  %8567 = vst [vmem:[#allocation109_spill] sm:$0xff] %v6053_v62  ;;  %v6056_v10 = vld [vmem:[#allocation9 + $0x300] sm:$0xff]  ;;  %v6059_v50 = vld [vmem:[#allocation9 + $0x2b8] sm:$0xff] }
 0x47c   :  { %1842 = vmatpush2.msra.mxu0 %v8564_v59  ;;  %1964 = vmatprep.subr.mxu1 %v6046_v48  ;;  %8568 = vst [vmem:[#allocation111_spill] sm:$0xff] %v6056_v10  ;;  %8569 = vst [vmem:[#allocation113_spill] sm:$0xff] %v6059_v50  ;;  %v6062_v59 = vld [vmem:[#allocation9 + $0x2f8] sm:$0xff]  ;;  %v6065_v48 = vld [vmem:[#allocation9 + $0x2b0] sm:$0xff] }
 0x47d   :  { %1844 = vmatmul.mubr.f32.vlgmr.msra.gmra.mxu0 %v5782_v12  ;;  %1973 = vmatprep.subr.mxu0 %v6050_v38  ;;  %8570 = vst [vmem:[#allocation115_spill] sm:$0xff] %v6062_v59  ;;  %8571 = vst [vmem:[#allocation116_spill] sm:$0xff] %v6065_v48  ;;  %v6068_v38 = vld [vmem:[#allocation9 + $0x288] sm:$0xff] }
 0x47e   :  { %1974 = vmatpush1.msra.mxu0 %v6053_v62  ;;  %1965 = vmatpush2.msra.mxu1 %v6056_v10  ;;  %8572 = vst [vmem:[#allocation118_spill] sm:$0xff] %v6068_v38  ;;  %v6071_v62 = vld [vmem:[#allocation9 + $0x280] sm:$0xff]  ;;  %v6074_v10 = vld [vmem:[#allocation9 + $0x258] sm:$0xff] }
 0x47f   :  { %1975 = vmatprep.subr.mxu0 %v6059_v50  ;;  %2044 = vmatprep.subr.mxu1 %v6062_v59  ;;  %8573 = vst [vmem:[#allocation119_spill] sm:$0xff] %v6071_v62  ;;  %8574 = vst [vmem:[#allocation120_spill] sm:$0xff] %v6074_v10  ;;  %v6077_v50 = vld [vmem:[#allocation9 + $0x250] sm:$0xff]  ;;  %v6080_v59 = vld [vmem:[#allocation9 + $0x228] sm:$0xff] }
 0x480   :  { %1976 = vmatpush1.msra.mxu0 %v6065_v48  ;;  %8575 = vst [vmem:[#allocation121_spill] sm:$0xff] %v6077_v50  ;;  %8576 = vst [vmem:[#allocation122_spill] sm:$0xff] %v6080_v59  ;;  %v6083_v48 = vld [vmem:[#allocation9 + $0x220] sm:$0xff] }
 0x481   :  { %1977 = vmatprep.subr.mxu0 %v6068_v38  ;;  %8577 = vst [vmem:[#allocation124_spill] sm:$0xff] %v6083_v48  ;;  %v6086_v38 = vld [vmem:[#allocation9 + $0x1f8] sm:$0xff] }
 0x482   :  { %1978 = vmatpush1.msra.mxu0 %v6071_v62  ;;  %8578 = vst [vmem:[#allocation125_spill] sm:$0xff] %v6086_v38  ;;  %v6089_v62 = vld [vmem:[#allocation9 + $0x1f0] sm:$0xff] }
 0x483   :  { %1979 = vmatprep.subr.mxu0 %v6074_v10  ;;  %8579 = vst [vmem:[#allocation126_spill] sm:$0xff] %v6089_v62  ;;  %v6092_v10 = vld [vmem:[#allocation9 + $0x1c8] sm:$0xff] }
 0x484   :  { %1980 = vmatpush1.msra.mxu0 %v6077_v50  ;;  %8580 = vst [vmem:[#allocation127_spill] sm:$0xff] %v6092_v10  ;;  %v6095_v50 = vld [vmem:[#allocation9 + $0x1c0] sm:$0xff] }
 0x485   :  { %1981 = vmatprep.subr.mxu0 %v6080_v59  ;;  %8581 = vst [vmem:[#allocation128_spill] sm:$0xff] %v6095_v50  ;;  %v6098_v59 = vld [vmem:[#allocation9 + $0x198] sm:$0xff] }
 0x486   :  { %1982 = vmatpush1.msra.mxu0 %v6083_v48  ;;  %8582 = vst [vmem:[#allocation129_spill] sm:$0xff] %v6098_v59  ;;  %v6101_v48 = vld [vmem:[#allocation9 + $0x190] sm:$0xff] }
 0x487   :  { %1983 = vmatprep.subr.mxu0 %v6086_v38  ;;  %8583 = vst [vmem:[#allocation130_spill] sm:$0xff] %v6101_v48  ;;  %v6104_v38 = vld [vmem:[#allocation9 + $0x168] sm:$0xff] }
 0x488   :  { %1984 = vmatpush1.msra.mxu0 %v6089_v62  ;;  %8584 = vst [vmem:[#allocation131_spill] sm:$0xff] %v6104_v38  ;;  %v6107_v62 = vld [vmem:[#allocation9 + $0x160] sm:$0xff] }
 0x489   :  { %1985 = vmatprep.subr.mxu0 %v6092_v10  ;;  %8585 = vst [vmem:[#allocation132_spill] sm:$0xff] %v6107_v62  ;;  %v6110_v10 = vld [vmem:[#allocation9 + $0x138] sm:$0xff] }
 0x48a   :  { %1986 = vmatpush1.msra.mxu0 %v6095_v50  ;;  %8586 = vst [vmem:[#allocation133_spill] sm:$0xff] %v6110_v10  ;;  %v6113_v50 = vld [vmem:[#allocation9 + $0x130] sm:$0xff] }
 0x48b   :  { %1987 = vmatprep.subr.mxu0 %v6098_v59  ;;  %8587 = vst [vmem:[#allocation134_spill] sm:$0xff] %v6113_v50  ;;  %v6116_v59 = vld [vmem:[#allocation9 + $0x108] sm:$0xff] }
 0x48c   :  { %1988 = vmatpush1.msra.mxu0 %v6101_v48  ;;  %8588 = vst [vmem:[#allocation135_spill] sm:$0xff] %v6116_v59  ;;  %v6119_v48 = vld [vmem:[#allocation9 + $0x100] sm:$0xff] }
 0x48d   :  { %1989 = vmatprep.subr.mxu0 %v6104_v38  ;;  %8589 = vst [vmem:[#allocation136_spill] sm:$0xff] %v6119_v48  ;;  %v6122_v38 = vld [vmem:[#allocation9 + $0xd8] sm:$0xff] }
 0x48e   :  { %1990 = vmatpush1.msra.mxu0 %v6107_v62  ;;  %8590 = vst [vmem:[#allocation137_spill] sm:$0xff] %v6122_v38  ;;  %v6125_v62 = vld [vmem:[#allocation9 + $0xd0] sm:$0xff] }
 0x48f   :  { %1991 = vmatprep.subr.mxu0 %v6110_v10  ;;  %8591 = vst [vmem:[#allocation138_spill] sm:$0xff] %v6125_v62  ;;  %v6128_v10 = vld [vmem:[#allocation9 + $0xa8] sm:$0xff] }
 0x490   :  { %1992 = vmatpush1.msra.mxu0 %v6113_v50  ;;  %8592 = vst [vmem:[#allocation139_spill] sm:$0xff] %v6128_v10  ;;  %v6131_v50 = vld [vmem:[#allocation9 + $0xa0] sm:$0xff] }
 0x491   :  { %1993 = vmatprep.subr.mxu0 %v6116_v59  ;;  %8593 = vst [vmem:[#allocation140_spill] sm:$0xff] %v6131_v50  ;;  %v6134_v59 = vld [vmem:[#allocation9 + $0x78] sm:$0xff] }
 0x492   :  { %1994 = vmatpush1.msra.mxu0 %v6119_v48  ;;  %8594 = vst [vmem:[#allocation141_spill] sm:$0xff] %v6134_v59  ;;  %v6137_v48 = vld [vmem:[#allocation9 + $0x70] sm:$0xff] }
 0x493   :  { %1995 = vmatprep.subr.mxu0 %v6122_v38  ;;  %8595 = vst [vmem:[#allocation142_spill] sm:$0xff] %v6137_v48  ;;  %v6140_v38 = vld [vmem:[#allocation9 + $0x48] sm:$0xff] }
 0x494   :  { %1996 = vmatpush1.msra.mxu0 %v6125_v62  ;;  %8596 = vst [vmem:[#allocation143_spill] sm:$0xff] %v6140_v38  ;;  %v6143_v62 = vld [vmem:[#allocation9 + $0x40] sm:$0xff] }
 0x495   :  { %1997 = vmatprep.subr.mxu0 %v6128_v10  ;;  %8597 = vst [vmem:[#allocation144_spill] sm:$0xff] %v6143_v62  ;;  %v6146_v10 = vld [vmem:[#allocation9 + $0x18] sm:$0xff] }
 0x496   :  { %1998 = vmatpush1.msra.mxu0 %v6131_v50  ;;  %8598 = vst [vmem:[#allocation145_spill] sm:$0xff] %v6146_v10  ;;  %v6149_v50 = vld [vmem:[#allocation9 + $0x10] sm:$0xff] }
 0x497   :  { %1999 = vmatprep.subr.mxu0 %v6134_v59  ;;  %8599 = vst [vmem:[#allocation146_spill] sm:$0xff] %v6149_v50  ;;  %v6152_v59 = vld [vmem:[#allocation9 + $0x5e8] sm:$0xff] }
 0x498   :  { %2000 = vmatpush1.msra.mxu0 %v6137_v48  ;;  %8600 = vst [vmem:[#allocation147_spill] sm:$0xff] %v6152_v59  ;;  %v6155_v48 = vld [vmem:[#allocation9 + $0x5e0] sm:$0xff] }
 0x499   :  { %2001 = vmatprep.subr.mxu0 %v6140_v38  ;;  %8601 = vst [vmem:[#allocation148_spill] sm:$0xff] %v6155_v48  ;;  %v6158_v38 = vld [vmem:[#allocation9 + $0x5b8] sm:$0xff] }
 0x49a   :  { %2002 = vmatpush1.msra.mxu0 %v6143_v62  ;;  %8602 = vst [vmem:[#allocation149_spill] sm:$0xff] %v6158_v38  ;;  %v6161_v62 = vld [vmem:[#allocation9 + $0x5b0] sm:$0xff] }
 0x49b   :  { %2003 = vmatprep.subr.mxu0 %v6146_v10  ;;  %8603 = vst [vmem:[#allocation150_spill] sm:$0xff] %v6161_v62  ;;  %v6164_v10 = vld [vmem:[#allocation9 + $0x588] sm:$0xff] }
 0x49c   :  { %2004 = vmatpush1.msra.mxu0 %v6149_v50  ;;  %8604 = vst [vmem:[#allocation151_spill] sm:$0xff] %v6164_v10  ;;  %v6167_v50 = vld [vmem:[#allocation9 + $0x580] sm:$0xff] }
 0x49d   :  { %2005 = vmatprep.subr.mxu0 %v6152_v59  ;;  %8605 = vst [vmem:[#allocation152_spill] sm:$0xff] %v6167_v50  ;;  %v6170_v59 = vld [vmem:[#allocation9 + $0x558] sm:$0xff] }
 0x49e   :  { %2006 = vmatpush2.msra.mxu0 %v6155_v48  ;;  %8606 = vst [vmem:[#allocation153_spill] sm:$0xff] %v6170_v59  ;;  %v6173_v48 = vld [vmem:[#allocation9 + $0x550] sm:$0xff] }
 0x49f   :  { %2007 = vmatprep.subr.mxu0 %v6158_v38  ;;  %8607 = vst [vmem:[#allocation154_spill] sm:$0xff] %v6173_v48  ;;  %v6176_v38 = vld [vmem:[#allocation9 + $0x528] sm:$0xff] }
 0x4a0   :  { %2008 = vmatpush2.msra.mxu0 %v6161_v62  ;;  %8608 = vst [vmem:[#allocation155_spill] sm:$0xff] %v6176_v38  ;;  %v6179_v62 = vld [vmem:[#allocation9 + $0x520] sm:$0xff] }
 0x4a1   :  { %2009 = vmatprep.subr.mxu0 %v6164_v10  ;;  %8609 = vst [vmem:[#allocation20_spill] sm:$0xff] %v6179_v62  ;;  %v6182_v10 = vld [vmem:[#allocation9 + $0x4f8] sm:$0xff] }
 0x4a2   :  { %2010 = vmatpush2.msra.mxu0 %v6167_v50  ;;  %8610 = vst [vmem:[#allocation48_spill] sm:$0xff] %v6182_v10  ;;  %v6185_v50 = vld [vmem:[#allocation9 + $0x4f0] sm:$0xff] }
 0x4a3   :  { %2011 = vmatprep.subr.mxu0 %v6170_v59  ;;  %8611 = vst [vmem:[#allocation25_spill] sm:$0xff] %v6185_v50  ;;  %v6188_v59 = vld [vmem:[#allocation9 + $0x4c8] sm:$0xff] }
 0x4a4   :  { %2012 = vmatpush2.msra.mxu0 %v6173_v48  ;;  %8612 = vst [vmem:[#allocation40_spill] sm:$0xff] %v6188_v59  ;;  %v6191_v48 = vld [vmem:[#allocation9 + $0x4c0] sm:$0xff] }
 0x4a5   :  { %2013 = vmatprep.subr.mxu0 %v6176_v38  ;;  %8613 = vst [vmem:[#allocation39_spill] sm:$0xff] %v6191_v48  ;;  %v6194_v38 = vld [vmem:[#allocation9 + $0x498] sm:$0xff] }
 0x4a6   :  { %2014 = vmatpush2.msra.mxu0 %v6179_v62  ;;  %8614 = vst [vmem:[#allocation56_spill] sm:$0xff] %v6194_v38  ;;  %v6197_v62 = vld [vmem:[#allocation9 + $0x490] sm:$0xff] }
 0x4a7   :  { %2015 = vmatprep.subr.mxu0 %v6182_v10  ;;  %8615 = vst [vmem:[#allocation63_spill] sm:$0xff] %v6197_v62  ;;  %v6200_v10 = vld [vmem:[#allocation9 + $0x468] sm:$0xff] }
 0x4a8   :  { %2016 = vmatpush2.msra.mxu0 %v6185_v50  ;;  %8616 = vst [vmem:[#allocation23_spill] sm:$0xff] %v6200_v10  ;;  %v6203_v50 = vld [vmem:[#allocation9 + $0x460] sm:$0xff] }
 0x4a9   :  { %2017 = vmatprep.subr.mxu0 %v6188_v59  ;;  %8617 = vst [vmem:[#allocation42_spill] sm:$0xff] %v6203_v50  ;;  %v6206_v59 = vld [vmem:[#allocation9 + $0x438] sm:$0xff] }
 0x4aa   :  { %2018 = vmatpush2.msra.mxu0 %v6191_v48  ;;  %8618 = vst [vmem:[#allocation60_spill] sm:$0xff] %v6206_v59  ;;  %v6209_v48 = vld [vmem:[#allocation9 + $0x430] sm:$0xff] }
 0x4ab   :  { %2019 = vmatprep.subr.mxu0 %v6194_v38  ;;  %8619 = vst [vmem:[#allocation37_spill] sm:$0xff] %v6209_v48  ;;  %v6212_v38 = vld [vmem:[#allocation9 + $0x408] sm:$0xff] }
 0x4ac   :  { %2020 = vmatpush2.msra.mxu0 %v6197_v62  ;;  %8620 = vst [vmem:[#allocation58_spill] sm:$0xff] %v6212_v38  ;;  %v6215_v62 = vld [vmem:[#allocation9 + $0x400] sm:$0xff] }
 0x4ad   :  { %2021 = vmatprep.subr.mxu0 %v6200_v10  ;;  %8621 = vst [vmem:[#allocation65_spill] sm:$0xff] %v6215_v62  ;;  %v6218_v10 = vld [vmem:[#allocation9 + $0x3d8] sm:$0xff] }
 0x4ae   :  { %2022 = vmatpush2.msra.mxu0 %v6203_v50  ;;  %8622 = vst [vmem:[#allocation62_spill] sm:$0xff] %v6218_v10  ;;  %v6221_v50 = vld [vmem:[#allocation9 + $0x3d0] sm:$0xff] }
 0x4af   :  { %2023 = vmatprep.subr.mxu0 %v6206_v59  ;;  %8623 = vst [vmem:[#allocation69_spill] sm:$0xff] %v6221_v50  ;;  %v6224_v59 = vld [vmem:[#allocation9 + $0x3a8] sm:$0xff] }
 0x4b0   :  { %2024 = vmatpush2.msra.mxu0 %v6209_v48  ;;  %8624 = vst [vmem:[#allocation64_spill] sm:$0xff] %v6224_v59  ;;  %v6227_v48 = vld [vmem:[#allocation9 + $0x3a0] sm:$0xff] }
 0x4b1   :  { %2025 = vmatprep.subr.mxu0 %v6212_v38  ;;  %8625 = vst [vmem:[#allocation71_spill] sm:$0xff] %v6227_v48  ;;  %v6230_v38 = vld [vmem:[#allocation9 + $0x378] sm:$0xff] }
 0x4b2   :  { %2026 = vmatpush2.msra.mxu0 %v6215_v62  ;;  %8626 = vst [vmem:[#allocation66_spill] sm:$0xff] %v6230_v38  ;;  %v6233_v62 = vld [vmem:[#allocation9 + $0x370] sm:$0xff] }
 0x4b3   :  { %2027 = vmatprep.subr.mxu0 %v6218_v10  ;;  %8627 = vst [vmem:[#allocation72_spill] sm:$0xff] %v6233_v62  ;;  %v6236_v10 = vld [vmem:[#allocation9 + $0x348] sm:$0xff] }
 0x4b4   :  { %2028 = vmatpush2.msra.mxu0 %v6221_v50  ;;  %8628 = vst [vmem:[#allocation68_spill] sm:$0xff] %v6236_v10  ;;  %v6239_v50 = vld [vmem:[#allocation9 + $0x340] sm:$0xff] }
 0x4b5   :  { %2029 = vmatprep.subr.mxu0 %v6224_v59  ;;  %8629 = vst [vmem:[#allocation70_spill] sm:$0xff] %v6239_v50  ;;  %v6242_v59 = vld [vmem:[#allocation9 + $0x318] sm:$0xff] }
 0x4b6   :  { %2030 = vmatpush2.msra.mxu0 %v6227_v48  ;;  %8630 = vst [vmem:[#allocation75_spill] sm:$0xff] %v6242_v59  ;;  %v6245_v48 = vld [vmem:[#allocation9 + $0x310] sm:$0xff] }
 0x4b7   :  { %2031 = vmatprep.subr.mxu0 %v6230_v38  ;;  %8631 = vst [vmem:[#allocation73_spill] sm:$0xff] %v6245_v48  ;;  %v8632_v38 = vld [vmem:[#allocation103_spill] sm:$0xff] }
 0x4b8   :  { %2032 = vmatpush2.msra.mxu0 %v6233_v62  ;;  %v8633_v62 = vld [vmem:[#allocation44_spill] sm:$0xff] }
 0x4b9   :  { %2033 = vmatprep.subr.mxu0 %v6236_v10 }
 0x4ba   :  { %2034 = vmatpush2.msra.mxu0 %v6239_v50  ;;  %v8635_v50 = vld [vmem:[#allocation27_spill] sm:$0xff] }
 0x4bb   :  { %2035 = vmatprep.subr.mxu0 %v6242_v59 }
 0x4bc   :  { %2036 = vmatpush2.msra.mxu0 %v6245_v48 }
 0x4bd   :  { %2165 = vmatprep.subr.mxu0 %v8632_v38  ;;  %v8636_v38 = vld [vmem:[#allocation67_spill] sm:$0xff] }
 0x4fd   :  { %v1703_v1 = vpop.f32.mrf.mxu0  ;;  %v1774_v59 = vpop.f32.mrf.mxu1 }
 0x4fe   :  { %v1704_v41 = vadd.f32 %v1703_v1, %v8633_v62  ;;  %v8637_v1 = vld [vmem:[#allocation38_spill] sm:$0xff] }
 0x4ff   :  { %v1705_v26 = vpop.f32.mrf.mxu0  ;;  %v1776_v57 = vpop.f32.mrf.mxu1  ;;  %v435_v62 = vadd.f32 %v8637_v1, %v4935_v54 }
 0x500   :  { %v1856_v10 = vadd.f32 %v1704_v41, %v8634_v46  ;;  %v1706_v0 = vadd.f32 %v1705_v26, %v8506_v17  ;;  %v1777_v60 = vadd.f32 %v1776_v57, %v8636_v38 }
 0x502   :  { %v3004_v19 = vmul.f32 -1.442695, %v1856_v10  ;;  %v1863_v7 = vadd.f32 %v1706_v0, %v8635_v50  ;;  %v1877_v13 = vadd.f32 %v1777_v60, %v435_v62 }
 0x504   :  { %3098 = vpow2.f32 %v3004_v19  ;;  %v3005_v9 = vmul.f32 -1.442695, %v1863_v7  ;;  %v3006_v41 = vmul.f32 -1.442695, %v1877_v13  ;;  %v1775_v19 = vadd.f32 %v1774_v59, %v8381_v42  ;;  %v8638_v7 = vld [vmem:[#allocation41_spill] sm:$0xff] }
 0x506   :  { %3100 = vpow2.f32 %v3005_v9  ;;  %v427_v9 = vadd.f32 %v8638_v7, %v4928_v14 }
 0x511   :  { %v3099_v2 = vpop.eup %3098 }
 0x512   :  { %v1860_v48 = vadd.f32 1.0, %v3099_v2 }
 0x513   :  { %v3101_v46 = vpop.eup %3100 }
 0x514   :  { %3102 = vrcp.f32 %v1860_v48  ;;  %v1867_v10 = vadd.f32 1.0, %v3101_v46  ;;  %v8639_v46 = vld [vmem:[#allocation54_spill] sm:$0xff] }
 0x515   :  { %3104 = vpow2.f32 %v3006_v41  ;;  %v546_v41 = vadd.f32 %v8639_v46, %v4950_v43 }
 0x516   :  { %3106 = vrcp.f32 %v1867_v10 }
 0x521   :  { %v3103_v0 = vpop.eup %3102 }
 0x522   :  { %v1870_v26 = vmul.f32 %v3103_v0, %v1775_v19  ;;  %v3105_v50 = vpop.eup %3104 }
 0x523   :  { %v3107_v57 = vpop.eup %3106  ;;  %v1881_v48 = vadd.f32 1.0, %v3105_v50 }
 0x524   :  { %v1871_v2 = vadd.f32 %v1870_v26, %v427_v9  ;;  %v1873_v38 = vsub.f32 1.0, %v3107_v57  ;;  %v1875_v13 = vmul.f32 %v3107_v57, %v5782_v12  ;;  %v8640_v26 = vld [vmem:[#allocation61_spill] sm:$0xff] }
 0x526   :  { %3108 = vtanh.f32 %v1871_v2 }
 0x527   :  { %3110 = vrcp.f32 %v1881_v48 }
 0x533   :  { %v3109_v1 = vpop.eup %3108 }
 0x534   :  { %v1874_v60 = vmul.f32 %v3109_v1, %v1873_v38  ;;  %v3111_v9 = vpop.eup %3110  ;;  %v548_v38 = vadd.f32 %v8640_v26, %v4960_v25  ;;  %v6429_v26 = vld [vmem:[#allocation9 + $0x560] sm:$0xff] }
 0x535   :  { %8644 = vst [vmem:[#allocation82_spill] sm:$0xff] %v6429_v26 }
 0x536   :  { %v6260_v62 = vadd.f32 %v1875_v13, %v1874_v60 }
 0x538   :  { %1899 = vst [vmem:[#allocation12 + $0x30] sm:$0xff] %v6260_v62 }
 0x53d   :  { %v1845_v59 = vpop.f32.mrf.mxu0 }
 0x53e   :  { %v1846_v10 = vadd.f32 %v1845_v59, %v4947_v11 }
 0x53f   :  { %v1847_v19 = vpop.f32.mrf.mxu0 }
 0x540   :  { %v1884_v0 = vadd.f32 %v1846_v10, %v546_v41  ;;  %v1848_v7 = vadd.f32 %v1847_v19, %v4956_v29  ;;  %v6277_v10 = vld [vmem:[#allocation9 + $0x2f0] sm:$0xff]  ;;  %v6281_v19 = vld [vmem:[#allocation9 + $0x2c8] sm:$0xff] }
 0x542   :  { %v3007_v2 = vmul.f32 -1.442695, %v1884_v0  ;;  %v1891_v12 = vmul.f32 %v3111_v9, %v1848_v7  ;;  %v6289_v0 = vld [vmem:[#allocation9 + $0x298] sm:$0xff]  ;;  %v6293_v7 = vld [vmem:[#allocation9 + $0x290] sm:$0xff]  ;;  %v6297_v9 = vld [vmem:[#allocation9 + $0x268] sm:$0xff] }
 0x544   :  { %3112 = vpow2.f32 %v3007_v2  ;;  %v1892_v50 = vadd.f32 %v1891_v12, %v548_v38  ;;  %v6433_v38 = vld [vmem:[#allocation9 + $0x538] sm:$0xff]  ;;  %v6437_v2 = vld [vmem:[#allocation9 + $0x530] sm:$0xff]  ;;  %v6441_v12 = vld [vmem:[#allocation9 + $0x508] sm:$0xff] }
 0x545   :  { %8646 = vst [vmem:[#allocation84_spill] sm:$0xff] %v6433_v38  ;;  %8648 = vst [vmem:[#allocation86_spill] sm:$0xff] %v6437_v2 }
 0x546   :  { %8650 = vst [vmem:[#allocation89_spill] sm:$0xff] %v6441_v12 }
 0x551   :  { %v3113_v57 = vpop.eup %3112 }
 0x552   :  { %v1888_v48 = vadd.f32 1.0, %v3113_v57  ;;  %v6445_v57 = vld [vmem:[#allocation9 + $0x500] sm:$0xff] }
 0x553   :  { %8652 = vst [vmem:[#allocation91_spill] sm:$0xff] %v6445_v57 }
 0x554   :  { %3114 = vrcp.f32 %v1888_v48  ;;  %v8653_v48 = vld [vmem:[#allocation117_spill] sm:$0xff] }
 0x555   :  { %3116 = vtanh.f32 %v1892_v50  ;;  %v8651_v50 = vld [vmem:[#allocation114_spill] sm:$0xff] }
 0x561   :  { %v3115_v1 = vpop.eup %3114 }
 0x562   :  { %v1894_v60 = vsub.f32 1.0, %v3115_v1  ;;  %v3117_v13 = vpop.eup %3116  ;;  %v1896_v46 = vmul.f32 %v3115_v1, %v5792_v24  ;;  %v6285_v24 = vld [vmem:[#allocation9 + $0x2c0] sm:$0xff]  ;;  %v6449_v1 = vld [vmem:[#allocation9 + $0x4d8] sm:$0xff] }
 0x563   :  { %8654 = vst [vmem:[#allocation93_spill] sm:$0xff] %v6449_v1 }
 0x564   :  { %v1895_v59 = vmul.f32 %v3117_v13, %v1894_v60  ;;  %v8655_v60 = vld [vmem:[#allocation123_spill] sm:$0xff] }
 0x565   :  { %v6453_v13 = vld [vmem:[#allocation9 + $0x4d0] sm:$0xff] }
 0x566   :  { %v6270_v41 = vadd.f32 %v1896_v46, %v1895_v59  ;;  %8656 = vst [vmem:[#allocation96_spill] sm:$0xff] %v6453_v13  ;;  %v8657_v59 = vld [vmem:[#allocation74_spill] sm:$0xff] }
 0x567   :  { %v6457_v46 = vld [vmem:[#allocation9 + $0x4a8] sm:$0xff] }
 0x568   :  { %1901 = vst [vmem:[#allocation12 + $0x48] sm:$0xff] %v6270_v41  ;;  %1966 = vmatprep.mubr.f32.mxu1 %v6270_v41  ;;  %2037 = vmatprep.mubr.f32.mxu0 %v6270_v41  ;;  %8658 = vst [vmem:[#allocation98_spill] sm:$0xff] %v6457_v46 }
 0x569   :  { %1967 = vmatmul.mubr.f32.vlgmr.msra.gmra.mxu1 %v6260_v62  ;;  %2038 = vmatmul.mubr.f32.vlgmr.msra.gmra.mxu0 %v6260_v62 }
 0x56a   :  { %2045 = vmatpush1.msra.mxu1 %v6277_v10  ;;  %2108 = vmatprep.mubr.f32.mxu1 %v6270_v41 }
 0x56b   :  { %2046 = vmatprep.subr.mxu1 %v6281_v19  ;;  %2166 = vmatpush1.msra.mxu0 %v5802_v15  ;;  %v6301_v15 = vld [vmem:[#allocation9 + $0x260] sm:$0xff] }
 0x56c   :  { %2047 = vmatpush1.msra.mxu1 %v6285_v24  ;;  %2167 = vmatprep.subr.mxu0 %v5806_v51  ;;  %v6305_v51 = vld [vmem:[#allocation9 + $0x238] sm:$0xff] }
 0x56d   :  { %2048 = vmatprep.subr.mxu1 %v6289_v0  ;;  %2168 = vmatpush1.msra.mxu0 %v5810_v22  ;;  %v6309_v22 = vld [vmem:[#allocation9 + $0x230] sm:$0xff] }
 0x56e   :  { %2049 = vmatpush1.msra.mxu1 %v6293_v7  ;;  %2169 = vmatprep.subr.mxu0 %v5814_v53  ;;  %v6313_v53 = vld [vmem:[#allocation9 + $0x208] sm:$0xff] }
 0x56f   :  { %2050 = vmatprep.subr.mxu1 %v6297_v9  ;;  %2170 = vmatpush1.msra.mxu0 %v5818_v39  ;;  %v6317_v39 = vld [vmem:[#allocation9 + $0x200] sm:$0xff] }
 0x570   :  { %2051 = vmatpush1.msra.mxu1 %v6301_v15  ;;  %2171 = vmatprep.subr.mxu0 %v5822_v23  ;;  %v6321_v23 = vld [vmem:[#allocation9 + $0x1d8] sm:$0xff] }
 0x571   :  { %2052 = vmatprep.subr.mxu1 %v6305_v51  ;;  %2172 = vmatpush1.msra.mxu0 %v5826_v37  ;;  %v6325_v37 = vld [vmem:[#allocation9 + $0x1d0] sm:$0xff] }
 0x572   :  { %2053 = vmatpush1.msra.mxu1 %v6309_v22  ;;  %2173 = vmatprep.subr.mxu0 %v5830_v35  ;;  %v6329_v35 = vld [vmem:[#allocation9 + $0x1a8] sm:$0xff] }
 0x573   :  { %2054 = vmatprep.subr.mxu1 %v6313_v53  ;;  %2174 = vmatpush1.msra.mxu0 %v5834_v33  ;;  %v6333_v33 = vld [vmem:[#allocation9 + $0x1a0] sm:$0xff] }
 0x574   :  { %2055 = vmatpush1.msra.mxu1 %v6317_v39  ;;  %2175 = vmatprep.subr.mxu0 %v5838_v61  ;;  %v6337_v61 = vld [vmem:[#allocation9 + $0x178] sm:$0xff] }
 0x575   :  { %2056 = vmatprep.subr.mxu1 %v6321_v23  ;;  %2176 = vmatpush1.msra.mxu0 %v5842_v47  ;;  %v6341_v47 = vld [vmem:[#allocation9 + $0x170] sm:$0xff] }
 0x576   :  { %2057 = vmatpush1.msra.mxu1 %v6325_v37  ;;  %2177 = vmatprep.subr.mxu0 %v5846_v20  ;;  %v6345_v20 = vld [vmem:[#allocation9 + $0x148] sm:$0xff] }
 0x577   :  { %2058 = vmatprep.subr.mxu1 %v6329_v35  ;;  %2178 = vmatpush1.msra.mxu0 %v5850_v5  ;;  %v6349_v5 = vld [vmem:[#allocation9 + $0x140] sm:$0xff] }
 0x578   :  { %2059 = vmatpush1.msra.mxu1 %v6333_v33  ;;  %2179 = vmatprep.subr.mxu0 %v5854_v52  ;;  %v6353_v52 = vld [vmem:[#allocation9 + $0x118] sm:$0xff] }
 0x579   :  { %2060 = vmatprep.subr.mxu1 %v6337_v61  ;;  %2180 = vmatpush1.msra.mxu0 %v5858_v3  ;;  %v6357_v3 = vld [vmem:[#allocation9 + $0x110] sm:$0xff] }
 0x57a   :  { %2061 = vmatpush1.msra.mxu1 %v6341_v47  ;;  %2181 = vmatprep.subr.mxu0 %v5862_v34  ;;  %v6361_v34 = vld [vmem:[#allocation9 + $0xe8] sm:$0xff] }
 0x57b   :  { %2062 = vmatprep.subr.mxu1 %v6345_v20  ;;  %2182 = vmatpush1.msra.mxu0 %v5866_v45  ;;  %v6365_v45 = vld [vmem:[#allocation9 + $0xe0] sm:$0xff] }
 0x57c   :  { %2063 = vmatpush1.msra.mxu1 %v6349_v5  ;;  %2183 = vmatprep.subr.mxu0 %v5870_v32  ;;  %v6369_v32 = vld [vmem:[#allocation9 + $0xb8] sm:$0xff] }
 0x57d   :  { %2064 = vmatprep.subr.mxu1 %v6353_v52  ;;  %2184 = vmatpush1.msra.mxu0 %v5874_v16  ;;  %v6373_v16 = vld [vmem:[#allocation9 + $0xb0] sm:$0xff] }
 0x57e   :  { %2065 = vmatpush1.msra.mxu1 %v6357_v3  ;;  %2185 = vmatprep.subr.mxu0 %v5878_v44  ;;  %v6377_v44 = vld [vmem:[#allocation9 + $0x88] sm:$0xff] }
 0x57f   :  { %2066 = vmatprep.subr.mxu1 %v6361_v34  ;;  %2186 = vmatpush1.msra.mxu0 %v5882_v36  ;;  %v6381_v36 = vld [vmem:[#allocation9 + $0x80] sm:$0xff] }
 0x580   :  { %2067 = vmatpush1.msra.mxu1 %v6365_v45  ;;  %2187 = vmatprep.subr.mxu0 %v5886_v31  ;;  %v6385_v31 = vld [vmem:[#allocation9 + $0x58] sm:$0xff] }
 0x581   :  { %2068 = vmatprep.subr.mxu1 %v6369_v32  ;;  %2188 = vmatpush1.msra.mxu0 %v5890_v6  ;;  %v6389_v6 = vld [vmem:[#allocation9 + $0x50] sm:$0xff] }
 0x582   :  { %2069 = vmatpush1.msra.mxu1 %v6373_v16  ;;  %2189 = vmatprep.subr.mxu0 %v5894_v49  ;;  %v6393_v49 = vld [vmem:[#allocation9 + $0x28] sm:$0xff] }
 0x583   :  { %2070 = vmatprep.subr.mxu1 %v6377_v44  ;;  %2190 = vmatpush1.msra.mxu0 %v5898_v27  ;;  %v6397_v27 = vld [vmem:[#allocation9 + $0x20] sm:$0xff] }
 0x584   :  { %2071 = vmatpush1.msra.mxu1 %v6381_v36  ;;  %2191 = vmatprep.subr.mxu0 %v5902_v4  ;;  %v6401_v4 = vld [vmem:[#allocation9 + $0x5f8] sm:$0xff] }
 0x585   :  { %2072 = vmatprep.subr.mxu1 %v6385_v31  ;;  %2192 = vmatpush1.msra.mxu0 %v5906_v21  ;;  %v6405_v21 = vld [vmem:[#allocation9 + $0x5f0] sm:$0xff] }
 0x586   :  { %2073 = vmatpush1.msra.mxu1 %v6389_v6  ;;  %2193 = vmatprep.subr.mxu0 %v5910_v8  ;;  %v6409_v8 = vld [vmem:[#allocation9 + $0x5c8] sm:$0xff] }
 0x587   :  { %2074 = vmatprep.subr.mxu1 %v6393_v49  ;;  %2194 = vmatpush1.msra.mxu0 %v5914_v55  ;;  %v6413_v55 = vld [vmem:[#allocation9 + $0x5c0] sm:$0xff] }
 0x588   :  { %2075 = vmatpush1.msra.mxu1 %v6397_v27  ;;  %2195 = vmatprep.subr.mxu0 %v5918_v63  ;;  %v6417_v63 = vld [vmem:[#allocation9 + $0x598] sm:$0xff] }
 0x589   :  { %2076 = vmatprep.subr.mxu1 %v6401_v4  ;;  %2196 = vmatpush1.msra.mxu0 %v5922_v18  ;;  %v6421_v18 = vld [vmem:[#allocation9 + $0x590] sm:$0xff] }
 0x58a   :  { %2077 = vmatpush2.msra.mxu1 %v6405_v21  ;;  %2197 = vmatprep.subr.mxu0 %v5926_v28  ;;  %8641 = vst [vmem:[#allocation77_spill] sm:$0xff] %v6421_v18  ;;  %v6425_v28 = vld [vmem:[#allocation9 + $0x568] sm:$0xff] }
 0x58b   :  { %2078 = vmatprep.subr.mxu1 %v6409_v8  ;;  %2198 = vmatpush2.msra.mxu0 %v5930_v58  ;;  %8642 = vst [vmem:[#allocation79_spill] sm:$0xff] %v6425_v28  ;;  %v8643_v58 = vld [vmem:[#allocation105_spill] sm:$0xff] }
 0x58c   :  { %2079 = vmatpush2.msra.mxu1 %v6413_v55  ;;  %2199 = vmatprep.subr.mxu0 %v5934_v40  ;;  %v8645_v40 = vld [vmem:[#allocation107_spill] sm:$0xff] }
 0x58d   :  { %2080 = vmatprep.subr.mxu1 %v6417_v63  ;;  %2200 = vmatpush2.msra.mxu0 %v5938_v56  ;;  %v8647_v56 = vld [vmem:[#allocation110_spill] sm:$0xff] }
 0x58e   :  { %2081 = vmatpush2.msra.mxu1 %v6421_v18  ;;  %2201 = vmatprep.subr.mxu0 %v5942_v30  ;;  %v8649_v30 = vld [vmem:[#allocation112_spill] sm:$0xff] }
 0x58f   :  { %2082 = vmatprep.subr.mxu1 %v6425_v28  ;;  %2202 = vmatpush2.msra.mxu0 %v8643_v58  ;;  %v8659_v58 = vld [vmem:[#allocation76_spill] sm:$0xff] }
 0x590   :  { %2083 = vmatpush2.msra.mxu1 %v6429_v26  ;;  %2203 = vmatprep.subr.mxu0 %v8645_v40  ;;  %v6461_v40 = vld [vmem:[#allocation9 + $0x4a0] sm:$0xff] }
 0x591   :  { %2084 = vmatprep.subr.mxu1 %v6433_v38  ;;  %2204 = vmatpush2.msra.mxu0 %v8647_v56  ;;  %8660 = vst [vmem:[#allocation100_spill] sm:$0xff] %v6461_v40  ;;  %v8661_v56 = vld [vmem:[#allocation78_spill] sm:$0xff] }
 0x592   :  { %2085 = vmatpush2.msra.mxu1 %v6437_v2  ;;  %2205 = vmatprep.subr.mxu0 %v8649_v30  ;;  %v6465_v30 = vld [vmem:[#allocation9 + $0x478] sm:$0xff] }
 0x593   :  { %2086 = vmatprep.subr.mxu1 %v6441_v12  ;;  %2206 = vmatpush2.msra.mxu0 %v8651_v50  ;;  %8662 = vst [vmem:[#allocation103_spill] sm:$0xff] %v6465_v30  ;;  %v8663_v50 = vld [vmem:[#allocation80_spill] sm:$0xff] }
 0x594   :  { %2087 = vmatpush2.msra.mxu1 %v6445_v57  ;;  %2207 = vmatprep.subr.mxu0 %v8653_v48  ;;  %v6469_v48 = vld [vmem:[#allocation9 + $0x470] sm:$0xff]  ;;  %v8762_v57 = vld [vmem:[#allocation22_spill] sm:$0xff] }
 0x595   :  { %2088 = vmatprep.subr.mxu1 %v6449_v1  ;;  %2208 = vmatpush2.msra.mxu0 %v8655_v60  ;;  %8664 = vst [vmem:[#allocation21_spill] sm:$0xff] %v6469_v48  ;;  %v8665_v60 = vld [vmem:[#allocation81_spill] sm:$0xff]  ;;  %v8704_v1 = vld [vmem:[#allocation122_spill] sm:$0xff] }
 0x596   :  { %2089 = vmatpush2.msra.mxu1 %v6453_v13  ;;  %2209 = vmatprep.subr.mxu0 %v8657_v59  ;;  %v6473_v59 = vld [vmem:[#allocation9 + $0x448] sm:$0xff] }
 0x597   :  { %2090 = vmatprep.subr.mxu1 %v6457_v46  ;;  %2210 = vmatpush2.msra.mxu0 %v8659_v58  ;;  %8666 = vst [vmem:[#allocation27_spill] sm:$0xff] %v6473_v59  ;;  %v8667_v58 = vld [vmem:[#allocation83_spill] sm:$0xff] }
 0x598   :  { %2091 = vmatpush2.msra.mxu1 %v6461_v40  ;;  %2211 = vmatprep.subr.mxu0 %v8661_v56  ;;  %v6477_v40 = vld [vmem:[#allocation9 + $0x440] sm:$0xff]  ;;  %v8698_v46 = vld [vmem:[#allocation115_spill] sm:$0xff] }
 0x599   :  { %2092 = vmatprep.subr.mxu1 %v6465_v30  ;;  %2212 = vmatpush2.msra.mxu0 %v8663_v50  ;;  %8668 = vst [vmem:[#allocation38_spill] sm:$0xff] %v6477_v40  ;;  %v8669_v56 = vld [vmem:[#allocation85_spill] sm:$0xff]  ;;  %v8671_v50 = vld [vmem:[#allocation87_spill] sm:$0xff] }
 0x59a   :  { %2093 = vmatpush2.msra.mxu1 %v6469_v48  ;;  %2213 = vmatprep.subr.mxu0 %v8665_v60  ;;  %v6481_v30 = vld [vmem:[#allocation9 + $0x418] sm:$0xff]  ;;  %v6485_v48 = vld [vmem:[#allocation9 + $0x410] sm:$0xff] }
 0x59b   :  { %2094 = vmatprep.subr.mxu1 %v6473_v59  ;;  %2214 = vmatpush2.msra.mxu0 %v8667_v58  ;;  %8670 = vst [vmem:[#allocation41_spill] sm:$0xff] %v6481_v30  ;;  %8672 = vst [vmem:[#allocation54_spill] sm:$0xff] %v6485_v48  ;;  %v8673_v60 = vld [vmem:[#allocation88_spill] sm:$0xff]  ;;  %v6489_v59 = vld [vmem:[#allocation9 + $0x3e8] sm:$0xff] }
 0x59c   :  { %2095 = vmatpush2.msra.mxu1 %v6477_v40  ;;  %2215 = vmatprep.subr.mxu0 %v8669_v56  ;;  %8674 = vst [vmem:[#allocation61_spill] sm:$0xff] %v6489_v59  ;;  %v8675_v58 = vld [vmem:[#allocation90_spill] sm:$0xff]  ;;  %v8677_v56 = vld [vmem:[#allocation92_spill] sm:$0xff]  ;;  %v8701_v13 = vld [vmem:[#allocation119_spill] sm:$0xff] }
 0x59d   :  { %2096 = vmatprep.subr.mxu1 %v6481_v30  ;;  %2216 = vmatpush2.msra.mxu0 %v8671_v50  ;;  %v6493_v40 = vld [vmem:[#allocation9 + $0x3e0] sm:$0xff]  ;;  %v6497_v30 = vld [vmem:[#allocation9 + $0x3b8] sm:$0xff] }
 0x59e   :  { %2097 = vmatpush2.msra.mxu1 %v6485_v48  ;;  %2217 = vmatprep.subr.mxu0 %v8673_v60  ;;  %8676 = vst [vmem:[#allocation105_spill] sm:$0xff] %v6493_v40  ;;  %8678 = vst [vmem:[#allocation107_spill] sm:$0xff] %v6497_v30  ;;  %v8679_v50 = vld [vmem:[#allocation94_spill] sm:$0xff]  ;;  %v6501_v48 = vld [vmem:[#allocation9 + $0x3b0] sm:$0xff] }
 0x59f   :  { %2098 = vmatprep.subr.mxu1 %v6489_v59  ;;  %2218 = vmatpush2.msra.mxu0 %v8675_v58  ;;  %8680 = vst [vmem:[#allocation110_spill] sm:$0xff] %v6501_v48  ;;  %v8681_v60 = vld [vmem:[#allocation95_spill] sm:$0xff]  ;;  %v8683_v58 = vld [vmem:[#allocation97_spill] sm:$0xff] }
 0x5a0   :  { %2099 = vmatpush2.msra.mxu1 %v6493_v40  ;;  %2219 = vmatprep.subr.mxu0 %v8677_v56  ;;  %v6505_v59 = vld [vmem:[#allocation9 + $0x388] sm:$0xff]  ;;  %v6509_v40 = vld [vmem:[#allocation9 + $0x380] sm:$0xff] }
 0x5a1   :  { %2100 = vmatprep.subr.mxu1 %v6497_v30  ;;  %2220 = vmatpush2.msra.mxu0 %v8679_v50  ;;  %8682 = vst [vmem:[#allocation112_spill] sm:$0xff] %v6505_v59  ;;  %8684 = vst [vmem:[#allocation114_spill] sm:$0xff] %v6509_v40  ;;  %v8685_v56 = vld [vmem:[#allocation99_spill] sm:$0xff]  ;;  %v6513_v30 = vld [vmem:[#allocation9 + $0x358] sm:$0xff] }
 0x5a2   :  { %2101 = vmatpush2.msra.mxu1 %v6501_v48  ;;  %2221 = vmatprep.subr.mxu0 %v8681_v60  ;;  %8686 = vst [vmem:[#allocation117_spill] sm:$0xff] %v6513_v30  ;;  %v8687_v50 = vld [vmem:[#allocation101_spill] sm:$0xff]  ;;  %v6517_v48 = vld [vmem:[#allocation9 + $0x350] sm:$0xff]  ;;  %v8689_v60 = vld [vmem:[#allocation102_spill] sm:$0xff] }
 0x5a3   :  { %2102 = vmatprep.subr.mxu1 %v6505_v59  ;;  %2222 = vmatpush2.msra.mxu0 %v8683_v58  ;;  %8688 = vst [vmem:[#allocation123_spill] sm:$0xff] %v6517_v48  ;;  %v6521_v59 = vld [vmem:[#allocation9 + $0x328] sm:$0xff]  ;;  %v8691_v58 = vld [vmem:[#allocation104_spill] sm:$0xff] }
 0x5a4   :  { %2103 = vmatpush2.msra.mxu1 %v6509_v40  ;;  %2223 = vmatprep.subr.mxu0 %v8685_v56  ;;  %8690 = vst [vmem:[#allocation74_spill] sm:$0xff] %v6521_v59  ;;  %v6525_v40 = vld [vmem:[#allocation9 + $0x320] sm:$0xff] }
 0x5a5   :  { %2104 = vmatprep.subr.mxu1 %v6513_v30  ;;  %2224 = vmatpush2.msra.mxu0 %v8687_v50  ;;  %8692 = vst [vmem:[#allocation76_spill] sm:$0xff] %v6525_v40  ;;  %v8693_v56 = vld [vmem:[#allocation106_spill] sm:$0xff]  ;;  %v8694_v50 = vld [vmem:[#allocation108_spill] sm:$0xff]  ;;  %v8695_v30 = vld [vmem:[#allocation109_spill] sm:$0xff] }
 0x5a6   :  { %2105 = vmatpush2.msra.mxu1 %v6517_v48  ;;  %2225 = vmatprep.subr.mxu0 %v8689_v60  ;;  %v8696_v48 = vld [vmem:[#allocation111_spill] sm:$0xff]  ;;  %v8697_v60 = vld [vmem:[#allocation113_spill] sm:$0xff] }
 0x5a7   :  { %2106 = vmatprep.subr.mxu1 %v6521_v59  ;;  %2226 = vmatpush2.msra.mxu0 %v8691_v58  ;;  %v8699_v59 = vld [vmem:[#allocation116_spill] sm:$0xff]  ;;  %v8700_v58 = vld [vmem:[#allocation118_spill] sm:$0xff] }
 0x5a8   :  { %2107 = vmatpush2.msra.mxu1 %v6525_v40  ;;  %2227 = vmatprep.subr.mxu0 %v8693_v56  ;;  %v8702_v40 = vld [vmem:[#allocation120_spill] sm:$0xff]  ;;  %v8703_v56 = vld [vmem:[#allocation121_spill] sm:$0xff] }
 0x5a9   :  { %2109 = vmatmul.mubr.f32.vlgmr.msra.gmra.mxu1 %v6260_v62  ;;  %2236 = vmatprep.subr.mxu1 %v8694_v50  ;;  %v8705_v50 = vld [vmem:[#allocation124_spill] sm:$0xff] }
 0x5aa   :  { %2237 = vmatpush1.msra.mxu1 %v8695_v30  ;;  %2228 = vmatpush2.msra.mxu0 %v8696_v48  ;;  %v8706_v30 = vld [vmem:[#allocation125_spill] sm:$0xff]  ;;  %v8707_v48 = vld [vmem:[#allocation126_spill] sm:$0xff] }
 0x5ab   :  { %2238 = vmatprep.subr.mxu1 %v8697_v60  ;;  %2307 = vmatprep.subr.mxu0 %v8698_v46  ;;  %v8708_v60 = vld [vmem:[#allocation127_spill] sm:$0xff]  ;;  %v8709_v46 = vld [vmem:[#allocation128_spill] sm:$0xff] }
 0x5ac   :  { %2239 = vmatpush1.msra.mxu1 %v8699_v59  ;;  %v8710_v59 = vld [vmem:[#allocation129_spill] sm:$0xff] }
 0x5ad   :  { %2240 = vmatprep.subr.mxu1 %v8700_v58  ;;  %v8711_v58 = vld [vmem:[#allocation130_spill] sm:$0xff] }
 0x5ae   :  { %2241 = vmatpush1.msra.mxu1 %v8701_v13  ;;  %v8712_v13 = vld [vmem:[#allocation131_spill] sm:$0xff] }
 0x5af   :  { %2242 = vmatprep.subr.mxu1 %v8702_v40  ;;  %v8713_v40 = vld [vmem:[#allocation132_spill] sm:$0xff] }
 0x5b0   :  { %2243 = vmatpush1.msra.mxu1 %v8703_v56  ;;  %v8714_v56 = vld [vmem:[#allocation133_spill] sm:$0xff] }
 0x5b1   :  { %2244 = vmatprep.subr.mxu1 %v8704_v1  ;;  %v8715_v1 = vld [vmem:[#allocation134_spill] sm:$0xff] }
 0x5b2   :  { %2245 = vmatpush1.msra.mxu1 %v8705_v50  ;;  %v8716_v50 = vld [vmem:[#allocation135_spill] sm:$0xff] }
 0x5b3   :  { %2246 = vmatprep.subr.mxu1 %v8706_v30  ;;  %v8717_v30 = vld [vmem:[#allocation136_spill] sm:$0xff] }
 0x5b4   :  { %2247 = vmatpush1.msra.mxu1 %v8707_v48  ;;  %v8718_v48 = vld [vmem:[#allocation137_spill] sm:$0xff] }
 0x5b5   :  { %2248 = vmatprep.subr.mxu1 %v8708_v60  ;;  %v8719_v60 = vld [vmem:[#allocation138_spill] sm:$0xff] }
 0x5b6   :  { %2249 = vmatpush1.msra.mxu1 %v8709_v46  ;;  %v8720_v46 = vld [vmem:[#allocation139_spill] sm:$0xff] }
 0x5b7   :  { %2250 = vmatprep.subr.mxu1 %v8710_v59  ;;  %v8721_v59 = vld [vmem:[#allocation140_spill] sm:$0xff] }
 0x5b8   :  { %2251 = vmatpush1.msra.mxu1 %v8711_v58  ;;  %v8722_v58 = vld [vmem:[#allocation141_spill] sm:$0xff] }
 0x5b9   :  { %2252 = vmatprep.subr.mxu1 %v8712_v13  ;;  %v8723_v13 = vld [vmem:[#allocation142_spill] sm:$0xff] }
 0x5ba   :  { %2253 = vmatpush1.msra.mxu1 %v8713_v40  ;;  %v8724_v40 = vld [vmem:[#allocation143_spill] sm:$0xff] }
 0x5bb   :  { %2254 = vmatprep.subr.mxu1 %v8714_v56  ;;  %v8725_v56 = vld [vmem:[#allocation144_spill] sm:$0xff] }
 0x5bc   :  { %2255 = vmatpush1.msra.mxu1 %v8715_v1  ;;  %v8726_v1 = vld [vmem:[#allocation145_spill] sm:$0xff] }
 0x5bd   :  { %2256 = vmatprep.subr.mxu1 %v8716_v50  ;;  %v8727_v50 = vld [vmem:[#allocation146_spill] sm:$0xff] }
 0x5be   :  { %2257 = vmatpush1.msra.mxu1 %v8717_v30  ;;  %v8728_v30 = vld [vmem:[#allocation147_spill] sm:$0xff] }
 0x5bf   :  { %2258 = vmatprep.subr.mxu1 %v8718_v48  ;;  %v8729_v48 = vld [vmem:[#allocation148_spill] sm:$0xff] }
 0x5c0   :  { %2259 = vmatpush1.msra.mxu1 %v8719_v60  ;;  %v8730_v60 = vld [vmem:[#allocation149_spill] sm:$0xff] }
 0x5c1   :  { %2260 = vmatprep.subr.mxu1 %v8720_v46  ;;  %v8731_v46 = vld [vmem:[#allocation150_spill] sm:$0xff] }
 0x5c2   :  { %2261 = vmatpush1.msra.mxu1 %v8721_v59  ;;  %v8732_v59 = vld [vmem:[#allocation151_spill] sm:$0xff] }
 0x5c3   :  { %2262 = vmatprep.subr.mxu1 %v8722_v58  ;;  %v8733_v58 = vld [vmem:[#allocation152_spill] sm:$0xff] }
 0x5c4   :  { %2263 = vmatpush1.msra.mxu1 %v8723_v13  ;;  %v8734_v13 = vld [vmem:[#allocation153_spill] sm:$0xff] }
 0x5c5   :  { %2264 = vmatprep.subr.mxu1 %v8724_v40  ;;  %v8735_v40 = vld [vmem:[#allocation154_spill] sm:$0xff] }
 0x5c6   :  { %2265 = vmatpush1.msra.mxu1 %v8725_v56  ;;  %v8736_v56 = vld [vmem:[#allocation155_spill] sm:$0xff] }
 0x5c7   :  { %2266 = vmatprep.subr.mxu1 %v8726_v1  ;;  %v8737_v1 = vld [vmem:[#allocation20_spill] sm:$0xff] }
 0x5c8   :  { %2267 = vmatpush1.msra.mxu1 %v8727_v50  ;;  %v8738_v50 = vld [vmem:[#allocation48_spill] sm:$0xff] }
 0x5c9   :  { %2268 = vmatprep.subr.mxu1 %v8728_v30  ;;  %v8739_v30 = vld [vmem:[#allocation25_spill] sm:$0xff] }
 0x5ca   :  { %2269 = vmatpush2.msra.mxu1 %v8729_v48  ;;  %v8740_v48 = vld [vmem:[#allocation40_spill] sm:$0xff] }
 0x5cb   :  { %2270 = vmatprep.subr.mxu1 %v8730_v60  ;;  %v8741_v60 = vld [vmem:[#allocation39_spill] sm:$0xff] }
 0x5cc   :  { %2271 = vmatpush2.msra.mxu1 %v8731_v46  ;;  %v8742_v46 = vld [vmem:[#allocation56_spill] sm:$0xff] }
 0x5cd   :  { %2272 = vmatprep.subr.mxu1 %v8732_v59  ;;  %v8743_v59 = vld [vmem:[#allocation63_spill] sm:$0xff] }
 0x5ce   :  { %2273 = vmatpush2.msra.mxu1 %v8733_v58  ;;  %v8744_v58 = vld [vmem:[#allocation23_spill] sm:$0xff] }
 0x5cf   :  { %2274 = vmatprep.subr.mxu1 %v8734_v13  ;;  %v8745_v13 = vld [vmem:[#allocation42_spill] sm:$0xff] }
 0x5d0   :  { %2275 = vmatpush2.msra.mxu1 %v8735_v40  ;;  %v8746_v40 = vld [vmem:[#allocation60_spill] sm:$0xff] }
 0x5d1   :  { %2276 = vmatprep.subr.mxu1 %v8736_v56  ;;  %v8747_v56 = vld [vmem:[#allocation37_spill] sm:$0xff] }
 0x5d2   :  { %2277 = vmatpush2.msra.mxu1 %v8737_v1  ;;  %v8748_v1 = vld [vmem:[#allocation58_spill] sm:$0xff] }
 0x5d3   :  { %2278 = vmatprep.subr.mxu1 %v8738_v50  ;;  %v8749_v50 = vld [vmem:[#allocation65_spill] sm:$0xff] }
 0x5d4   :  { %2279 = vmatpush2.msra.mxu1 %v8739_v30  ;;  %v8750_v30 = vld [vmem:[#allocation62_spill] sm:$0xff] }
 0x5d5   :  { %2280 = vmatprep.subr.mxu1 %v8740_v48  ;;  %v8751_v48 = vld [vmem:[#allocation69_spill] sm:$0xff] }
 0x5d6   :  { %2281 = vmatpush2.msra.mxu1 %v8741_v60  ;;  %v8752_v60 = vld [vmem:[#allocation64_spill] sm:$0xff] }
 0x5d7   :  { %2282 = vmatprep.subr.mxu1 %v8742_v46  ;;  %v8753_v46 = vld [vmem:[#allocation71_spill] sm:$0xff] }
 0x5d8   :  { %2283 = vmatpush2.msra.mxu1 %v8743_v59  ;;  %v8754_v59 = vld [vmem:[#allocation66_spill] sm:$0xff] }
 0x5d9   :  { %2284 = vmatprep.subr.mxu1 %v8744_v58  ;;  %v8755_v58 = vld [vmem:[#allocation72_spill] sm:$0xff] }
 0x5da   :  { %2285 = vmatpush2.msra.mxu1 %v8745_v13  ;;  %v8756_v13 = vld [vmem:[#allocation68_spill] sm:$0xff] }
 0x5db   :  { %2286 = vmatprep.subr.mxu1 %v8746_v40  ;;  %v8757_v40 = vld [vmem:[#allocation70_spill] sm:$0xff] }
 0x5dc   :  { %2287 = vmatpush2.msra.mxu1 %v8747_v56  ;;  %v8758_v56 = vld [vmem:[#allocation75_spill] sm:$0xff] }
 0x5dd   :  { %2288 = vmatprep.subr.mxu1 %v8748_v1  ;;  %v8759_v1 = vld [vmem:[#allocation73_spill] sm:$0xff] }
 0x5de   :  { %2289 = vmatpush2.msra.mxu1 %v8749_v50  ;;  %v6596_v50 = vld [vmem:[#allocation9 + $0x2d8] sm:$0xff] }
 0x5df   :  { %2290 = vmatprep.subr.mxu1 %v8750_v30  ;;  %8760 = vst [vmem:[#allocation78_spill] sm:$0xff] %v6596_v50 }
 0x5e0   :  { %2291 = vmatpush2.msra.mxu1 %v8751_v48  ;;  %v8761_v48 = vld [vmem:[#allocation44_spill] sm:$0xff] }
 0x5e1   :  { %2292 = vmatprep.subr.mxu1 %v8752_v60 }
 0x5e2   :  { %2293 = vmatpush2.msra.mxu1 %v8753_v46 }
 0x5e3   :  { %2294 = vmatprep.subr.mxu1 %v8754_v59 }
 0x5e4   :  { %2295 = vmatpush2.msra.mxu1 %v8755_v58 }
 0x5e5   :  { %2296 = vmatprep.subr.mxu1 %v8756_v13  ;;  %v8763_v13 = vld [vmem:[#allocation29_spill] sm:$0xff] }
 0x5e6   :  { %2297 = vmatpush2.msra.mxu1 %v8757_v40 }
 0x5e7   :  { %2298 = vmatprep.subr.mxu1 %v8758_v56 }
 0x5e8   :  { %2299 = vmatpush2.msra.mxu1 %v8759_v1 }
 0x5e9   :  { %2428 = vmatprep.subr.mxu1 %v6596_v50  ;;  %v8764_v50 = vld [vmem:[#allocation67_spill] sm:$0xff] }
 0x629   :  { %v1968_v30 = vpop.f32.mrf.mxu1  ;;  %v2039_v56 = vpop.f32.mrf.mxu0 }
 0x62a   :  { %v1969_v60 = vadd.f32 %v1968_v30, %v8761_v48  ;;  %v8765_v30 = vld [vmem:[#allocation36_spill] sm:$0xff] }
 0x62b   :  { %v1970_v46 = vpop.f32.mrf.mxu1  ;;  %v2041_v38 = vpop.f32.mrf.mxu0  ;;  %v429_v48 = vadd.f32 %v8765_v30, %v4935_v54 }
 0x62c   :  { %v2121_v59 = vadd.f32 %v1969_v60, %v8762_v57  ;;  %v1971_v58 = vadd.f32 %v1970_v46, %v8506_v17  ;;  %v2042_v28 = vadd.f32 %v2041_v38, %v8764_v50 }
 0x62e   :  { %v3008_v12 = vmul.f32 -1.442695, %v2121_v59  ;;  %v2128_v40 = vadd.f32 %v1971_v58, %v8763_v13  ;;  %v2142_v18 = vadd.f32 %v2042_v28, %v429_v48  ;;  %v8766_v58 = vld [vmem:[#allocation43_spill] sm:$0xff] }
 0x630   :  { %3118 = vpow2.f32 %v3008_v12  ;;  %v3009_v2 = vmul.f32 -1.442695, %v2128_v40  ;;  %v3010_v60 = vmul.f32 -1.442695, %v2142_v18  ;;  %v2040_v12 = vadd.f32 %v2039_v56, %v8381_v42 }
 0x632   :  { %3120 = vpow2.f32 %v3009_v2  ;;  %v433_v2 = vadd.f32 %v8766_v58, %v4928_v14 }
 0x63d   :  { %v3119_v1 = vpop.eup %3118 }
 0x63e   :  { %v2125_v26 = vadd.f32 1.0, %v3119_v1 }
 0x63f   :  { %v3121_v57 = vpop.eup %3120 }
 0x640   :  { %3122 = vrcp.f32 %v2125_v26  ;;  %v2132_v59 = vadd.f32 1.0, %v3121_v57  ;;  %v8767_v57 = vld [vmem:[#allocation52_spill] sm:$0xff] }
 0x641   :  { %3124 = vpow2.f32 %v3010_v60  ;;  %v540_v60 = vadd.f32 %v8767_v57, %v4950_v43 }
 0x642   :  { %3126 = vrcp.f32 %v2132_v59 }
 0x64d   :  { %v3123_v46 = vpop.eup %3122 }
 0x64e   :  { %v2135_v13 = vmul.f32 %v3123_v46, %v2040_v12  ;;  %v3125_v26 = vpop.eup %3124 }
 0x64f   :  { %v3127_v38 = vpop.eup %3126  ;;  %v2146_v1 = vadd.f32 1.0, %v3125_v26 }
 0x650   :  { %v2136_v40 = vadd.f32 %v2135_v13, %v433_v2  ;;  %v2138_v50 = vsub.f32 1.0, %v3127_v38  ;;  %v2140_v18 = vmul.f32 %v3127_v38, %v6260_v62  ;;  %v8768_v13 = vld [vmem:[#allocation59_spill] sm:$0xff] }
 0x652   :  { %3128 = vtanh.f32 %v2136_v40 }
 0x653   :  { %3130 = vrcp.f32 %v2146_v1 }
 0x65f   :  { %v3129_v30 = vpop.eup %3128 }
 0x660   :  { %v2139_v28 = vmul.f32 %v3129_v30, %v2138_v50  ;;  %v3131_v2 = vpop.eup %3130  ;;  %v542_v50 = vadd.f32 %v8768_v13, %v4960_v25  ;;  %v6782_v13 = vld [vmem:[#allocation9 + $0x540] sm:$0xff] }
 0x661   :  { %8775 = vst [vmem:[#allocation83_spill] sm:$0xff] %v6782_v13 }
 0x662   :  { %v6610_v48 = vadd.f32 %v2140_v18, %v2139_v28 }
 0x664   :  { %2163 = vst [vmem:[#allocation12 + $0x40] sm:$0xff] %v6610_v48 }
 0x669   :  { %v2110_v56 = vpop.f32.mrf.mxu1 }
 0x66a   :  { %v2111_v59 = vadd.f32 %v2110_v56, %v4947_v11 }
 0x66b   :  { %v2112_v12 = vpop.f32.mrf.mxu1 }
 0x66c   :  { %v2149_v46 = vadd.f32 %v2111_v59, %v540_v60  ;;  %v2113_v58 = vadd.f32 %v2112_v12, %v4956_v29  ;;  %v6630_v59 = vld [vmem:[#allocation9 + $0x2d0] sm:$0xff]  ;;  %v6638_v12 = vld [vmem:[#allocation9 + $0x2a0] sm:$0xff] }
 0x66e   :  { %v3011_v40 = vmul.f32 -1.442695, %v2149_v46  ;;  %v2156_v62 = vmul.f32 %v3131_v2, %v2113_v58  ;;  %v6770_v46 = vld [vmem:[#allocation9 + $0x578] sm:$0xff]  ;;  %v6774_v58 = vld [vmem:[#allocation9 + $0x570] sm:$0xff]  ;;  %v6778_v2 = vld [vmem:[#allocation9 + $0x548] sm:$0xff] }
 0x66f   :  { %8771 = vst [vmem:[#allocation80_spill] sm:$0xff] %v6774_v58  ;;  %8773 = vst [vmem:[#allocation81_spill] sm:$0xff] %v6778_v2 }
 0x670   :  { %3132 = vpow2.f32 %v3011_v40  ;;  %v2157_v26 = vadd.f32 %v2156_v62, %v542_v50  ;;  %v8776_v50 = vld [vmem:[#allocation86_spill] sm:$0xff]  ;;  %v6786_v40 = vld [vmem:[#allocation9 + $0x518] sm:$0xff] }
 0x671   :  { %8777 = vst [vmem:[#allocation85_spill] sm:$0xff] %v6786_v40  ;;  %v8778_v62 = vld [vmem:[#allocation89_spill] sm:$0xff] }
 0x67d   :  { %v3133_v38 = vpop.eup %3132 }
 0x67e   :  { %v2153_v1 = vadd.f32 1.0, %v3133_v38  ;;  %v8780_v38 = vld [vmem:[#allocation91_spill] sm:$0xff] }
 0x680   :  { %3134 = vrcp.f32 %v2153_v1  ;;  %v6794_v1 = vld [vmem:[#allocation9 + $0x4e8] sm:$0xff] }
 0x681   :  { %3136 = vtanh.f32 %v2157_v26  ;;  %v6790_v26 = vld [vmem:[#allocation9 + $0x510] sm:$0xff]  ;;  %8781 = vst [vmem:[#allocation88_spill] sm:$0xff] %v6794_v1 }
 0x682   :  { %8779 = vst [vmem:[#allocation87_spill] sm:$0xff] %v6790_v26 }
 0x68d   :  { %v3135_v30 = vpop.eup %3134 }
 0x68e   :  { %v2159_v28 = vsub.f32 1.0, %v3135_v30  ;;  %v3137_v18 = vpop.eup %3136  ;;  %v2161_v57 = vmul.f32 %v3135_v30, %v6270_v41  ;;  %v6634_v41 = vld [vmem:[#allocation9 + $0x2a8] sm:$0xff]  ;;  %v8782_v30 = vld [vmem:[#allocation93_spill] sm:$0xff] }
 0x690   :  { %v2160_v56 = vmul.f32 %v3137_v18, %v2159_v28  ;;  %v6798_v28 = vld [vmem:[#allocation9 + $0x4e0] sm:$0xff]  ;;  %v8784_v18 = vld [vmem:[#allocation96_spill] sm:$0xff] }
 0x691   :  { %8783 = vst [vmem:[#allocation90_spill] sm:$0xff] %v6798_v28 }
 0x692   :  { %v6620_v60 = vadd.f32 %v2161_v57, %v2160_v56  ;;  %v6802_v56 = vld [vmem:[#allocation9 + $0x4b8] sm:$0xff]  ;;  %v8786_v57 = vld [vmem:[#allocation98_spill] sm:$0xff] }
 0x693   :  { %8785 = vst [vmem:[#allocation92_spill] sm:$0xff] %v6802_v56 }
 0x694   :  { %2164 = vst [vmem:[#allocation12 + $0x38] sm:$0xff] %v6620_v60  ;;  %2229 = vmatprep.mubr.f32.mxu0 %v6620_v60  ;;  %2300 = vmatprep.mubr.f32.mxu1 %v6620_v60 }
 0x695   :  { %2230 = vmatmul.mubr.f32.vlgmr.msra.gmra.mxu0 %v6610_v48  ;;  %2301 = vmatmul.mubr.f32.vlgmr.msra.gmra.mxu1 %v6610_v48 }
 0x696   :  { %2308 = vmatpush1.msra.mxu0 %v6277_v10  ;;  %2371 = vmatprep.mubr.f32.mxu0 %v6620_v60  ;;  %v6642_v10 = vld [vmem:[#allocation9 + $0x278] sm:$0xff] }
 0x697   :  { %2309 = vmatprep.subr.mxu0 %v6281_v19  ;;  %2429 = vmatpush1.msra.mxu1 %v6630_v59  ;;  %v6646_v19 = vld [vmem:[#allocation9 + $0x270] sm:$0xff] }
 0x698   :  { %2310 = vmatpush1.msra.mxu0 %v6285_v24  ;;  %2430 = vmatprep.subr.mxu1 %v6634_v41  ;;  %v6650_v24 = vld [vmem:[#allocation9 + $0x248] sm:$0xff] }
 0x699   :  { %2311 = vmatprep.subr.mxu0 %v6289_v0  ;;  %2431 = vmatpush1.msra.mxu1 %v6638_v12  ;;  %v6654_v0 = vld [vmem:[#allocation9 + $0x240] sm:$0xff] }
 0x69a   :  { %2312 = vmatpush1.msra.mxu0 %v6293_v7  ;;  %2432 = vmatprep.subr.mxu1 %v6642_v10  ;;  %v6658_v7 = vld [vmem:[#allocation9 + $0x218] sm:$0xff] }
 0x69b   :  { %2313 = vmatprep.subr.mxu0 %v6297_v9  ;;  %2433 = vmatpush1.msra.mxu1 %v6646_v19  ;;  %v6662_v9 = vld [vmem:[#allocation9 + $0x210] sm:$0xff] }
 0x69c   :  { %2314 = vmatpush1.msra.mxu0 %v6301_v15  ;;  %2434 = vmatprep.subr.mxu1 %v6650_v24  ;;  %v6666_v15 = vld [vmem:[#allocation9 + $0x1e8] sm:$0xff] }
 0x69d   :  { %2315 = vmatprep.subr.mxu0 %v6305_v51  ;;  %2435 = vmatpush1.msra.mxu1 %v6654_v0  ;;  %v6670_v51 = vld [vmem:[#allocation9 + $0x1e0] sm:$0xff] }
 0x69e   :  { %2316 = vmatpush1.msra.mxu0 %v6309_v22  ;;  %2436 = vmatprep.subr.mxu1 %v6658_v7  ;;  %v6674_v22 = vld [vmem:[#allocation9 + $0x1b8] sm:$0xff] }
 0x69f   :  { %2317 = vmatprep.subr.mxu0 %v6313_v53  ;;  %2437 = vmatpush1.msra.mxu1 %v6662_v9  ;;  %v6678_v53 = vld [vmem:[#allocation9 + $0x1b0] sm:$0xff] }
 0x6a0   :  { %2318 = vmatpush1.msra.mxu0 %v6317_v39  ;;  %2438 = vmatprep.subr.mxu1 %v6666_v15  ;;  %v6682_v39 = vld [vmem:[#allocation9 + $0x188] sm:$0xff] }
 0x6a1   :  { %2319 = vmatprep.subr.mxu0 %v6321_v23  ;;  %2439 = vmatpush1.msra.mxu1 %v6670_v51  ;;  %v6686_v23 = vld [vmem:[#allocation9 + $0x180] sm:$0xff] }
 0x6a2   :  { %2320 = vmatpush1.msra.mxu0 %v6325_v37  ;;  %2440 = vmatprep.subr.mxu1 %v6674_v22  ;;  %v6690_v37 = vld [vmem:[#allocation9 + $0x158] sm:$0xff] }
 0x6a3   :  { %2321 = vmatprep.subr.mxu0 %v6329_v35  ;;  %2441 = vmatpush1.msra.mxu1 %v6678_v53  ;;  %v6694_v35 = vld [vmem:[#allocation9 + $0x150] sm:$0xff] }
 0x6a4   :  { %2322 = vmatpush1.msra.mxu0 %v6333_v33  ;;  %2442 = vmatprep.subr.mxu1 %v6682_v39  ;;  %v6698_v33 = vld [vmem:[#allocation9 + $0x128] sm:$0xff] }
 0x6a5   :  { %2323 = vmatprep.subr.mxu0 %v6337_v61  ;;  %2443 = vmatpush1.msra.mxu1 %v6686_v23  ;;  %v6702_v61 = vld [vmem:[#allocation9 + $0x120] sm:$0xff] }
 0x6a6   :  { %2324 = vmatpush1.msra.mxu0 %v6341_v47  ;;  %2444 = vmatprep.subr.mxu1 %v6690_v37  ;;  %v6706_v47 = vld [vmem:[#allocation9 + $0xf8] sm:$0xff] }
 0x6a7   :  { %2325 = vmatprep.subr.mxu0 %v6345_v20  ;;  %2445 = vmatpush1.msra.mxu1 %v6694_v35  ;;  %v6710_v20 = vld [vmem:[#allocation9 + $0xf0] sm:$0xff] }
 0x6a8   :  { %2326 = vmatpush1.msra.mxu0 %v6349_v5  ;;  %2446 = vmatprep.subr.mxu1 %v6698_v33  ;;  %v6714_v5 = vld [vmem:[#allocation9 + $0xc8] sm:$0xff] }
 0x6a9   :  { %2327 = vmatprep.subr.mxu0 %v6353_v52  ;;  %2447 = vmatpush1.msra.mxu1 %v6702_v61  ;;  %v6718_v52 = vld [vmem:[#allocation9 + $0xc0] sm:$0xff] }
 0x6aa   :  { %2328 = vmatpush1.msra.mxu0 %v6357_v3  ;;  %2448 = vmatprep.subr.mxu1 %v6706_v47  ;;  %v6722_v3 = vld [vmem:[#allocation9 + $0x98] sm:$0xff] }
 0x6ab   :  { %2329 = vmatprep.subr.mxu0 %v6361_v34  ;;  %2449 = vmatpush1.msra.mxu1 %v6710_v20  ;;  %v6726_v34 = vld [vmem:[#allocation9 + $0x90] sm:$0xff] }
 0x6ac   :  { %2330 = vmatpush1.msra.mxu0 %v6365_v45  ;;  %2450 = vmatprep.subr.mxu1 %v6714_v5  ;;  %v6730_v45 = vld [vmem:[#allocation9 + $0x68] sm:$0xff] }
 0x6ad   :  { %2331 = vmatprep.subr.mxu0 %v6369_v32  ;;  %2451 = vmatpush1.msra.mxu1 %v6718_v52  ;;  %v6734_v32 = vld [vmem:[#allocation9 + $0x60] sm:$0xff] }
 0x6ae   :  { %2332 = vmatpush1.msra.mxu0 %v6373_v16  ;;  %2452 = vmatprep.subr.mxu1 %v6722_v3  ;;  %v6738_v16 = vld [vmem:[#allocation9 + $0x38] sm:$0xff] }
 0x6af   :  { %2333 = vmatprep.subr.mxu0 %v6377_v44  ;;  %2453 = vmatpush1.msra.mxu1 %v6726_v34  ;;  %v6742_v44 = vld [vmem:[#allocation9 + $0x30] sm:$0xff] }
 0x6b0   :  { %2334 = vmatpush1.msra.mxu0 %v6381_v36  ;;  %2454 = vmatprep.subr.mxu1 %v6730_v45  ;;  %v6746_v36 = vld [vmem:[#allocation9 + $0x8] sm:$0xff] }
 0x6b1   :  { %2335 = vmatprep.subr.mxu0 %v6385_v31  ;;  %2455 = vmatpush1.msra.mxu1 %v6734_v32  ;;  %v6750_v31 = vld [vmem:[#allocation9] sm:$0xff] }
 0x6b2   :  { %2336 = vmatpush1.msra.mxu0 %v6389_v6  ;;  %2456 = vmatprep.subr.mxu1 %v6738_v16  ;;  %v6754_v6 = vld [vmem:[#allocation9 + $0x5d8] sm:$0xff] }
 0x6b3   :  { %2337 = vmatprep.subr.mxu0 %v6393_v49  ;;  %2457 = vmatpush1.msra.mxu1 %v6742_v44  ;;  %v6758_v49 = vld [vmem:[#allocation9 + $0x5d0] sm:$0xff] }
 0x6b4   :  { %2338 = vmatpush1.msra.mxu0 %v6397_v27  ;;  %2458 = vmatprep.subr.mxu1 %v6746_v36  ;;  %v6762_v27 = vld [vmem:[#allocation9 + $0x5a8] sm:$0xff] }
 0x6b5   :  { %2339 = vmatprep.subr.mxu0 %v6401_v4  ;;  %2459 = vmatpush1.msra.mxu1 %v6750_v31  ;;  %v6766_v4 = vld [vmem:[#allocation9 + $0x5a0] sm:$0xff] }
 0x6b6   :  { %2340 = vmatpush2.msra.mxu0 %v6405_v21  ;;  %2460 = vmatprep.subr.mxu1 %v6754_v6  ;;  %v8769_v21 = vld [vmem:[#allocation77_spill] sm:$0xff] }
 0x6b7   :  { %2341 = vmatprep.subr.mxu0 %v6409_v8  ;;  %2461 = vmatpush2.msra.mxu1 %v6758_v49  ;;  %v8770_v8 = vld [vmem:[#allocation79_spill] sm:$0xff] }
 0x6b8   :  { %2342 = vmatpush2.msra.mxu0 %v6413_v55  ;;  %2462 = vmatprep.subr.mxu1 %v6762_v27  ;;  %v8772_v55 = vld [vmem:[#allocation82_spill] sm:$0xff] }
 0x6b9   :  { %2343 = vmatprep.subr.mxu0 %v6417_v63  ;;  %2463 = vmatpush2.msra.mxu1 %v6766_v4  ;;  %v8774_v63 = vld [vmem:[#allocation84_spill] sm:$0xff] }
 0x6ba   :  { %2344 = vmatpush2.msra.mxu0 %v8769_v21  ;;  %2464 = vmatprep.subr.mxu1 %v6770_v46  ;;  %v6806_v21 = vld [vmem:[#allocation9 + $0x4b0] sm:$0xff] }
 0x6bb   :  { %2345 = vmatprep.subr.mxu0 %v8770_v8  ;;  %2465 = vmatpush2.msra.mxu1 %v6774_v58  ;;  %8787 = vst [vmem:[#allocation94_spill] sm:$0xff] %v6806_v21  ;;  %v8788_v8 = vld [vmem:[#allocation100_spill] sm:$0xff] }
 0x6bc   :  { %2346 = vmatpush2.msra.mxu0 %v8772_v55  ;;  %2466 = vmatprep.subr.mxu1 %v6778_v2  ;;  %v6810_v55 = vld [vmem:[#allocation9 + $0x488] sm:$0xff] }
 0x6bd   :  { %2347 = vmatprep.subr.mxu0 %v8774_v63  ;;  %2467 = vmatpush2.msra.mxu1 %v6782_v13  ;;  %8789 = vst [vmem:[#allocation95_spill] sm:$0xff] %v6810_v55  ;;  %v8790_v63 = vld [vmem:[#allocation103_spill] sm:$0xff] }
 0x6be   :  { %2348 = vmatpush2.msra.mxu0 %v8776_v50  ;;  %2468 = vmatprep.subr.mxu1 %v6786_v40  ;;  %v6814_v50 = vld [vmem:[#allocation9 + $0x480] sm:$0xff] }
 0x6bf   :  { %2349 = vmatprep.subr.mxu0 %v8778_v62  ;;  %2469 = vmatpush2.msra.mxu1 %v6790_v26  ;;  %8791 = vst [vmem:[#allocation97_spill] sm:$0xff] %v6814_v50  ;;  %v8792_v62 = vld [vmem:[#allocation21_spill] sm:$0xff] }
 0x6c0   :  { %2350 = vmatpush2.msra.mxu0 %v8780_v38  ;;  %2470 = vmatprep.subr.mxu1 %v6794_v1  ;;  %v6818_v38 = vld [vmem:[#allocation9 + $0x458] sm:$0xff] }
 0x6c1   :  { %2351 = vmatprep.subr.mxu0 %v8782_v30  ;;  %2471 = vmatpush2.msra.mxu1 %v6798_v28  ;;  %8793 = vst [vmem:[#allocation99_spill] sm:$0xff] %v6818_v38  ;;  %v8794_v30 = vld [vmem:[#allocation27_spill] sm:$0xff] }
 0x6c2   :  { %2352 = vmatpush2.msra.mxu0 %v8784_v18  ;;  %2472 = vmatprep.subr.mxu1 %v6802_v56  ;;  %v6822_v18 = vld [vmem:[#allocation9 + $0x450] sm:$0xff] }
 0x6c3   :  { %2353 = vmatprep.subr.mxu0 %v8786_v57  ;;  %2473 = vmatpush2.msra.mxu1 %v6806_v21  ;;  %8795 = vst [vmem:[#allocation101_spill] sm:$0xff] %v6822_v18  ;;  %v8796_v57 = vld [vmem:[#allocation38_spill] sm:$0xff]  ;;  %v8890_v21 = vld [vmem:[#allocation24_spill] sm:$0xff] }
 0x6c4   :  { %2354 = vmatpush2.msra.mxu0 %v8788_v8  ;;  %2474 = vmatprep.subr.mxu1 %v6810_v55  ;;  %v6826_v8 = vld [vmem:[#allocation9 + $0x428] sm:$0xff] }
 0x6c5   :  { %2355 = vmatprep.subr.mxu0 %v8790_v63  ;;  %2475 = vmatpush2.msra.mxu1 %v6814_v50  ;;  %8797 = vst [vmem:[#allocation102_spill] sm:$0xff] %v6826_v8  ;;  %v8798_v63 = vld [vmem:[#allocation41_spill] sm:$0xff] }
 0x6c6   :  { %2356 = vmatpush2.msra.mxu0 %v8792_v62  ;;  %2476 = vmatprep.subr.mxu1 %v6818_v38  ;;  %v6830_v50 = vld [vmem:[#allocation9 + $0x420] sm:$0xff]  ;;  %v6834_v38 = vld [vmem:[#allocation9 + $0x3f8] sm:$0xff] }
 0x6c7   :  { %2357 = vmatprep.subr.mxu0 %v8794_v30  ;;  %2477 = vmatpush2.msra.mxu1 %v6822_v18  ;;  %8799 = vst [vmem:[#allocation104_spill] sm:$0xff] %v6830_v50  ;;  %v8800_v62 = vld [vmem:[#allocation54_spill] sm:$0xff]  ;;  %8801 = vst [vmem:[#allocation106_spill] sm:$0xff] %v6834_v38  ;;  %v8802_v30 = vld [vmem:[#allocation61_spill] sm:$0xff] }
 0x6c8   :  { %2358 = vmatpush2.msra.mxu0 %v8796_v57  ;;  %2478 = vmatprep.subr.mxu1 %v6826_v8  ;;  %v6838_v18 = vld [vmem:[#allocation9 + $0x3f0] sm:$0xff]  ;;  %v8804_v57 = vld [vmem:[#allocation105_spill] sm:$0xff]  ;;  %v6842_v8 = vld [vmem:[#allocation9 + $0x3c8] sm:$0xff] }
 0x6c9   :  { %2359 = vmatprep.subr.mxu0 %v8798_v63  ;;  %2479 = vmatpush2.msra.mxu1 %v6830_v50  ;;  %8803 = vst [vmem:[#allocation108_spill] sm:$0xff] %v6838_v18  ;;  %8805 = vst [vmem:[#allocation109_spill] sm:$0xff] %v6842_v8  ;;  %v8806_v63 = vld [vmem:[#allocation107_spill] sm:$0xff]  ;;  %v6846_v50 = vld [vmem:[#allocation9 + $0x3c0] sm:$0xff] }
 0x6ca   :  { %2360 = vmatpush2.msra.mxu0 %v8800_v62  ;;  %2480 = vmatprep.subr.mxu1 %v6834_v38  ;;  %8807 = vst [vmem:[#allocation111_spill] sm:$0xff] %v6846_v50  ;;  %v8808_v62 = vld [vmem:[#allocation110_spill] sm:$0xff]  ;;  %v6850_v38 = vld [vmem:[#allocation9 + $0x398] sm:$0xff] }
 0x6cb   :  { %2361 = vmatprep.subr.mxu0 %v8802_v30  ;;  %2481 = vmatpush2.msra.mxu1 %v6838_v18  ;;  %8809 = vst [vmem:[#allocation113_spill] sm:$0xff] %v6850_v38  ;;  %v8810_v30 = vld [vmem:[#allocation112_spill] sm:$0xff] }
 0x6cc   :  { %2362 = vmatpush2.msra.mxu0 %v8804_v57  ;;  %2482 = vmatprep.subr.mxu1 %v6842_v8  ;;  %v6854_v18 = vld [vmem:[#allocation9 + $0x390] sm:$0xff]  ;;  %v8812_v57 = vld [vmem:[#allocation114_spill] sm:$0xff] }
 0x6cd   :  { %2363 = vmatprep.subr.mxu0 %v8806_v63  ;;  %2483 = vmatpush2.msra.mxu1 %v6846_v50  ;;  %8811 = vst [vmem:[#allocation115_spill] sm:$0xff] %v6854_v18  ;;  %v6858_v8 = vld [vmem:[#allocation9 + $0x368] sm:$0xff]  ;;  %v8814_v63 = vld [vmem:[#allocation117_spill] sm:$0xff] }
 0x6ce   :  { %2364 = vmatpush2.msra.mxu0 %v8808_v62  ;;  %2484 = vmatprep.subr.mxu1 %v6850_v38  ;;  %8813 = vst [vmem:[#allocation116_spill] sm:$0xff] %v6858_v8  ;;  %v6862_v50 = vld [vmem:[#allocation9 + $0x360] sm:$0xff]  ;;  %v8816_v62 = vld [vmem:[#allocation123_spill] sm:$0xff]  ;;  %v6866_v38 = vld [vmem:[#allocation9 + $0x338] sm:$0xff] }
 0x6cf   :  { %2365 = vmatprep.subr.mxu0 %v8810_v30  ;;  %2485 = vmatpush2.msra.mxu1 %v6854_v18  ;;  %8815 = vst [vmem:[#allocation118_spill] sm:$0xff] %v6862_v50  ;;  %8817 = vst [vmem:[#allocation119_spill] sm:$0xff] %v6866_v38  ;;  %v8818_v30 = vld [vmem:[#allocation74_spill] sm:$0xff]  ;;  %v6870_v18 = vld [vmem:[#allocation9 + $0x330] sm:$0xff] }
 0x6d0   :  { %2366 = vmatpush2.msra.mxu0 %v8812_v57  ;;  %2486 = vmatprep.subr.mxu1 %v6858_v8  ;;  %8819 = vst [vmem:[#allocation120_spill] sm:$0xff] %v6870_v18  ;;  %v8820_v57 = vld [vmem:[#allocation76_spill] sm:$0xff]  ;;  %v6874_v8 = vld [vmem:[#allocation9 + $0x308] sm:$0xff] }
 0x6d1   :  { %2367 = vmatprep.subr.mxu0 %v8814_v63  ;;  %2487 = vmatpush2.msra.mxu1 %v6862_v50  ;;  %8821 = vst [vmem:[#allocation121_spill] sm:$0xff] %v6874_v8  ;;  %v6878_v63 = vld [vmem:[#allocation9 + $0x2e8] sm:$0xff] }
 0x6d2   :  { %2368 = vmatpush2.msra.mxu0 %v8816_v62  ;;  %2488 = vmatprep.subr.mxu1 %v6866_v38  ;;  %8822 = vst [vmem:[#allocation122_spill] sm:$0xff] %v6878_v63  ;;  %v6881_v62 = vld [vmem:[#allocation9 + $0x2e0] sm:$0xff] }
 0x6d3   :  { %2369 = vmatprep.subr.mxu0 %v8818_v30  ;;  %2489 = vmatpush2.msra.mxu1 %v6870_v18  ;;  %8823 = vst [vmem:[#allocation124_spill] sm:$0xff] %v6881_v62  ;;  %v6884_v30 = vld [vmem:[#allocation9 + $0x300] sm:$0xff]  ;;  %v6887_v18 = vld [vmem:[#allocation9 + $0x2b8] sm:$0xff] }
 0x6d4   :  { %2370 = vmatpush2.msra.mxu0 %v8820_v57  ;;  %2490 = vmatprep.subr.mxu1 %v6874_v8  ;;  %8824 = vst [vmem:[#allocation125_spill] sm:$0xff] %v6884_v30  ;;  %8825 = vst [vmem:[#allocation126_spill] sm:$0xff] %v6887_v18  ;;  %v6890_v57 = vld [vmem:[#allocation9 + $0x2f8] sm:$0xff]  ;;  %v6893_v8 = vld [vmem:[#allocation9 + $0x2b0] sm:$0xff] }
 0x6d5   :  { %2372 = vmatmul.mubr.f32.vlgmr.msra.gmra.mxu0 %v6610_v48  ;;  %2499 = vmatprep.subr.mxu0 %v6878_v63  ;;  %8826 = vst [vmem:[#allocation127_spill] sm:$0xff] %v6890_v57  ;;  %8827 = vst [vmem:[#allocation128_spill] sm:$0xff] %v6893_v8  ;;  %v6896_v63 = vld [vmem:[#allocation9 + $0x288] sm:$0xff] }
 0x6d6   :  { %2500 = vmatpush1.msra.mxu0 %v6881_v62  ;;  %2491 = vmatpush2.msra.mxu1 %v6884_v30  ;;  %8828 = vst [vmem:[#allocation129_spill] sm:$0xff] %v6896_v63  ;;  %v6899_v62 = vld [vmem:[#allocation9 + $0x280] sm:$0xff]  ;;  %v6902_v30 = vld [vmem:[#allocation9 + $0x258] sm:$0xff] }
 0x6d7   :  { %2501 = vmatprep.subr.mxu0 %v6887_v18  ;;  %2570 = vmatprep.subr.mxu1 %v6890_v57  ;;  %8829 = vst [vmem:[#allocation130_spill] sm:$0xff] %v6899_v62  ;;  %8830 = vst [vmem:[#allocation131_spill] sm:$0xff] %v6902_v30  ;;  %v6905_v18 = vld [vmem:[#allocation9 + $0x250] sm:$0xff]  ;;  %v6908_v57 = vld [vmem:[#allocation9 + $0x228] sm:$0xff] }
 0x6d8   :  { %2502 = vmatpush1.msra.mxu0 %v6893_v8  ;;  %8831 = vst [vmem:[#allocation132_spill] sm:$0xff] %v6905_v18  ;;  %8832 = vst [vmem:[#allocation133_spill] sm:$0xff] %v6908_v57  ;;  %v6911_v8 = vld [vmem:[#allocation9 + $0x220] sm:$0xff] }
 0x6d9   :  { %2503 = vmatprep.subr.mxu0 %v6896_v63  ;;  %8833 = vst [vmem:[#allocation134_spill] sm:$0xff] %v6911_v8  ;;  %v6914_v63 = vld [vmem:[#allocation9 + $0x1f8] sm:$0xff] }
 0x6da   :  { %2504 = vmatpush1.msra.mxu0 %v6899_v62  ;;  %8834 = vst [vmem:[#allocation135_spill] sm:$0xff] %v6914_v63  ;;  %v6917_v62 = vld [vmem:[#allocation9 + $0x1f0] sm:$0xff] }
 0x6db   :  { %2505 = vmatprep.subr.mxu0 %v6902_v30  ;;  %8835 = vst [vmem:[#allocation136_spill] sm:$0xff] %v6917_v62  ;;  %v6920_v30 = vld [vmem:[#allocation9 + $0x1c8] sm:$0xff] }
 0x6dc   :  { %2506 = vmatpush1.msra.mxu0 %v6905_v18  ;;  %8836 = vst [vmem:[#allocation137_spill] sm:$0xff] %v6920_v30  ;;  %v6923_v18 = vld [vmem:[#allocation9 + $0x1c0] sm:$0xff] }
 0x6dd   :  { %2507 = vmatprep.subr.mxu0 %v6908_v57  ;;  %8837 = vst [vmem:[#allocation138_spill] sm:$0xff] %v6923_v18  ;;  %v6926_v57 = vld [vmem:[#allocation9 + $0x198] sm:$0xff] }
 0x6de   :  { %2508 = vmatpush1.msra.mxu0 %v6911_v8  ;;  %8838 = vst [vmem:[#allocation139_spill] sm:$0xff] %v6926_v57  ;;  %v6929_v8 = vld [vmem:[#allocation9 + $0x190] sm:$0xff] }
 0x6df   :  { %2509 = vmatprep.subr.mxu0 %v6914_v63  ;;  %8839 = vst [vmem:[#allocation140_spill] sm:$0xff] %v6929_v8  ;;  %v6932_v63 = vld [vmem:[#allocation9 + $0x168] sm:$0xff] }
 0x6e0   :  { %2510 = vmatpush1.msra.mxu0 %v6917_v62  ;;  %8840 = vst [vmem:[#allocation141_spill] sm:$0xff] %v6932_v63  ;;  %v6935_v62 = vld [vmem:[#allocation9 + $0x160] sm:$0xff] }
 0x6e1   :  { %2511 = vmatprep.subr.mxu0 %v6920_v30  ;;  %8841 = vst [vmem:[#allocation142_spill] sm:$0xff] %v6935_v62  ;;  %v6938_v30 = vld [vmem:[#allocation9 + $0x138] sm:$0xff] }
 0x6e2   :  { %2512 = vmatpush1.msra.mxu0 %v6923_v18  ;;  %8842 = vst [vmem:[#allocation143_spill] sm:$0xff] %v6938_v30  ;;  %v6941_v18 = vld [vmem:[#allocation9 + $0x130] sm:$0xff] }
 0x6e3   :  { %2513 = vmatprep.subr.mxu0 %v6926_v57  ;;  %8843 = vst [vmem:[#allocation144_spill] sm:$0xff] %v6941_v18  ;;  %v6944_v57 = vld [vmem:[#allocation9 + $0x108] sm:$0xff] }
 0x6e4   :  { %2514 = vmatpush1.msra.mxu0 %v6929_v8  ;;  %8844 = vst [vmem:[#allocation145_spill] sm:$0xff] %v6944_v57  ;;  %v6947_v8 = vld [vmem:[#allocation9 + $0x100] sm:$0xff] }
 0x6e5   :  { %2515 = vmatprep.subr.mxu0 %v6932_v63  ;;  %8845 = vst [vmem:[#allocation146_spill] sm:$0xff] %v6947_v8  ;;  %v6950_v63 = vld [vmem:[#allocation9 + $0xd8] sm:$0xff] }
 0x6e6   :  { %2516 = vmatpush1.msra.mxu0 %v6935_v62  ;;  %8846 = vst [vmem:[#allocation147_spill] sm:$0xff] %v6950_v63  ;;  %v6953_v62 = vld [vmem:[#allocation9 + $0xd0] sm:$0xff] }
 0x6e7   :  { %2517 = vmatprep.subr.mxu0 %v6938_v30  ;;  %8847 = vst [vmem:[#allocation148_spill] sm:$0xff] %v6953_v62  ;;  %v6956_v30 = vld [vmem:[#allocation9 + $0xa8] sm:$0xff] }
 0x6e8   :  { %2518 = vmatpush1.msra.mxu0 %v6941_v18  ;;  %8848 = vst [vmem:[#allocation149_spill] sm:$0xff] %v6956_v30  ;;  %v6959_v18 = vld [vmem:[#allocation9 + $0xa0] sm:$0xff] }
 0x6e9   :  { %2519 = vmatprep.subr.mxu0 %v6944_v57  ;;  %8849 = vst [vmem:[#allocation150_spill] sm:$0xff] %v6959_v18  ;;  %v6962_v57 = vld [vmem:[#allocation9 + $0x78] sm:$0xff] }
 0x6ea   :  { %2520 = vmatpush1.msra.mxu0 %v6947_v8  ;;  %8850 = vst [vmem:[#allocation151_spill] sm:$0xff] %v6962_v57  ;;  %v6965_v8 = vld [vmem:[#allocation9 + $0x70] sm:$0xff] }
 0x6eb   :  { %2521 = vmatprep.subr.mxu0 %v6950_v63  ;;  %8851 = vst [vmem:[#allocation152_spill] sm:$0xff] %v6965_v8  ;;  %v6968_v63 = vld [vmem:[#allocation9 + $0x48] sm:$0xff] }
 0x6ec   :  { %2522 = vmatpush1.msra.mxu0 %v6953_v62  ;;  %8852 = vst [vmem:[#allocation153_spill] sm:$0xff] %v6968_v63  ;;  %v6971_v62 = vld [vmem:[#allocation9 + $0x40] sm:$0xff] }
 0x6ed   :  { %2523 = vmatprep.subr.mxu0 %v6956_v30  ;;  %8853 = vst [vmem:[#allocation154_spill] sm:$0xff] %v6971_v62  ;;  %v6974_v30 = vld [vmem:[#allocation9 + $0x18] sm:$0xff] }
 0x6ee   :  { %2524 = vmatpush1.msra.mxu0 %v6959_v18  ;;  %8854 = vst [vmem:[#allocation155_spill] sm:$0xff] %v6974_v30  ;;  %v6977_v18 = vld [vmem:[#allocation9 + $0x10] sm:$0xff] }
 0x6ef   :  { %2525 = vmatprep.subr.mxu0 %v6962_v57  ;;  %8855 = vst [vmem:[#allocation20_spill] sm:$0xff] %v6977_v18  ;;  %v6980_v57 = vld [vmem:[#allocation9 + $0x5e8] sm:$0xff] }
 0x6f0   :  { %2526 = vmatpush1.msra.mxu0 %v6965_v8  ;;  %8856 = vst [vmem:[#allocation48_spill] sm:$0xff] %v6980_v57  ;;  %v6983_v8 = vld [vmem:[#allocation9 + $0x5e0] sm:$0xff] }
 0x6f1   :  { %2527 = vmatprep.subr.mxu0 %v6968_v63  ;;  %8857 = vst [vmem:[#allocation25_spill] sm:$0xff] %v6983_v8  ;;  %v6986_v63 = vld [vmem:[#allocation9 + $0x5b8] sm:$0xff] }
 0x6f2   :  { %2528 = vmatpush1.msra.mxu0 %v6971_v62  ;;  %8858 = vst [vmem:[#allocation40_spill] sm:$0xff] %v6986_v63  ;;  %v6989_v62 = vld [vmem:[#allocation9 + $0x5b0] sm:$0xff] }
 0x6f3   :  { %2529 = vmatprep.subr.mxu0 %v6974_v30  ;;  %8859 = vst [vmem:[#allocation39_spill] sm:$0xff] %v6989_v62  ;;  %v6992_v30 = vld [vmem:[#allocation9 + $0x588] sm:$0xff] }
 0x6f4   :  { %2530 = vmatpush1.msra.mxu0 %v6977_v18  ;;  %8860 = vst [vmem:[#allocation56_spill] sm:$0xff] %v6992_v30  ;;  %v6995_v18 = vld [vmem:[#allocation9 + $0x580] sm:$0xff] }
 0x6f5   :  { %2531 = vmatprep.subr.mxu0 %v6980_v57  ;;  %8861 = vst [vmem:[#allocation63_spill] sm:$0xff] %v6995_v18  ;;  %v6998_v57 = vld [vmem:[#allocation9 + $0x558] sm:$0xff] }
 0x6f6   :  { %2532 = vmatpush2.msra.mxu0 %v6983_v8  ;;  %8862 = vst [vmem:[#allocation23_spill] sm:$0xff] %v6998_v57  ;;  %v7001_v8 = vld [vmem:[#allocation9 + $0x550] sm:$0xff] }
 0x6f7   :  { %2533 = vmatprep.subr.mxu0 %v6986_v63  ;;  %8863 = vst [vmem:[#allocation42_spill] sm:$0xff] %v7001_v8  ;;  %v7004_v63 = vld [vmem:[#allocation9 + $0x528] sm:$0xff] }
 0x6f8   :  { %2534 = vmatpush2.msra.mxu0 %v6989_v62  ;;  %8864 = vst [vmem:[#allocation60_spill] sm:$0xff] %v7004_v63  ;;  %v7007_v62 = vld [vmem:[#allocation9 + $0x520] sm:$0xff] }
 0x6f9   :  { %2535 = vmatprep.subr.mxu0 %v6992_v30  ;;  %8865 = vst [vmem:[#allocation37_spill] sm:$0xff] %v7007_v62  ;;  %v7010_v30 = vld [vmem:[#allocation9 + $0x4f8] sm:$0xff] }
 0x6fa   :  { %2536 = vmatpush2.msra.mxu0 %v6995_v18  ;;  %8866 = vst [vmem:[#allocation58_spill] sm:$0xff] %v7010_v30  ;;  %v7013_v18 = vld [vmem:[#allocation9 + $0x4f0] sm:$0xff] }
 0x6fb   :  { %2537 = vmatprep.subr.mxu0 %v6998_v57  ;;  %8867 = vst [vmem:[#allocation65_spill] sm:$0xff] %v7013_v18  ;;  %v7016_v57 = vld [vmem:[#allocation9 + $0x4c8] sm:$0xff] }
 0x6fc   :  { %2538 = vmatpush2.msra.mxu0 %v7001_v8  ;;  %8868 = vst [vmem:[#allocation62_spill] sm:$0xff] %v7016_v57  ;;  %v7019_v8 = vld [vmem:[#allocation9 + $0x4c0] sm:$0xff] }
 0x6fd   :  { %2539 = vmatprep.subr.mxu0 %v7004_v63  ;;  %8869 = vst [vmem:[#allocation69_spill] sm:$0xff] %v7019_v8  ;;  %v7022_v63 = vld [vmem:[#allocation9 + $0x498] sm:$0xff] }
 0x6fe   :  { %2540 = vmatpush2.msra.mxu0 %v7007_v62  ;;  %8870 = vst [vmem:[#allocation64_spill] sm:$0xff] %v7022_v63  ;;  %v7025_v62 = vld [vmem:[#allocation9 + $0x490] sm:$0xff] }
 0x6ff   :  { %2541 = vmatprep.subr.mxu0 %v7010_v30  ;;  %8871 = vst [vmem:[#allocation71_spill] sm:$0xff] %v7025_v62  ;;  %v7028_v30 = vld [vmem:[#allocation9 + $0x468] sm:$0xff] }
 0x700   :  { %2542 = vmatpush2.msra.mxu0 %v7013_v18  ;;  %8872 = vst [vmem:[#allocation66_spill] sm:$0xff] %v7028_v30  ;;  %v7031_v18 = vld [vmem:[#allocation9 + $0x460] sm:$0xff] }
 0x701   :  { %2543 = vmatprep.subr.mxu0 %v7016_v57  ;;  %8873 = vst [vmem:[#allocation72_spill] sm:$0xff] %v7031_v18  ;;  %v7034_v57 = vld [vmem:[#allocation9 + $0x438] sm:$0xff] }
 0x702   :  { %2544 = vmatpush2.msra.mxu0 %v7019_v8  ;;  %8874 = vst [vmem:[#allocation68_spill] sm:$0xff] %v7034_v57  ;;  %v7037_v8 = vld [vmem:[#allocation9 + $0x430] sm:$0xff] }
 0x703   :  { %2545 = vmatprep.subr.mxu0 %v7022_v63  ;;  %8875 = vst [vmem:[#allocation70_spill] sm:$0xff] %v7037_v8  ;;  %v7040_v63 = vld [vmem:[#allocation9 + $0x408] sm:$0xff] }
 0x704   :  { %2546 = vmatpush2.msra.mxu0 %v7025_v62  ;;  %8876 = vst [vmem:[#allocation75_spill] sm:$0xff] %v7040_v63  ;;  %v7043_v62 = vld [vmem:[#allocation9 + $0x400] sm:$0xff] }
 0x705   :  { %2547 = vmatprep.subr.mxu0 %v7028_v30  ;;  %8877 = vst [vmem:[#allocation73_spill] sm:$0xff] %v7043_v62  ;;  %v7046_v30 = vld [vmem:[#allocation9 + $0x3d8] sm:$0xff] }
 0x706   :  { %2548 = vmatpush2.msra.mxu0 %v7031_v18  ;;  %8878 = vst [vmem:[#allocation22_spill] sm:$0xff] %v7046_v30  ;;  %v7049_v18 = vld [vmem:[#allocation9 + $0x3d0] sm:$0xff] }
 0x707   :  { %2549 = vmatprep.subr.mxu0 %v7034_v57  ;;  %8879 = vst [vmem:[#allocation29_spill] sm:$0xff] %v7049_v18  ;;  %v7052_v57 = vld [vmem:[#allocation9 + $0x3a8] sm:$0xff] }
 0x708   :  { %2550 = vmatpush2.msra.mxu0 %v7037_v8  ;;  %8880 = vst [vmem:[#allocation36_spill] sm:$0xff] %v7052_v57  ;;  %v7055_v8 = vld [vmem:[#allocation9 + $0x3a0] sm:$0xff] }
 0x709   :  { %2551 = vmatprep.subr.mxu0 %v7040_v63  ;;  %8881 = vst [vmem:[#allocation43_spill] sm:$0xff] %v7055_v8  ;;  %v7058_v63 = vld [vmem:[#allocation9 + $0x378] sm:$0xff] }
 0x70a   :  { %2552 = vmatpush2.msra.mxu0 %v7043_v62  ;;  %8882 = vst [vmem:[#allocation52_spill] sm:$0xff] %v7058_v63  ;;  %v7061_v62 = vld [vmem:[#allocation9 + $0x370] sm:$0xff] }
 0x70b   :  { %2553 = vmatprep.subr.mxu0 %v7046_v30  ;;  %8883 = vst [vmem:[#allocation59_spill] sm:$0xff] %v7061_v62  ;;  %v7064_v30 = vld [vmem:[#allocation9 + $0x348] sm:$0xff] }
 0x70c   :  { %2554 = vmatpush2.msra.mxu0 %v7049_v18  ;;  %8884 = vst [vmem:[#allocation77_spill] sm:$0xff] %v7064_v30  ;;  %v7067_v18 = vld [vmem:[#allocation9 + $0x340] sm:$0xff] }
 0x70d   :  { %2555 = vmatprep.subr.mxu0 %v7052_v57  ;;  %8885 = vst [vmem:[#allocation79_spill] sm:$0xff] %v7067_v18  ;;  %v7070_v57 = vld [vmem:[#allocation9 + $0x318] sm:$0xff] }
 0x70e   :  { %2556 = vmatpush2.msra.mxu0 %v7055_v8  ;;  %8886 = vst [vmem:[#allocation82_spill] sm:$0xff] %v7070_v57  ;;  %v7073_v8 = vld [vmem:[#allocation9 + $0x310] sm:$0xff] }
 0x70f   :  { %2557 = vmatprep.subr.mxu0 %v7058_v63  ;;  %8887 = vst [vmem:[#allocation84_spill] sm:$0xff] %v7073_v8  ;;  %v8888_v63 = vld [vmem:[#allocation78_spill] sm:$0xff] }
 0x710   :  { %2558 = vmatpush2.msra.mxu0 %v7061_v62  ;;  %v8889_v62 = vld [vmem:[#allocation44_spill] sm:$0xff] }
 0x711   :  { %2559 = vmatprep.subr.mxu0 %v7064_v30 }
 0x712   :  { %2560 = vmatpush2.msra.mxu0 %v7067_v18  ;;  %v8891_v18 = vld [vmem:[#allocation31_spill] sm:$0xff] }
 0x713   :  { %2561 = vmatprep.subr.mxu0 %v7070_v57 }
 0x714   :  { %2562 = vmatpush2.msra.mxu0 %v7073_v8 }
 0x715   :  { %2691 = vmatprep.subr.mxu0 %v8888_v63  ;;  %v8892_v63 = vld [vmem:[#allocation67_spill] sm:$0xff] }
 0x755   :  { %v2231_v38 = vpop.f32.mrf.mxu0  ;;  %v2302_v57 = vpop.f32.mrf.mxu1 }
 0x756   :  { %v2232_v50 = vadd.f32 %v2231_v38, %v8889_v62  ;;  %v8893_v38 = vld [vmem:[#allocation34_spill] sm:$0xff] }
 0x757   :  { %v2233_v55 = vpop.f32.mrf.mxu0  ;;  %v2304_v13 = vpop.f32.mrf.mxu1  ;;  %v423_v62 = vadd.f32 %v8893_v38, %v4935_v54 }
 0x758   :  { %v2384_v30 = vadd.f32 %v2232_v50, %v8890_v21  ;;  %v2234_v28 = vadd.f32 %v2233_v55, %v8506_v17  ;;  %v2305_v2 = vadd.f32 %v2304_v13, %v8892_v63 }
 0x75a   :  { %v3012_v56 = vmul.f32 -1.442695, %v2384_v30  ;;  %v2391_v1 = vadd.f32 %v2234_v28, %v8891_v18  ;;  %v2405_v58 = vadd.f32 %v2305_v2, %v423_v62 }
 0x75c   :  { %3138 = vpow2.f32 %v3012_v56  ;;  %v3013_v26 = vmul.f32 -1.442695, %v2391_v1  ;;  %v3014_v50 = vmul.f32 -1.442695, %v2405_v58  ;;  %v2303_v56 = vadd.f32 %v2302_v57, %v8381_v42  ;;  %v8894_v1 = vld [vmem:[#allocation45_spill] sm:$0xff] }
 0x75e   :  { %3140 = vpow2.f32 %v3013_v26  ;;  %v439_v26 = vadd.f32 %v8894_v1, %v4928_v14 }
 0x769   :  { %v3139_v40 = vpop.eup %3138 }
 0x76a   :  { %v2388_v8 = vadd.f32 1.0, %v3139_v40 }
 0x76b   :  { %v3141_v21 = vpop.eup %3140 }
 0x76c   :  { %3142 = vrcp.f32 %v2388_v8  ;;  %v2395_v30 = vadd.f32 1.0, %v3141_v21  ;;  %v8895_v21 = vld [vmem:[#allocation50_spill] sm:$0xff] }
 0x76d   :  { %3144 = vpow2.f32 %v3014_v50  ;;  %v534_v50 = vadd.f32 %v8895_v21, %v4950_v43 }
 0x76e   :  { %3146 = vrcp.f32 %v2395_v30 }
 0x779   :  { %v3143_v28 = vpop.eup %3142 }
 0x77a   :  { %v2398_v55 = vmul.f32 %v3143_v28, %v2303_v56  ;;  %v3145_v18 = vpop.eup %3144 }
 0x77b   :  { %v3147_v13 = vpop.eup %3146  ;;  %v2409_v8 = vadd.f32 1.0, %v3145_v18 }
 0x77c   :  { %v2399_v40 = vadd.f32 %v2398_v55, %v439_v26  ;;  %v2401_v63 = vsub.f32 1.0, %v3147_v13  ;;  %v2403_v58 = vmul.f32 %v3147_v13, %v6610_v48  ;;  %v8896_v55 = vld [vmem:[#allocation57_spill] sm:$0xff] }
 0x77e   :  { %3148 = vtanh.f32 %v2399_v40 }
 0x77f   :  { %3150 = vrcp.f32 %v2409_v8 }
 0x78b   :  { %v3149_v38 = vpop.eup %3148 }
 0x78c   :  { %v2402_v2 = vmul.f32 %v3149_v38, %v2401_v63  ;;  %v3151_v26 = vpop.eup %3150  ;;  %v536_v63 = vadd.f32 %v8896_v55, %v4960_v25  ;;  %v7257_v55 = vld [vmem:[#allocation9 + $0x560] sm:$0xff] }
 0x78d   :  { %8900 = vst [vmem:[#allocation91_spill] sm:$0xff] %v7257_v55 }
 0x78e   :  { %v7088_v62 = vadd.f32 %v2403_v58, %v2402_v2 }
 0x790   :  { %2426 = vst [vmem:[#allocation12 + $0x50] sm:$0xff] %v7088_v62 }
 0x795   :  { %v2373_v57 = vpop.f32.mrf.mxu0 }
 0x796   :  { %v2374_v30 = vadd.f32 %v2373_v57, %v4947_v11 }
 0x797   :  { %v2375_v56 = vpop.f32.mrf.mxu0 }
 0x798   :  { %v2412_v28 = vadd.f32 %v2374_v30, %v534_v50  ;;  %v2376_v1 = vadd.f32 %v2375_v56, %v4956_v29  ;;  %v7105_v30 = vld [vmem:[#allocation9 + $0x2f0] sm:$0xff]  ;;  %v7109_v56 = vld [vmem:[#allocation9 + $0x2c8] sm:$0xff] }
 0x79a   :  { %v3015_v40 = vmul.f32 -1.442695, %v2412_v28  ;;  %v2419_v48 = vmul.f32 %v3151_v26, %v2376_v1  ;;  %v7117_v28 = vld [vmem:[#allocation9 + $0x298] sm:$0xff]  ;;  %v7121_v1 = vld [vmem:[#allocation9 + $0x290] sm:$0xff]  ;;  %v7125_v26 = vld [vmem:[#allocation9 + $0x268] sm:$0xff] }
 0x79c   :  { %3152 = vpow2.f32 %v3015_v40  ;;  %v2420_v18 = vadd.f32 %v2419_v48, %v536_v63  ;;  %v7261_v63 = vld [vmem:[#allocation9 + $0x538] sm:$0xff]  ;;  %v7265_v40 = vld [vmem:[#allocation9 + $0x530] sm:$0xff]  ;;  %v7269_v48 = vld [vmem:[#allocation9 + $0x508] sm:$0xff] }
 0x79d   :  { %8902 = vst [vmem:[#allocation93_spill] sm:$0xff] %v7261_v63  ;;  %8904 = vst [vmem:[#allocation96_spill] sm:$0xff] %v7265_v40 }
 0x79e   :  { %8906 = vst [vmem:[#allocation98_spill] sm:$0xff] %v7269_v48 }
 0x7a9   :  { %v3153_v13 = vpop.eup %3152 }
 0x7aa   :  { %v2416_v8 = vadd.f32 1.0, %v3153_v13  ;;  %v7273_v13 = vld [vmem:[#allocation9 + $0x500] sm:$0xff] }
 0x7ab   :  { %8908 = vst [vmem:[#allocation100_spill] sm:$0xff] %v7273_v13 }
 0x7ac   :  { %3154 = vrcp.f32 %v2416_v8  ;;  %v8909_v8 = vld [vmem:[#allocation88_spill] sm:$0xff] }
 0x7ad   :  { %3156 = vtanh.f32 %v2420_v18  ;;  %v8907_v18 = vld [vmem:[#allocation87_spill] sm:$0xff] }
 0x7b9   :  { %v3155_v38 = vpop.eup %3154 }
 0x7ba   :  { %v2422_v2 = vsub.f32 1.0, %v3155_v38  ;;  %v3157_v58 = vpop.eup %3156  ;;  %v2424_v21 = vmul.f32 %v3155_v38, %v6620_v60  ;;  %v7113_v60 = vld [vmem:[#allocation9 + $0x2c0] sm:$0xff]  ;;  %v7277_v38 = vld [vmem:[#allocation9 + $0x4d8] sm:$0xff] }
 0x7bb   :  { %8910 = vst [vmem:[#allocation103_spill] sm:$0xff] %v7277_v38 }
 0x7bc   :  { %v2423_v57 = vmul.f32 %v3157_v58, %v2422_v2  ;;  %v8911_v2 = vld [vmem:[#allocation90_spill] sm:$0xff]  ;;  %v7281_v58 = vld [vmem:[#allocation9 + $0x4d0] sm:$0xff] }
 0x7bd   :  { %8912 = vst [vmem:[#allocation21_spill] sm:$0xff] %v7281_v58 }
 0x7be   :  { %v7098_v50 = vadd.f32 %v2424_v21, %v2423_v57  ;;  %v8913_v57 = vld [vmem:[#allocation92_spill] sm:$0xff]  ;;  %v7285_v21 = vld [vmem:[#allocation9 + $0x4a8] sm:$0xff] }
 0x7bf   :  { %8914 = vst [vmem:[#allocation27_spill] sm:$0xff] %v7285_v21 }
 0x7c0   :  { %2427 = vst [vmem:[#allocation12 + $0x28] sm:$0xff] %v7098_v50  ;;  %2492 = vmatprep.mubr.f32.mxu1 %v7098_v50  ;;  %2563 = vmatprep.mubr.f32.mxu0 %v7098_v50 }
 0x7c1   :  { %2493 = vmatmul.mubr.f32.vlgmr.msra.gmra.mxu1 %v7088_v62  ;;  %2564 = vmatmul.mubr.f32.vlgmr.msra.gmra.mxu0 %v7088_v62 }
 0x7c2   :  { %2571 = vmatpush1.msra.mxu1 %v7105_v30  ;;  %2634 = vmatprep.mubr.f32.mxu1 %v7098_v50 }
 0x7c3   :  { %2572 = vmatprep.subr.mxu1 %v7109_v56  ;;  %2692 = vmatpush1.msra.mxu0 %v6630_v59  ;;  %v7129_v59 = vld [vmem:[#allocation9 + $0x260] sm:$0xff] }
 0x7c4   :  { %2573 = vmatpush1.msra.mxu1 %v7113_v60  ;;  %2693 = vmatprep.subr.mxu0 %v6634_v41  ;;  %v7133_v41 = vld [vmem:[#allocation9 + $0x238] sm:$0xff] }
 0x7c5   :  { %2574 = vmatprep.subr.mxu1 %v7117_v28  ;;  %2694 = vmatpush1.msra.mxu0 %v6638_v12  ;;  %v7137_v12 = vld [vmem:[#allocation9 + $0x230] sm:$0xff] }
 0x7c6   :  { %2575 = vmatpush1.msra.mxu1 %v7121_v1  ;;  %2695 = vmatprep.subr.mxu0 %v6642_v10  ;;  %v7141_v10 = vld [vmem:[#allocation9 + $0x208] sm:$0xff] }
 0x7c7   :  { %2576 = vmatprep.subr.mxu1 %v7125_v26  ;;  %2696 = vmatpush1.msra.mxu0 %v6646_v19  ;;  %v7145_v19 = vld [vmem:[#allocation9 + $0x200] sm:$0xff] }
 0x7c8   :  { %2577 = vmatpush1.msra.mxu1 %v7129_v59  ;;  %2697 = vmatprep.subr.mxu0 %v6650_v24  ;;  %v7149_v24 = vld [vmem:[#allocation9 + $0x1d8] sm:$0xff] }
 0x7c9   :  { %2578 = vmatprep.subr.mxu1 %v7133_v41  ;;  %2698 = vmatpush1.msra.mxu0 %v6654_v0  ;;  %v7153_v0 = vld [vmem:[#allocation9 + $0x1d0] sm:$0xff] }
 0x7ca   :  { %2579 = vmatpush1.msra.mxu1 %v7137_v12  ;;  %2699 = vmatprep.subr.mxu0 %v6658_v7  ;;  %v7157_v7 = vld [vmem:[#allocation9 + $0x1a8] sm:$0xff] }
 0x7cb   :  { %2580 = vmatprep.subr.mxu1 %v7141_v10  ;;  %2700 = vmatpush1.msra.mxu0 %v6662_v9  ;;  %v7161_v9 = vld [vmem:[#allocation9 + $0x1a0] sm:$0xff] }
 0x7cc   :  { %2581 = vmatpush1.msra.mxu1 %v7145_v19  ;;  %2701 = vmatprep.subr.mxu0 %v6666_v15  ;;  %v7165_v15 = vld [vmem:[#allocation9 + $0x178] sm:$0xff] }
 0x7cd   :  { %2582 = vmatprep.subr.mxu1 %v7149_v24  ;;  %2702 = vmatpush1.msra.mxu0 %v6670_v51  ;;  %v7169_v51 = vld [vmem:[#allocation9 + $0x170] sm:$0xff] }
 0x7ce   :  { %2583 = vmatpush1.msra.mxu1 %v7153_v0  ;;  %2703 = vmatprep.subr.mxu0 %v6674_v22  ;;  %v7173_v22 = vld [vmem:[#allocation9 + $0x148] sm:$0xff] }
 0x7cf   :  { %2584 = vmatprep.subr.mxu1 %v7157_v7  ;;  %2704 = vmatpush1.msra.mxu0 %v6678_v53  ;;  %v7177_v53 = vld [vmem:[#allocation9 + $0x140] sm:$0xff] }
 0x7d0   :  { %2585 = vmatpush1.msra.mxu1 %v7161_v9  ;;  %2705 = vmatprep.subr.mxu0 %v6682_v39  ;;  %v7181_v39 = vld [vmem:[#allocation9 + $0x118] sm:$0xff] }
 0x7d1   :  { %2586 = vmatprep.subr.mxu1 %v7165_v15  ;;  %2706 = vmatpush1.msra.mxu0 %v6686_v23  ;;  %v7185_v23 = vld [vmem:[#allocation9 + $0x110] sm:$0xff] }
 0x7d2   :  { %2587 = vmatpush1.msra.mxu1 %v7169_v51  ;;  %2707 = vmatprep.subr.mxu0 %v6690_v37  ;;  %v7189_v37 = vld [vmem:[#allocation9 + $0xe8] sm:$0xff] }
 0x7d3   :  { %2588 = vmatprep.subr.mxu1 %v7173_v22  ;;  %2708 = vmatpush1.msra.mxu0 %v6694_v35  ;;  %v7193_v35 = vld [vmem:[#allocation9 + $0xe0] sm:$0xff] }
 0x7d4   :  { %2589 = vmatpush1.msra.mxu1 %v7177_v53  ;;  %2709 = vmatprep.subr.mxu0 %v6698_v33  ;;  %v7197_v33 = vld [vmem:[#allocation9 + $0xb8] sm:$0xff] }
 0x7d5   :  { %2590 = vmatprep.subr.mxu1 %v7181_v39  ;;  %2710 = vmatpush1.msra.mxu0 %v6702_v61  ;;  %v7201_v61 = vld [vmem:[#allocation9 + $0xb0] sm:$0xff] }
 0x7d6   :  { %2591 = vmatpush1.msra.mxu1 %v7185_v23  ;;  %2711 = vmatprep.subr.mxu0 %v6706_v47  ;;  %v7205_v47 = vld [vmem:[#allocation9 + $0x88] sm:$0xff] }
 0x7d7   :  { %2592 = vmatprep.subr.mxu1 %v7189_v37  ;;  %2712 = vmatpush1.msra.mxu0 %v6710_v20  ;;  %v7209_v20 = vld [vmem:[#allocation9 + $0x80] sm:$0xff] }
 0x7d8   :  { %2593 = vmatpush1.msra.mxu1 %v7193_v35  ;;  %2713 = vmatprep.subr.mxu0 %v6714_v5  ;;  %v7213_v5 = vld [vmem:[#allocation9 + $0x58] sm:$0xff] }
 0x7d9   :  { %2594 = vmatprep.subr.mxu1 %v7197_v33  ;;  %2714 = vmatpush1.msra.mxu0 %v6718_v52  ;;  %v7217_v52 = vld [vmem:[#allocation9 + $0x50] sm:$0xff] }
 0x7da   :  { %2595 = vmatpush1.msra.mxu1 %v7201_v61  ;;  %2715 = vmatprep.subr.mxu0 %v6722_v3  ;;  %v7221_v3 = vld [vmem:[#allocation9 + $0x28] sm:$0xff] }
 0x7db   :  { %2596 = vmatprep.subr.mxu1 %v7205_v47  ;;  %2716 = vmatpush1.msra.mxu0 %v6726_v34  ;;  %v7225_v34 = vld [vmem:[#allocation9 + $0x20] sm:$0xff] }
 0x7dc   :  { %2597 = vmatpush1.msra.mxu1 %v7209_v20  ;;  %2717 = vmatprep.subr.mxu0 %v6730_v45  ;;  %v7229_v45 = vld [vmem:[#allocation9 + $0x5f8] sm:$0xff] }
 0x7dd   :  { %2598 = vmatprep.subr.mxu1 %v7213_v5  ;;  %2718 = vmatpush1.msra.mxu0 %v6734_v32  ;;  %v7233_v32 = vld [vmem:[#allocation9 + $0x5f0] sm:$0xff] }
 0x7de   :  { %2599 = vmatpush1.msra.mxu1 %v7217_v52  ;;  %2719 = vmatprep.subr.mxu0 %v6738_v16  ;;  %v7237_v16 = vld [vmem:[#allocation9 + $0x5c8] sm:$0xff] }
 0x7df   :  { %2600 = vmatprep.subr.mxu1 %v7221_v3  ;;  %2720 = vmatpush1.msra.mxu0 %v6742_v44  ;;  %v7241_v44 = vld [vmem:[#allocation9 + $0x5c0] sm:$0xff] }
 0x7e0   :  { %2601 = vmatpush1.msra.mxu1 %v7225_v34  ;;  %2721 = vmatprep.subr.mxu0 %v6746_v36  ;;  %v7245_v36 = vld [vmem:[#allocation9 + $0x598] sm:$0xff] }
 0x7e1   :  { %2602 = vmatprep.subr.mxu1 %v7229_v45  ;;  %2722 = vmatpush1.msra.mxu0 %v6750_v31  ;;  %v7249_v31 = vld [vmem:[#allocation9 + $0x590] sm:$0xff] }
 0x7e2   :  { %2603 = vmatpush2.msra.mxu1 %v7233_v32  ;;  %2723 = vmatprep.subr.mxu0 %v6754_v6  ;;  %8897 = vst [vmem:[#allocation86_spill] sm:$0xff] %v7249_v31  ;;  %v7253_v6 = vld [vmem:[#allocation9 + $0x568] sm:$0xff] }
 0x7e3   :  { %2604 = vmatprep.subr.mxu1 %v7237_v16  ;;  %2724 = vmatpush2.msra.mxu0 %v6758_v49  ;;  %8898 = vst [vmem:[#allocation89_spill] sm:$0xff] %v7253_v6  ;;  %v8899_v49 = vld [vmem:[#allocation80_spill] sm:$0xff] }
 0x7e4   :  { %2605 = vmatpush2.msra.mxu1 %v7241_v44  ;;  %2725 = vmatprep.subr.mxu0 %v6762_v27  ;;  %v8901_v27 = vld [vmem:[#allocation81_spill] sm:$0xff] }
 0x7e5   :  { %2606 = vmatprep.subr.mxu1 %v7245_v36  ;;  %2726 = vmatpush2.msra.mxu0 %v6766_v4  ;;  %v8903_v4 = vld [vmem:[#allocation83_spill] sm:$0xff] }
 0x7e6   :  { %2607 = vmatpush2.msra.mxu1 %v7249_v31  ;;  %2727 = vmatprep.subr.mxu0 %v6770_v46  ;;  %v8905_v46 = vld [vmem:[#allocation85_spill] sm:$0xff] }
 0x7e7   :  { %2608 = vmatprep.subr.mxu1 %v7253_v6  ;;  %2728 = vmatpush2.msra.mxu0 %v8899_v49  ;;  %v8915_v49 = vld [vmem:[#allocation94_spill] sm:$0xff] }
 0x7e8   :  { %2609 = vmatpush2.msra.mxu1 %v7257_v55  ;;  %2729 = vmatprep.subr.mxu0 %v8901_v27  ;;  %v7289_v27 = vld [vmem:[#allocation9 + $0x4a0] sm:$0xff] }
 0x7e9   :  { %2610 = vmatprep.subr.mxu1 %v7261_v63  ;;  %2730 = vmatpush2.msra.mxu0 %v8903_v4  ;;  %8916 = vst [vmem:[#allocation38_spill] sm:$0xff] %v7289_v27  ;;  %v8917_v4 = vld [vmem:[#allocation95_spill] sm:$0xff] }
 0x7ea   :  { %2611 = vmatpush2.msra.mxu1 %v7265_v40  ;;  %2731 = vmatprep.subr.mxu0 %v8905_v46  ;;  %v7293_v46 = vld [vmem:[#allocation9 + $0x478] sm:$0xff] }
 0x7eb   :  { %2612 = vmatprep.subr.mxu1 %v7269_v48  ;;  %2732 = vmatpush2.msra.mxu0 %v8907_v18  ;;  %8918 = vst [vmem:[#allocation41_spill] sm:$0xff] %v7293_v46  ;;  %v8919_v18 = vld [vmem:[#allocation97_spill] sm:$0xff]  ;;  %v9017_v48 = vld [vmem:[#allocation26_spill] sm:$0xff] }
 0x7ec   :  { %2613 = vmatpush2.msra.mxu1 %v7273_v13  ;;  %2733 = vmatprep.subr.mxu0 %v8909_v8  ;;  %v7297_v8 = vld [vmem:[#allocation9 + $0x470] sm:$0xff] }
 0x7ed   :  { %2614 = vmatprep.subr.mxu1 %v7277_v38  ;;  %2734 = vmatpush2.msra.mxu0 %v8911_v2  ;;  %8920 = vst [vmem:[#allocation54_spill] sm:$0xff] %v7297_v8  ;;  %v8921_v2 = vld [vmem:[#allocation99_spill] sm:$0xff]  ;;  %v8960_v38 = vld [vmem:[#allocation133_spill] sm:$0xff] }
 0x7ee   :  { %2615 = vmatpush2.msra.mxu1 %v7281_v58  ;;  %2735 = vmatprep.subr.mxu0 %v8913_v57  ;;  %v7301_v57 = vld [vmem:[#allocation9 + $0x448] sm:$0xff] }
 0x7ef   :  { %2616 = vmatprep.subr.mxu1 %v7285_v21  ;;  %2736 = vmatpush2.msra.mxu0 %v8915_v49  ;;  %8922 = vst [vmem:[#allocation61_spill] sm:$0xff] %v7301_v57  ;;  %v8923_v49 = vld [vmem:[#allocation101_spill] sm:$0xff]  ;;  %v8954_v21 = vld [vmem:[#allocation127_spill] sm:$0xff]  ;;  %v8957_v58 = vld [vmem:[#allocation130_spill] sm:$0xff] }
 0x7f0   :  { %2617 = vmatpush2.msra.mxu1 %v7289_v27  ;;  %2737 = vmatprep.subr.mxu0 %v8917_v4  ;;  %v7305_v27 = vld [vmem:[#allocation9 + $0x440] sm:$0xff] }
 0x7f1   :  { %2618 = vmatprep.subr.mxu1 %v7293_v46  ;;  %2738 = vmatpush2.msra.mxu0 %v8919_v18  ;;  %8924 = vst [vmem:[#allocation105_spill] sm:$0xff] %v7305_v27  ;;  %v8925_v4 = vld [vmem:[#allocation102_spill] sm:$0xff]  ;;  %v7309_v46 = vld [vmem:[#allocation9 + $0x418] sm:$0xff] }
 0x7f2   :  { %2619 = vmatpush2.msra.mxu1 %v7297_v8  ;;  %2739 = vmatprep.subr.mxu0 %v8921_v2  ;;  %8926 = vst [vmem:[#allocation107_spill] sm:$0xff] %v7309_v46  ;;  %v8927_v18 = vld [vmem:[#allocation104_spill] sm:$0xff]  ;;  %v8929_v2 = vld [vmem:[#allocation106_spill] sm:$0xff] }
 0x7f3   :  { %2620 = vmatprep.subr.mxu1 %v7301_v57  ;;  %2740 = vmatpush2.msra.mxu0 %v8923_v49  ;;  %v7313_v8 = vld [vmem:[#allocation9 + $0x410] sm:$0xff]  ;;  %v7317_v57 = vld [vmem:[#allocation9 + $0x3e8] sm:$0xff] }
 0x7f4   :  { %2621 = vmatpush2.msra.mxu1 %v7305_v27  ;;  %2741 = vmatprep.subr.mxu0 %v8925_v4  ;;  %8928 = vst [vmem:[#allocation110_spill] sm:$0xff] %v7313_v8  ;;  %8930 = vst [vmem:[#allocation112_spill] sm:$0xff] %v7317_v57  ;;  %v8931_v49 = vld [vmem:[#allocation108_spill] sm:$0xff]  ;;  %v7321_v27 = vld [vmem:[#allocation9 + $0x3e0] sm:$0xff] }
 0x7f5   :  { %2622 = vmatprep.subr.mxu1 %v7309_v46  ;;  %2742 = vmatpush2.msra.mxu0 %v8927_v18  ;;  %8932 = vst [vmem:[#allocation114_spill] sm:$0xff] %v7321_v27  ;;  %v8933_v4 = vld [vmem:[#allocation109_spill] sm:$0xff]  ;;  %v8935_v18 = vld [vmem:[#allocation111_spill] sm:$0xff] }
 0x7f6   :  { %2623 = vmatpush2.msra.mxu1 %v7313_v8  ;;  %2743 = vmatprep.subr.mxu0 %v8929_v2  ;;  %v7325_v46 = vld [vmem:[#allocation9 + $0x3b8] sm:$0xff]  ;;  %v7329_v8 = vld [vmem:[#allocation9 + $0x3b0] sm:$0xff] }
 0x7f7   :  { %2624 = vmatprep.subr.mxu1 %v7317_v57  ;;  %2744 = vmatpush2.msra.mxu0 %v8931_v49  ;;  %8934 = vst [vmem:[#allocation117_spill] sm:$0xff] %v7325_v46  ;;  %8936 = vst [vmem:[#allocation123_spill] sm:$0xff] %v7329_v8  ;;  %v8937_v2 = vld [vmem:[#allocation113_spill] sm:$0xff]  ;;  %v7333_v57 = vld [vmem:[#allocation9 + $0x388] sm:$0xff] }
 0x7f8   :  { %2625 = vmatpush2.msra.mxu1 %v7321_v27  ;;  %2745 = vmatprep.subr.mxu0 %v8933_v4  ;;  %8938 = vst [vmem:[#allocation74_spill] sm:$0xff] %v7333_v57  ;;  %v8939_v49 = vld [vmem:[#allocation115_spill] sm:$0xff]  ;;  %v7337_v27 = vld [vmem:[#allocation9 + $0x380] sm:$0xff]  ;;  %v8941_v4 = vld [vmem:[#allocation116_spill] sm:$0xff] }
 0x7f9   :  { %2626 = vmatprep.subr.mxu1 %v7325_v46  ;;  %2746 = vmatpush2.msra.mxu0 %v8935_v18  ;;  %8940 = vst [vmem:[#allocation76_spill] sm:$0xff] %v7337_v27  ;;  %v7341_v46 = vld [vmem:[#allocation9 + $0x358] sm:$0xff]  ;;  %v8943_v18 = vld [vmem:[#allocation118_spill] sm:$0xff] }
 0x7fa   :  { %2627 = vmatpush2.msra.mxu1 %v7329_v8  ;;  %2747 = vmatprep.subr.mxu0 %v8937_v2  ;;  %8942 = vst [vmem:[#allocation78_spill] sm:$0xff] %v7341_v46  ;;  %v7345_v8 = vld [vmem:[#allocation9 + $0x350] sm:$0xff] }
 0x7fb   :  { %2628 = vmatprep.subr.mxu1 %v7333_v57  ;;  %2748 = vmatpush2.msra.mxu0 %v8939_v49  ;;  %8944 = vst [vmem:[#allocation24_spill] sm:$0xff] %v7345_v8  ;;  %v8945_v2 = vld [vmem:[#allocation119_spill] sm:$0xff]  ;;  %v8947_v49 = vld [vmem:[#allocation120_spill] sm:$0xff] }
 0x7fc   :  { %2629 = vmatpush2.msra.mxu1 %v7337_v27  ;;  %2749 = vmatprep.subr.mxu0 %v8941_v4  ;;  %v7349_v57 = vld [vmem:[#allocation9 + $0x328] sm:$0xff]  ;;  %v7353_v27 = vld [vmem:[#allocation9 + $0x320] sm:$0xff] }
 0x7fd   :  { %2630 = vmatprep.subr.mxu1 %v7341_v46  ;;  %2750 = vmatpush2.msra.mxu0 %v8943_v18  ;;  %8946 = vst [vmem:[#allocation31_spill] sm:$0xff] %v7349_v57  ;;  %8948 = vst [vmem:[#allocation34_spill] sm:$0xff] %v7353_v27  ;;  %v8949_v4 = vld [vmem:[#allocation121_spill] sm:$0xff]  ;;  %v8950_v18 = vld [vmem:[#allocation122_spill] sm:$0xff] }
 0x7fe   :  { %2631 = vmatpush2.msra.mxu1 %v7345_v8  ;;  %2751 = vmatprep.subr.mxu0 %v8945_v2  ;;  %v8951_v46 = vld [vmem:[#allocation124_spill] sm:$0xff]  ;;  %v8952_v8 = vld [vmem:[#allocation125_spill] sm:$0xff]  ;;  %v8953_v2 = vld [vmem:[#allocation126_spill] sm:$0xff] }
 0x7ff   :  { %2632 = vmatprep.subr.mxu1 %v7349_v57  ;;  %2752 = vmatpush2.msra.mxu0 %v8947_v49  ;;  %v8955_v57 = vld [vmem:[#allocation128_spill] sm:$0xff]  ;;  %v8956_v49 = vld [vmem:[#allocation129_spill] sm:$0xff] }
 0x800   :  { %2633 = vmatpush2.msra.mxu1 %v7353_v27  ;;  %2753 = vmatprep.subr.mxu0 %v8949_v4  ;;  %v8958_v27 = vld [vmem:[#allocation131_spill] sm:$0xff]  ;;  %v8959_v4 = vld [vmem:[#allocation132_spill] sm:$0xff] }
 0x801   :  { %2635 = vmatmul.mubr.f32.vlgmr.msra.gmra.mxu1 %v7088_v62  ;;  %2762 = vmatprep.subr.mxu1 %v8950_v18  ;;  %v8961_v18 = vld [vmem:[#allocation134_spill] sm:$0xff] }
 0x802   :  { %2763 = vmatpush1.msra.mxu1 %v8951_v46  ;;  %2754 = vmatpush2.msra.mxu0 %v8952_v8  ;;  %v8962_v46 = vld [vmem:[#allocation135_spill] sm:$0xff]  ;;  %v8963_v8 = vld [vmem:[#allocation136_spill] sm:$0xff] }
 0x803   :  { %2764 = vmatprep.subr.mxu1 %v8953_v2  ;;  %2833 = vmatprep.subr.mxu0 %v8954_v21  ;;  %v8964_v2 = vld [vmem:[#allocation137_spill] sm:$0xff]  ;;  %v8965_v21 = vld [vmem:[#allocation138_spill] sm:$0xff] }
 0x804   :  { %2765 = vmatpush1.msra.mxu1 %v8955_v57  ;;  %v8966_v57 = vld [vmem:[#allocation139_spill] sm:$0xff] }
 0x805   :  { %2766 = vmatprep.subr.mxu1 %v8956_v49  ;;  %v8967_v49 = vld [vmem:[#allocation140_spill] sm:$0xff] }
 0x806   :  { %2767 = vmatpush1.msra.mxu1 %v8957_v58  ;;  %v8968_v58 = vld [vmem:[#allocation141_spill] sm:$0xff] }
 0x807   :  { %2768 = vmatprep.subr.mxu1 %v8958_v27  ;;  %v8969_v27 = vld [vmem:[#allocation142_spill] sm:$0xff] }
 0x808   :  { %2769 = vmatpush1.msra.mxu1 %v8959_v4  ;;  %v8970_v4 = vld [vmem:[#allocation143_spill] sm:$0xff] }
 0x809   :  { %2770 = vmatprep.subr.mxu1 %v8960_v38  ;;  %v8971_v38 = vld [vmem:[#allocation144_spill] sm:$0xff] }
 0x80a   :  { %2771 = vmatpush1.msra.mxu1 %v8961_v18  ;;  %v8972_v18 = vld [vmem:[#allocation145_spill] sm:$0xff] }
 0x80b   :  { %2772 = vmatprep.subr.mxu1 %v8962_v46  ;;  %v8973_v46 = vld [vmem:[#allocation146_spill] sm:$0xff] }
 0x80c   :  { %2773 = vmatpush1.msra.mxu1 %v8963_v8  ;;  %v8974_v8 = vld [vmem:[#allocation147_spill] sm:$0xff] }
 0x80d   :  { %2774 = vmatprep.subr.mxu1 %v8964_v2  ;;  %v8975_v2 = vld [vmem:[#allocation148_spill] sm:$0xff] }
 0x80e   :  { %2775 = vmatpush1.msra.mxu1 %v8965_v21  ;;  %v8976_v21 = vld [vmem:[#allocation149_spill] sm:$0xff] }
 0x80f   :  { %2776 = vmatprep.subr.mxu1 %v8966_v57  ;;  %v8977_v57 = vld [vmem:[#allocation150_spill] sm:$0xff] }
 0x810   :  { %2777 = vmatpush1.msra.mxu1 %v8967_v49  ;;  %v8978_v49 = vld [vmem:[#allocation151_spill] sm:$0xff] }
 0x811   :  { %2778 = vmatprep.subr.mxu1 %v8968_v58  ;;  %v8979_v58 = vld [vmem:[#allocation152_spill] sm:$0xff] }
 0x812   :  { %2779 = vmatpush1.msra.mxu1 %v8969_v27  ;;  %v8980_v27 = vld [vmem:[#allocation153_spill] sm:$0xff] }
 0x813   :  { %2780 = vmatprep.subr.mxu1 %v8970_v4  ;;  %v8981_v4 = vld [vmem:[#allocation154_spill] sm:$0xff] }
 0x814   :  { %2781 = vmatpush1.msra.mxu1 %v8971_v38  ;;  %v8982_v38 = vld [vmem:[#allocation155_spill] sm:$0xff] }
 0x815   :  { %2782 = vmatprep.subr.mxu1 %v8972_v18  ;;  %v8983_v18 = vld [vmem:[#allocation20_spill] sm:$0xff] }
 0x816   :  { %2783 = vmatpush1.msra.mxu1 %v8973_v46  ;;  %v8984_v46 = vld [vmem:[#allocation48_spill] sm:$0xff] }
 0x817   :  { %2784 = vmatprep.subr.mxu1 %v8974_v8  ;;  %v8985_v8 = vld [vmem:[#allocation25_spill] sm:$0xff] }
 0x818   :  { %2785 = vmatpush1.msra.mxu1 %v8975_v2  ;;  %v8986_v2 = vld [vmem:[#allocation40_spill] sm:$0xff] }
 0x819   :  { %2786 = vmatprep.subr.mxu1 %v8976_v21  ;;  %v8987_v21 = vld [vmem:[#allocation39_spill] sm:$0xff] }
 0x81a   :  { %2787 = vmatpush1.msra.mxu1 %v8977_v57  ;;  %v8988_v57 = vld [vmem:[#allocation56_spill] sm:$0xff] }
 0x81b   :  { %2788 = vmatprep.subr.mxu1 %v8978_v49  ;;  %v8989_v49 = vld [vmem:[#allocation63_spill] sm:$0xff] }
 0x81c   :  { %2789 = vmatpush1.msra.mxu1 %v8979_v58  ;;  %v8990_v58 = vld [vmem:[#allocation23_spill] sm:$0xff] }
 0x81d   :  { %2790 = vmatprep.subr.mxu1 %v8980_v27  ;;  %v8991_v27 = vld [vmem:[#allocation42_spill] sm:$0xff] }
 0x81e   :  { %2791 = vmatpush1.msra.mxu1 %v8981_v4  ;;  %v8992_v4 = vld [vmem:[#allocation60_spill] sm:$0xff] }
 0x81f   :  { %2792 = vmatprep.subr.mxu1 %v8982_v38  ;;  %v8993_v38 = vld [vmem:[#allocation37_spill] sm:$0xff] }
 0x820   :  { %2793 = vmatpush1.msra.mxu1 %v8983_v18  ;;  %v8994_v18 = vld [vmem:[#allocation58_spill] sm:$0xff] }
 0x821   :  { %2794 = vmatprep.subr.mxu1 %v8984_v46  ;;  %v8995_v46 = vld [vmem:[#allocation65_spill] sm:$0xff] }
 0x822   :  { %2795 = vmatpush2.msra.mxu1 %v8985_v8  ;;  %v8996_v8 = vld [vmem:[#allocation62_spill] sm:$0xff] }
 0x823   :  { %2796 = vmatprep.subr.mxu1 %v8986_v2  ;;  %v8997_v2 = vld [vmem:[#allocation69_spill] sm:$0xff] }
 0x824   :  { %2797 = vmatpush2.msra.mxu1 %v8987_v21  ;;  %v8998_v21 = vld [vmem:[#allocation64_spill] sm:$0xff] }
 0x825   :  { %2798 = vmatprep.subr.mxu1 %v8988_v57  ;;  %v8999_v57 = vld [vmem:[#allocation71_spill] sm:$0xff] }
 0x826   :  { %2799 = vmatpush2.msra.mxu1 %v8989_v49  ;;  %v9000_v49 = vld [vmem:[#allocation66_spill] sm:$0xff] }
 0x827   :  { %2800 = vmatprep.subr.mxu1 %v8990_v58  ;;  %v9001_v58 = vld [vmem:[#allocation72_spill] sm:$0xff] }
 0x828   :  { %2801 = vmatpush2.msra.mxu1 %v8991_v27  ;;  %v9002_v27 = vld [vmem:[#allocation68_spill] sm:$0xff] }
 0x829   :  { %2802 = vmatprep.subr.mxu1 %v8992_v4  ;;  %v9003_v4 = vld [vmem:[#allocation70_spill] sm:$0xff] }
 0x82a   :  { %2803 = vmatpush2.msra.mxu1 %v8993_v38  ;;  %v9004_v38 = vld [vmem:[#allocation75_spill] sm:$0xff] }
 0x82b   :  { %2804 = vmatprep.subr.mxu1 %v8994_v18  ;;  %v9005_v18 = vld [vmem:[#allocation73_spill] sm:$0xff] }
 0x82c   :  { %2805 = vmatpush2.msra.mxu1 %v8995_v46  ;;  %v9006_v46 = vld [vmem:[#allocation22_spill] sm:$0xff] }
 0x82d   :  { %2806 = vmatprep.subr.mxu1 %v8996_v8  ;;  %v9007_v8 = vld [vmem:[#allocation29_spill] sm:$0xff] }
 0x82e   :  { %2807 = vmatpush2.msra.mxu1 %v8997_v2  ;;  %v9008_v2 = vld [vmem:[#allocation36_spill] sm:$0xff] }
 0x82f   :  { %2808 = vmatprep.subr.mxu1 %v8998_v21  ;;  %v9009_v21 = vld [vmem:[#allocation43_spill] sm:$0xff] }
 0x830   :  { %2809 = vmatpush2.msra.mxu1 %v8999_v57  ;;  %v9010_v57 = vld [vmem:[#allocation52_spill] sm:$0xff] }
 0x831   :  { %2810 = vmatprep.subr.mxu1 %v9000_v49  ;;  %v9011_v49 = vld [vmem:[#allocation59_spill] sm:$0xff] }
 0x832   :  { %2811 = vmatpush2.msra.mxu1 %v9001_v58  ;;  %v9012_v58 = vld [vmem:[#allocation77_spill] sm:$0xff] }
 0x833   :  { %2812 = vmatprep.subr.mxu1 %v9002_v27  ;;  %v9013_v27 = vld [vmem:[#allocation79_spill] sm:$0xff] }
 0x834   :  { %2813 = vmatpush2.msra.mxu1 %v9003_v4  ;;  %v9014_v4 = vld [vmem:[#allocation82_spill] sm:$0xff] }
 0x835   :  { %2814 = vmatprep.subr.mxu1 %v9004_v38  ;;  %v9015_v38 = vld [vmem:[#allocation84_spill] sm:$0xff] }
 0x836   :  { %2815 = vmatpush2.msra.mxu1 %v9005_v18 }
 0x837   :  { %2816 = vmatprep.subr.mxu1 %v9006_v46  ;;  %v9016_v46 = vld [vmem:[#allocation44_spill] sm:$0xff] }
 0x838   :  { %2817 = vmatpush2.msra.mxu1 %v9007_v8 }
 0x839   :  { %2818 = vmatprep.subr.mxu1 %v9008_v2 }
 0x83a   :  { %2819 = vmatpush2.msra.mxu1 %v9009_v21 }
 0x83b   :  { %2820 = vmatprep.subr.mxu1 %v9010_v57  ;;  %v9018_v57 = vld [vmem:[#allocation33_spill] sm:$0xff] }
 0x83c   :  { %2821 = vmatpush2.msra.mxu1 %v9011_v49 }
 0x83d   :  { %2822 = vmatprep.subr.mxu1 %v9012_v58 }
 0x83e   :  { %2823 = vmatpush2.msra.mxu1 %v9013_v27 }
 0x83f   :  { %2824 = vmatprep.subr.mxu1 %v9014_v4 }
 0x840   :  { %2825 = vmatpush2.msra.mxu1 %v9015_v38  ;;  %v9019_v38 = vld [vmem:[#allocation67_spill] sm:$0xff] }
 0x881   :  { %v2494_v18 = vpop.f32.mrf.mxu1  ;;  %v2565_v58 = vpop.f32.mrf.mxu0 }
 0x882   :  { %v2495_v13 = vadd.f32 %v2494_v18, %v9016_v46  ;;  %v9020_v18 = vld [vmem:[#allocation32_spill] sm:$0xff] }
 0x883   :  { %v2496_v8 = vpop.f32.mrf.mxu1  ;;  %v2567_v55 = vpop.f32.mrf.mxu0  ;;  %v417_v46 = vadd.f32 %v9020_v18, %v4935_v54 }
 0x884   :  { %v2647_v2 = vadd.f32 %v2495_v13, %v9017_v48  ;;  %v2497_v21 = vadd.f32 %v2496_v8, %v8506_v17  ;;  %v2568_v6 = vadd.f32 %v2567_v55, %v9019_v38 }
 0x886   :  { %v3016_v40 = vmul.f32 -1.442695, %v2647_v2  ;;  %v2654_v49 = vadd.f32 %v2497_v21, %v9018_v57  ;;  %v2668_v31 = vadd.f32 %v2568_v6, %v417_v46  ;;  %v9021_v21 = vld [vmem:[#allocation47_spill] sm:$0xff] }
 0x888   :  { %3158 = vpow2.f32 %v3016_v40  ;;  %v3017_v63 = vmul.f32 -1.442695, %v2654_v49  ;;  %v3018_v13 = vmul.f32 -1.442695, %v2668_v31  ;;  %v2566_v40 = vadd.f32 %v2565_v58, %v8381_v42 }
 0x88a   :  { %3160 = vpow2.f32 %v3017_v63  ;;  %v445_v63 = vadd.f32 %v9021_v21, %v4928_v14 }
 0x895   :  { %v3159_v27 = vpop.eup %3158 }
 0x896   :  { %v2651_v4 = vadd.f32 1.0, %v3159_v27 }
 0x897   :  { %v3161_v48 = vpop.eup %3160 }
 0x898   :  { %3162 = vrcp.f32 %v2651_v4  ;;  %v2658_v2 = vadd.f32 1.0, %v3161_v48  ;;  %v9022_v48 = vld [vmem:[#allocation53_spill] sm:$0xff] }
 0x899   :  { %3164 = vpow2.f32 %v3018_v13  ;;  %v528_v13 = vadd.f32 %v9022_v48, %v4950_v43 }
 0x89a   :  { %3166 = vrcp.f32 %v2658_v2 }
 0x8a5   :  { %v3163_v8 = vpop.eup %3162 }
 0x8a6   :  { %v2661_v57 = vmul.f32 %v3163_v8, %v2566_v40  ;;  %v3165_v27 = vpop.eup %3164 }
 0x8a7   :  { %v3167_v55 = vpop.eup %3166  ;;  %v2672_v4 = vadd.f32 1.0, %v3165_v27 }
 0x8a8   :  { %v2662_v49 = vadd.f32 %v2661_v57, %v445_v63  ;;  %v2664_v38 = vsub.f32 1.0, %v3167_v55  ;;  %v2666_v31 = vmul.f32 %v3167_v55, %v7088_v62  ;;  %v9023_v57 = vld [vmem:[#allocation55_spill] sm:$0xff] }
 0x8aa   :  { %3168 = vtanh.f32 %v2662_v49 }
 0x8ab   :  { %3170 = vrcp.f32 %v2672_v4 }
 0x8b7   :  { %v3169_v18 = vpop.eup %3168 }
 0x8b8   :  { %v2665_v6 = vmul.f32 %v3169_v18, %v2664_v38  ;;  %v3171_v63 = vpop.eup %3170  ;;  %v530_v38 = vadd.f32 %v9023_v57, %v4960_v25  ;;  %v9054_v57 = vld [vmem:[#allocation67_spill] sm:$0xff] }
 0x8ba   :  { %v7435_v46 = vadd.f32 %v2666_v31, %v2665_v6 }
 0x8bc   :  { %2689 = vst [vmem:[#allocation12 + $0x60] sm:$0xff] %v7435_v46 }
 0x8c1   :  { %v2636_v58 = vpop.f32.mrf.mxu1 }
 0x8c2   :  { %v2637_v2 = vadd.f32 %v2636_v58, %v4947_v11 }
 0x8c3   :  { %v2638_v40 = vpop.f32.mrf.mxu1 }
 0x8c4   :  { %v2675_v8 = vadd.f32 %v2637_v2, %v528_v13  ;;  %v2639_v21 = vadd.f32 %v2638_v40, %v4956_v29 }
 0x8c6   :  { %v3019_v49 = vmul.f32 -1.442695, %v2675_v8  ;;  %v2682_v62 = vmul.f32 %v3171_v63, %v2639_v21 }
 0x8c8   :  { %3172 = vpow2.f32 %v3019_v49  ;;  %v2683_v27 = vadd.f32 %v2682_v62, %v530_v38  ;;  %v9055_v49 = vld [vmem:[#allocation30_spill] sm:$0xff] }
 0x8c9   :  { %v411_v62 = vadd.f32 %v9055_v49, %v4935_v54 }
 0x8d5   :  { %v3173_v55 = vpop.eup %3172 }
 0x8d6   :  { %v2679_v4 = vadd.f32 1.0, %v3173_v55 }
 0x8d8   :  { %3174 = vrcp.f32 %v2679_v4 }
 0x8d9   :  { %3176 = vtanh.f32 %v2683_v27 }
 0x8e5   :  { %v3175_v18 = vpop.eup %3174 }
 0x8e6   :  { %v2685_v6 = vsub.f32 1.0, %v3175_v18  ;;  %v3177_v31 = vpop.eup %3176  ;;  %v2687_v48 = vmul.f32 %v3175_v18, %v7098_v50  ;;  %v9024_v50 = vld [vmem:[#allocation86_spill] sm:$0xff] }
 0x8e8   :  { %v2686_v58 = vmul.f32 %v3177_v31, %v2685_v6  ;;  %v9056_v31 = vld [vmem:[#allocation49_spill] sm:$0xff] }
 0x8ea   :  { %v7445_v13 = vadd.f32 %v2687_v48, %v2686_v58  ;;  %v451_v58 = vadd.f32 %v9056_v31, %v4928_v14 }
 0x8ec   :  { %2690 = vst [vmem:[#allocation12 + $0x18] sm:$0xff] %v7445_v13  ;;  %2755 = vmatprep.mubr.f32.mxu0 %v7445_v13  ;;  %2826 = vmatprep.mubr.f32.mxu1 %v7445_v13 }
 0x8ed   :  { %2756 = vmatmul.mubr.f32.vlgmr.msra.gmra.mxu0 %v7435_v46  ;;  %2827 = vmatmul.mubr.f32.vlgmr.msra.gmra.mxu1 %v7435_v46 }
 0x8ee   :  { %2834 = vmatpush1.msra.mxu0 %v7105_v30  ;;  %2897 = vmatprep.mubr.f32.mxu0 %v7445_v13  ;;  %v9025_v30 = vld [vmem:[#allocation89_spill] sm:$0xff] }
 0x8ef   :  { %2835 = vmatprep.subr.mxu0 %v7109_v56  ;;  %v9026_v56 = vld [vmem:[#allocation91_spill] sm:$0xff] }
 0x8f0   :  { %2836 = vmatpush1.msra.mxu0 %v7113_v60  ;;  %v9027_v60 = vld [vmem:[#allocation93_spill] sm:$0xff] }
 0x8f1   :  { %2837 = vmatprep.subr.mxu0 %v7117_v28  ;;  %v9028_v28 = vld [vmem:[#allocation96_spill] sm:$0xff] }
 0x8f2   :  { %2838 = vmatpush1.msra.mxu0 %v7121_v1  ;;  %v9029_v1 = vld [vmem:[#allocation98_spill] sm:$0xff] }
 0x8f3   :  { %2839 = vmatprep.subr.mxu0 %v7125_v26  ;;  %v9030_v26 = vld [vmem:[#allocation100_spill] sm:$0xff] }
 0x8f4   :  { %2840 = vmatpush1.msra.mxu0 %v7129_v59  ;;  %v9031_v59 = vld [vmem:[#allocation103_spill] sm:$0xff] }
 0x8f5   :  { %2841 = vmatprep.subr.mxu0 %v7133_v41  ;;  %v9032_v41 = vld [vmem:[#allocation21_spill] sm:$0xff] }
 0x8f6   :  { %2842 = vmatpush1.msra.mxu0 %v7137_v12  ;;  %v9033_v12 = vld [vmem:[#allocation27_spill] sm:$0xff] }
 0x8f7   :  { %2843 = vmatprep.subr.mxu0 %v7141_v10  ;;  %v9034_v10 = vld [vmem:[#allocation38_spill] sm:$0xff] }
 0x8f8   :  { %2844 = vmatpush1.msra.mxu0 %v7145_v19  ;;  %v9035_v19 = vld [vmem:[#allocation41_spill] sm:$0xff] }
 0x8f9   :  { %2845 = vmatprep.subr.mxu0 %v7149_v24  ;;  %v9036_v24 = vld [vmem:[#allocation54_spill] sm:$0xff] }
 0x8fa   :  { %2846 = vmatpush1.msra.mxu0 %v7153_v0  ;;  %v9037_v0 = vld [vmem:[#allocation61_spill] sm:$0xff] }
 0x8fb   :  { %2847 = vmatprep.subr.mxu0 %v7157_v7  ;;  %v9038_v7 = vld [vmem:[#allocation105_spill] sm:$0xff] }
 0x8fc   :  { %2848 = vmatpush1.msra.mxu0 %v7161_v9  ;;  %v9039_v9 = vld [vmem:[#allocation107_spill] sm:$0xff] }
 0x8fd   :  { %2849 = vmatprep.subr.mxu0 %v7165_v15  ;;  %v9040_v15 = vld [vmem:[#allocation110_spill] sm:$0xff] }
 0x8fe   :  { %2850 = vmatpush1.msra.mxu0 %v7169_v51  ;;  %v9041_v51 = vld [vmem:[#allocation112_spill] sm:$0xff] }
 0x8ff   :  { %2851 = vmatprep.subr.mxu0 %v7173_v22  ;;  %v9042_v22 = vld [vmem:[#allocation114_spill] sm:$0xff] }
 0x900   :  { %2852 = vmatpush1.msra.mxu0 %v7177_v53  ;;  %v9043_v53 = vld [vmem:[#allocation117_spill] sm:$0xff] }
 0x901   :  { %2853 = vmatprep.subr.mxu0 %v7181_v39  ;;  %v9044_v39 = vld [vmem:[#allocation123_spill] sm:$0xff] }
 0x902   :  { %2854 = vmatpush1.msra.mxu0 %v7185_v23  ;;  %v9045_v23 = vld [vmem:[#allocation74_spill] sm:$0xff] }
 0x903   :  { %2855 = vmatprep.subr.mxu0 %v7189_v37  ;;  %v9046_v37 = vld [vmem:[#allocation76_spill] sm:$0xff] }
 0x904   :  { %2856 = vmatpush1.msra.mxu0 %v7193_v35  ;;  %v9047_v35 = vld [vmem:[#allocation78_spill] sm:$0xff] }
 0x905   :  { %2857 = vmatprep.subr.mxu0 %v7197_v33  ;;  %v9048_v33 = vld [vmem:[#allocation24_spill] sm:$0xff] }
 0x906   :  { %2858 = vmatpush1.msra.mxu0 %v7201_v61  ;;  %v9049_v61 = vld [vmem:[#allocation31_spill] sm:$0xff] }
 0x907   :  { %2859 = vmatprep.subr.mxu0 %v7205_v47  ;;  %v9050_v47 = vld [vmem:[#allocation34_spill] sm:$0xff] }
 0x908   :  { %2860 = vmatpush1.msra.mxu0 %v7209_v20 }
 0x909   :  { %2861 = vmatprep.subr.mxu0 %v7213_v5  ;;  %v9051_v5 = vld [vmem:[#allocation44_spill] sm:$0xff] }
 0x90a   :  { %2862 = vmatpush1.msra.mxu0 %v7217_v52 }
 0x90b   :  { %2863 = vmatprep.subr.mxu0 %v7221_v3 }
 0x90c   :  { %2864 = vmatpush1.msra.mxu0 %v7225_v34  ;;  %v9052_v34 = vld [vmem:[#allocation28_spill] sm:$0xff] }
 0x90d   :  { %2865 = vmatprep.subr.mxu0 %v7229_v45 }
 0x90e   :  { %2866 = vmatpush2.msra.mxu0 %v7233_v32 }
 0x90f   :  { %2867 = vmatprep.subr.mxu0 %v7237_v16 }
 0x910   :  { %2868 = vmatpush2.msra.mxu0 %v7241_v44  ;;  %v9053_v44 = vld [vmem:[#allocation35_spill] sm:$0xff] }
 0x911   :  { %2869 = vmatprep.subr.mxu0 %v7245_v36 }
 0x912   :  { %2870 = vmatpush2.msra.mxu0 %v9024_v50 }
 0x913   :  { %2871 = vmatprep.subr.mxu0 %v9025_v30 }
 0x914   :  { %2872 = vmatpush2.msra.mxu0 %v9026_v56 }
 0x915   :  { %2873 = vmatprep.subr.mxu0 %v9027_v60 }
 0x916   :  { %2874 = vmatpush2.msra.mxu0 %v9028_v28 }
 0x917   :  { %2875 = vmatprep.subr.mxu0 %v9029_v1 }
 0x918   :  { %2876 = vmatpush2.msra.mxu0 %v9030_v26 }
 0x919   :  { %2877 = vmatprep.subr.mxu0 %v9031_v59 }
 0x91a   :  { %2878 = vmatpush2.msra.mxu0 %v9032_v41  ;;  %v9057_v41 = vld [vmem:[#allocation51_spill] sm:$0xff] }
 0x91b   :  { %2879 = vmatprep.subr.mxu0 %v9033_v12  ;;  %v522_v14 = vadd.f32 %v9057_v41, %v4950_v43 }
 0x91c   :  { %2880 = vmatpush2.msra.mxu0 %v9034_v10 }
 0x91d   :  { %2881 = vmatprep.subr.mxu0 %v9035_v19 }
 0x91e   :  { %2882 = vmatpush2.msra.mxu0 %v9036_v24 }
 0x91f   :  { %2883 = vmatprep.subr.mxu0 %v9037_v0 }
 0x920   :  { %2884 = vmatpush2.msra.mxu0 %v9038_v7  ;;  %v9058_v7 = vld [vmem:[#allocation46_spill] sm:$0xff] }
 0x921   :  { %2885 = vmatprep.subr.mxu0 %v9039_v9  ;;  %v524_v9 = vadd.f32 %v9058_v7, %v4960_v25 }
 0x922   :  { %2886 = vmatpush2.msra.mxu0 %v9040_v15 }
 0x923   :  { %2887 = vmatprep.subr.mxu0 %v9041_v51 }
 0x924   :  { %2888 = vmatpush2.msra.mxu0 %v9042_v22 }
 0x925   :  { %2889 = vmatprep.subr.mxu0 %v9043_v53 }
 0x926   :  { %2890 = vmatpush2.msra.mxu0 %v9044_v39 }
 0x927   :  { %2891 = vmatprep.subr.mxu0 %v9045_v23 }
 0x928   :  { %2892 = vmatpush2.msra.mxu0 %v9046_v37 }
 0x929   :  { %2893 = vmatprep.subr.mxu0 %v9047_v35 }
 0x92a   :  { %2894 = vmatpush2.msra.mxu0 %v9048_v33 }
 0x92b   :  { %2895 = vmatprep.subr.mxu0 %v9049_v61 }
 0x92c   :  { %2896 = vmatpush2.msra.mxu0 %v9050_v47 }
 0x92d   :  { %2898 = vmatmul.mubr.f32.vlgmr.msra.gmra.mxu0 %v7435_v46 }
 0x9ad   :  { %v2757_v20 = vpop.f32.mrf.mxu0  ;;  %v2828_v40 = vpop.f32.mrf.mxu1 }
 0x9ae   :  { %v2758_v52 = vadd.f32 %v2757_v20, %v9051_v5 }
 0x9af   :  { %v2759_v3 = vpop.f32.mrf.mxu0  ;;  %v2830_v21 = vpop.f32.mrf.mxu1 }
 0x9b0   :  { %v2910_v45 = vadd.f32 %v2758_v52, %v9052_v34  ;;  %v2760_v16 = vadd.f32 %v2759_v3, %v8506_v17  ;;  %v2831_v38 = vadd.f32 %v2830_v21, %v9054_v57  ;;  %v2829_v17 = vadd.f32 %v2828_v40, %v8381_v42 }
 0x9b2   :  { %v3020_v32 = vmul.f32 -1.442695, %v2910_v45  ;;  %v2917_v36 = vadd.f32 %v2760_v16, %v9053_v44  ;;  %v2931_v27 = vadd.f32 %v2831_v38, %v411_v62 }
 0x9b4   :  { %3178 = vpow2.f32 %v3020_v32  ;;  %v3021_v2 = vmul.f32 -1.442695, %v2917_v36  ;;  %v3022_v4 = vmul.f32 -1.442695, %v2931_v27 }
 0x9b6   :  { %3180 = vpow2.f32 %v3021_v2 }
 0x9c1   :  { %v3179_v8 = vpop.eup %3178 }
 0x9c2   :  { %v2914_v63 = vadd.f32 1.0, %v3179_v8 }
 0x9c3   :  { %v3181_v55 = vpop.eup %3180 }
 0x9c4   :  { %3182 = vrcp.f32 %v2914_v63  ;;  %v2921_v18 = vadd.f32 1.0, %v3181_v55 }
 0x9c5   :  { %3184 = vpow2.f32 %v3022_v4 }
 0x9c6   :  { %3186 = vrcp.f32 %v2921_v18 }
 0x9d1   :  { %v3183_v6 = vpop.eup %3182 }
 0x9d2   :  { %v2924_v48 = vmul.f32 %v3183_v6, %v2829_v17  ;;  %v3185_v30 = vpop.eup %3184 }
 0x9d3   :  { %v3187_v56 = vpop.eup %3186  ;;  %v2935_v60 = vadd.f32 1.0, %v3185_v30 }
 0x9d4   :  { %v2925_v50 = vadd.f32 %v2924_v48, %v451_v58  ;;  %v2927_v28 = vsub.f32 1.0, %v3187_v56  ;;  %v2929_v26 = vmul.f32 %v3187_v56, %v7435_v46 }
 0x9d6   :  { %3188 = vtanh.f32 %v2925_v50 }
 0x9d7   :  { %3190 = vrcp.f32 %v2935_v60 }
 0x9e3   :  { %v3189_v54 = vpop.eup %3188 }
 0x9e4   :  { %v2928_v1 = vmul.f32 %v3189_v54, %v2927_v28  ;;  %v3191_v0 = vpop.eup %3190 }
 0x9e6   :  { %v2930_v59 = vadd.f32 %v2929_v26, %v2928_v1 }
 0x9e8   :  { %2952 = vst [vmem:[#allocation12 + $0x70] sm:$0xff] %v2930_v59  ;;  %2954 = vst [vmem:[#allocation13] sm:$0xff] %v2930_v59 }
 0x9ed   :  { %v2899_v42 = vpop.f32.mrf.mxu0 }
 0x9ee   :  { %v2900_v12 = vadd.f32 %v2899_v42, %v4947_v11 }
 0x9ef   :  { %v2901_v10 = vpop.f32.mrf.mxu0 }
 0x9f0   :  { %v2938_v19 = vadd.f32 %v2900_v12, %v522_v14  ;;  %v2902_v24 = vadd.f32 %v2901_v10, %v4956_v29 }
 0x9f2   :  { %v3023_v15 = vmul.f32 -1.442695, %v2938_v19  ;;  %v2945_v46 = vmul.f32 %v3191_v0, %v2902_v24 }
 0x9f4   :  { %3192 = vpow2.f32 %v3023_v15  ;;  %v2946_v51 = vadd.f32 %v2945_v46, %v524_v9 }
 0xa01   :  { %v3193_v22 = vpop.eup %3192 }
 0xa02   :  { %v2942_v53 = vadd.f32 1.0, %v3193_v22 }
 0xa04   :  { %3194 = vrcp.f32 %v2942_v53 }
 0xa05   :  { %3196 = vtanh.f32 %v2946_v51 }
 0xa11   :  { %v3195_v39 = vpop.eup %3194 }
 0xa12   :  { %v2948_v43 = vsub.f32 1.0, %v3195_v39  ;;  %v3197_v11 = vpop.eup %3196  ;;  %v2950_v23 = vmul.f32 %v3195_v39, %v7445_v13 }
 0xa14   :  { %v2949_v29 = vmul.f32 %v3197_v11, %v2948_v43 }
 0xa16   :  { %v2951_v25 = vadd.f32 %v2950_v23, %v2949_v29 }
 0xa18   :  { %2953 = vst [vmem:[#allocation12 + $0x8] sm:$0xff] %v2951_v25  ;;  %2956 = vst [vmem:[#allocation13 + $0x8] sm:$0xff] %v2951_v25 }
 0xa19   :  { %3885 = shalt.err (!%p3882_p1)
}
 0xa1a   :  { %s3936_s10 = smov 256   ;;  %s3937_s11 = smov 16  }
 0xa1b   :  { %2968 = dma.vmem_to_hbm [thread:$0]  %s2963_s29, 2048, %s7550_s6, [#allocation5], %s3936_s10, %s3936_s10, %s3937_s11  }
 0xa1c   :  { %s3894_s14 = scalar_lea.vmem %s2975_s8, 256  ;;  %p3899_p3 = scmp.lt.s32.totalorder %s2975_s8, %s2975_s8 }
 0xa1d   :  { %p3895_p2 = scmp.ne.s32.totalorder %s2975_s8, %s3894_s14  ;;  %p3900_p4 = scmp.lt.s32.totalorder %s3894_s14, %s3894_s14 }
 0xa1f   :  { %p3901_p5 = por %p3900_p4, %p3899_p3 }
 0xa21   :  { %p3902_p6 = pnand %p3901_p5, %p3895_p2 }
 0xa23   :  { %3905 = shalt.err (!%p3902_p6)
}
 0xa24   :  { %2980 = dma.vmem_to_hbm [thread:$0]  %s2975_s8, 256, %s7551_s7, [#allocation14], %s3925_s27, %s3925_s27, %s3926_s28  }
 0xa25   :  { %3920 = dma.done.wait [#allocation5], 2048  }
 0xa26   :  { %3921 = vsyncadd [#allocation5], 4294965248 }
 0xa27   :  { %3922 = dma.done.wait [#allocation14], 256  }
 0xa28   :  { %3923 = vsyncadd [#allocation14], 4294967040 }
 0xa29   :  { %2987 = vsyncpa [#allocation4], 1 }
 0xa2a   :  { %2988 = vsyncpa [#allocation7], 1 }
 0xa2b   :  { %2989 = vsyncpa [#allocation10], 1 }
 0xa2c   :  { %2990 = vsyncpa [#allocation5], 1 }
 0xa2d   :  { %2991 = vsyncpa [#allocation14], 1 }

</bundles_post_ra>
